<compile_context>
chip_gen: v7x
topology: tpu7x:2x2x1
jax: 0.10.0
libtpu: 0.0.40
codegen_flags: <defaults>
</compile_context>

<pallas_src>
import numpy as np

import jax
import jax.numpy as jnp
from jax.experimental import pallas as pl
from jax.experimental.pallas import tpu as pltpu

# ---- shapes forced by the module -------------------------------------------------
C = 256                    # channels entering avgpool
H_IN = 15                  # spatial size of the feature map feeding avgpool
W_IN = 15
SP = H_IN * W_IN           # 225
POOL = 6                   # AdaptiveAvgPool2d((6, 6))
NPOOL = POOL * POOL        # 36
FEAT = C * NPOOL           # 9216  (== classifier[1].in_features in the spec)

# ---- classifier widths ------------------------------------------------------------
H1 = 1024                  # TODO(synk): spec uses 9216 (reduced for the small demo)
H2 = 512                   # spec
NUM_CLASSES = 3            # spec
NC_PAD = 128               # lane-dense padding of the tiny class dim (sliced off outside)

# ---- tiling -----------------------------------------------------------------------
TK_STREAM = 1152           # K tile of Linear-1 when w1 is streamed (FEAT / 1152 = 8 steps)
BATCH_GRAIN = 16           # batch-tile granularity (bf16 feat rows: sublane multiple of 16)
assert FEAT % TK_STREAM == 0


def _round_up(x, m):
    return ((x + m - 1) // m) * m


def _bin(i, in_size, out_size):
    """PyTorch AdaptiveAvgPool bin: [floor(i*I/O), ceil((i+1)*I/O))."""
    start = (i * in_size) // out_size
    end = -((-(i + 1) * in_size) // out_size)
    return start, end


def _make_pool_matrix_t():
    """(225, 36) averaging matrix: pooled[., p] = sum_s x[., s] * M[s, p]."""
    m = np.zeros((SP, NPOOL), np.float32)
    for ho in range(POOL):
        hs, he = _bin(ho, H_IN, POOL)
        for wo in range(POOL):
            ws, we = _bin(wo, W_IN, POOL)
            inv = 1.0 / float((he - hs) * (we - ws))
            for h in range(hs, he):
                for w in range(ws, we):
                    m[h * W_IN + w, ho * POOL + wo] = inv
    return m


_POOL_MATRIX_T = _make_pool_matrix_t()


def _tpu_vmem_capacity():
    try:
        return int(pltpu.get_tpu_info().vmem_capacity_bytes)
    except Exception:
        return 64 * 1024 * 1024          # conservative default (v7x per-core figure)


def _vmem_budget(cap):
    # Leave half the per-core VMEM for the compiler / pipelining, cap at 64 MiB.
    return int(min(cap // 2, 64 * 1024 * 1024))


def _choose_batch_tile(B, cap):
    """Batch tile: multiple of 16, divides padded batch, prefers >= 2 tiles (v7x dual-TC)."""
    max_bt = 32 if cap <= 64 * 1024 * 1024 else 64
    b_pad = _round_up(max(B, 1), BATCH_GRAIN)
    cands = [d for d in range(BATCH_GRAIN, min(max_bt, b_pad) + 1, BATCH_GRAIN)
             if b_pad % d == 0]
    two_tile = [d for d in cands if b_pad // d >= 2]
    bt = max(two_tile) if two_tile else max(cands)
    return bt, b_pad


# ================================= kernels =========================================
def pool_kernel(x_ref, pt_ref, o_ref):
    # x_ref : (BT*C, 225) f32  -- rows are (b*C + c), channels-first, spatial flattened
    # pt_ref: (225, 36)   f32  -- constant adaptive-avg-pool averaging matrix
    # o_ref : (BT*C, 36)  bf16 -- rows (b*C + c), cols (ho*6 + wo); bf16 halves writeback
    # (the pool matmul is ~1% of the Linear-1 FLOPs, so its f32 operands are negligible)
    o_ref[...] = jnp.dot(
        x_ref[...], pt_ref[...], preferred_element_type=jnp.float32
    ).astype(o_ref.dtype)


def mlp_kernel(x_ref, w1_ref, b1_ref, w2_ref, b2_ref, w3_ref, b3_ref, o_ref, acc_ref):
    # grid = (batch_tiles, k_tiles); k tiles FEAT for Linear-1 (k_tiles == 1 when w1 is
    # VMEM-resident).  x_ref (BT, TK) bf16; w1/w2/w3 bf16; biases f32; acc f32 scratch.
    k = pl.program_id(1)

    @pl.when(k == 0)
    def _():
        acc_ref[...] = jnp.zeros_like(acc_ref)

    # Linear 1: bf16 x bf16 on the MXU, f32 accumulation.
    acc_ref[...] += jnp.dot(
        x_ref[...], w1_ref[...], preferred_element_type=jnp.float32
    )

    @pl.when(k == pl.num_programs(1) - 1)
    def _():
        acc_ref[...] += b1_ref[...]                       # in-place bias add (no f32 temp)
        h1 = acc_ref[...].astype(jnp.bfloat16)            # no ReLU per spec
        h2 = jnp.dot(h1, w2_ref[...],
                     preferred_element_type=jnp.float32) + b2_ref[...]
        logits = jnp.dot(h2.astype(jnp.bfloat16), w3_ref[...],
                         preferred_element_type=jnp.float32) + b3_ref[...]
        o_ref[...] = logits.astype(o_ref.dtype)


# ================================= wrapper =========================================
def alexnet_head_forward(x, kernel_params):
    """avgpool(6,6) -> flatten -> Linear -> Linear -> Linear on a (B,256,15,15) map."""
    w1, b1, w2, b2, w3, b3 = kernel_params

    x = x.reshape(-1, C, H_IN, W_IN)                  # NCHW, as in the PyTorch forward
    B = x.shape[0]
    cap = _tpu_vmem_capacity()
    vmem = _vmem_budget(cap)
    BT, B_pad = _choose_batch_tile(B, cap)
    n_b = B_pad // BT

    # Channels-first flatten of the spatial dims: pure reshape, no transpose needed.
    x_r = x.reshape(B, C, SP)
    if B_pad != B:
        # Only pads to the 16-row batch granularity (no pad when B % 16 == 0).
        x_r = jnp.pad(x_r, ((0, B_pad - B), (0, 0), (0, 0)))
    x_flat = x_r.reshape(B_pad * C, SP)               # (B_pad*256, 225)

    # ---- adaptive avg-pool as a single MXU matmul per batch tile -----------------
    pooled = pl.pallas_call(
        pool_kernel,
        out_shape=jax.ShapeDtypeStruct((B_pad * C, NPOOL), jnp.bfloat16),
        grid=(n_b,),
        in_specs=[
            pl.BlockSpec((BT * C, SP), lambda b: (b, 0)),
            pl.BlockSpec((SP, NPOOL), lambda b: (0, 0)),
        ],
        out_specs=pl.BlockSpec((BT * C, NPOOL), lambda b: (b, 0)),
        compiler_params=pltpu.CompilerParams(
            dimension_semantics=("parallel",),
            vmem_limit_bytes=vmem,
        ),
    )(x_flat, jnp.asarray(_POOL_MATRIX_T))

    # (b*C + c, ho*6 + wo) -> (b, c*36 + ho*6 + wo): identical to torch.flatten order.
    # This HBM reshape is the relayout that makes the classifier LHS lane-dense; it is a
    # pure metadata op (no data movement).
    feat = pooled.reshape(B_pad, FEAT)

    # ---- classifier: resident-w1 when it fits VMEM, else K-streamed --------------
    def _est_vmem_bytes(tk):
        b = 2 * BT * tk * 2                          # feat blocks (bf16, double-buffered)
        b += 2 * tk * H1 * 2                         # w1 blocks
        b += 2 * H1 * H2 * 2 + 2 * H2 * NC_PAD * 2   # w2, w3
        b += 2 * (H1 + H2 + NC_PAD) * 4              # biases
        b += 2 * BT * NC_PAD * 4                     # output blocks
        b += BT * H1 * 4                             # f32 accumulator scratch
        return b

    # Resident w1 (single K block, fetched once for the whole grid) on 128-MiB-VMEM parts;
    # K-streamed (double-buffered 1152-wide tiles) otherwise.
    TK = FEAT if _est_vmem_bytes(FEAT) <= vmem else TK_STREAM
    n_k = FEAT // TK
    # TODO(synk): in the streamed case with n_b > 1, w1 is re-streamed from HBM per batch
    # tile; acceptable at 18.9 MiB but must be restructured before scaling H1 to 9216.

    out = pl.pallas_call(
        mlp_kernel,
        out_shape=jax.ShapeDtypeStruct((B_pad, NC_PAD), jnp.float32),
        grid=(n_b, n_k),
        in_specs=[
            pl.BlockSpec((BT, TK), lambda b, k: (b, k)),        # feat (bf16)
            pl.BlockSpec((TK, H1), lambda b, k: (k, 0)),        # w1 (resident or streamed)
            pl.BlockSpec((1, H1), lambda b, k: (0, 0)),         # b1
            pl.BlockSpec((H1, H2), lambda b, k: (0, 0)),        # w2 (resident)
            pl.BlockSpec((1, H2), lambda b, k: (0, 0)),         # b2
            pl.BlockSpec((H2, NC_PAD), lambda b, k: (0, 0)),    # w3 (lane-padded)
            pl.BlockSpec((1, NC_PAD), lambda b, k: (0, 0)),     # b3
        ],
        out_specs=pl.BlockSpec((BT, NC_PAD), lambda b, k: (b, 0)),
        scratch_shapes=[pltpu.VMEM((BT, H1), jnp.float32)],
        compiler_params=pltpu.CompilerParams(
            dimension_semantics=("parallel", "arbitrary"),
            vmem_limit_bytes=vmem,
        ),
    )(feat, w1, b1, w2, b2, w3, b3)

    return out[:B, :NUM_CLASSES]


# ========================= params / reference / main ===============================
def init_torch_convention_params(key):
    """Weights in PyTorch nn.Linear convention: W (out, in), y = x @ W.T + b."""
    k1, k2, k3, k4, k5, k6 = jax.random.split(key, 6)
    s = 0.02
    W1 = jax.random.normal(k1, (H1, FEAT), jnp.float32) * s
    b1 = jax.random.normal(k2, (H1,), jnp.float32) * s
    W2 = jax.random.normal(k3, (H2, H1), jnp.float32) * s
    b2 = jax.random.normal(k4, (H2,), jnp.float32) * s
    W3 = jax.random.normal(k5, (NUM_CLASSES, H2), jnp.float32) * s
    b3 = jax.random.normal(k6, (NUM_CLASSES,), jnp.float32) * s
    return W1, b1, W2, b2, W3, b3


def to_kernel_params(torch_params):
    W1, b1, W2, b2, W3, b3 = torch_params
    # Weights transposed to (in, out) and stored in bf16; biases stay f32.
    w1 = W1.T.astype(jnp.bfloat16)                         # (FEAT, H1)
    w2 = W2.T.astype(jnp.bfloat16)                         # (H1, H2)
    w3 = jnp.pad(W3.T, ((0, 0), (0, NC_PAD - NUM_CLASSES))).astype(jnp.bfloat16)
    b3p = jnp.pad(b3.reshape(1, -1), ((0, 0), (0, NC_PAD - NUM_CLASSES)))
    return (w1, b1.reshape(1, H1), w2, b2.reshape(1, H2), w3, b3p)


def reference_forward(x, torch_params):
    """Pure-JAX f32 reference mirroring the PyTorch head (NCHW)."""
    W1, b1, W2, b2, W3, b3 = torch_params
    x = x.reshape(-1, C, H_IN, W_IN)
    B = x.shape[0]
    rows = []
    for ho in range(POOL):
        hs, he = _bin(ho, H_IN, POOL)
        cols = []
        for wo in range(POOL):
            ws, we = _bin(wo, W_IN, POOL)
            cols.append(jnp.mean(x[:, :, hs:he, ws:we], axis=(2, 3)))
        rows.append(jnp.stack(cols, axis=-1))
    pooled = jnp.stack(rows, axis=-2)                      # (B, C, 6, 6)
    feat = pooled.reshape(B, FEAT)
    h = feat @ W1.T + b1                                   # no activations (per spec)
    h = h @ W2.T + b2
    return h @ W3.T + b3


if __name__ == "__main__":
    key = jax.random.PRNGKey(0)
    kx, kp = jax.random.split(key)

    B = 32                                                  # -> 2 batch tiles of 16 rows
    x = jax.random.normal(kx, (B, C, H_IN, W_IN), jnp.float32)   # NCHW feature map

    torch_params = init_torch_convention_params(kp)
    kernel_params = to_kernel_params(torch_params)

    out = alexnet_head_forward(x, kernel_params)
    out = jax.block_until_ready(out)

    ref = reference_forward(x, torch_params)
    assert out.shape == (B, NUM_CLASSES), out.shape
    # bf16 feat + bf16 weights -> loosened tolerance (reference is pure f32).
    err = float(jnp.max(jnp.abs(out - ref)))
    assert jnp.allclose(out, ref, rtol=3e-2, atol=1.5e-2), err

    print("KERNEL_OK")
</pallas_src>

<mosaic_0001>
module attributes {stable_mosaic.version = 11 : i64} {
  func.func @pool_kernel(%arg0: i32, %arg1: memref<4096x225xf32, #tpu.memory_space<vmem>>, %arg2: memref<225x36xf32, #tpu.memory_space<vmem>>, %arg3: memref<4096x36xbf16, #tpu.memory_space<vmem>>) attributes {dimension_semantics = [#tpu.dimension_semantics<parallel>], iteration_bounds = array<i64: 2>, scalar_prefetch = 0 : i64, scratch_operands = 0 : i64, tpu.core_type = #tpu.core_type<tc>, window_params = [{transform_indices = @transform_0, window_bounds = array<i64: 4096, 225>}, {pipeline_mode = #tpu.pipeline_mode<synchronous>, transform_indices = @transform_1, window_bounds = array<i64: 225, 36>}, {transform_indices = @transform_2, window_bounds = array<i64: 4096, 36>}]} {
    %c0 = arith.constant 0 : index
    %c0_0 = arith.constant 0 : index
    %0 = vector.load %arg1[%c0, %c0_0] : memref<4096x225xf32, #tpu.memory_space<vmem>>, vector<4096x225xf32>
    %c0_1 = arith.constant 0 : index
    %c0_2 = arith.constant 0 : index
    %1 = vector.load %arg2[%c0_1, %c0_2] : memref<225x36xf32, #tpu.memory_space<vmem>>, vector<225x36xf32>
    %cst = arith.constant dense<0.000000e+00> : vector<4096x36xf32>
    %2 = tpu.matmul %0, %1, %cst {dimension_numbers = #tpu.dot_dimension_numbers<[1], [0], [0], [1], [0, 0, 1, 1], [], []>} : vector<4096x225xf32>, vector<225x36xf32>, vector<4096x36xf32> -> vector<4096x36xf32>
    %3 = arith.truncf %2 : vector<4096x36xf32> to vector<4096x36xbf16>
    %c0_3 = arith.constant 0 : index
    %c0_4 = arith.constant 0 : index
    %4 = vector.load %arg3[%c0_3, %c0_4] : memref<4096x36xbf16, #tpu.memory_space<vmem>>, vector<4096x36xbf16>
    tpu.vector_store %arg3[%c0_3, %c0_4], %3 {strides = array<i32>} : memref<4096x36xbf16, #tpu.memory_space<vmem>>, vector<4096x36xbf16>,
    return
  }
  func.func @transform_0(%arg0: i32) -> (i32, i32) {
    %c0_i32 = arith.constant 0 : i32
    %c0_i32_0 = arith.constant 0 : i32
    return %arg0, %c0_i32 : i32, i32
  }
  func.func @transform_1(%arg0: i32) -> (i32, i32) {
    %c0_i32 = arith.constant 0 : i32
    %c0_i32_0 = arith.constant 0 : i32
    %c0_i32_1 = arith.constant 0 : i32
    return %c0_i32, %c0_i32_0 : i32, i32
  }
  func.func @transform_2(%arg0: i32) -> (i32, i32) {
    %c0_i32 = arith.constant 0 : i32
    %c0_i32_0 = arith.constant 0 : i32
    return %arg0, %c0_i32 : i32, i32
  }
}

</mosaic_0001>

<bundles_post_ra>
// kernel: tpu_custom_call.1
= control target key start
LH: loop header
LB: loop body
LE: loop exit
PB: predicated region body
PF: predicated region fallthrough
CT: control target
= control target key end

     0   :  { %s9643_s9 = smov 0   ;;  %s12343_s0 = inlined_call_operand.vmem [shape: f32[8192,225], index: 0, kind: input, shape index: {}]   ;;  %s12344_s1 = inlined_call_operand.vmem [shape: f32[225,36], index: 1, kind: input, shape index: {}]   ;;  %s12345_s2 = inlined_call_operand.vmem [shape: bf16[8192,36], index: 2, kind: output, shape index: {}]  }
   0x1 LB: > { %s7986_s10 = sadd.s32 4294967295, %s9624_s9   ;;  %p7990_p0 = scmp.ge.s32.totalorder %s9624_s9, 1  ;;  %s9624_s9 = sphi %s9643_s9, %s12_s9  }
   0x2   : > { %p114_p1 = scmp.lt.s32.totalorder %s9624_s9, 3 }
   0x4   : > { %p115_p2 = pnand %p7990_p0, %p114_p1 }
   0x5   : > { %v1174_v0 = vld [vmem:[%s12344_s1] sm:$0xff] (!%p115_p2)  ;;  %v1175_v1 = vld [vmem:[%s12344_s1 + $0x8] sm:$0xff] (!%p115_p2)  ;;  %v1176_v2 = vld [vmem:[%s12344_s1 + $0x10] sm:$0xff] (!%p115_p2)  ;;  %v9626_v3 = vmov (!%p115_p2), 0.0|0.0   ;;  %s7991_s19 = sshll.u32 (!%p115_p2), %s7986_s10, 9  ;;  %vm1203_vm0 = vcmask (!%p115_p2), 793600  }
   0x6   : > { %118 = sbr.rel (%p115_p2) target bundleno = 1300 (0x514), region = 28  ;;  %9536 = vmatprep.subr.bf16.mxu0 (!%p115_p2), %v9626_v3  ;;  %9578 = vmatprep.subr.bf16.mxu1 (!%p115_p2), %v9626_v3  ;;  %v9537_v4 = vpack.c.bf16 (!%p115_p2), %v1175_v1, %v1174_v0  ;;  %v1177_v5 = vld [vmem:[%s12344_s1 + $0x18] sm:$0xff] (!%p115_p2)  ;;  %p138_p3 = scmp.lt.s32.totalorder (!%p115_p2), %s7991_s19, 1023  ;;  %v1178_v7 = vld [vmem:[%s12344_s1 + $0x20] sm:$0xff] (!%p115_p2)  ;;  %v1179_v8 = vld [vmem:[%s12344_s1 + $0x28] sm:$0xff] (!%p115_p2)  ;;  %v9627_v45 = vmov (!%p115_p2), 0.0  }
   0x7   : > { %v9540_v6 = vpack.c.bf16 (!%p115_p2), %v1177_v5, %v1176_v2  ;;  %v9543_v9 = vpack.c.bf16 (!%p115_p2), %v1179_v8, %v1178_v7  ;;  %v1180_v10 = vld [vmem:[%s12344_s1 + $0x30] sm:$0xff] (!%p115_p2)  ;;  %v1181_v11 = vld [vmem:[%s12344_s1 + $0x38] sm:$0xff] (!%p115_p2)  ;;  %v1182_v15 = vld [vmem:[%s12344_s1 + $0x40] sm:$0xff] (!%p115_p2)  ;;  %vm2740_vm1 = vcmask (!%p115_p2), 1040384   ;;  %vm7417_vm2 = vcmask (!%p115_p2), 289792  }
   0x8   : > { %9538 = vmatpush1.bf16.msra.mxu0 (!%p115_p2), %v9537_v4  ;;  %9593 = vmatpush1.bf16.msra.mxu1 (!%p115_p2), %v9537_v4  ;;  %v9546_v14 = vpack.c.bf16 (!%p115_p2), %v1181_v11, %v1180_v10  ;;  %v1183_v16 = vld [vmem:[%s12344_s1 + $0x48] sm:$0xff] (!%p115_p2)  ;;  %v1184_v18 = vld [vmem:[%s12344_s1 + $0x50] sm:$0xff] (!%p115_p2)  ;;  %v1185_v19 = vld [vmem:[%s12344_s1 + $0x58] sm:$0xff] (!%p115_p2) }
   0x9   : > { %9539 = vmatprep.subr.bf16.mxu0 (!%p115_p2), %v9626_v3  ;;  %9579 = vmatprep.subr.bf16.mxu1 (!%p115_p2), %v9626_v3  ;;  %v9549_v17 = vpack.c.bf16 (!%p115_p2), %v1183_v16, %v1182_v15  ;;  %v9552_v20 = vpack.c.bf16 (!%p115_p2), %v1185_v19, %v1184_v18  ;;  %v1186_v21 = vld [vmem:[%s12344_s1 + $0x60] sm:$0xff] (!%p115_p2)  ;;  %v1187_v22 = vld [vmem:[%s12344_s1 + $0x68] sm:$0xff] (!%p115_p2)  ;;  %v1188_v24 = vld [vmem:[%s12344_s1 + $0x70] sm:$0xff] (!%p115_p2) }
   0xa   : > { %v9555_v23 = vpack.c.bf16 (!%p115_p2), %v1187_v22, %v1186_v21  ;;  %v1189_v25 = vld [vmem:[%s12344_s1 + $0x78] sm:$0xff] (!%p115_p2)  ;;  %v1190_v27 = vld [vmem:[%s12344_s1 + $0x80] sm:$0xff] (!%p115_p2)  ;;  %v1191_v28 = vld [vmem:[%s12344_s1 + $0x88] sm:$0xff] (!%p115_p2) }
   0xb   : > { %v9558_v26 = vpack.c.bf16 (!%p115_p2), %v1189_v25, %v1188_v24  ;;  %v9561_v29 = vpack.c.bf16 (!%p115_p2), %v1191_v28, %v1190_v27  ;;  %v1192_v30 = vld [vmem:[%s12344_s1 + $0x90] sm:$0xff] (!%p115_p2)  ;;  %v1193_v31 = vld [vmem:[%s12344_s1 + $0x98] sm:$0xff] (!%p115_p2)  ;;  %v1194_v33 = vld [vmem:[%s12344_s1 + $0xa0] sm:$0xff] (!%p115_p2) }
   0xc   : > { %9541 = vmatpush1.bf16.msra.mxu0 (!%p115_p2), %v9540_v6  ;;  %9594 = vmatpush1.bf16.msra.mxu1 (!%p115_p2), %v9540_v6  ;;  %v9564_v32 = vpack.c.bf16 (!%p115_p2), %v1193_v31, %v1192_v30  ;;  %v1195_v34 = vld [vmem:[%s12344_s1 + $0xa8] sm:$0xff] (!%p115_p2)  ;;  %v1196_v36 = vld [vmem:[%s12344_s1 + $0xb0] sm:$0xff] (!%p115_p2)  ;;  %v1197_v37 = vld [vmem:[%s12344_s1 + $0xb8] sm:$0xff] (!%p115_p2) }
   0xd   : > { %s12347_s19 = smov (!%p138_p3, %s7991_s19), 1023  ;;  %9542 = vmatprep.subr.bf16.mxu0 %v9626_v3  ;;  %9580 = vmatprep.subr.bf16.mxu1 %v9626_v3  ;;  %v9567_v35 = vpack.c.bf16 %v1195_v34, %v1194_v33  ;;  %v9570_v38 = vpack.c.bf16 %v1197_v37, %v1196_v36  ;;  %v1198_v39 = vld [vmem:[%s12344_s1 + $0xc0] sm:$0xff]  ;;  %v1199_v40 = vld [vmem:[%s12344_s1 + $0xc8] sm:$0xff]  ;;  %v1200_v42 = vld [vmem:[%s12344_s1 + $0xd0] sm:$0xff] }
   0xe   : > { %s9023_s24 = sshll.u32 %s12347_s19, 4  ;;  %v9573_v41 = vpack.c.bf16 %v1199_v40, %v1198_v39  ;;  %v1201_v43 = vld [vmem:[%s12344_s1 + $0xd8] sm:$0xff]  ;;  %v1202_v46 = vld [vmem:[%s12344_s1 + $0xe0] sm:$0x1]  ;;  %s7995_s23 = sshll.u32 %s12347_s19, 2 }
   0xf   : > { %s9679_s27 = scalar_lea.vmem %s12343_s0, %s9023_s24  ;;  %v9576_v44 = vpack.c.bf16 %v1201_v43, %v1200_v42  ;;  %s10104_s26 = scalar_lea.vmem %s12345_s2, %s7995_s23 }
  0x10   : > { %v151_v12 = vld [vmem:[%s9679_s27 + $0x8] sm:$0xff]  ;;  %9544 = vmatpush1.bf16.msra.mxu0 %v9543_v9  ;;  %9595 = vmatpush1.bf16.msra.mxu1 %v9543_v9  ;;  %v150_v47 = vld [vmem:[%s9679_s27] sm:$0xff]  ;;  %v153_v49 = vld [vmem:[%s9679_s27 + $0x18] sm:$0xff] }
  0x11   : > { %7997 = vmatprep.mubr.msk.f32.mxu0 %vm1203_vm0, %v151_v12  ;;  %v663_v13 = vld [vmem:[%s9679_s27 + $0x1008] sm:$0xff]  ;;  %9545 = vmatprep.subr.bf16.mxu0 %v9626_v3  ;;  %v662_v48 = vld [vmem:[%s9679_s27 + $0x1000] sm:$0xff]  ;;  %v665_v50 = vld [vmem:[%s9679_s27 + $0x1018] sm:$0xff] }
  0x12   : > { %9581 = vmatprep.subr.bf16.mxu1 %v9626_v3  ;;  %8253 = vmatprep.mubr.msk.f32.mxu1 %vm1203_vm0, %v663_v13  ;;  %v152_v51 = vld [vmem:[%s9679_s27 + $0x10] sm:$0xff]  ;;  %v155_v53 = vld [vmem:[%s9679_s27 + $0x28] sm:$0xff]  ;;  %v154_v55 = vld [vmem:[%s9679_s27 + $0x20] sm:$0xff] }
  0x13   : > { %v664_v52 = vld [vmem:[%s9679_s27 + $0x1010] sm:$0xff]  ;;  %v667_v54 = vld [vmem:[%s9679_s27 + $0x1028] sm:$0xff]  ;;  %v666_v56 = vld [vmem:[%s9679_s27 + $0x1020] sm:$0xff] }
  0x14   : > { %9547 = vmatpush1.bf16.msra.mxu0 %v9546_v14  ;;  %9596 = vmatpush1.bf16.msra.mxu1 %v9546_v14  ;;  %v157_v57 = vld [vmem:[%s9679_s27 + $0x38] sm:$0xff]  ;;  %v156_v59 = vld [vmem:[%s9679_s27 + $0x30] sm:$0xff]  ;;  %v159_v61 = vld [vmem:[%s9679_s27 + $0x48] sm:$0xff] }
  0x15   : > { %9548 = vmatprep.subr.bf16.mxu0 %v9626_v3  ;;  %9582 = vmatprep.subr.bf16.mxu1 %v9626_v3  ;;  %v669_v58 = vld [vmem:[%s9679_s27 + $0x1038] sm:$0xff]  ;;  %v668_v60 = vld [vmem:[%s9679_s27 + $0x1030] sm:$0xff]  ;;  %v671_v62 = vld [vmem:[%s9679_s27 + $0x1048] sm:$0xff] }
  0x16   : > { %v158_v63 = vld [vmem:[%s9679_s27 + $0x40] sm:$0xff]  ;;  %v161_v1 = vld [vmem:[%s9679_s27 + $0x58] sm:$0xff]  ;;  %v672_v4 = vld [vmem:[%s9679_s27 + $0x1050] sm:$0xff] }
  0x17   : > { %v670_v0 = vld [vmem:[%s9679_s27 + $0x1040] sm:$0xff]  ;;  %v673_v2 = vld [vmem:[%s9679_s27 + $0x1058] sm:$0xff]  ;;  %v163_v5 = vld [vmem:[%s9679_s27 + $0x68] sm:$0xff] }
  0x18   : > { %9550 = vmatpush1.bf16.msra.mxu0 %v9549_v17  ;;  %9597 = vmatpush1.bf16.msra.mxu1 %v9549_v17  ;;  %v675_v6 = vld [vmem:[%s9679_s27 + $0x1068] sm:$0xff]  ;;  %v162_v7 = vld [vmem:[%s9679_s27 + $0x60] sm:$0xff]  ;;  %v165_v9 = vld [vmem:[%s9679_s27 + $0x78] sm:$0xff] }
  0x19   : > { %9551 = vmatprep.subr.bf16.mxu0 %v9626_v3  ;;  %9583 = vmatprep.subr.bf16.mxu1 %v9626_v3  ;;  %v674_v8 = vld [vmem:[%s9679_s27 + $0x1060] sm:$0xff]  ;;  %v677_v10 = vld [vmem:[%s9679_s27 + $0x1078] sm:$0xff]  ;;  %v164_v11 = vld [vmem:[%s9679_s27 + $0x70] sm:$0xff] }
  0x1a   : > { %v676_v12 = vld [vmem:[%s9679_s27 + $0x1070] sm:$0xff]  ;;  %v167_v13 = vld [vmem:[%s9679_s27 + $0x88] sm:$0xff]  ;;  %v166_v15 = vld [vmem:[%s9679_s27 + $0x80] sm:$0xff] }
  0x1b   : > { %v679_v14 = vld [vmem:[%s9679_s27 + $0x1088] sm:$0xff]  ;;  %v678_v16 = vld [vmem:[%s9679_s27 + $0x1080] sm:$0xff]  ;;  %v169_v17 = vld [vmem:[%s9679_s27 + $0x98] sm:$0xff] }
  0x1c   : > { %9553 = vmatpush1.bf16.msra.mxu0 %v9552_v20  ;;  %9598 = vmatpush1.bf16.msra.mxu1 %v9552_v20  ;;  %v681_v18 = vld [vmem:[%s9679_s27 + $0x1098] sm:$0xff]  ;;  %v168_v19 = vld [vmem:[%s9679_s27 + $0x90] sm:$0xff]  ;;  %v171_v21 = vld [vmem:[%s9679_s27 + $0xa8] sm:$0xff] }
  0x1d   : > { %9554 = vmatprep.subr.bf16.mxu0 %v9626_v3  ;;  %9584 = vmatprep.subr.bf16.mxu1 %v9626_v3  ;;  %v680_v20 = vld [vmem:[%s9679_s27 + $0x1090] sm:$0xff]  ;;  %v683_v22 = vld [vmem:[%s9679_s27 + $0x10a8] sm:$0xff]  ;;  %v682_v24 = vld [vmem:[%s9679_s27 + $0x10a0] sm:$0xff] }
  0x1e   : > { %v173_v25 = vld [vmem:[%s9679_s27 + $0xb8] sm:$0xff]  ;;  %v172_v27 = vld [vmem:[%s9679_s27 + $0xb0] sm:$0xff]  ;;  %v687_v30 = vld [vmem:[%s9679_s27 + $0x10c8] sm:$0xff] }
  0x1f   : > { %v684_v28 = vld [vmem:[%s9679_s27 + $0x10b0] sm:$0xff]  ;;  %v174_v31 = vld [vmem:[%s9679_s27 + $0xc0] sm:$0xff]  ;;  %v177_v33 = vld [vmem:[%s9679_s27 + $0xd8] sm:$0xff] }
  0x20   : > { %9556 = vmatpush1.bf16.msra.mxu0 %v9555_v23  ;;  %9599 = vmatpush1.bf16.msra.mxu1 %v9555_v23  ;;  %v170_v23 = vld [vmem:[%s9679_s27 + $0xa0] sm:$0xff]  ;;  %v689_v34 = vld [vmem:[%s9679_s27 + $0x10d8] sm:$0xff]  ;;  %v688_v36 = vld [vmem:[%s9679_s27 + $0x10d0] sm:$0xff] }
  0x21   : > { %9557 = vmatprep.subr.bf16.mxu0 %v9626_v3  ;;  %9585 = vmatprep.subr.bf16.mxu1 %v9626_v3  ;;  %v179_v37 = vld [vmem:[%s9679_s27 + $0xe8] sm:$0xff]  ;;  %v178_v39 = vld [vmem:[%s9679_s27 + $0xe0] sm:$0xff]  ;;  %v693_v42 = vld [vmem:[%s9679_s27 + $0x10f8] sm:$0xff] }
  0x22   : > { %v690_v40 = vld [vmem:[%s9679_s27 + $0x10e0] sm:$0xff]  ;;  %v180_v43 = vld [vmem:[%s9679_s27 + $0xf0] sm:$0xff] }
  0x24   : > { %9559 = vmatpush1.bf16.msra.mxu0 %v9558_v26  ;;  %9600 = vmatpush1.bf16.msra.mxu1 %v9558_v26  ;;  %v685_v26 = vld [vmem:[%s9679_s27 + $0x10b8] sm:$0xff] }
  0x25   : > { %9560 = vmatprep.subr.bf16.mxu0 %v9626_v3  ;;  %9586 = vmatprep.subr.bf16.mxu1 %v9626_v3 }
  0x28   : > { %9562 = vmatpush1.bf16.msra.mxu0 %v9561_v29  ;;  %9601 = vmatpush1.bf16.msra.mxu1 %v9561_v29  ;;  %v175_v29 = vld [vmem:[%s9679_s27 + $0xc8] sm:$0xff] }
  0x29   : > { %9563 = vmatprep.subr.bf16.mxu0 %v9626_v3  ;;  %9587 = vmatprep.subr.bf16.mxu1 %v9626_v3 }
  0x2c   : > { %9565 = vmatpush1.bf16.msra.mxu0 %v9564_v32  ;;  %9602 = vmatpush1.bf16.msra.mxu1 %v9564_v32  ;;  %v686_v32 = vld [vmem:[%s9679_s27 + $0x10c0] sm:$0xff] }
  0x2d   : > { %9566 = vmatprep.subr.bf16.mxu0 %v9626_v3  ;;  %9588 = vmatprep.subr.bf16.mxu1 %v9626_v3 }
  0x30   : > { %9568 = vmatpush1.bf16.msra.mxu0 %v9567_v35  ;;  %9603 = vmatpush1.bf16.msra.mxu1 %v9567_v35  ;;  %v176_v35 = vld [vmem:[%s9679_s27 + $0xd0] sm:$0xff] }
  0x31   : > { %9569 = vmatprep.subr.bf16.mxu0 %v9626_v3  ;;  %9589 = vmatprep.subr.bf16.mxu1 %v9626_v3 }
  0x34   : > { %9571 = vmatpush1.bf16.msra.mxu0 %v9570_v38  ;;  %9604 = vmatpush1.bf16.msra.mxu1 %v9570_v38  ;;  %v691_v38 = vld [vmem:[%s9679_s27 + $0x10e8] sm:$0xff] }
  0x35   : > { %9572 = vmatprep.subr.bf16.mxu0 %v9626_v3  ;;  %9590 = vmatprep.subr.bf16.mxu1 %v9626_v3 }
  0x38   : > { %9574 = vmatpush1.bf16.msra.mxu0 %v9573_v41  ;;  %9605 = vmatpush1.bf16.msra.mxu1 %v9573_v41  ;;  %v181_v41 = vld [vmem:[%s9679_s27 + $0xf8] sm:$0xff] }
  0x39   : > { %9575 = vmatprep.subr.bf16.mxu0 %v9626_v3  ;;  %9591 = vmatprep.subr.bf16.mxu1 %v9626_v3  ;;  %v160_v3 = vld [vmem:[%s9679_s27 + $0x50] sm:$0xff] }
  0x3c   : > { %9577 = vmatpush1.bf16.msra.mxu0 %v9576_v44  ;;  %9606 = vmatpush1.bf16.msra.mxu1 %v9576_v44  ;;  %v692_v44 = vld [vmem:[%s9679_s27 + $0x10f0] sm:$0xff] }
  0x3d   : > { %2800 = vmatprep.subr.mxu0 %v9627_v45  ;;  %9592 = vmatprep.subr.mxu1 %v9627_v45  ;;  %v183_v45 = vld [vmem:[%s9679_s27 + $0x108] sm:$0xff] }
  0x40   : > { %7996 = vmatpush1.msk.msra.mxu0 %vm2740_vm1, %v1202_v46  ;;  %9607 = vmatpush1.msk.msra.mxu1 %vm2740_vm1, %v1202_v46  ;;  %v695_v46 = vld [vmem:[%s9679_s27 + $0x1108] sm:$0xff] }
  0x41   : > { %2809 = vmatmul.mubr.f32.vlgmr.msra.gmra.mrb[0].mxu0 %v150_v47  ;;  %4089 = vmatmul.mubr.f32.vlgmr.msra.gmra.mrb[0].mxu1 %v662_v48  ;;  %v182_v47 = vld [vmem:[%s9679_s27 + $0x100] sm:$0xff] }
  0x42   : > { %7998 = vmatprep.mubr.msk.f32.mxu0 %vm1203_vm0, %v153_v49  ;;  %8254 = vmatprep.mubr.msk.f32.mxu1 %vm1203_vm0, %v665_v50  ;;  %v694_v48 = vld [vmem:[%s9679_s27 + $0x1100] sm:$0xff]  ;;  %v185_v49 = vld [vmem:[%s9679_s27 + $0x118] sm:$0xff] }
  0x43   : > { %v697_v50 = vld [vmem:[%s9679_s27 + $0x1118] sm:$0xff] }
  0x45   : > { %2814 = vmatmul.mubr.f32.gmra.mrb[2].mxu0 %v152_v51  ;;  %4094 = vmatmul.mubr.f32.gmra.mrb[2].mxu1 %v664_v52  ;;  %v184_v51 = vld [vmem:[%s9679_s27 + $0x110] sm:$0xff] }
  0x46   : > { %7999 = vmatprep.mubr.msk.f32.mxu0 %vm1203_vm0, %v155_v53  ;;  %8255 = vmatprep.mubr.msk.f32.mxu1 %vm1203_vm0, %v667_v54  ;;  %v696_v52 = vld [vmem:[%s9679_s27 + $0x1110] sm:$0xff]  ;;  %v187_v53 = vld [vmem:[%s9679_s27 + $0x128] sm:$0xff] }
  0x47   : > { %v699_v54 = vld [vmem:[%s9679_s27 + $0x1128] sm:$0xff] }
  0x49   : > { %2819 = vmatmul.mubr.f32.gmra.mrb[4].mxu0 %v154_v55  ;;  %4099 = vmatmul.mubr.f32.gmra.mrb[4].mxu1 %v666_v56  ;;  %v186_v55 = vld [vmem:[%s9679_s27 + $0x120] sm:$0xff] }
  0x4a   : > { %8000 = vmatprep.mubr.msk.f32.mxu0 %vm1203_vm0, %v157_v57  ;;  %8256 = vmatprep.mubr.msk.f32.mxu1 %vm1203_vm0, %v669_v58  ;;  %v698_v56 = vld [vmem:[%s9679_s27 + $0x1120] sm:$0xff]  ;;  %v189_v57 = vld [vmem:[%s9679_s27 + $0x138] sm:$0xff] }
  0x4b   : > { %v701_v58 = vld [vmem:[%s9679_s27 + $0x1138] sm:$0xff] }
  0x4d   : > { %2824 = vmatmul.mubr.f32.gmra.mrb[6].mxu0 %v156_v59  ;;  %4104 = vmatmul.mubr.f32.gmra.mrb[6].mxu1 %v668_v60  ;;  %v188_v59 = vld [vmem:[%s9679_s27 + $0x130] sm:$0xff] }
  0x4e   : > { %8001 = vmatprep.mubr.msk.f32.mxu0 %vm1203_vm0, %v159_v61  ;;  %8257 = vmatprep.mubr.msk.f32.mxu1 %vm1203_vm0, %v671_v62  ;;  %v700_v60 = vld [vmem:[%s9679_s27 + $0x1130] sm:$0xff]  ;;  %v191_v61 = vld [vmem:[%s9679_s27 + $0x148] sm:$0xff] }
  0x4f   : > { %v703_v62 = vld [vmem:[%s9679_s27 + $0x1148] sm:$0xff] }
  0x51   : > { %2829 = vmatmul.mubr.f32.gmra.mrb[8].mxu0 %v158_v63  ;;  %4109 = vmatmul.mubr.f32.gmra.mrb[8].mxu1 %v670_v0  ;;  %v190_v63 = vld [vmem:[%s9679_s27 + $0x140] sm:$0xff] }
  0x52   : > { %8002 = vmatprep.mubr.msk.f32.mxu0 %vm1203_vm0, %v161_v1  ;;  %8258 = vmatprep.mubr.msk.f32.mxu1 %vm1203_vm0, %v673_v2  ;;  %v702_v0 = vld [vmem:[%s9679_s27 + $0x1140] sm:$0xff]  ;;  %v193_v1 = vld [vmem:[%s9679_s27 + $0x158] sm:$0xff] }
  0x53   : > { %v705_v2 = vld [vmem:[%s9679_s27 + $0x1158] sm:$0xff] }
  0x55   : > { %2834 = vmatmul.mubr.f32.gmra.mrb[10].mxu0 %v160_v3  ;;  %4114 = vmatmul.mubr.f32.gmra.mrb[10].mxu1 %v672_v4  ;;  %v192_v3 = vld [vmem:[%s9679_s27 + $0x150] sm:$0xff] }
  0x56   : > { %8003 = vmatprep.mubr.msk.f32.mxu0 %vm1203_vm0, %v163_v5  ;;  %8259 = vmatprep.mubr.msk.f32.mxu1 %vm1203_vm0, %v675_v6  ;;  %v704_v4 = vld [vmem:[%s9679_s27 + $0x1150] sm:$0xff]  ;;  %v195_v5 = vld [vmem:[%s9679_s27 + $0x168] sm:$0xff] }
  0x57   : > { %v707_v6 = vld [vmem:[%s9679_s27 + $0x1168] sm:$0xff] }
  0x59   : > { %2839 = vmatmul.mubr.f32.gmra.mrb[12].mxu0 %v162_v7  ;;  %4119 = vmatmul.mubr.f32.gmra.mrb[12].mxu1 %v674_v8  ;;  %v194_v7 = vld [vmem:[%s9679_s27 + $0x160] sm:$0xff] }
  0x5a   : > { %8004 = vmatprep.mubr.msk.f32.mxu0 %vm1203_vm0, %v165_v9  ;;  %8260 = vmatprep.mubr.msk.f32.mxu1 %vm1203_vm0, %v677_v10  ;;  %v706_v8 = vld [vmem:[%s9679_s27 + $0x1160] sm:$0xff]  ;;  %v197_v9 = vld [vmem:[%s9679_s27 + $0x178] sm:$0xff] }
  0x5b   : > { %v709_v10 = vld [vmem:[%s9679_s27 + $0x1178] sm:$0xff] }
  0x5d   : > { %2844 = vmatmul.mubr.f32.gmra.mrb[14].mxu0 %v164_v11  ;;  %4124 = vmatmul.mubr.f32.gmra.mrb[14].mxu1 %v676_v12  ;;  %v196_v11 = vld [vmem:[%s9679_s27 + $0x170] sm:$0xff] }
  0x5e   : > { %8005 = vmatprep.mubr.msk.f32.mxu0 %vm1203_vm0, %v167_v13  ;;  %8261 = vmatprep.mubr.msk.f32.mxu1 %vm1203_vm0, %v679_v14  ;;  %v708_v12 = vld [vmem:[%s9679_s27 + $0x1170] sm:$0xff]  ;;  %v199_v13 = vld [vmem:[%s9679_s27 + $0x188] sm:$0xff] }
  0x5f   : > { %v711_v14 = vld [vmem:[%s9679_s27 + $0x1188] sm:$0xff] }
  0x61   : > { %2849 = vmatmul.mubr.f32.gmra.mrb[16].mxu0 %v166_v15  ;;  %4129 = vmatmul.mubr.f32.gmra.mrb[16].mxu1 %v678_v16  ;;  %v198_v15 = vld [vmem:[%s9679_s27 + $0x180] sm:$0xff] }
  0x62   : > { %8006 = vmatprep.mubr.msk.f32.mxu0 %vm1203_vm0, %v169_v17  ;;  %8262 = vmatprep.mubr.msk.f32.mxu1 %vm1203_vm0, %v681_v18  ;;  %v710_v16 = vld [vmem:[%s9679_s27 + $0x1180] sm:$0xff]  ;;  %v201_v17 = vld [vmem:[%s9679_s27 + $0x198] sm:$0xff] }
  0x63   : > { %v713_v18 = vld [vmem:[%s9679_s27 + $0x1198] sm:$0xff] }
  0x65   : > { %2854 = vmatmul.mubr.f32.gmra.mrb[18].mxu0 %v168_v19  ;;  %4134 = vmatmul.mubr.f32.gmra.mrb[18].mxu1 %v680_v20  ;;  %v200_v19 = vld [vmem:[%s9679_s27 + $0x190] sm:$0xff] }
  0x66   : > { %8007 = vmatprep.mubr.msk.f32.mxu0 %vm1203_vm0, %v171_v21  ;;  %8263 = vmatprep.mubr.msk.f32.mxu1 %vm1203_vm0, %v683_v22  ;;  %v712_v20 = vld [vmem:[%s9679_s27 + $0x1190] sm:$0xff]  ;;  %v203_v21 = vld [vmem:[%s9679_s27 + $0x1a8] sm:$0xff] }
  0x67   : > { %v715_v22 = vld [vmem:[%s9679_s27 + $0x11a8] sm:$0xff] }
  0x69   : > { %2859 = vmatmul.mubr.f32.gmra.mrb[20].mxu0 %v170_v23  ;;  %4139 = vmatmul.mubr.f32.gmra.mrb[20].mxu1 %v682_v24  ;;  %v202_v23 = vld [vmem:[%s9679_s27 + $0x1a0] sm:$0xff] }
  0x6a   : > { %8008 = vmatprep.mubr.msk.f32.mxu0 %vm1203_vm0, %v173_v25  ;;  %8264 = vmatprep.mubr.msk.f32.mxu1 %vm1203_vm0, %v685_v26  ;;  %v714_v24 = vld [vmem:[%s9679_s27 + $0x11a0] sm:$0xff]  ;;  %v205_v25 = vld [vmem:[%s9679_s27 + $0x1b8] sm:$0xff] }
  0x6b   : > { %v717_v26 = vld [vmem:[%s9679_s27 + $0x11b8] sm:$0xff] }
  0x6d   : > { %2864 = vmatmul.mubr.f32.gmra.mrb[22].mxu0 %v172_v27  ;;  %4144 = vmatmul.mubr.f32.gmra.mrb[22].mxu1 %v684_v28  ;;  %v204_v27 = vld [vmem:[%s9679_s27 + $0x1b0] sm:$0xff] }
  0x6e   : > { %8009 = vmatprep.mubr.msk.f32.mxu0 %vm1203_vm0, %v175_v29  ;;  %8265 = vmatprep.mubr.msk.f32.mxu1 %vm1203_vm0, %v687_v30  ;;  %v716_v28 = vld [vmem:[%s9679_s27 + $0x11b0] sm:$0xff]  ;;  %v207_v29 = vld [vmem:[%s9679_s27 + $0x1c8] sm:$0xff] }
  0x6f   : > { %v719_v30 = vld [vmem:[%s9679_s27 + $0x11c8] sm:$0xff] }
  0x71   : > { %2869 = vmatmul.mubr.f32.gmra.mrb[24].mxu0 %v174_v31  ;;  %4149 = vmatmul.mubr.f32.gmra.mrb[24].mxu1 %v686_v32  ;;  %v206_v31 = vld [vmem:[%s9679_s27 + $0x1c0] sm:$0xff] }
  0x72   : > { %8010 = vmatprep.mubr.msk.f32.mxu0 %vm1203_vm0, %v177_v33  ;;  %8266 = vmatprep.mubr.msk.f32.mxu1 %vm1203_vm0, %v689_v34  ;;  %v718_v32 = vld [vmem:[%s9679_s27 + $0x11c0] sm:$0xff]  ;;  %v209_v33 = vld [vmem:[%s9679_s27 + $0x1d8] sm:$0xff] }
  0x73   : > { %v721_v34 = vld [vmem:[%s9679_s27 + $0x11d8] sm:$0xff] }
  0x75   : > { %2874 = vmatmul.mubr.f32.gmra.mrb[26].mxu0 %v176_v35  ;;  %4154 = vmatmul.mubr.f32.gmra.mrb[26].mxu1 %v688_v36  ;;  %v208_v35 = vld [vmem:[%s9679_s27 + $0x1d0] sm:$0xff] }
  0x76   : > { %8011 = vmatprep.mubr.msk.f32.mxu0 %vm1203_vm0, %v179_v37  ;;  %8267 = vmatprep.mubr.msk.f32.mxu1 %vm1203_vm0, %v691_v38  ;;  %v720_v36 = vld [vmem:[%s9679_s27 + $0x11d0] sm:$0xff]  ;;  %v211_v37 = vld [vmem:[%s9679_s27 + $0x1e8] sm:$0xff] }
  0x77   : > { %v723_v38 = vld [vmem:[%s9679_s27 + $0x11e8] sm:$0xff] }
  0x79   : > { %2879 = vmatmul.mubr.f32.gmra.mrb[28].mxu0 %v178_v39  ;;  %4159 = vmatmul.mubr.f32.gmra.mrb[28].mxu1 %v690_v40  ;;  %v210_v39 = vld [vmem:[%s9679_s27 + $0x1e0] sm:$0xff] }
  0x7a   : > { %8012 = vmatprep.mubr.msk.f32.mxu0 %vm1203_vm0, %v181_v41  ;;  %8268 = vmatprep.mubr.msk.f32.mxu1 %vm1203_vm0, %v693_v42  ;;  %v722_v40 = vld [vmem:[%s9679_s27 + $0x11e0] sm:$0xff]  ;;  %v213_v41 = vld [vmem:[%s9679_s27 + $0x1f8] sm:$0xff] }
  0x7b   : > { %v725_v42 = vld [vmem:[%s9679_s27 + $0x11f8] sm:$0xff] }
  0x7d   : > { %2884 = vmatmul.mubr.f32.gmra.mrb[30].mxu0 %v180_v43  ;;  %4164 = vmatmul.mubr.f32.gmra.mrb[30].mxu1 %v692_v44  ;;  %v212_v43 = vld [vmem:[%s9679_s27 + $0x1f0] sm:$0xff] }
  0x7e   : > { %8013 = vmatprep.mubr.msk.f32.mxu0 %vm1203_vm0, %v183_v45  ;;  %8269 = vmatprep.mubr.msk.f32.mxu1 %vm1203_vm0, %v695_v46  ;;  %v724_v44 = vld [vmem:[%s9679_s27 + $0x11f0] sm:$0xff]  ;;  %v215_v45 = vld [vmem:[%s9679_s27 + $0x208] sm:$0xff] }
  0x7f   : > { %v727_v46 = vld [vmem:[%s9679_s27 + $0x1208] sm:$0xff] }
  0x81   : > { %2889 = vmatmul.mubr.f32.gmra.mrb[32].mxu0 %v182_v47  ;;  %4169 = vmatmul.mubr.f32.gmra.mrb[32].mxu1 %v694_v48  ;;  %v214_v47 = vld [vmem:[%s9679_s27 + $0x200] sm:$0xff] }
  0x82   : > { %8014 = vmatprep.mubr.msk.f32.mxu0 %vm1203_vm0, %v185_v49  ;;  %8270 = vmatprep.mubr.msk.f32.mxu1 %vm1203_vm0, %v697_v50  ;;  %v726_v48 = vld [vmem:[%s9679_s27 + $0x1200] sm:$0xff]  ;;  %v217_v49 = vld [vmem:[%s9679_s27 + $0x218] sm:$0xff] }
  0x83   : > { %v729_v50 = vld [vmem:[%s9679_s27 + $0x1218] sm:$0xff] }
  0x85   : > { %2894 = vmatmul.mubr.f32.gmra.mrb[34].mxu0 %v184_v51  ;;  %4174 = vmatmul.mubr.f32.gmra.mrb[34].mxu1 %v696_v52  ;;  %v216_v51 = vld [vmem:[%s9679_s27 + $0x210] sm:$0xff] }
  0x86   : > { %8015 = vmatprep.mubr.msk.f32.mxu0 %vm1203_vm0, %v187_v53  ;;  %8271 = vmatprep.mubr.msk.f32.mxu1 %vm1203_vm0, %v699_v54  ;;  %v728_v52 = vld [vmem:[%s9679_s27 + $0x1210] sm:$0xff]  ;;  %v219_v53 = vld [vmem:[%s9679_s27 + $0x228] sm:$0xff] }
  0x87   : > { %v731_v54 = vld [vmem:[%s9679_s27 + $0x1228] sm:$0xff] }
  0x89   : > { %2899 = vmatmul.mubr.f32.gmra.mrb[36].mxu0 %v186_v55  ;;  %4179 = vmatmul.mubr.f32.gmra.mrb[36].mxu1 %v698_v56  ;;  %v218_v55 = vld [vmem:[%s9679_s27 + $0x220] sm:$0xff] }
  0x8a   : > { %8016 = vmatprep.mubr.msk.f32.mxu0 %vm1203_vm0, %v189_v57  ;;  %8272 = vmatprep.mubr.msk.f32.mxu1 %vm1203_vm0, %v701_v58  ;;  %v730_v56 = vld [vmem:[%s9679_s27 + $0x1220] sm:$0xff]  ;;  %v221_v57 = vld [vmem:[%s9679_s27 + $0x238] sm:$0xff] }
  0x8b   : > { %v733_v58 = vld [vmem:[%s9679_s27 + $0x1238] sm:$0xff] }
  0x8d   : > { %2904 = vmatmul.mubr.f32.gmra.mrb[38].mxu0 %v188_v59  ;;  %4184 = vmatmul.mubr.f32.gmra.mrb[38].mxu1 %v700_v60  ;;  %v220_v59 = vld [vmem:[%s9679_s27 + $0x230] sm:$0xff] }
  0x8e   : > { %8017 = vmatprep.mubr.msk.f32.mxu0 %vm1203_vm0, %v191_v61  ;;  %8273 = vmatprep.mubr.msk.f32.mxu1 %vm1203_vm0, %v703_v62  ;;  %v732_v60 = vld [vmem:[%s9679_s27 + $0x1230] sm:$0xff]  ;;  %v223_v61 = vld [vmem:[%s9679_s27 + $0x248] sm:$0xff] }
  0x8f   : > { %v735_v62 = vld [vmem:[%s9679_s27 + $0x1248] sm:$0xff] }
  0x91   : > { %2909 = vmatmul.mubr.f32.gmra.mrb[40].mxu0 %v190_v63  ;;  %4189 = vmatmul.mubr.f32.gmra.mrb[40].mxu1 %v702_v0  ;;  %v222_v63 = vld [vmem:[%s9679_s27 + $0x240] sm:$0xff] }
  0x92   : > { %8018 = vmatprep.mubr.msk.f32.mxu0 %vm1203_vm0, %v193_v1  ;;  %8274 = vmatprep.mubr.msk.f32.mxu1 %vm1203_vm0, %v705_v2  ;;  %v734_v0 = vld [vmem:[%s9679_s27 + $0x1240] sm:$0xff]  ;;  %v225_v1 = vld [vmem:[%s9679_s27 + $0x258] sm:$0xff] }
  0x93   : > { %v737_v2 = vld [vmem:[%s9679_s27 + $0x1258] sm:$0xff] }
  0x95   : > { %2914 = vmatmul.mubr.f32.gmra.mrb[42].mxu0 %v192_v3  ;;  %4194 = vmatmul.mubr.f32.gmra.mrb[42].mxu1 %v704_v4  ;;  %v224_v3 = vld [vmem:[%s9679_s27 + $0x250] sm:$0xff] }
  0x96   : > { %8019 = vmatprep.mubr.msk.f32.mxu0 %vm1203_vm0, %v195_v5  ;;  %8275 = vmatprep.mubr.msk.f32.mxu1 %vm1203_vm0, %v707_v6  ;;  %v736_v4 = vld [vmem:[%s9679_s27 + $0x1250] sm:$0xff]  ;;  %v227_v5 = vld [vmem:[%s9679_s27 + $0x268] sm:$0xff] }
  0x97   : > { %v739_v6 = vld [vmem:[%s9679_s27 + $0x1268] sm:$0xff] }
  0x99   : > { %2919 = vmatmul.mubr.f32.gmra.mrb[44].mxu0 %v194_v7  ;;  %4199 = vmatmul.mubr.f32.gmra.mrb[44].mxu1 %v706_v8  ;;  %v226_v7 = vld [vmem:[%s9679_s27 + $0x260] sm:$0xff] }
  0x9a   : > { %8020 = vmatprep.mubr.msk.f32.mxu0 %vm1203_vm0, %v197_v9  ;;  %8276 = vmatprep.mubr.msk.f32.mxu1 %vm1203_vm0, %v709_v10  ;;  %v738_v8 = vld [vmem:[%s9679_s27 + $0x1260] sm:$0xff]  ;;  %v229_v9 = vld [vmem:[%s9679_s27 + $0x278] sm:$0xff] }
  0x9b   : > { %v741_v10 = vld [vmem:[%s9679_s27 + $0x1278] sm:$0xff] }
  0x9d   : > { %2924 = vmatmul.mubr.f32.gmra.mrb[46].mxu0 %v196_v11  ;;  %4204 = vmatmul.mubr.f32.gmra.mrb[46].mxu1 %v708_v12  ;;  %v228_v11 = vld [vmem:[%s9679_s27 + $0x270] sm:$0xff] }
  0x9e   : > { %8021 = vmatprep.mubr.msk.f32.mxu0 %vm1203_vm0, %v199_v13  ;;  %8277 = vmatprep.mubr.msk.f32.mxu1 %vm1203_vm0, %v711_v14  ;;  %v740_v12 = vld [vmem:[%s9679_s27 + $0x1270] sm:$0xff]  ;;  %v231_v13 = vld [vmem:[%s9679_s27 + $0x288] sm:$0xff] }
  0x9f   : > { %v743_v14 = vld [vmem:[%s9679_s27 + $0x1288] sm:$0xff] }
  0xa1   : > { %2929 = vmatmul.mubr.f32.gmra.mrb[48].mxu0 %v198_v15  ;;  %4209 = vmatmul.mubr.f32.gmra.mrb[48].mxu1 %v710_v16  ;;  %v230_v15 = vld [vmem:[%s9679_s27 + $0x280] sm:$0xff] }
  0xa2   : > { %8022 = vmatprep.mubr.msk.f32.mxu0 %vm1203_vm0, %v201_v17  ;;  %8278 = vmatprep.mubr.msk.f32.mxu1 %vm1203_vm0, %v713_v18  ;;  %v742_v16 = vld [vmem:[%s9679_s27 + $0x1280] sm:$0xff]  ;;  %v233_v17 = vld [vmem:[%s9679_s27 + $0x298] sm:$0xff] }
  0xa3   : > { %v745_v18 = vld [vmem:[%s9679_s27 + $0x1298] sm:$0xff] }
  0xa5   : > { %2934 = vmatmul.mubr.f32.gmra.mrb[50].mxu0 %v200_v19  ;;  %4214 = vmatmul.mubr.f32.gmra.mrb[50].mxu1 %v712_v20  ;;  %v232_v19 = vld [vmem:[%s9679_s27 + $0x290] sm:$0xff] }
  0xa6   : > { %8023 = vmatprep.mubr.msk.f32.mxu0 %vm1203_vm0, %v203_v21  ;;  %8279 = vmatprep.mubr.msk.f32.mxu1 %vm1203_vm0, %v715_v22  ;;  %v744_v20 = vld [vmem:[%s9679_s27 + $0x1290] sm:$0xff]  ;;  %v235_v21 = vld [vmem:[%s9679_s27 + $0x2a8] sm:$0xff] }
  0xa7   : > { %v747_v22 = vld [vmem:[%s9679_s27 + $0x12a8] sm:$0xff] }
  0xa9   : > { %2939 = vmatmul.mubr.f32.gmra.mrb[52].mxu0 %v202_v23  ;;  %4219 = vmatmul.mubr.f32.gmra.mrb[52].mxu1 %v714_v24  ;;  %v234_v23 = vld [vmem:[%s9679_s27 + $0x2a0] sm:$0xff] }
  0xaa   : > { %8024 = vmatprep.mubr.msk.f32.mxu0 %vm1203_vm0, %v205_v25  ;;  %8280 = vmatprep.mubr.msk.f32.mxu1 %vm1203_vm0, %v717_v26  ;;  %v746_v24 = vld [vmem:[%s9679_s27 + $0x12a0] sm:$0xff]  ;;  %v237_v25 = vld [vmem:[%s9679_s27 + $0x2b8] sm:$0xff] }
  0xab   : > { %v749_v26 = vld [vmem:[%s9679_s27 + $0x12b8] sm:$0xff] }
  0xad   : > { %2944 = vmatmul.mubr.f32.gmra.mrb[54].mxu0 %v204_v27  ;;  %4224 = vmatmul.mubr.f32.gmra.mrb[54].mxu1 %v716_v28  ;;  %v236_v27 = vld [vmem:[%s9679_s27 + $0x2b0] sm:$0xff] }
  0xae   : > { %8025 = vmatprep.mubr.msk.f32.mxu0 %vm1203_vm0, %v207_v29  ;;  %8281 = vmatprep.mubr.msk.f32.mxu1 %vm1203_vm0, %v719_v30  ;;  %v748_v28 = vld [vmem:[%s9679_s27 + $0x12b0] sm:$0xff]  ;;  %v239_v29 = vld [vmem:[%s9679_s27 + $0x2c8] sm:$0xff] }
  0xaf   : > { %v751_v30 = vld [vmem:[%s9679_s27 + $0x12c8] sm:$0xff] }
  0xb1   : > { %2949 = vmatmul.mubr.f32.gmra.mrb[56].mxu0 %v206_v31  ;;  %4229 = vmatmul.mubr.f32.gmra.mrb[56].mxu1 %v718_v32  ;;  %v238_v31 = vld [vmem:[%s9679_s27 + $0x2c0] sm:$0xff] }
  0xb2   : > { %8026 = vmatprep.mubr.msk.f32.mxu0 %vm1203_vm0, %v209_v33  ;;  %8282 = vmatprep.mubr.msk.f32.mxu1 %vm1203_vm0, %v721_v34  ;;  %v750_v32 = vld [vmem:[%s9679_s27 + $0x12c0] sm:$0xff]  ;;  %v241_v33 = vld [vmem:[%s9679_s27 + $0x2d8] sm:$0xff] }
  0xb3   : > { %v753_v34 = vld [vmem:[%s9679_s27 + $0x12d8] sm:$0xff] }
  0xb5   : > { %2954 = vmatmul.mubr.f32.gmra.mrb[58].mxu0 %v208_v35  ;;  %4234 = vmatmul.mubr.f32.gmra.mrb[58].mxu1 %v720_v36  ;;  %v240_v35 = vld [vmem:[%s9679_s27 + $0x2d0] sm:$0xff] }
  0xb6   : > { %8027 = vmatprep.mubr.msk.f32.mxu0 %vm1203_vm0, %v211_v37  ;;  %8283 = vmatprep.mubr.msk.f32.mxu1 %vm1203_vm0, %v723_v38  ;;  %v752_v36 = vld [vmem:[%s9679_s27 + $0x12d0] sm:$0xff]  ;;  %v243_v37 = vld [vmem:[%s9679_s27 + $0x2e8] sm:$0xff] }
  0xb7   : > { %v755_v38 = vld [vmem:[%s9679_s27 + $0x12e8] sm:$0xff] }
  0xb9   : > { %2959 = vmatmul.mubr.f32.gmra.mrb[60].mxu0 %v210_v39  ;;  %4239 = vmatmul.mubr.f32.gmra.mrb[60].mxu1 %v722_v40  ;;  %v242_v39 = vld [vmem:[%s9679_s27 + $0x2e0] sm:$0xff] }
  0xba   : > { %8028 = vmatprep.mubr.msk.f32.mxu0 %vm1203_vm0, %v213_v41  ;;  %8284 = vmatprep.mubr.msk.f32.mxu1 %vm1203_vm0, %v725_v42  ;;  %v754_v40 = vld [vmem:[%s9679_s27 + $0x12e0] sm:$0xff]  ;;  %v245_v41 = vld [vmem:[%s9679_s27 + $0x2f8] sm:$0xff] }
  0xbb   : > { %v757_v42 = vld [vmem:[%s9679_s27 + $0x12f8] sm:$0xff] }
  0xbd   : > { %2964 = vmatmul.mubr.f32.gmra.mrb[62].mxu0 %v212_v43  ;;  %4244 = vmatmul.mubr.f32.gmra.mrb[62].mxu1 %v724_v44  ;;  %v244_v43 = vld [vmem:[%s9679_s27 + $0x2f0] sm:$0xff] }
  0xbe   : > { %8029 = vmatprep.mubr.msk.f32.mxu0 %vm1203_vm0, %v215_v45  ;;  %8285 = vmatprep.mubr.msk.f32.mxu1 %vm1203_vm0, %v727_v46  ;;  %v756_v44 = vld [vmem:[%s9679_s27 + $0x12f0] sm:$0xff]  ;;  %v247_v45 = vld [vmem:[%s9679_s27 + $0x308] sm:$0xff] }
  0xbf   : > { %v759_v46 = vld [vmem:[%s9679_s27 + $0x1308] sm:$0xff] }
  0xc1   : > { %2969 = vmatmul.mubr.f32.gmra.mrb[64].mxu0 %v214_v47  ;;  %4249 = vmatmul.mubr.f32.gmra.mrb[64].mxu1 %v726_v48  ;;  %v246_v47 = vld [vmem:[%s9679_s27 + $0x300] sm:$0xff] }
  0xc2   : > { %8030 = vmatprep.mubr.msk.f32.mxu0 %vm1203_vm0, %v217_v49  ;;  %8286 = vmatprep.mubr.msk.f32.mxu1 %vm1203_vm0, %v729_v50  ;;  %v758_v48 = vld [vmem:[%s9679_s27 + $0x1300] sm:$0xff]  ;;  %v249_v49 = vld [vmem:[%s9679_s27 + $0x318] sm:$0xff] }
  0xc3   : > { %v761_v50 = vld [vmem:[%s9679_s27 + $0x1318] sm:$0xff] }
  0xc5   : > { %2974 = vmatmul.mubr.f32.gmra.mrb[66].mxu0 %v216_v51  ;;  %4254 = vmatmul.mubr.f32.gmra.mrb[66].mxu1 %v728_v52  ;;  %v248_v51 = vld [vmem:[%s9679_s27 + $0x310] sm:$0xff] }
  0xc6   : > { %8031 = vmatprep.mubr.msk.f32.mxu0 %vm1203_vm0, %v219_v53  ;;  %8287 = vmatprep.mubr.msk.f32.mxu1 %vm1203_vm0, %v731_v54  ;;  %v760_v52 = vld [vmem:[%s9679_s27 + $0x1310] sm:$0xff]  ;;  %v251_v53 = vld [vmem:[%s9679_s27 + $0x328] sm:$0xff] }
  0xc7   : > { %v763_v54 = vld [vmem:[%s9679_s27 + $0x1328] sm:$0xff] }
  0xc9   : > { %2979 = vmatmul.mubr.f32.gmra.mrb[68].mxu0 %v218_v55  ;;  %4259 = vmatmul.mubr.f32.gmra.mrb[68].mxu1 %v730_v56  ;;  %v250_v55 = vld [vmem:[%s9679_s27 + $0x320] sm:$0xff] }
  0xca   : > { %8032 = vmatprep.mubr.msk.f32.mxu0 %vm1203_vm0, %v221_v57  ;;  %8288 = vmatprep.mubr.msk.f32.mxu1 %vm1203_vm0, %v733_v58  ;;  %v762_v56 = vld [vmem:[%s9679_s27 + $0x1320] sm:$0xff]  ;;  %v253_v57 = vld [vmem:[%s9679_s27 + $0x338] sm:$0xff] }
  0xcb   : > { %v765_v58 = vld [vmem:[%s9679_s27 + $0x1338] sm:$0xff] }
  0xcd   : > { %2984 = vmatmul.mubr.f32.gmra.mrb[70].mxu0 %v220_v59  ;;  %4264 = vmatmul.mubr.f32.gmra.mrb[70].mxu1 %v732_v60  ;;  %v252_v59 = vld [vmem:[%s9679_s27 + $0x330] sm:$0xff] }
  0xce   : > { %8033 = vmatprep.mubr.msk.f32.mxu0 %vm1203_vm0, %v223_v61  ;;  %8289 = vmatprep.mubr.msk.f32.mxu1 %vm1203_vm0, %v735_v62  ;;  %v764_v60 = vld [vmem:[%s9679_s27 + $0x1330] sm:$0xff]  ;;  %v255_v61 = vld [vmem:[%s9679_s27 + $0x348] sm:$0xff] }
  0xcf   : > { %v767_v62 = vld [vmem:[%s9679_s27 + $0x1348] sm:$0xff] }
  0xd1   : > { %2989 = vmatmul.mubr.f32.gmra.mrb[72].mxu0 %v222_v63  ;;  %4269 = vmatmul.mubr.f32.gmra.mrb[72].mxu1 %v734_v0  ;;  %v254_v63 = vld [vmem:[%s9679_s27 + $0x340] sm:$0xff] }
  0xd2   : > { %8034 = vmatprep.mubr.msk.f32.mxu0 %vm1203_vm0, %v225_v1  ;;  %8290 = vmatprep.mubr.msk.f32.mxu1 %vm1203_vm0, %v737_v2  ;;  %v766_v0 = vld [vmem:[%s9679_s27 + $0x1340] sm:$0xff]  ;;  %v257_v1 = vld [vmem:[%s9679_s27 + $0x358] sm:$0xff] }
  0xd3   : > { %v769_v2 = vld [vmem:[%s9679_s27 + $0x1358] sm:$0xff] }
  0xd5   : > { %2994 = vmatmul.mubr.f32.gmra.mrb[74].mxu0 %v224_v3  ;;  %4274 = vmatmul.mubr.f32.gmra.mrb[74].mxu1 %v736_v4  ;;  %v256_v3 = vld [vmem:[%s9679_s27 + $0x350] sm:$0xff] }
  0xd6   : > { %8035 = vmatprep.mubr.msk.f32.mxu0 %vm1203_vm0, %v227_v5  ;;  %8291 = vmatprep.mubr.msk.f32.mxu1 %vm1203_vm0, %v739_v6  ;;  %v768_v4 = vld [vmem:[%s9679_s27 + $0x1350] sm:$0xff]  ;;  %v259_v5 = vld [vmem:[%s9679_s27 + $0x368] sm:$0xff] }
  0xd7   : > { %v771_v6 = vld [vmem:[%s9679_s27 + $0x1368] sm:$0xff] }
  0xd9   : > { %2999 = vmatmul.mubr.f32.gmra.mrb[76].mxu0 %v226_v7  ;;  %4279 = vmatmul.mubr.f32.gmra.mrb[76].mxu1 %v738_v8 }
  0xda   : > { %8036 = vmatprep.mubr.msk.f32.mxu0 %vm1203_vm0, %v229_v9  ;;  %8292 = vmatprep.mubr.msk.f32.mxu1 %vm1203_vm0, %v741_v10 }
  0xdd   : > { %3004 = vmatmul.mubr.f32.gmra.mrb[78].mxu0 %v228_v11  ;;  %4284 = vmatmul.mubr.f32.gmra.mrb[78].mxu1 %v740_v12 }
  0xde   : > { %8037 = vmatprep.mubr.msk.f32.mxu0 %vm1203_vm0, %v231_v13  ;;  %8293 = vmatprep.mubr.msk.f32.mxu1 %vm1203_vm0, %v743_v14  ;;  %v258_v13 = vld [vmem:[%s9679_s27 + $0x360] sm:$0xff] }
  0xdf   : > { %v770_v14 = vld [vmem:[%s9679_s27 + $0x1360] sm:$0xff] }
  0xe1   : > { %3009 = vmatmul.mubr.f32.gmra.mrb[80].mxu0 %v230_v15  ;;  %4289 = vmatmul.mubr.f32.gmra.mrb[80].mxu1 %v742_v16  ;;  %v261_v15 = vld [vmem:[%s9679_s27 + $0x378] sm:$0xff] }
  0xe2   : > { %8038 = vmatprep.mubr.msk.f32.mxu0 %vm1203_vm0, %v233_v17  ;;  %8294 = vmatprep.mubr.msk.f32.mxu1 %vm1203_vm0, %v745_v18  ;;  %v773_v16 = vld [vmem:[%s9679_s27 + $0x1378] sm:$0xff] }
  0xe5   : > { %3014 = vmatmul.mubr.f32.gmra.mrb[82].mxu0 %v232_v19  ;;  %4294 = vmatmul.mubr.f32.gmra.mrb[82].mxu1 %v744_v20 }
  0xe6   : > { %8039 = vmatprep.mubr.msk.f32.mxu0 %vm1203_vm0, %v235_v21  ;;  %8295 = vmatprep.mubr.msk.f32.mxu1 %vm1203_vm0, %v747_v22 }
  0xe9   : > { %3019 = vmatmul.mubr.f32.gmra.mrb[84].mxu0 %v234_v23  ;;  %4299 = vmatmul.mubr.f32.gmra.mrb[84].mxu1 %v746_v24  ;;  %v260_v23 = vld [vmem:[%s9679_s27 + $0x370] sm:$0xff] }
  0xea   : > { %8040 = vmatprep.mubr.msk.f32.mxu0 %vm1203_vm0, %v237_v25  ;;  %8296 = vmatprep.mubr.msk.f32.mxu1 %vm1203_vm0, %v749_v26  ;;  %v772_v24 = vld [vmem:[%s9679_s27 + $0x1370] sm:$0xff]  ;;  %v263_v25 = vld [vmem:[%s9679_s27 + $0x388] sm:$0xff] }
  0xeb   : > { %v775_v26 = vld [vmem:[%s9679_s27 + $0x1388] sm:$0xff] }
  0xed   : > { %3024 = vmatmul.mubr.f32.gmra.mrb[86].mxu0 %v236_v27  ;;  %4304 = vmatmul.mubr.f32.gmra.mrb[86].mxu1 %v748_v28 }
  0xee   : > { %8041 = vmatprep.mubr.msk.f32.mxu0 %vm1203_vm0, %v239_v29  ;;  %8297 = vmatprep.mubr.msk.f32.mxu1 %vm1203_vm0, %v751_v30 }
  0xf1   : > { %3029 = vmatmul.mubr.f32.gmra.mrb[88].mxu0 %v238_v31  ;;  %4309 = vmatmul.mubr.f32.gmra.mrb[88].mxu1 %v750_v32 }
  0xf2   : > { %8042 = vmatprep.mubr.msk.f32.mxu0 %vm1203_vm0, %v241_v33  ;;  %8298 = vmatprep.mubr.msk.f32.mxu1 %vm1203_vm0, %v753_v34  ;;  %v262_v33 = vld [vmem:[%s9679_s27 + $0x380] sm:$0xff] }
  0xf3   : > { %v774_v34 = vld [vmem:[%s9679_s27 + $0x1380] sm:$0xff] }
  0xf5   : > { %3034 = vmatmul.mubr.f32.gmra.mrb[90].mxu0 %v240_v35  ;;  %4314 = vmatmul.mubr.f32.gmra.mrb[90].mxu1 %v752_v36  ;;  %v265_v35 = vld [vmem:[%s9679_s27 + $0x398] sm:$0xff] }
  0xf6   : > { %8043 = vmatprep.mubr.msk.f32.mxu0 %vm1203_vm0, %v243_v37  ;;  %8299 = vmatprep.mubr.msk.f32.mxu1 %vm1203_vm0, %v755_v38  ;;  %v777_v36 = vld [vmem:[%s9679_s27 + $0x1398] sm:$0xff] }
  0xf9   : > { %3039 = vmatmul.mubr.f32.gmra.mrb[92].mxu0 %v242_v39  ;;  %4319 = vmatmul.mubr.f32.gmra.mrb[92].mxu1 %v754_v40 }
  0xfa   : > { %8044 = vmatprep.mubr.msk.f32.mxu0 %vm1203_vm0, %v245_v41  ;;  %8300 = vmatprep.mubr.msk.f32.mxu1 %vm1203_vm0, %v757_v42 }
  0xfd   : > { %3044 = vmatmul.mubr.f32.gmra.mrb[94].mxu0 %v244_v43  ;;  %4324 = vmatmul.mubr.f32.gmra.mrb[94].mxu1 %v756_v44  ;;  %v264_v43 = vld [vmem:[%s9679_s27 + $0x390] sm:$0xff] }
  0xfe   : > { %8045 = vmatprep.mubr.msk.f32.mxu0 %vm1203_vm0, %v247_v45  ;;  %8301 = vmatprep.mubr.msk.f32.mxu1 %vm1203_vm0, %v759_v46  ;;  %v776_v44 = vld [vmem:[%s9679_s27 + $0x1390] sm:$0xff]  ;;  %v267_v45 = vld [vmem:[%s9679_s27 + $0x3a8] sm:$0xff] }
  0xff   : > { %v779_v46 = vld [vmem:[%s9679_s27 + $0x13a8] sm:$0xff] }
 0x101   : > { %3049 = vmatmul.mubr.f32.gmra.mrb[96].mxu0 %v246_v47  ;;  %4329 = vmatmul.mubr.f32.gmra.mrb[96].mxu1 %v758_v48 }
 0x102   : > { %8046 = vmatprep.mubr.msk.f32.mxu0 %vm1203_vm0, %v249_v49  ;;  %8302 = vmatprep.mubr.msk.f32.mxu1 %vm1203_vm0, %v761_v50 }
 0x105   : > { %3054 = vmatmul.mubr.f32.gmra.mrb[98].mxu0 %v248_v51  ;;  %4334 = vmatmul.mubr.f32.gmra.mrb[98].mxu1 %v760_v52 }
 0x106   : > { %8047 = vmatprep.mubr.msk.f32.mxu0 %vm1203_vm0, %v251_v53  ;;  %8303 = vmatprep.mubr.msk.f32.mxu1 %vm1203_vm0, %v763_v54  ;;  %v266_v53 = vld [vmem:[%s9679_s27 + $0x3a0] sm:$0xff] }
 0x107   : > { %v778_v54 = vld [vmem:[%s9679_s27 + $0x13a0] sm:$0xff] }
 0x109   : > { %3059 = vmatmul.mubr.f32.gmra.mrb[100].mxu0 %v250_v55  ;;  %4339 = vmatmul.mubr.f32.gmra.mrb[100].mxu1 %v762_v56  ;;  %v269_v55 = vld [vmem:[%s9679_s27 + $0x3b8] sm:$0xff] }
 0x10a   : > { %8048 = vmatprep.mubr.msk.f32.mxu0 %vm1203_vm0, %v253_v57  ;;  %8304 = vmatprep.mubr.msk.f32.mxu1 %vm1203_vm0, %v765_v58  ;;  %v781_v56 = vld [vmem:[%s9679_s27 + $0x13b8] sm:$0xff] }
 0x10d   : > { %3064 = vmatmul.mubr.f32.gmra.mrb[102].mxu0 %v252_v59  ;;  %4344 = vmatmul.mubr.f32.gmra.mrb[102].mxu1 %v764_v60 }
 0x10e   : > { %8049 = vmatprep.mubr.msk.f32.mxu0 %vm1203_vm0, %v255_v61  ;;  %8305 = vmatprep.mubr.msk.f32.mxu1 %vm1203_vm0, %v767_v62 }
 0x111   : > { %3069 = vmatmul.mubr.f32.gmra.mrb[104].mxu0 %v254_v63  ;;  %4349 = vmatmul.mubr.f32.gmra.mrb[104].mxu1 %v766_v0  ;;  %v268_v63 = vld [vmem:[%s9679_s27 + $0x3b0] sm:$0xff] }
 0x112   : > { %8050 = vmatprep.mubr.msk.f32.mxu0 %vm1203_vm0, %v257_v1  ;;  %8306 = vmatprep.mubr.msk.f32.mxu1 %vm1203_vm0, %v769_v2  ;;  %v780_v0 = vld [vmem:[%s9679_s27 + $0x13b0] sm:$0xff]  ;;  %v271_v1 = vld [vmem:[%s9679_s27 + $0x3c8] sm:$0xff] }
 0x113   : > { %v783_v2 = vld [vmem:[%s9679_s27 + $0x13c8] sm:$0xff] }
 0x114   : > { %v2810_v7 = vpop.f32.mrb[0].mxu0  ;;  %v4090_v8 = vpop.f32.mrb[0].mxu1 }
 0x115   : > { %v9024_v9 = vpack.c.bf16 %v2810_v7, %v2810_v7  ;;  %v9280_v10 = vpack.c.bf16 %v4090_v8, %v4090_v8  ;;  %v2812_v11 = vpop.f32.mrb[1].mxu0  ;;  %3074 = vmatmul.mubr.f32.gmra.mrb[106].mxu0 %v256_v3  ;;  %v4092_v12 = vpop.f32.mrb[1].mxu1  ;;  %4354 = vmatmul.mubr.f32.gmra.mrb[106].mxu1 %v768_v4 }
 0x116   : > { %8051 = vmatprep.mubr.msk.f32.mxu0 %vm1203_vm0, %v259_v5  ;;  %8307 = vmatprep.mubr.msk.f32.mxu1 %vm1203_vm0, %v771_v6  ;;  %v273_v11 = vld [vmem:[%s9679_s27 + $0x3d8] sm:$0xff] }
 0x117   : > { %7418 = vst.msk [vmem:[%s10104_s26] sm:$0xf] %vm7417_vm2, %v9024_v9  ;;  %7674 = vst.msk [vmem:[%s10104_s26 + $0x400] sm:$0xf] %vm7417_vm2, %v9280_v10  ;;  %v270_v9 = vld [vmem:[%s9679_s27 + $0x3c0] sm:$0xff]  ;;  %v785_v12 = vld [vmem:[%s9679_s27 + $0x13d8] sm:$0xff] }
 0x118   : > { %v2815_v17 = vpop.f32.mrb[2].mxu0  ;;  %v4095_v18 = vpop.f32.mrb[2].mxu1  ;;  %v782_v10 = vld [vmem:[%s9679_s27 + $0x13c0] sm:$0xff] }
 0x119   : > { %v9025_v19 = vpack.c.bf16 %v2815_v17, %v2815_v17  ;;  %v9281_v20 = vpack.c.bf16 %v4095_v18, %v4095_v18  ;;  %v2817_v21 = vpop.f32.mrb[3].mxu0  ;;  %3079 = vmatmul.mubr.f32.gmra.mrb[108].mxu0 %v258_v13  ;;  %v4097_v22 = vpop.f32.mrb[3].mxu1  ;;  %4359 = vmatmul.mubr.f32.gmra.mrb[108].mxu1 %v770_v14 }
 0x11a   : > { %8052 = vmatprep.mubr.msk.f32.mxu0 %vm1203_vm0, %v261_v15  ;;  %8308 = vmatprep.mubr.msk.f32.mxu1 %vm1203_vm0, %v773_v16  ;;  %v275_v21 = vld [vmem:[%s9679_s27 + $0x3e8] sm:$0xff] }
 0x11b   : > { %7419 = vst.msk [vmem:[%s10104_s26 + $0x4] sm:$0xf] %vm7417_vm2, %v9025_v19  ;;  %7675 = vst.msk [vmem:[%s10104_s26 + $0x404] sm:$0xf] %vm7417_vm2, %v9281_v20  ;;  %v272_v19 = vld [vmem:[%s9679_s27 + $0x3d0] sm:$0xff]  ;;  %v787_v22 = vld [vmem:[%s9679_s27 + $0x13e8] sm:$0xff] }
 0x11c   : > { %v2820_v27 = vpop.f32.mrb[4].mxu0  ;;  %v4100_v28 = vpop.f32.mrb[4].mxu1  ;;  %v784_v20 = vld [vmem:[%s9679_s27 + $0x13d0] sm:$0xff] }
 0x11d   : > { %v9026_v29 = vpack.c.bf16 %v2820_v27, %v2820_v27  ;;  %v9282_v30 = vpack.c.bf16 %v4100_v28, %v4100_v28  ;;  %v2822_v31 = vpop.f32.mrb[5].mxu0  ;;  %3084 = vmatmul.mubr.f32.gmra.mrb[110].mxu0 %v260_v23  ;;  %v4102_v32 = vpop.f32.mrb[5].mxu1  ;;  %4364 = vmatmul.mubr.f32.gmra.mrb[110].mxu1 %v772_v24 }
 0x11e   : > { %8053 = vmatprep.mubr.msk.f32.mxu0 %vm1203_vm0, %v263_v25  ;;  %8309 = vmatprep.mubr.msk.f32.mxu1 %vm1203_vm0, %v775_v26  ;;  %v277_v31 = vld [vmem:[%s9679_s27 + $0x3f8] sm:$0xff] }
 0x11f   : > { %7420 = vst.msk [vmem:[%s10104_s26 + $0x8] sm:$0xf] %vm7417_vm2, %v9026_v29  ;;  %7676 = vst.msk [vmem:[%s10104_s26 + $0x408] sm:$0xf] %vm7417_vm2, %v9282_v30  ;;  %v274_v29 = vld [vmem:[%s9679_s27 + $0x3e0] sm:$0xff]  ;;  %v789_v32 = vld [vmem:[%s9679_s27 + $0x13f8] sm:$0xff] }
 0x120   : > { %v2825_v37 = vpop.f32.mrb[6].mxu0  ;;  %v4105_v38 = vpop.f32.mrb[6].mxu1  ;;  %v786_v30 = vld [vmem:[%s9679_s27 + $0x13e0] sm:$0xff] }
 0x121   : > { %v9027_v39 = vpack.c.bf16 %v2825_v37, %v2825_v37  ;;  %v9283_v40 = vpack.c.bf16 %v4105_v38, %v4105_v38  ;;  %v2827_v41 = vpop.f32.mrb[7].mxu0  ;;  %3089 = vmatmul.mubr.f32.gmra.mrb[112].mxu0 %v262_v33  ;;  %v4107_v42 = vpop.f32.mrb[7].mxu1  ;;  %4369 = vmatmul.mubr.f32.gmra.mrb[112].mxu1 %v774_v34 }
 0x122   : > { %8054 = vmatprep.mubr.msk.f32.mxu0 %vm1203_vm0, %v265_v35  ;;  %8310 = vmatprep.mubr.msk.f32.mxu1 %vm1203_vm0, %v777_v36  ;;  %v279_v41 = vld [vmem:[%s9679_s27 + $0x408] sm:$0xff] }
 0x123   : > { %7421 = vst.msk [vmem:[%s10104_s26 + $0xc] sm:$0xf] %vm7417_vm2, %v9027_v39  ;;  %7677 = vst.msk [vmem:[%s10104_s26 + $0x40c] sm:$0xf] %vm7417_vm2, %v9283_v40  ;;  %v276_v39 = vld [vmem:[%s9679_s27 + $0x3f0] sm:$0xff]  ;;  %v791_v42 = vld [vmem:[%s9679_s27 + $0x1408] sm:$0xff] }
 0x124   : > { %v2830_v47 = vpop.f32.mrb[8].mxu0  ;;  %v4110_v48 = vpop.f32.mrb[8].mxu1  ;;  %v788_v40 = vld [vmem:[%s9679_s27 + $0x13f0] sm:$0xff] }
 0x125   : > { %v9028_v49 = vpack.c.bf16 %v2830_v47, %v2830_v47  ;;  %v9284_v50 = vpack.c.bf16 %v4110_v48, %v4110_v48  ;;  %v2832_v51 = vpop.f32.mrb[9].mxu0  ;;  %3094 = vmatmul.mubr.f32.gmra.mrb[114].mxu0 %v264_v43  ;;  %v4112_v52 = vpop.f32.mrb[9].mxu1  ;;  %4374 = vmatmul.mubr.f32.gmra.mrb[114].mxu1 %v776_v44 }
 0x126   : > { %8055 = vmatprep.mubr.msk.f32.mxu0 %vm1203_vm0, %v267_v45  ;;  %8311 = vmatprep.mubr.msk.f32.mxu1 %vm1203_vm0, %v779_v46  ;;  %v281_v51 = vld [vmem:[%s9679_s27 + $0x418] sm:$0xff] }
 0x127   : > { %7422 = vst.msk [vmem:[%s10104_s26 + $0x10] sm:$0xf] %vm7417_vm2, %v9028_v49  ;;  %7678 = vst.msk [vmem:[%s10104_s26 + $0x410] sm:$0xf] %vm7417_vm2, %v9284_v50  ;;  %v278_v49 = vld [vmem:[%s9679_s27 + $0x400] sm:$0xff]  ;;  %v793_v52 = vld [vmem:[%s9679_s27 + $0x1418] sm:$0xff] }
 0x128   : > { %v2835_v57 = vpop.f32.mrb[10].mxu0  ;;  %v4115_v58 = vpop.f32.mrb[10].mxu1  ;;  %v790_v50 = vld [vmem:[%s9679_s27 + $0x1400] sm:$0xff] }
 0x129   : > { %v9029_v59 = vpack.c.bf16 %v2835_v57, %v2835_v57  ;;  %v9285_v60 = vpack.c.bf16 %v4115_v58, %v4115_v58  ;;  %v2837_v61 = vpop.f32.mrb[11].mxu0  ;;  %3099 = vmatmul.mubr.f32.gmra.mrb[116].mxu0 %v266_v53  ;;  %v4117_v62 = vpop.f32.mrb[11].mxu1  ;;  %4379 = vmatmul.mubr.f32.gmra.mrb[116].mxu1 %v778_v54 }
 0x12a   : > { %8056 = vmatprep.mubr.msk.f32.mxu0 %vm1203_vm0, %v269_v55  ;;  %8312 = vmatprep.mubr.msk.f32.mxu1 %vm1203_vm0, %v781_v56  ;;  %v283_v61 = vld [vmem:[%s9679_s27 + $0x428] sm:$0xff] }
 0x12b   : > { %7423 = vst.msk [vmem:[%s10104_s26 + $0x14] sm:$0xf] %vm7417_vm2, %v9029_v59  ;;  %7679 = vst.msk [vmem:[%s10104_s26 + $0x414] sm:$0xf] %vm7417_vm2, %v9285_v60  ;;  %v280_v59 = vld [vmem:[%s9679_s27 + $0x410] sm:$0xff]  ;;  %v795_v62 = vld [vmem:[%s9679_s27 + $0x1428] sm:$0xff] }
 0x12c   : > { %v2840_v3 = vpop.f32.mrb[12].mxu0  ;;  %v4120_v4 = vpop.f32.mrb[12].mxu1  ;;  %v792_v60 = vld [vmem:[%s9679_s27 + $0x1410] sm:$0xff] }
 0x12d   : > { %v9030_v5 = vpack.c.bf16 %v2840_v3, %v2840_v3  ;;  %v9286_v6 = vpack.c.bf16 %v4120_v4, %v4120_v4  ;;  %v2842_v7 = vpop.f32.mrb[13].mxu0  ;;  %3104 = vmatmul.mubr.f32.gmra.mrb[118].mxu0 %v268_v63  ;;  %v4122_v8 = vpop.f32.mrb[13].mxu1  ;;  %4384 = vmatmul.mubr.f32.gmra.mrb[118].mxu1 %v780_v0 }
 0x12e   : > { %8057 = vmatprep.mubr.msk.f32.mxu0 %vm1203_vm0, %v271_v1  ;;  %8313 = vmatprep.mubr.msk.f32.mxu1 %vm1203_vm0, %v783_v2  ;;  %v285_v7 = vld [vmem:[%s9679_s27 + $0x438] sm:$0xff] }
 0x12f   : > { %7424 = vst.msk [vmem:[%s10104_s26 + $0x18] sm:$0xf] %vm7417_vm2, %v9030_v5  ;;  %7680 = vst.msk [vmem:[%s10104_s26 + $0x418] sm:$0xf] %vm7417_vm2, %v9286_v6  ;;  %v282_v5 = vld [vmem:[%s9679_s27 + $0x420] sm:$0xff]  ;;  %v797_v8 = vld [vmem:[%s9679_s27 + $0x1438] sm:$0xff] }
 0x130   : > { %v2845_v13 = vpop.f32.mrb[14].mxu0  ;;  %v4125_v14 = vpop.f32.mrb[14].mxu1  ;;  %v794_v6 = vld [vmem:[%s9679_s27 + $0x1420] sm:$0xff] }
 0x131   : > { %v9031_v15 = vpack.c.bf16 %v2845_v13, %v2845_v13  ;;  %v9287_v16 = vpack.c.bf16 %v4125_v14, %v4125_v14  ;;  %v2847_v17 = vpop.f32.mrb[15].mxu0  ;;  %3109 = vmatmul.mubr.f32.gmra.mrb[120].mxu0 %v270_v9  ;;  %v4127_v18 = vpop.f32.mrb[15].mxu1  ;;  %4389 = vmatmul.mubr.f32.gmra.mrb[120].mxu1 %v782_v10 }
 0x132   : > { %8058 = vmatprep.mubr.msk.f32.mxu0 %vm1203_vm0, %v273_v11  ;;  %8314 = vmatprep.mubr.msk.f32.mxu1 %vm1203_vm0, %v785_v12  ;;  %v287_v17 = vld [vmem:[%s9679_s27 + $0x448] sm:$0xff] }
 0x133   : > { %7425 = vst.msk [vmem:[%s10104_s26 + $0x1c] sm:$0xf] %vm7417_vm2, %v9031_v15  ;;  %7681 = vst.msk [vmem:[%s10104_s26 + $0x41c] sm:$0xf] %vm7417_vm2, %v9287_v16  ;;  %v284_v15 = vld [vmem:[%s9679_s27 + $0x430] sm:$0xff]  ;;  %v799_v18 = vld [vmem:[%s9679_s27 + $0x1448] sm:$0xff] }
 0x134   : > { %v2850_v23 = vpop.f32.mrb[16].mxu0  ;;  %v4130_v24 = vpop.f32.mrb[16].mxu1  ;;  %v796_v16 = vld [vmem:[%s9679_s27 + $0x1430] sm:$0xff] }
 0x135   : > { %v9032_v25 = vpack.c.bf16 %v2850_v23, %v2850_v23  ;;  %v9288_v26 = vpack.c.bf16 %v4130_v24, %v4130_v24  ;;  %v2852_v27 = vpop.f32.mrb[17].mxu0  ;;  %3114 = vmatmul.mubr.f32.gmra.mrb[122].mxu0 %v272_v19  ;;  %v4132_v28 = vpop.f32.mrb[17].mxu1  ;;  %4394 = vmatmul.mubr.f32.gmra.mrb[122].mxu1 %v784_v20 }
 0x136   : > { %8059 = vmatprep.mubr.msk.f32.mxu0 %vm1203_vm0, %v275_v21  ;;  %8315 = vmatprep.mubr.msk.f32.mxu1 %vm1203_vm0, %v787_v22  ;;  %v289_v27 = vld [vmem:[%s9679_s27 + $0x458] sm:$0xff] }
 0x137   : > { %7426 = vst.msk [vmem:[%s10104_s26 + $0x20] sm:$0xf] %vm7417_vm2, %v9032_v25  ;;  %7682 = vst.msk [vmem:[%s10104_s26 + $0x420] sm:$0xf] %vm7417_vm2, %v9288_v26  ;;  %v286_v25 = vld [vmem:[%s9679_s27 + $0x440] sm:$0xff]  ;;  %v801_v28 = vld [vmem:[%s9679_s27 + $0x1458] sm:$0xff] }
 0x138   : > { %v2855_v33 = vpop.f32.mrb[18].mxu0  ;;  %v4135_v34 = vpop.f32.mrb[18].mxu1  ;;  %v798_v26 = vld [vmem:[%s9679_s27 + $0x1440] sm:$0xff] }
 0x139   : > { %v9033_v35 = vpack.c.bf16 %v2855_v33, %v2855_v33  ;;  %v9289_v36 = vpack.c.bf16 %v4135_v34, %v4135_v34  ;;  %v2857_v37 = vpop.f32.mrb[19].mxu0  ;;  %3119 = vmatmul.mubr.f32.gmra.mrb[124].mxu0 %v274_v29  ;;  %v4137_v38 = vpop.f32.mrb[19].mxu1  ;;  %4399 = vmatmul.mubr.f32.gmra.mrb[124].mxu1 %v786_v30 }
 0x13a   : > { %8060 = vmatprep.mubr.msk.f32.mxu0 %vm1203_vm0, %v277_v31  ;;  %8316 = vmatprep.mubr.msk.f32.mxu1 %vm1203_vm0, %v789_v32  ;;  %v291_v37 = vld [vmem:[%s9679_s27 + $0x468] sm:$0xff] }
 0x13b   : > { %7427 = vst.msk [vmem:[%s10104_s26 + $0x24] sm:$0xf] %vm7417_vm2, %v9033_v35  ;;  %7683 = vst.msk [vmem:[%s10104_s26 + $0x424] sm:$0xf] %vm7417_vm2, %v9289_v36  ;;  %v288_v35 = vld [vmem:[%s9679_s27 + $0x450] sm:$0xff]  ;;  %v803_v38 = vld [vmem:[%s9679_s27 + $0x1468] sm:$0xff] }
 0x13c   : > { %v2860_v43 = vpop.f32.mrb[20].mxu0  ;;  %v4140_v44 = vpop.f32.mrb[20].mxu1  ;;  %v800_v36 = vld [vmem:[%s9679_s27 + $0x1450] sm:$0xff] }
 0x13d   : > { %v9034_v45 = vpack.c.bf16 %v2860_v43, %v2860_v43  ;;  %v9290_v46 = vpack.c.bf16 %v4140_v44, %v4140_v44  ;;  %v2862_v47 = vpop.f32.mrb[21].mxu0  ;;  %3124 = vmatmul.mubr.f32.gmra.mrb[126].mxu0 %v276_v39  ;;  %v4142_v48 = vpop.f32.mrb[21].mxu1  ;;  %4404 = vmatmul.mubr.f32.gmra.mrb[126].mxu1 %v788_v40 }
 0x13e   : > { %8061 = vmatprep.mubr.msk.f32.mxu0 %vm1203_vm0, %v279_v41  ;;  %8317 = vmatprep.mubr.msk.f32.mxu1 %vm1203_vm0, %v791_v42  ;;  %v293_v47 = vld [vmem:[%s9679_s27 + $0x478] sm:$0xff] }
 0x13f   : > { %7428 = vst.msk [vmem:[%s10104_s26 + $0x28] sm:$0xf] %vm7417_vm2, %v9034_v45  ;;  %7684 = vst.msk [vmem:[%s10104_s26 + $0x428] sm:$0xf] %vm7417_vm2, %v9290_v46  ;;  %v290_v45 = vld [vmem:[%s9679_s27 + $0x460] sm:$0xff]  ;;  %v805_v48 = vld [vmem:[%s9679_s27 + $0x1478] sm:$0xff] }
 0x140   : > { %v2865_v53 = vpop.f32.mrb[22].mxu0  ;;  %v4145_v54 = vpop.f32.mrb[22].mxu1  ;;  %v802_v46 = vld [vmem:[%s9679_s27 + $0x1460] sm:$0xff] }
 0x141   : > { %v9035_v55 = vpack.c.bf16 %v2865_v53, %v2865_v53  ;;  %v9291_v56 = vpack.c.bf16 %v4145_v54, %v4145_v54  ;;  %v2867_v57 = vpop.f32.mrb[23].mxu0  ;;  %3129 = vmatmul.mubr.f32.gmra.mrb[128].mxu0 %v278_v49  ;;  %v4147_v58 = vpop.f32.mrb[23].mxu1  ;;  %4409 = vmatmul.mubr.f32.gmra.mrb[128].mxu1 %v790_v50 }
 0x142   : > { %8062 = vmatprep.mubr.msk.f32.mxu0 %vm1203_vm0, %v281_v51  ;;  %8318 = vmatprep.mubr.msk.f32.mxu1 %vm1203_vm0, %v793_v52  ;;  %v295_v57 = vld [vmem:[%s9679_s27 + $0x488] sm:$0xff] }
 0x143   : > { %7429 = vst.msk [vmem:[%s10104_s26 + $0x2c] sm:$0xf] %vm7417_vm2, %v9035_v55  ;;  %7685 = vst.msk [vmem:[%s10104_s26 + $0x42c] sm:$0xf] %vm7417_vm2, %v9291_v56  ;;  %v292_v55 = vld [vmem:[%s9679_s27 + $0x470] sm:$0xff]  ;;  %v807_v58 = vld [vmem:[%s9679_s27 + $0x1488] sm:$0xff] }
 0x144   : > { %v2870_v63 = vpop.f32.mrb[24].mxu0  ;;  %v4150_v0 = vpop.f32.mrb[24].mxu1  ;;  %v804_v56 = vld [vmem:[%s9679_s27 + $0x1470] sm:$0xff] }
 0x145   : > { %v9036_v1 = vpack.c.bf16 %v2870_v63, %v2870_v63  ;;  %v9292_v2 = vpack.c.bf16 %v4150_v0, %v4150_v0  ;;  %v2872_v3 = vpop.f32.mrb[25].mxu0  ;;  %3134 = vmatmul.mubr.f32.gmra.mrb[130].mxu0 %v280_v59  ;;  %v4152_v4 = vpop.f32.mrb[25].mxu1  ;;  %4414 = vmatmul.mubr.f32.gmra.mrb[130].mxu1 %v792_v60 }
 0x146   : > { %8063 = vmatprep.mubr.msk.f32.mxu0 %vm1203_vm0, %v283_v61  ;;  %8319 = vmatprep.mubr.msk.f32.mxu1 %vm1203_vm0, %v795_v62  ;;  %v297_v3 = vld [vmem:[%s9679_s27 + $0x498] sm:$0xff] }
 0x147   : > { %7430 = vst.msk [vmem:[%s10104_s26 + $0x30] sm:$0xf] %vm7417_vm2, %v9036_v1  ;;  %7686 = vst.msk [vmem:[%s10104_s26 + $0x430] sm:$0xf] %vm7417_vm2, %v9292_v2  ;;  %v294_v1 = vld [vmem:[%s9679_s27 + $0x480] sm:$0xff]  ;;  %v809_v4 = vld [vmem:[%s9679_s27 + $0x1498] sm:$0xff] }
 0x148   : > { %v2875_v9 = vpop.f32.mrb[26].mxu0  ;;  %v4155_v10 = vpop.f32.mrb[26].mxu1  ;;  %v806_v2 = vld [vmem:[%s9679_s27 + $0x1480] sm:$0xff] }
 0x149   : > { %v9037_v11 = vpack.c.bf16 %v2875_v9, %v2875_v9  ;;  %v9293_v12 = vpack.c.bf16 %v4155_v10, %v4155_v10  ;;  %v2877_v13 = vpop.f32.mrb[27].mxu0  ;;  %3139 = vmatmul.mubr.f32.gmra.mrb[132].mxu0 %v282_v5  ;;  %v4157_v14 = vpop.f32.mrb[27].mxu1  ;;  %4419 = vmatmul.mubr.f32.gmra.mrb[132].mxu1 %v794_v6 }
 0x14a   : > { %8064 = vmatprep.mubr.msk.f32.mxu0 %vm1203_vm0, %v285_v7  ;;  %8320 = vmatprep.mubr.msk.f32.mxu1 %vm1203_vm0, %v797_v8  ;;  %v299_v13 = vld [vmem:[%s9679_s27 + $0x4a8] sm:$0xff] }
 0x14b   : > { %7431 = vst.msk [vmem:[%s10104_s26 + $0x34] sm:$0xf] %vm7417_vm2, %v9037_v11  ;;  %7687 = vst.msk [vmem:[%s10104_s26 + $0x434] sm:$0xf] %vm7417_vm2, %v9293_v12  ;;  %v296_v11 = vld [vmem:[%s9679_s27 + $0x490] sm:$0xff]  ;;  %v811_v14 = vld [vmem:[%s9679_s27 + $0x14a8] sm:$0xff] }
 0x14c   : > { %v2880_v19 = vpop.f32.mrb[28].mxu0  ;;  %v4160_v20 = vpop.f32.mrb[28].mxu1  ;;  %v808_v12 = vld [vmem:[%s9679_s27 + $0x1490] sm:$0xff] }
 0x14d   : > { %v9038_v21 = vpack.c.bf16 %v2880_v19, %v2880_v19  ;;  %v9294_v22 = vpack.c.bf16 %v4160_v20, %v4160_v20  ;;  %v2882_v23 = vpop.f32.mrb[29].mxu0  ;;  %3144 = vmatmul.mubr.f32.gmra.mrb[134].mxu0 %v284_v15  ;;  %v4162_v24 = vpop.f32.mrb[29].mxu1  ;;  %4424 = vmatmul.mubr.f32.gmra.mrb[134].mxu1 %v796_v16 }
 0x14e   : > { %8065 = vmatprep.mubr.msk.f32.mxu0 %vm1203_vm0, %v287_v17  ;;  %8321 = vmatprep.mubr.msk.f32.mxu1 %vm1203_vm0, %v799_v18  ;;  %v301_v23 = vld [vmem:[%s9679_s27 + $0x4b8] sm:$0xff] }
 0x14f   : > { %7432 = vst.msk [vmem:[%s10104_s26 + $0x38] sm:$0xf] %vm7417_vm2, %v9038_v21  ;;  %7688 = vst.msk [vmem:[%s10104_s26 + $0x438] sm:$0xf] %vm7417_vm2, %v9294_v22  ;;  %v298_v21 = vld [vmem:[%s9679_s27 + $0x4a0] sm:$0xff]  ;;  %v813_v24 = vld [vmem:[%s9679_s27 + $0x14b8] sm:$0xff] }
 0x150   : > { %v2885_v29 = vpop.f32.mrb[30].mxu0  ;;  %v4165_v30 = vpop.f32.mrb[30].mxu1  ;;  %v810_v22 = vld [vmem:[%s9679_s27 + $0x14a0] sm:$0xff] }
 0x151   : > { %v9039_v31 = vpack.c.bf16 %v2885_v29, %v2885_v29  ;;  %v9295_v32 = vpack.c.bf16 %v4165_v30, %v4165_v30  ;;  %v2887_v33 = vpop.f32.mrb[31].mxu0  ;;  %3149 = vmatmul.mubr.f32.gmra.mrb[136].mxu0 %v286_v25  ;;  %v4167_v34 = vpop.f32.mrb[31].mxu1  ;;  %4429 = vmatmul.mubr.f32.gmra.mrb[136].mxu1 %v798_v26 }
 0x152   : > { %8066 = vmatprep.mubr.msk.f32.mxu0 %vm1203_vm0, %v289_v27  ;;  %8322 = vmatprep.mubr.msk.f32.mxu1 %vm1203_vm0, %v801_v28  ;;  %v303_v33 = vld [vmem:[%s9679_s27 + $0x4c8] sm:$0xff] }
 0x153   : > { %7433 = vst.msk [vmem:[%s10104_s26 + $0x3c] sm:$0xf] %vm7417_vm2, %v9039_v31  ;;  %7689 = vst.msk [vmem:[%s10104_s26 + $0x43c] sm:$0xf] %vm7417_vm2, %v9295_v32  ;;  %v300_v31 = vld [vmem:[%s9679_s27 + $0x4b0] sm:$0xff]  ;;  %v815_v34 = vld [vmem:[%s9679_s27 + $0x14c8] sm:$0xff] }
 0x154   : > { %v2890_v39 = vpop.f32.mrb[32].mxu0  ;;  %v4170_v40 = vpop.f32.mrb[32].mxu1  ;;  %v812_v32 = vld [vmem:[%s9679_s27 + $0x14b0] sm:$0xff] }
 0x155   : > { %v9040_v41 = vpack.c.bf16 %v2890_v39, %v2890_v39  ;;  %v9296_v42 = vpack.c.bf16 %v4170_v40, %v4170_v40  ;;  %v2892_v43 = vpop.f32.mrb[33].mxu0  ;;  %3154 = vmatmul.mubr.f32.gmra.mrb[138].mxu0 %v288_v35  ;;  %v4172_v44 = vpop.f32.mrb[33].mxu1  ;;  %4434 = vmatmul.mubr.f32.gmra.mrb[138].mxu1 %v800_v36 }
 0x156   : > { %8067 = vmatprep.mubr.msk.f32.mxu0 %vm1203_vm0, %v291_v37  ;;  %8323 = vmatprep.mubr.msk.f32.mxu1 %vm1203_vm0, %v803_v38  ;;  %v305_v43 = vld [vmem:[%s9679_s27 + $0x4d8] sm:$0xff] }
 0x157   : > { %7434 = vst.msk [vmem:[%s10104_s26 + $0x40] sm:$0xf] %vm7417_vm2, %v9040_v41  ;;  %7690 = vst.msk [vmem:[%s10104_s26 + $0x440] sm:$0xf] %vm7417_vm2, %v9296_v42  ;;  %v302_v41 = vld [vmem:[%s9679_s27 + $0x4c0] sm:$0xff]  ;;  %v817_v44 = vld [vmem:[%s9679_s27 + $0x14d8] sm:$0xff] }
 0x158   : > { %v2895_v49 = vpop.f32.mrb[34].mxu0  ;;  %v4175_v50 = vpop.f32.mrb[34].mxu1  ;;  %v814_v42 = vld [vmem:[%s9679_s27 + $0x14c0] sm:$0xff] }
 0x159   : > { %v9041_v51 = vpack.c.bf16 %v2895_v49, %v2895_v49  ;;  %v9297_v52 = vpack.c.bf16 %v4175_v50, %v4175_v50  ;;  %v2897_v53 = vpop.f32.mrb[35].mxu0  ;;  %3159 = vmatmul.mubr.f32.gmra.mrb[140].mxu0 %v290_v45  ;;  %v4177_v54 = vpop.f32.mrb[35].mxu1  ;;  %4439 = vmatmul.mubr.f32.gmra.mrb[140].mxu1 %v802_v46 }
 0x15a   : > { %8068 = vmatprep.mubr.msk.f32.mxu0 %vm1203_vm0, %v293_v47  ;;  %8324 = vmatprep.mubr.msk.f32.mxu1 %vm1203_vm0, %v805_v48  ;;  %v307_v53 = vld [vmem:[%s9679_s27 + $0x4e8] sm:$0xff] }
 0x15b   : > { %7435 = vst.msk [vmem:[%s10104_s26 + $0x44] sm:$0xf] %vm7417_vm2, %v9041_v51  ;;  %7691 = vst.msk [vmem:[%s10104_s26 + $0x444] sm:$0xf] %vm7417_vm2, %v9297_v52  ;;  %v304_v51 = vld [vmem:[%s9679_s27 + $0x4d0] sm:$0xff]  ;;  %v819_v54 = vld [vmem:[%s9679_s27 + $0x14e8] sm:$0xff] }
 0x15c   : > { %v2900_v59 = vpop.f32.mrb[36].mxu0  ;;  %v4180_v60 = vpop.f32.mrb[36].mxu1  ;;  %v816_v52 = vld [vmem:[%s9679_s27 + $0x14d0] sm:$0xff] }
 0x15d   : > { %v9042_v61 = vpack.c.bf16 %v2900_v59, %v2900_v59  ;;  %v9298_v62 = vpack.c.bf16 %v4180_v60, %v4180_v60  ;;  %v2902_v63 = vpop.f32.mrb[37].mxu0  ;;  %3164 = vmatmul.mubr.f32.gmra.mrb[142].mxu0 %v292_v55  ;;  %v4182_v0 = vpop.f32.mrb[37].mxu1  ;;  %4444 = vmatmul.mubr.f32.gmra.mrb[142].mxu1 %v804_v56 }
 0x15e   : > { %8069 = vmatprep.mubr.msk.f32.mxu0 %vm1203_vm0, %v295_v57  ;;  %8325 = vmatprep.mubr.msk.f32.mxu1 %vm1203_vm0, %v807_v58  ;;  %v309_v63 = vld [vmem:[%s9679_s27 + $0x4f8] sm:$0xff] }
 0x15f   : > { %7436 = vst.msk [vmem:[%s10104_s26 + $0x48] sm:$0xf] %vm7417_vm2, %v9042_v61  ;;  %7692 = vst.msk [vmem:[%s10104_s26 + $0x448] sm:$0xf] %vm7417_vm2, %v9298_v62  ;;  %v306_v61 = vld [vmem:[%s9679_s27 + $0x4e0] sm:$0xff]  ;;  %v821_v0 = vld [vmem:[%s9679_s27 + $0x14f8] sm:$0xff] }
 0x160   : > { %v2905_v5 = vpop.f32.mrb[38].mxu0  ;;  %v4185_v6 = vpop.f32.mrb[38].mxu1  ;;  %v818_v62 = vld [vmem:[%s9679_s27 + $0x14e0] sm:$0xff] }
 0x161   : > { %v9043_v7 = vpack.c.bf16 %v2905_v5, %v2905_v5  ;;  %v9299_v8 = vpack.c.bf16 %v4185_v6, %v4185_v6  ;;  %v2907_v9 = vpop.f32.mrb[39].mxu0  ;;  %3169 = vmatmul.mubr.f32.gmra.mrb[144].mxu0 %v294_v1  ;;  %v4187_v10 = vpop.f32.mrb[39].mxu1  ;;  %4449 = vmatmul.mubr.f32.gmra.mrb[144].mxu1 %v806_v2 }
 0x162   : > { %8070 = vmatprep.mubr.msk.f32.mxu0 %vm1203_vm0, %v297_v3  ;;  %8326 = vmatprep.mubr.msk.f32.mxu1 %vm1203_vm0, %v809_v4  ;;  %v311_v9 = vld [vmem:[%s9679_s27 + $0x508] sm:$0xff] }
 0x163   : > { %7437 = vst.msk [vmem:[%s10104_s26 + $0x4c] sm:$0xf] %vm7417_vm2, %v9043_v7  ;;  %7693 = vst.msk [vmem:[%s10104_s26 + $0x44c] sm:$0xf] %vm7417_vm2, %v9299_v8  ;;  %v308_v7 = vld [vmem:[%s9679_s27 + $0x4f0] sm:$0xff]  ;;  %v823_v10 = vld [vmem:[%s9679_s27 + $0x1508] sm:$0xff] }
 0x164   : > { %v2910_v15 = vpop.f32.mrb[40].mxu0  ;;  %v4190_v16 = vpop.f32.mrb[40].mxu1  ;;  %v820_v8 = vld [vmem:[%s9679_s27 + $0x14f0] sm:$0xff] }
 0x165   : > { %v9044_v17 = vpack.c.bf16 %v2910_v15, %v2910_v15  ;;  %v9300_v18 = vpack.c.bf16 %v4190_v16, %v4190_v16  ;;  %v2912_v19 = vpop.f32.mrb[41].mxu0  ;;  %3174 = vmatmul.mubr.f32.gmra.mrb[146].mxu0 %v296_v11  ;;  %v4192_v20 = vpop.f32.mrb[41].mxu1  ;;  %4454 = vmatmul.mubr.f32.gmra.mrb[146].mxu1 %v808_v12 }
 0x166   : > { %8071 = vmatprep.mubr.msk.f32.mxu0 %vm1203_vm0, %v299_v13  ;;  %8327 = vmatprep.mubr.msk.f32.mxu1 %vm1203_vm0, %v811_v14  ;;  %v313_v19 = vld [vmem:[%s9679_s27 + $0x518] sm:$0xff] }
 0x167   : > { %7438 = vst.msk [vmem:[%s10104_s26 + $0x50] sm:$0xf] %vm7417_vm2, %v9044_v17  ;;  %7694 = vst.msk [vmem:[%s10104_s26 + $0x450] sm:$0xf] %vm7417_vm2, %v9300_v18  ;;  %v310_v17 = vld [vmem:[%s9679_s27 + $0x500] sm:$0xff]  ;;  %v825_v20 = vld [vmem:[%s9679_s27 + $0x1518] sm:$0xff] }
 0x168   : > { %v2915_v25 = vpop.f32.mrb[42].mxu0  ;;  %v4195_v26 = vpop.f32.mrb[42].mxu1  ;;  %v822_v18 = vld [vmem:[%s9679_s27 + $0x1500] sm:$0xff] }
 0x169   : > { %v9045_v27 = vpack.c.bf16 %v2915_v25, %v2915_v25  ;;  %v9301_v28 = vpack.c.bf16 %v4195_v26, %v4195_v26  ;;  %v2917_v29 = vpop.f32.mrb[43].mxu0  ;;  %3179 = vmatmul.mubr.f32.gmra.mrb[148].mxu0 %v298_v21  ;;  %v4197_v30 = vpop.f32.mrb[43].mxu1  ;;  %4459 = vmatmul.mubr.f32.gmra.mrb[148].mxu1 %v810_v22 }
 0x16a   : > { %8072 = vmatprep.mubr.msk.f32.mxu0 %vm1203_vm0, %v301_v23  ;;  %8328 = vmatprep.mubr.msk.f32.mxu1 %vm1203_vm0, %v813_v24  ;;  %v315_v29 = vld [vmem:[%s9679_s27 + $0x528] sm:$0xff] }
 0x16b   : > { %7439 = vst.msk [vmem:[%s10104_s26 + $0x54] sm:$0xf] %vm7417_vm2, %v9045_v27  ;;  %7695 = vst.msk [vmem:[%s10104_s26 + $0x454] sm:$0xf] %vm7417_vm2, %v9301_v28  ;;  %v312_v27 = vld [vmem:[%s9679_s27 + $0x510] sm:$0xff]  ;;  %v827_v30 = vld [vmem:[%s9679_s27 + $0x1528] sm:$0xff] }
 0x16c   : > { %v2920_v35 = vpop.f32.mrb[44].mxu0  ;;  %v4200_v36 = vpop.f32.mrb[44].mxu1  ;;  %v824_v28 = vld [vmem:[%s9679_s27 + $0x1510] sm:$0xff] }
 0x16d   : > { %v9046_v37 = vpack.c.bf16 %v2920_v35, %v2920_v35  ;;  %v9302_v38 = vpack.c.bf16 %v4200_v36, %v4200_v36  ;;  %v2922_v39 = vpop.f32.mrb[45].mxu0  ;;  %3184 = vmatmul.mubr.f32.gmra.mrb[150].mxu0 %v300_v31  ;;  %v4202_v40 = vpop.f32.mrb[45].mxu1  ;;  %4464 = vmatmul.mubr.f32.gmra.mrb[150].mxu1 %v812_v32 }
 0x16e   : > { %8073 = vmatprep.mubr.msk.f32.mxu0 %vm1203_vm0, %v303_v33  ;;  %8329 = vmatprep.mubr.msk.f32.mxu1 %vm1203_vm0, %v815_v34  ;;  %v317_v39 = vld [vmem:[%s9679_s27 + $0x538] sm:$0xff] }
 0x16f   : > { %7440 = vst.msk [vmem:[%s10104_s26 + $0x58] sm:$0xf] %vm7417_vm2, %v9046_v37  ;;  %7696 = vst.msk [vmem:[%s10104_s26 + $0x458] sm:$0xf] %vm7417_vm2, %v9302_v38  ;;  %v314_v37 = vld [vmem:[%s9679_s27 + $0x520] sm:$0xff]  ;;  %v829_v40 = vld [vmem:[%s9679_s27 + $0x1538] sm:$0xff] }
 0x170   : > { %v2925_v45 = vpop.f32.mrb[46].mxu0  ;;  %v4205_v46 = vpop.f32.mrb[46].mxu1  ;;  %v826_v38 = vld [vmem:[%s9679_s27 + $0x1520] sm:$0xff] }
 0x171   : > { %v9047_v47 = vpack.c.bf16 %v2925_v45, %v2925_v45  ;;  %v9303_v48 = vpack.c.bf16 %v4205_v46, %v4205_v46  ;;  %v2927_v49 = vpop.f32.mrb[47].mxu0  ;;  %3189 = vmatmul.mubr.f32.gmra.mrb[152].mxu0 %v302_v41  ;;  %v4207_v50 = vpop.f32.mrb[47].mxu1  ;;  %4469 = vmatmul.mubr.f32.gmra.mrb[152].mxu1 %v814_v42 }
 0x172   : > { %8074 = vmatprep.mubr.msk.f32.mxu0 %vm1203_vm0, %v305_v43  ;;  %8330 = vmatprep.mubr.msk.f32.mxu1 %vm1203_vm0, %v817_v44  ;;  %v319_v49 = vld [vmem:[%s9679_s27 + $0x548] sm:$0xff] }
 0x173   : > { %7441 = vst.msk [vmem:[%s10104_s26 + $0x5c] sm:$0xf] %vm7417_vm2, %v9047_v47  ;;  %7697 = vst.msk [vmem:[%s10104_s26 + $0x45c] sm:$0xf] %vm7417_vm2, %v9303_v48  ;;  %v316_v47 = vld [vmem:[%s9679_s27 + $0x530] sm:$0xff]  ;;  %v831_v50 = vld [vmem:[%s9679_s27 + $0x1548] sm:$0xff] }
 0x174   : > { %v2930_v55 = vpop.f32.mrb[48].mxu0  ;;  %v4210_v56 = vpop.f32.mrb[48].mxu1  ;;  %v828_v48 = vld [vmem:[%s9679_s27 + $0x1530] sm:$0xff] }
 0x175   : > { %v9048_v57 = vpack.c.bf16 %v2930_v55, %v2930_v55  ;;  %v9304_v58 = vpack.c.bf16 %v4210_v56, %v4210_v56  ;;  %v2932_v59 = vpop.f32.mrb[49].mxu0  ;;  %3194 = vmatmul.mubr.f32.gmra.mrb[154].mxu0 %v304_v51  ;;  %v4212_v60 = vpop.f32.mrb[49].mxu1  ;;  %4474 = vmatmul.mubr.f32.gmra.mrb[154].mxu1 %v816_v52 }
 0x176   : > { %8075 = vmatprep.mubr.msk.f32.mxu0 %vm1203_vm0, %v307_v53  ;;  %8331 = vmatprep.mubr.msk.f32.mxu1 %vm1203_vm0, %v819_v54  ;;  %v321_v59 = vld [vmem:[%s9679_s27 + $0x558] sm:$0xff] }
 0x177   : > { %7442 = vst.msk [vmem:[%s10104_s26 + $0x60] sm:$0xf] %vm7417_vm2, %v9048_v57  ;;  %7698 = vst.msk [vmem:[%s10104_s26 + $0x460] sm:$0xf] %vm7417_vm2, %v9304_v58  ;;  %v318_v57 = vld [vmem:[%s9679_s27 + $0x540] sm:$0xff]  ;;  %v833_v60 = vld [vmem:[%s9679_s27 + $0x1558] sm:$0xff] }
 0x178   : > { %v2935_v1 = vpop.f32.mrb[50].mxu0  ;;  %v4215_v2 = vpop.f32.mrb[50].mxu1  ;;  %v830_v58 = vld [vmem:[%s9679_s27 + $0x1540] sm:$0xff] }
 0x179   : > { %v9049_v3 = vpack.c.bf16 %v2935_v1, %v2935_v1  ;;  %v9305_v4 = vpack.c.bf16 %v4215_v2, %v4215_v2  ;;  %v2937_v5 = vpop.f32.mrb[51].mxu0  ;;  %3199 = vmatmul.mubr.f32.gmra.mrb[156].mxu0 %v306_v61  ;;  %v4217_v6 = vpop.f32.mrb[51].mxu1  ;;  %4479 = vmatmul.mubr.f32.gmra.mrb[156].mxu1 %v818_v62 }
 0x17a   : > { %8076 = vmatprep.mubr.msk.f32.mxu0 %vm1203_vm0, %v309_v63  ;;  %8332 = vmatprep.mubr.msk.f32.mxu1 %vm1203_vm0, %v821_v0  ;;  %v323_v5 = vld [vmem:[%s9679_s27 + $0x568] sm:$0xff] }
 0x17b   : > { %7443 = vst.msk [vmem:[%s10104_s26 + $0x64] sm:$0xf] %vm7417_vm2, %v9049_v3  ;;  %7699 = vst.msk [vmem:[%s10104_s26 + $0x464] sm:$0xf] %vm7417_vm2, %v9305_v4  ;;  %v320_v3 = vld [vmem:[%s9679_s27 + $0x550] sm:$0xff]  ;;  %v835_v6 = vld [vmem:[%s9679_s27 + $0x1568] sm:$0xff] }
 0x17c   : > { %v2940_v11 = vpop.f32.mrb[52].mxu0  ;;  %v4220_v12 = vpop.f32.mrb[52].mxu1  ;;  %v832_v4 = vld [vmem:[%s9679_s27 + $0x1550] sm:$0xff] }
 0x17d   : > { %v9050_v13 = vpack.c.bf16 %v2940_v11, %v2940_v11  ;;  %v9306_v14 = vpack.c.bf16 %v4220_v12, %v4220_v12  ;;  %v2942_v15 = vpop.f32.mrb[53].mxu0  ;;  %3204 = vmatmul.mubr.f32.gmra.mrb[158].mxu0 %v308_v7  ;;  %v4222_v16 = vpop.f32.mrb[53].mxu1  ;;  %4484 = vmatmul.mubr.f32.gmra.mrb[158].mxu1 %v820_v8 }
 0x17e   : > { %8077 = vmatprep.mubr.msk.f32.mxu0 %vm1203_vm0, %v311_v9  ;;  %8333 = vmatprep.mubr.msk.f32.mxu1 %vm1203_vm0, %v823_v10  ;;  %v325_v15 = vld [vmem:[%s9679_s27 + $0x578] sm:$0xff] }
 0x17f   : > { %7444 = vst.msk [vmem:[%s10104_s26 + $0x68] sm:$0xf] %vm7417_vm2, %v9050_v13  ;;  %7700 = vst.msk [vmem:[%s10104_s26 + $0x468] sm:$0xf] %vm7417_vm2, %v9306_v14  ;;  %v322_v13 = vld [vmem:[%s9679_s27 + $0x560] sm:$0xff]  ;;  %v837_v16 = vld [vmem:[%s9679_s27 + $0x1578] sm:$0xff] }
 0x180   : > { %v2945_v21 = vpop.f32.mrb[54].mxu0  ;;  %v4225_v22 = vpop.f32.mrb[54].mxu1  ;;  %v834_v14 = vld [vmem:[%s9679_s27 + $0x1560] sm:$0xff] }
 0x181   : > { %v9051_v23 = vpack.c.bf16 %v2945_v21, %v2945_v21  ;;  %v9307_v24 = vpack.c.bf16 %v4225_v22, %v4225_v22  ;;  %v2947_v25 = vpop.f32.mrb[55].mxu0  ;;  %3209 = vmatmul.mubr.f32.gmra.mrb[160].mxu0 %v310_v17  ;;  %v4227_v26 = vpop.f32.mrb[55].mxu1  ;;  %4489 = vmatmul.mubr.f32.gmra.mrb[160].mxu1 %v822_v18 }
 0x182   : > { %8078 = vmatprep.mubr.msk.f32.mxu0 %vm1203_vm0, %v313_v19  ;;  %8334 = vmatprep.mubr.msk.f32.mxu1 %vm1203_vm0, %v825_v20  ;;  %v327_v25 = vld [vmem:[%s9679_s27 + $0x588] sm:$0xff] }
 0x183   : > { %7445 = vst.msk [vmem:[%s10104_s26 + $0x6c] sm:$0xf] %vm7417_vm2, %v9051_v23  ;;  %7701 = vst.msk [vmem:[%s10104_s26 + $0x46c] sm:$0xf] %vm7417_vm2, %v9307_v24  ;;  %v324_v23 = vld [vmem:[%s9679_s27 + $0x570] sm:$0xff]  ;;  %v839_v26 = vld [vmem:[%s9679_s27 + $0x1588] sm:$0xff] }
 0x184   : > { %v2950_v31 = vpop.f32.mrb[56].mxu0  ;;  %v4230_v32 = vpop.f32.mrb[56].mxu1  ;;  %v836_v24 = vld [vmem:[%s9679_s27 + $0x1570] sm:$0xff] }
 0x185   : > { %v9052_v33 = vpack.c.bf16 %v2950_v31, %v2950_v31  ;;  %v9308_v34 = vpack.c.bf16 %v4230_v32, %v4230_v32  ;;  %v2952_v35 = vpop.f32.mrb[57].mxu0  ;;  %3214 = vmatmul.mubr.f32.gmra.mrb[162].mxu0 %v312_v27  ;;  %v4232_v36 = vpop.f32.mrb[57].mxu1  ;;  %4494 = vmatmul.mubr.f32.gmra.mrb[162].mxu1 %v824_v28 }
 0x186   : > { %8079 = vmatprep.mubr.msk.f32.mxu0 %vm1203_vm0, %v315_v29  ;;  %8335 = vmatprep.mubr.msk.f32.mxu1 %vm1203_vm0, %v827_v30  ;;  %v329_v35 = vld [vmem:[%s9679_s27 + $0x598] sm:$0xff] }
 0x187   : > { %7446 = vst.msk [vmem:[%s10104_s26 + $0x70] sm:$0xf] %vm7417_vm2, %v9052_v33  ;;  %7702 = vst.msk [vmem:[%s10104_s26 + $0x470] sm:$0xf] %vm7417_vm2, %v9308_v34  ;;  %v326_v33 = vld [vmem:[%s9679_s27 + $0x580] sm:$0xff]  ;;  %v841_v36 = vld [vmem:[%s9679_s27 + $0x1598] sm:$0xff] }
 0x188   : > { %v2955_v41 = vpop.f32.mrb[58].mxu0  ;;  %v4235_v42 = vpop.f32.mrb[58].mxu1  ;;  %v838_v34 = vld [vmem:[%s9679_s27 + $0x1580] sm:$0xff] }
 0x189   : > { %v9053_v43 = vpack.c.bf16 %v2955_v41, %v2955_v41  ;;  %v9309_v44 = vpack.c.bf16 %v4235_v42, %v4235_v42  ;;  %v2957_v45 = vpop.f32.mrb[59].mxu0  ;;  %3219 = vmatmul.mubr.f32.gmra.mrb[164].mxu0 %v314_v37  ;;  %v4237_v46 = vpop.f32.mrb[59].mxu1  ;;  %4499 = vmatmul.mubr.f32.gmra.mrb[164].mxu1 %v826_v38 }
 0x18a   : > { %8080 = vmatprep.mubr.msk.f32.mxu0 %vm1203_vm0, %v317_v39  ;;  %8336 = vmatprep.mubr.msk.f32.mxu1 %vm1203_vm0, %v829_v40  ;;  %v331_v45 = vld [vmem:[%s9679_s27 + $0x5a8] sm:$0xff] }
 0x18b   : > { %7447 = vst.msk [vmem:[%s10104_s26 + $0x74] sm:$0xf] %vm7417_vm2, %v9053_v43  ;;  %7703 = vst.msk [vmem:[%s10104_s26 + $0x474] sm:$0xf] %vm7417_vm2, %v9309_v44  ;;  %v328_v43 = vld [vmem:[%s9679_s27 + $0x590] sm:$0xff]  ;;  %v843_v46 = vld [vmem:[%s9679_s27 + $0x15a8] sm:$0xff] }
 0x18c   : > { %v2960_v51 = vpop.f32.mrb[60].mxu0  ;;  %v4240_v52 = vpop.f32.mrb[60].mxu1  ;;  %v840_v44 = vld [vmem:[%s9679_s27 + $0x1590] sm:$0xff] }
 0x18d   : > { %v9054_v53 = vpack.c.bf16 %v2960_v51, %v2960_v51  ;;  %v9310_v54 = vpack.c.bf16 %v4240_v52, %v4240_v52  ;;  %v2962_v55 = vpop.f32.mrb[61].mxu0  ;;  %3224 = vmatmul.mubr.f32.gmra.mrb[166].mxu0 %v316_v47  ;;  %v4242_v56 = vpop.f32.mrb[61].mxu1  ;;  %4504 = vmatmul.mubr.f32.gmra.mrb[166].mxu1 %v828_v48 }
 0x18e   : > { %8081 = vmatprep.mubr.msk.f32.mxu0 %vm1203_vm0, %v319_v49  ;;  %8337 = vmatprep.mubr.msk.f32.mxu1 %vm1203_vm0, %v831_v50  ;;  %v333_v55 = vld [vmem:[%s9679_s27 + $0x5b8] sm:$0xff] }
 0x18f   : > { %7448 = vst.msk [vmem:[%s10104_s26 + $0x78] sm:$0xf] %vm7417_vm2, %v9054_v53  ;;  %7704 = vst.msk [vmem:[%s10104_s26 + $0x478] sm:$0xf] %vm7417_vm2, %v9310_v54  ;;  %v330_v53 = vld [vmem:[%s9679_s27 + $0x5a0] sm:$0xff]  ;;  %v845_v56 = vld [vmem:[%s9679_s27 + $0x15b8] sm:$0xff] }
 0x190   : > { %v2965_v61 = vpop.f32.mrb[62].mxu0  ;;  %v4245_v62 = vpop.f32.mrb[62].mxu1  ;;  %v842_v54 = vld [vmem:[%s9679_s27 + $0x15a0] sm:$0xff] }
 0x191   : > { %v9055_v63 = vpack.c.bf16 %v2965_v61, %v2965_v61  ;;  %v9311_v0 = vpack.c.bf16 %v4245_v62, %v4245_v62  ;;  %v2967_v1 = vpop.f32.mrb[63].mxu0  ;;  %3229 = vmatmul.mubr.f32.gmra.mrb[168].mxu0 %v318_v57  ;;  %v4247_v2 = vpop.f32.mrb[63].mxu1  ;;  %4509 = vmatmul.mubr.f32.gmra.mrb[168].mxu1 %v830_v58 }
 0x192   : > { %8082 = vmatprep.mubr.msk.f32.mxu0 %vm1203_vm0, %v321_v59  ;;  %8338 = vmatprep.mubr.msk.f32.mxu1 %vm1203_vm0, %v833_v60  ;;  %v335_v1 = vld [vmem:[%s9679_s27 + $0x5c8] sm:$0xff] }
 0x193   : > { %7449 = vst.msk [vmem:[%s10104_s26 + $0x7c] sm:$0xf] %vm7417_vm2, %v9055_v63  ;;  %7705 = vst.msk [vmem:[%s10104_s26 + $0x47c] sm:$0xf] %vm7417_vm2, %v9311_v0  ;;  %v332_v63 = vld [vmem:[%s9679_s27 + $0x5b0] sm:$0xff]  ;;  %v847_v2 = vld [vmem:[%s9679_s27 + $0x15c8] sm:$0xff] }
 0x194   : > { %v2970_v7 = vpop.f32.mrb[64].mxu0  ;;  %v4250_v8 = vpop.f32.mrb[64].mxu1  ;;  %v844_v0 = vld [vmem:[%s9679_s27 + $0x15b0] sm:$0xff] }
 0x195   : > { %v9056_v9 = vpack.c.bf16 %v2970_v7, %v2970_v7  ;;  %v9312_v10 = vpack.c.bf16 %v4250_v8, %v4250_v8  ;;  %v2972_v11 = vpop.f32.mrb[65].mxu0  ;;  %3234 = vmatmul.mubr.f32.gmra.mrb[170].mxu0 %v320_v3  ;;  %v4252_v12 = vpop.f32.mrb[65].mxu1  ;;  %4514 = vmatmul.mubr.f32.gmra.mrb[170].mxu1 %v832_v4 }
 0x196   : > { %8083 = vmatprep.mubr.msk.f32.mxu0 %vm1203_vm0, %v323_v5  ;;  %8339 = vmatprep.mubr.msk.f32.mxu1 %vm1203_vm0, %v835_v6  ;;  %v337_v11 = vld [vmem:[%s9679_s27 + $0x5d8] sm:$0xff] }
 0x197   : > { %7450 = vst.msk [vmem:[%s10104_s26 + $0x80] sm:$0xf] %vm7417_vm2, %v9056_v9  ;;  %7706 = vst.msk [vmem:[%s10104_s26 + $0x480] sm:$0xf] %vm7417_vm2, %v9312_v10  ;;  %v334_v9 = vld [vmem:[%s9679_s27 + $0x5c0] sm:$0xff]  ;;  %v849_v12 = vld [vmem:[%s9679_s27 + $0x15d8] sm:$0xff] }
 0x198   : > { %v2975_v17 = vpop.f32.mrb[66].mxu0  ;;  %v4255_v18 = vpop.f32.mrb[66].mxu1  ;;  %v846_v10 = vld [vmem:[%s9679_s27 + $0x15c0] sm:$0xff] }
 0x199   : > { %v9057_v19 = vpack.c.bf16 %v2975_v17, %v2975_v17  ;;  %v9313_v20 = vpack.c.bf16 %v4255_v18, %v4255_v18  ;;  %v2977_v21 = vpop.f32.mrb[67].mxu0  ;;  %3239 = vmatmul.mubr.f32.gmra.mrb[172].mxu0 %v322_v13  ;;  %v4257_v22 = vpop.f32.mrb[67].mxu1  ;;  %4519 = vmatmul.mubr.f32.gmra.mrb[172].mxu1 %v834_v14 }
 0x19a   : > { %8084 = vmatprep.mubr.msk.f32.mxu0 %vm1203_vm0, %v325_v15  ;;  %8340 = vmatprep.mubr.msk.f32.mxu1 %vm1203_vm0, %v837_v16  ;;  %v339_v21 = vld [vmem:[%s9679_s27 + $0x5e8] sm:$0xff] }
 0x19b   : > { %7451 = vst.msk [vmem:[%s10104_s26 + $0x84] sm:$0xf] %vm7417_vm2, %v9057_v19  ;;  %7707 = vst.msk [vmem:[%s10104_s26 + $0x484] sm:$0xf] %vm7417_vm2, %v9313_v20  ;;  %v336_v19 = vld [vmem:[%s9679_s27 + $0x5d0] sm:$0xff]  ;;  %v851_v22 = vld [vmem:[%s9679_s27 + $0x15e8] sm:$0xff] }
 0x19c   : > { %v2980_v27 = vpop.f32.mrb[68].mxu0  ;;  %v4260_v28 = vpop.f32.mrb[68].mxu1  ;;  %v848_v20 = vld [vmem:[%s9679_s27 + $0x15d0] sm:$0xff] }
 0x19d   : > { %v9058_v29 = vpack.c.bf16 %v2980_v27, %v2980_v27  ;;  %v9314_v30 = vpack.c.bf16 %v4260_v28, %v4260_v28  ;;  %v2982_v31 = vpop.f32.mrb[69].mxu0  ;;  %3244 = vmatmul.mubr.f32.gmra.mrb[174].mxu0 %v324_v23  ;;  %v4262_v32 = vpop.f32.mrb[69].mxu1  ;;  %4524 = vmatmul.mubr.f32.gmra.mrb[174].mxu1 %v836_v24 }
 0x19e   : > { %8085 = vmatprep.mubr.msk.f32.mxu0 %vm1203_vm0, %v327_v25  ;;  %8341 = vmatprep.mubr.msk.f32.mxu1 %vm1203_vm0, %v839_v26  ;;  %v341_v31 = vld [vmem:[%s9679_s27 + $0x5f8] sm:$0xff] }
 0x19f   : > { %7452 = vst.msk [vmem:[%s10104_s26 + $0x88] sm:$0xf] %vm7417_vm2, %v9058_v29  ;;  %7708 = vst.msk [vmem:[%s10104_s26 + $0x488] sm:$0xf] %vm7417_vm2, %v9314_v30  ;;  %v338_v29 = vld [vmem:[%s9679_s27 + $0x5e0] sm:$0xff]  ;;  %v853_v32 = vld [vmem:[%s9679_s27 + $0x15f8] sm:$0xff] }
 0x1a0   : > { %v2985_v37 = vpop.f32.mrb[70].mxu0  ;;  %v4265_v38 = vpop.f32.mrb[70].mxu1  ;;  %v850_v30 = vld [vmem:[%s9679_s27 + $0x15e0] sm:$0xff] }
 0x1a1   : > { %v9059_v39 = vpack.c.bf16 %v2985_v37, %v2985_v37  ;;  %v9315_v40 = vpack.c.bf16 %v4265_v38, %v4265_v38  ;;  %v2987_v41 = vpop.f32.mrb[71].mxu0  ;;  %3249 = vmatmul.mubr.f32.gmra.mrb[176].mxu0 %v326_v33  ;;  %v4267_v42 = vpop.f32.mrb[71].mxu1  ;;  %4529 = vmatmul.mubr.f32.gmra.mrb[176].mxu1 %v838_v34 }
 0x1a2   : > { %8086 = vmatprep.mubr.msk.f32.mxu0 %vm1203_vm0, %v329_v35  ;;  %8342 = vmatprep.mubr.msk.f32.mxu1 %vm1203_vm0, %v841_v36  ;;  %v343_v41 = vld [vmem:[%s9679_s27 + $0x608] sm:$0xff] }
 0x1a3   : > { %7453 = vst.msk [vmem:[%s10104_s26 + $0x8c] sm:$0xf] %vm7417_vm2, %v9059_v39  ;;  %7709 = vst.msk [vmem:[%s10104_s26 + $0x48c] sm:$0xf] %vm7417_vm2, %v9315_v40  ;;  %v340_v39 = vld [vmem:[%s9679_s27 + $0x5f0] sm:$0xff]  ;;  %v855_v42 = vld [vmem:[%s9679_s27 + $0x1608] sm:$0xff] }
 0x1a4   : > { %v2990_v47 = vpop.f32.mrb[72].mxu0  ;;  %v4270_v48 = vpop.f32.mrb[72].mxu1  ;;  %v852_v40 = vld [vmem:[%s9679_s27 + $0x15f0] sm:$0xff] }
 0x1a5   : > { %v9060_v49 = vpack.c.bf16 %v2990_v47, %v2990_v47  ;;  %v9316_v50 = vpack.c.bf16 %v4270_v48, %v4270_v48  ;;  %v2992_v51 = vpop.f32.mrb[73].mxu0  ;;  %3254 = vmatmul.mubr.f32.gmra.mrb[178].mxu0 %v328_v43  ;;  %v4272_v52 = vpop.f32.mrb[73].mxu1  ;;  %4534 = vmatmul.mubr.f32.gmra.mrb[178].mxu1 %v840_v44 }
 0x1a6   : > { %8087 = vmatprep.mubr.msk.f32.mxu0 %vm1203_vm0, %v331_v45  ;;  %8343 = vmatprep.mubr.msk.f32.mxu1 %vm1203_vm0, %v843_v46  ;;  %v345_v51 = vld [vmem:[%s9679_s27 + $0x618] sm:$0xff] }
 0x1a7   : > { %7454 = vst.msk [vmem:[%s10104_s26 + $0x90] sm:$0xf] %vm7417_vm2, %v9060_v49  ;;  %7710 = vst.msk [vmem:[%s10104_s26 + $0x490] sm:$0xf] %vm7417_vm2, %v9316_v50  ;;  %v342_v49 = vld [vmem:[%s9679_s27 + $0x600] sm:$0xff]  ;;  %v857_v52 = vld [vmem:[%s9679_s27 + $0x1618] sm:$0xff] }
 0x1a8   : > { %v2995_v57 = vpop.f32.mrb[74].mxu0  ;;  %v4275_v58 = vpop.f32.mrb[74].mxu1  ;;  %v854_v50 = vld [vmem:[%s9679_s27 + $0x1600] sm:$0xff] }
 0x1a9   : > { %v9061_v59 = vpack.c.bf16 %v2995_v57, %v2995_v57  ;;  %v9317_v60 = vpack.c.bf16 %v4275_v58, %v4275_v58  ;;  %v2997_v61 = vpop.f32.mrb[75].mxu0  ;;  %3259 = vmatmul.mubr.f32.gmra.mrb[180].mxu0 %v330_v53  ;;  %v4277_v62 = vpop.f32.mrb[75].mxu1  ;;  %4539 = vmatmul.mubr.f32.gmra.mrb[180].mxu1 %v842_v54 }
 0x1aa   : > { %8088 = vmatprep.mubr.msk.f32.mxu0 %vm1203_vm0, %v333_v55  ;;  %8344 = vmatprep.mubr.msk.f32.mxu1 %vm1203_vm0, %v845_v56  ;;  %v347_v61 = vld [vmem:[%s9679_s27 + $0x628] sm:$0xff] }
 0x1ab   : > { %7455 = vst.msk [vmem:[%s10104_s26 + $0x94] sm:$0xf] %vm7417_vm2, %v9061_v59  ;;  %7711 = vst.msk [vmem:[%s10104_s26 + $0x494] sm:$0xf] %vm7417_vm2, %v9317_v60  ;;  %v344_v59 = vld [vmem:[%s9679_s27 + $0x610] sm:$0xff]  ;;  %v859_v62 = vld [vmem:[%s9679_s27 + $0x1628] sm:$0xff] }
 0x1ac   : > { %v3000_v3 = vpop.f32.mrb[76].mxu0  ;;  %v4280_v4 = vpop.f32.mrb[76].mxu1  ;;  %v856_v60 = vld [vmem:[%s9679_s27 + $0x1610] sm:$0xff] }
 0x1ad   : > { %v9062_v5 = vpack.c.bf16 %v3000_v3, %v3000_v3  ;;  %v9318_v6 = vpack.c.bf16 %v4280_v4, %v4280_v4  ;;  %v3002_v7 = vpop.f32.mrb[77].mxu0  ;;  %3264 = vmatmul.mubr.f32.gmra.mrb[182].mxu0 %v332_v63  ;;  %v4282_v8 = vpop.f32.mrb[77].mxu1  ;;  %4544 = vmatmul.mubr.f32.gmra.mrb[182].mxu1 %v844_v0 }
 0x1ae   : > { %8089 = vmatprep.mubr.msk.f32.mxu0 %vm1203_vm0, %v335_v1  ;;  %8345 = vmatprep.mubr.msk.f32.mxu1 %vm1203_vm0, %v847_v2  ;;  %v349_v7 = vld [vmem:[%s9679_s27 + $0x638] sm:$0xff] }
 0x1af   : > { %7456 = vst.msk [vmem:[%s10104_s26 + $0x98] sm:$0xf] %vm7417_vm2, %v9062_v5  ;;  %7712 = vst.msk [vmem:[%s10104_s26 + $0x498] sm:$0xf] %vm7417_vm2, %v9318_v6  ;;  %v346_v5 = vld [vmem:[%s9679_s27 + $0x620] sm:$0xff]  ;;  %v861_v8 = vld [vmem:[%s9679_s27 + $0x1638] sm:$0xff] }
 0x1b0   : > { %v3005_v13 = vpop.f32.mrb[78].mxu0  ;;  %v4285_v14 = vpop.f32.mrb[78].mxu1  ;;  %v858_v6 = vld [vmem:[%s9679_s27 + $0x1620] sm:$0xff] }
 0x1b1   : > { %v9063_v15 = vpack.c.bf16 %v3005_v13, %v3005_v13  ;;  %v9319_v16 = vpack.c.bf16 %v4285_v14, %v4285_v14  ;;  %v3007_v17 = vpop.f32.mrb[79].mxu0  ;;  %3269 = vmatmul.mubr.f32.gmra.mrb[184].mxu0 %v334_v9  ;;  %v4287_v18 = vpop.f32.mrb[79].mxu1  ;;  %4549 = vmatmul.mubr.f32.gmra.mrb[184].mxu1 %v846_v10 }
 0x1b2   : > { %8090 = vmatprep.mubr.msk.f32.mxu0 %vm1203_vm0, %v337_v11  ;;  %8346 = vmatprep.mubr.msk.f32.mxu1 %vm1203_vm0, %v849_v12  ;;  %v351_v17 = vld [vmem:[%s9679_s27 + $0x648] sm:$0xff] }
 0x1b3   : > { %7457 = vst.msk [vmem:[%s10104_s26 + $0x9c] sm:$0xf] %vm7417_vm2, %v9063_v15  ;;  %7713 = vst.msk [vmem:[%s10104_s26 + $0x49c] sm:$0xf] %vm7417_vm2, %v9319_v16  ;;  %v348_v15 = vld [vmem:[%s9679_s27 + $0x630] sm:$0xff]  ;;  %v863_v18 = vld [vmem:[%s9679_s27 + $0x1648] sm:$0xff] }
 0x1b4   : > { %v3010_v23 = vpop.f32.mrb[80].mxu0  ;;  %v4290_v24 = vpop.f32.mrb[80].mxu1  ;;  %v860_v16 = vld [vmem:[%s9679_s27 + $0x1630] sm:$0xff] }
 0x1b5   : > { %v9064_v25 = vpack.c.bf16 %v3010_v23, %v3010_v23  ;;  %v9320_v26 = vpack.c.bf16 %v4290_v24, %v4290_v24  ;;  %v3012_v27 = vpop.f32.mrb[81].mxu0  ;;  %3274 = vmatmul.mubr.f32.gmra.mrb[186].mxu0 %v336_v19  ;;  %v4292_v28 = vpop.f32.mrb[81].mxu1  ;;  %4554 = vmatmul.mubr.f32.gmra.mrb[186].mxu1 %v848_v20 }
 0x1b6   : > { %8091 = vmatprep.mubr.msk.f32.mxu0 %vm1203_vm0, %v339_v21  ;;  %8347 = vmatprep.mubr.msk.f32.mxu1 %vm1203_vm0, %v851_v22  ;;  %v353_v27 = vld [vmem:[%s9679_s27 + $0x658] sm:$0xff] }
 0x1b7   : > { %7458 = vst.msk [vmem:[%s10104_s26 + $0xa0] sm:$0xf] %vm7417_vm2, %v9064_v25  ;;  %7714 = vst.msk [vmem:[%s10104_s26 + $0x4a0] sm:$0xf] %vm7417_vm2, %v9320_v26  ;;  %v350_v25 = vld [vmem:[%s9679_s27 + $0x640] sm:$0xff]  ;;  %v865_v28 = vld [vmem:[%s9679_s27 + $0x1658] sm:$0xff] }
 0x1b8   : > { %v3015_v33 = vpop.f32.mrb[82].mxu0  ;;  %v4295_v34 = vpop.f32.mrb[82].mxu1  ;;  %v862_v26 = vld [vmem:[%s9679_s27 + $0x1640] sm:$0xff] }
 0x1b9   : > { %v9065_v35 = vpack.c.bf16 %v3015_v33, %v3015_v33  ;;  %v9321_v36 = vpack.c.bf16 %v4295_v34, %v4295_v34  ;;  %v3017_v37 = vpop.f32.mrb[83].mxu0  ;;  %3279 = vmatmul.mubr.f32.gmra.mrb[188].mxu0 %v338_v29  ;;  %v4297_v38 = vpop.f32.mrb[83].mxu1  ;;  %4559 = vmatmul.mubr.f32.gmra.mrb[188].mxu1 %v850_v30 }
 0x1ba   : > { %8092 = vmatprep.mubr.msk.f32.mxu0 %vm1203_vm0, %v341_v31  ;;  %8348 = vmatprep.mubr.msk.f32.mxu1 %vm1203_vm0, %v853_v32  ;;  %v355_v37 = vld [vmem:[%s9679_s27 + $0x668] sm:$0xff] }
 0x1bb   : > { %7459 = vst.msk [vmem:[%s10104_s26 + $0xa4] sm:$0xf] %vm7417_vm2, %v9065_v35  ;;  %7715 = vst.msk [vmem:[%s10104_s26 + $0x4a4] sm:$0xf] %vm7417_vm2, %v9321_v36  ;;  %v352_v35 = vld [vmem:[%s9679_s27 + $0x650] sm:$0xff]  ;;  %v867_v38 = vld [vmem:[%s9679_s27 + $0x1668] sm:$0xff] }
 0x1bc   : > { %v3020_v43 = vpop.f32.mrb[84].mxu0  ;;  %v4300_v44 = vpop.f32.mrb[84].mxu1  ;;  %v864_v36 = vld [vmem:[%s9679_s27 + $0x1650] sm:$0xff] }
 0x1bd   : > { %v9066_v45 = vpack.c.bf16 %v3020_v43, %v3020_v43  ;;  %v9322_v46 = vpack.c.bf16 %v4300_v44, %v4300_v44  ;;  %v3022_v47 = vpop.f32.mrb[85].mxu0  ;;  %3284 = vmatmul.mubr.f32.gmra.mrb[190].mxu0 %v340_v39  ;;  %v4302_v48 = vpop.f32.mrb[85].mxu1  ;;  %4564 = vmatmul.mubr.f32.gmra.mrb[190].mxu1 %v852_v40 }
 0x1be   : > { %8093 = vmatprep.mubr.msk.f32.mxu0 %vm1203_vm0, %v343_v41  ;;  %8349 = vmatprep.mubr.msk.f32.mxu1 %vm1203_vm0, %v855_v42  ;;  %v357_v47 = vld [vmem:[%s9679_s27 + $0x678] sm:$0xff] }
 0x1bf   : > { %7460 = vst.msk [vmem:[%s10104_s26 + $0xa8] sm:$0xf] %vm7417_vm2, %v9066_v45  ;;  %7716 = vst.msk [vmem:[%s10104_s26 + $0x4a8] sm:$0xf] %vm7417_vm2, %v9322_v46  ;;  %v354_v45 = vld [vmem:[%s9679_s27 + $0x660] sm:$0xff]  ;;  %v869_v48 = vld [vmem:[%s9679_s27 + $0x1678] sm:$0xff] }
 0x1c0   : > { %v3025_v53 = vpop.f32.mrb[86].mxu0  ;;  %v4305_v54 = vpop.f32.mrb[86].mxu1  ;;  %v866_v46 = vld [vmem:[%s9679_s27 + $0x1660] sm:$0xff] }
 0x1c1   : > { %v9067_v55 = vpack.c.bf16 %v3025_v53, %v3025_v53  ;;  %v9323_v56 = vpack.c.bf16 %v4305_v54, %v4305_v54  ;;  %v3027_v57 = vpop.f32.mrb[87].mxu0  ;;  %3289 = vmatmul.mubr.f32.gmra.mrb[192].mxu0 %v342_v49  ;;  %v4307_v58 = vpop.f32.mrb[87].mxu1  ;;  %4569 = vmatmul.mubr.f32.gmra.mrb[192].mxu1 %v854_v50 }
 0x1c2   : > { %8094 = vmatprep.mubr.msk.f32.mxu0 %vm1203_vm0, %v345_v51  ;;  %8350 = vmatprep.mubr.msk.f32.mxu1 %vm1203_vm0, %v857_v52  ;;  %v359_v57 = vld [vmem:[%s9679_s27 + $0x688] sm:$0xff] }
 0x1c3   : > { %7461 = vst.msk [vmem:[%s10104_s26 + $0xac] sm:$0xf] %vm7417_vm2, %v9067_v55  ;;  %7717 = vst.msk [vmem:[%s10104_s26 + $0x4ac] sm:$0xf] %vm7417_vm2, %v9323_v56  ;;  %v356_v55 = vld [vmem:[%s9679_s27 + $0x670] sm:$0xff]  ;;  %v871_v58 = vld [vmem:[%s9679_s27 + $0x1688] sm:$0xff] }
 0x1c4   : > { %v3030_v63 = vpop.f32.mrb[88].mxu0  ;;  %v4310_v0 = vpop.f32.mrb[88].mxu1  ;;  %v868_v56 = vld [vmem:[%s9679_s27 + $0x1670] sm:$0xff] }
 0x1c5   : > { %v9068_v1 = vpack.c.bf16 %v3030_v63, %v3030_v63  ;;  %v9324_v2 = vpack.c.bf16 %v4310_v0, %v4310_v0  ;;  %v3032_v3 = vpop.f32.mrb[89].mxu0  ;;  %3294 = vmatmul.mubr.f32.gmra.mrb[194].mxu0 %v344_v59  ;;  %v4312_v4 = vpop.f32.mrb[89].mxu1  ;;  %4574 = vmatmul.mubr.f32.gmra.mrb[194].mxu1 %v856_v60 }
 0x1c6   : > { %8095 = vmatprep.mubr.msk.f32.mxu0 %vm1203_vm0, %v347_v61  ;;  %8351 = vmatprep.mubr.msk.f32.mxu1 %vm1203_vm0, %v859_v62  ;;  %v361_v3 = vld [vmem:[%s9679_s27 + $0x698] sm:$0xff] }
 0x1c7   : > { %7462 = vst.msk [vmem:[%s10104_s26 + $0xb0] sm:$0xf] %vm7417_vm2, %v9068_v1  ;;  %7718 = vst.msk [vmem:[%s10104_s26 + $0x4b0] sm:$0xf] %vm7417_vm2, %v9324_v2  ;;  %v358_v1 = vld [vmem:[%s9679_s27 + $0x680] sm:$0xff]  ;;  %v873_v4 = vld [vmem:[%s9679_s27 + $0x1698] sm:$0xff] }
 0x1c8   : > { %v3035_v9 = vpop.f32.mrb[90].mxu0  ;;  %v4315_v10 = vpop.f32.mrb[90].mxu1  ;;  %v870_v2 = vld [vmem:[%s9679_s27 + $0x1680] sm:$0xff] }
 0x1c9   : > { %v9069_v11 = vpack.c.bf16 %v3035_v9, %v3035_v9  ;;  %v9325_v12 = vpack.c.bf16 %v4315_v10, %v4315_v10  ;;  %v3037_v13 = vpop.f32.mrb[91].mxu0  ;;  %3299 = vmatmul.mubr.f32.gmra.mrb[196].mxu0 %v346_v5  ;;  %v4317_v14 = vpop.f32.mrb[91].mxu1  ;;  %4579 = vmatmul.mubr.f32.gmra.mrb[196].mxu1 %v858_v6 }
 0x1ca   : > { %8096 = vmatprep.mubr.msk.f32.mxu0 %vm1203_vm0, %v349_v7  ;;  %8352 = vmatprep.mubr.msk.f32.mxu1 %vm1203_vm0, %v861_v8  ;;  %v363_v13 = vld [vmem:[%s9679_s27 + $0x6a8] sm:$0xff] }
 0x1cb   : > { %7463 = vst.msk [vmem:[%s10104_s26 + $0xb4] sm:$0xf] %vm7417_vm2, %v9069_v11  ;;  %7719 = vst.msk [vmem:[%s10104_s26 + $0x4b4] sm:$0xf] %vm7417_vm2, %v9325_v12  ;;  %v360_v11 = vld [vmem:[%s9679_s27 + $0x690] sm:$0xff]  ;;  %v875_v14 = vld [vmem:[%s9679_s27 + $0x16a8] sm:$0xff] }
 0x1cc   : > { %v3040_v19 = vpop.f32.mrb[92].mxu0  ;;  %v4320_v20 = vpop.f32.mrb[92].mxu1  ;;  %v872_v12 = vld [vmem:[%s9679_s27 + $0x1690] sm:$0xff] }
 0x1cd   : > { %v9070_v21 = vpack.c.bf16 %v3040_v19, %v3040_v19  ;;  %v9326_v22 = vpack.c.bf16 %v4320_v20, %v4320_v20  ;;  %v3042_v23 = vpop.f32.mrb[93].mxu0  ;;  %3304 = vmatmul.mubr.f32.gmra.mrb[198].mxu0 %v348_v15  ;;  %v4322_v24 = vpop.f32.mrb[93].mxu1  ;;  %4584 = vmatmul.mubr.f32.gmra.mrb[198].mxu1 %v860_v16 }
 0x1ce   : > { %8097 = vmatprep.mubr.msk.f32.mxu0 %vm1203_vm0, %v351_v17  ;;  %8353 = vmatprep.mubr.msk.f32.mxu1 %vm1203_vm0, %v863_v18  ;;  %v365_v23 = vld [vmem:[%s9679_s27 + $0x6b8] sm:$0xff] }
 0x1cf   : > { %7464 = vst.msk [vmem:[%s10104_s26 + $0xb8] sm:$0xf] %vm7417_vm2, %v9070_v21  ;;  %7720 = vst.msk [vmem:[%s10104_s26 + $0x4b8] sm:$0xf] %vm7417_vm2, %v9326_v22  ;;  %v362_v21 = vld [vmem:[%s9679_s27 + $0x6a0] sm:$0xff]  ;;  %v877_v24 = vld [vmem:[%s9679_s27 + $0x16b8] sm:$0xff] }
 0x1d0   : > { %v3045_v29 = vpop.f32.mrb[94].mxu0  ;;  %v4325_v30 = vpop.f32.mrb[94].mxu1  ;;  %v874_v22 = vld [vmem:[%s9679_s27 + $0x16a0] sm:$0xff] }
 0x1d1   : > { %v9071_v31 = vpack.c.bf16 %v3045_v29, %v3045_v29  ;;  %v9327_v32 = vpack.c.bf16 %v4325_v30, %v4325_v30  ;;  %v3047_v33 = vpop.f32.mrb[95].mxu0  ;;  %3309 = vmatmul.mubr.f32.gmra.mrb[200].mxu0 %v350_v25  ;;  %v4327_v34 = vpop.f32.mrb[95].mxu1  ;;  %4589 = vmatmul.mubr.f32.gmra.mrb[200].mxu1 %v862_v26 }
 0x1d2   : > { %8098 = vmatprep.mubr.msk.f32.mxu0 %vm1203_vm0, %v353_v27  ;;  %8354 = vmatprep.mubr.msk.f32.mxu1 %vm1203_vm0, %v865_v28  ;;  %v367_v33 = vld [vmem:[%s9679_s27 + $0x6c8] sm:$0xff] }
 0x1d3   : > { %7465 = vst.msk [vmem:[%s10104_s26 + $0xbc] sm:$0xf] %vm7417_vm2, %v9071_v31  ;;  %7721 = vst.msk [vmem:[%s10104_s26 + $0x4bc] sm:$0xf] %vm7417_vm2, %v9327_v32  ;;  %v364_v31 = vld [vmem:[%s9679_s27 + $0x6b0] sm:$0xff]  ;;  %v879_v34 = vld [vmem:[%s9679_s27 + $0x16c8] sm:$0xff] }
 0x1d4   : > { %v3050_v39 = vpop.f32.mrb[96].mxu0  ;;  %v4330_v40 = vpop.f32.mrb[96].mxu1  ;;  %v876_v32 = vld [vmem:[%s9679_s27 + $0x16b0] sm:$0xff] }
 0x1d5   : > { %v9072_v41 = vpack.c.bf16 %v3050_v39, %v3050_v39  ;;  %v9328_v42 = vpack.c.bf16 %v4330_v40, %v4330_v40  ;;  %v3052_v43 = vpop.f32.mrb[97].mxu0  ;;  %3314 = vmatmul.mubr.f32.gmra.mrb[202].mxu0 %v352_v35  ;;  %v4332_v44 = vpop.f32.mrb[97].mxu1  ;;  %4594 = vmatmul.mubr.f32.gmra.mrb[202].mxu1 %v864_v36 }
 0x1d6   : > { %8099 = vmatprep.mubr.msk.f32.mxu0 %vm1203_vm0, %v355_v37  ;;  %8355 = vmatprep.mubr.msk.f32.mxu1 %vm1203_vm0, %v867_v38  ;;  %v369_v43 = vld [vmem:[%s9679_s27 + $0x6d8] sm:$0xff] }
 0x1d7   : > { %7466 = vst.msk [vmem:[%s10104_s26 + $0xc0] sm:$0xf] %vm7417_vm2, %v9072_v41  ;;  %7722 = vst.msk [vmem:[%s10104_s26 + $0x4c0] sm:$0xf] %vm7417_vm2, %v9328_v42  ;;  %v366_v41 = vld [vmem:[%s9679_s27 + $0x6c0] sm:$0xff]  ;;  %v881_v44 = vld [vmem:[%s9679_s27 + $0x16d8] sm:$0xff] }
 0x1d8   : > { %v3055_v49 = vpop.f32.mrb[98].mxu0  ;;  %v4335_v50 = vpop.f32.mrb[98].mxu1  ;;  %v878_v42 = vld [vmem:[%s9679_s27 + $0x16c0] sm:$0xff] }
 0x1d9   : > { %v9073_v51 = vpack.c.bf16 %v3055_v49, %v3055_v49  ;;  %v9329_v52 = vpack.c.bf16 %v4335_v50, %v4335_v50  ;;  %v3057_v53 = vpop.f32.mrb[99].mxu0  ;;  %3319 = vmatmul.mubr.f32.gmra.mrb[204].mxu0 %v354_v45  ;;  %v4337_v54 = vpop.f32.mrb[99].mxu1  ;;  %4599 = vmatmul.mubr.f32.gmra.mrb[204].mxu1 %v866_v46 }
 0x1da   : > { %8100 = vmatprep.mubr.msk.f32.mxu0 %vm1203_vm0, %v357_v47  ;;  %8356 = vmatprep.mubr.msk.f32.mxu1 %vm1203_vm0, %v869_v48  ;;  %v371_v53 = vld [vmem:[%s9679_s27 + $0x6e8] sm:$0xff] }
 0x1db   : > { %7467 = vst.msk [vmem:[%s10104_s26 + $0xc4] sm:$0xf] %vm7417_vm2, %v9073_v51  ;;  %7723 = vst.msk [vmem:[%s10104_s26 + $0x4c4] sm:$0xf] %vm7417_vm2, %v9329_v52  ;;  %v368_v51 = vld [vmem:[%s9679_s27 + $0x6d0] sm:$0xff]  ;;  %v883_v54 = vld [vmem:[%s9679_s27 + $0x16e8] sm:$0xff] }
 0x1dc   : > { %v3060_v59 = vpop.f32.mrb[100].mxu0  ;;  %v4340_v60 = vpop.f32.mrb[100].mxu1  ;;  %v880_v52 = vld [vmem:[%s9679_s27 + $0x16d0] sm:$0xff] }
 0x1dd   : > { %v9074_v61 = vpack.c.bf16 %v3060_v59, %v3060_v59  ;;  %v9330_v62 = vpack.c.bf16 %v4340_v60, %v4340_v60  ;;  %v3062_v63 = vpop.f32.mrb[101].mxu0  ;;  %3324 = vmatmul.mubr.f32.gmra.mrb[206].mxu0 %v356_v55  ;;  %v4342_v0 = vpop.f32.mrb[101].mxu1  ;;  %4604 = vmatmul.mubr.f32.gmra.mrb[206].mxu1 %v868_v56 }
 0x1de   : > { %8101 = vmatprep.mubr.msk.f32.mxu0 %vm1203_vm0, %v359_v57  ;;  %8357 = vmatprep.mubr.msk.f32.mxu1 %vm1203_vm0, %v871_v58  ;;  %v373_v63 = vld [vmem:[%s9679_s27 + $0x6f8] sm:$0xff] }
 0x1df   : > { %7468 = vst.msk [vmem:[%s10104_s26 + $0xc8] sm:$0xf] %vm7417_vm2, %v9074_v61  ;;  %7724 = vst.msk [vmem:[%s10104_s26 + $0x4c8] sm:$0xf] %vm7417_vm2, %v9330_v62  ;;  %v370_v61 = vld [vmem:[%s9679_s27 + $0x6e0] sm:$0xff]  ;;  %v885_v0 = vld [vmem:[%s9679_s27 + $0x16f8] sm:$0xff] }
 0x1e0   : > { %v3065_v5 = vpop.f32.mrb[102].mxu0  ;;  %v4345_v6 = vpop.f32.mrb[102].mxu1  ;;  %v882_v62 = vld [vmem:[%s9679_s27 + $0x16e0] sm:$0xff] }
 0x1e1   : > { %v9075_v7 = vpack.c.bf16 %v3065_v5, %v3065_v5  ;;  %v9331_v8 = vpack.c.bf16 %v4345_v6, %v4345_v6  ;;  %v3067_v9 = vpop.f32.mrb[103].mxu0  ;;  %3329 = vmatmul.mubr.f32.gmra.mrb[208].mxu0 %v358_v1  ;;  %v4347_v10 = vpop.f32.mrb[103].mxu1  ;;  %4609 = vmatmul.mubr.f32.gmra.mrb[208].mxu1 %v870_v2 }
 0x1e2   : > { %8102 = vmatprep.mubr.msk.f32.mxu0 %vm1203_vm0, %v361_v3  ;;  %8358 = vmatprep.mubr.msk.f32.mxu1 %vm1203_vm0, %v873_v4  ;;  %v375_v9 = vld [vmem:[%s9679_s27 + $0x708] sm:$0xff] }
 0x1e3   : > { %7469 = vst.msk [vmem:[%s10104_s26 + $0xcc] sm:$0xf] %vm7417_vm2, %v9075_v7  ;;  %7725 = vst.msk [vmem:[%s10104_s26 + $0x4cc] sm:$0xf] %vm7417_vm2, %v9331_v8  ;;  %v372_v7 = vld [vmem:[%s9679_s27 + $0x6f0] sm:$0xff]  ;;  %v887_v10 = vld [vmem:[%s9679_s27 + $0x1708] sm:$0xff] }
 0x1e4   : > { %v3070_v15 = vpop.f32.mrb[104].mxu0  ;;  %v4350_v16 = vpop.f32.mrb[104].mxu1  ;;  %v884_v8 = vld [vmem:[%s9679_s27 + $0x16f0] sm:$0xff] }
 0x1e5   : > { %v9076_v17 = vpack.c.bf16 %v3070_v15, %v3070_v15  ;;  %v9332_v18 = vpack.c.bf16 %v4350_v16, %v4350_v16  ;;  %v3072_v19 = vpop.f32.mrb[105].mxu0  ;;  %3334 = vmatmul.mubr.f32.gmra.mrb[210].mxu0 %v360_v11  ;;  %v4352_v20 = vpop.f32.mrb[105].mxu1  ;;  %4614 = vmatmul.mubr.f32.gmra.mrb[210].mxu1 %v872_v12 }
 0x1e6   : > { %8103 = vmatprep.mubr.msk.f32.mxu0 %vm1203_vm0, %v363_v13  ;;  %8359 = vmatprep.mubr.msk.f32.mxu1 %vm1203_vm0, %v875_v14  ;;  %v377_v19 = vld [vmem:[%s9679_s27 + $0x718] sm:$0xff] }
 0x1e7   : > { %7470 = vst.msk [vmem:[%s10104_s26 + $0xd0] sm:$0xf] %vm7417_vm2, %v9076_v17  ;;  %7726 = vst.msk [vmem:[%s10104_s26 + $0x4d0] sm:$0xf] %vm7417_vm2, %v9332_v18  ;;  %v374_v17 = vld [vmem:[%s9679_s27 + $0x700] sm:$0xff]  ;;  %v889_v20 = vld [vmem:[%s9679_s27 + $0x1718] sm:$0xff] }
 0x1e8   : > { %v3075_v25 = vpop.f32.mrb[106].mxu0  ;;  %v4355_v26 = vpop.f32.mrb[106].mxu1  ;;  %v886_v18 = vld [vmem:[%s9679_s27 + $0x1700] sm:$0xff] }
 0x1e9   : > { %v9077_v27 = vpack.c.bf16 %v3075_v25, %v3075_v25  ;;  %v9333_v28 = vpack.c.bf16 %v4355_v26, %v4355_v26  ;;  %v3077_v29 = vpop.f32.mrb[107].mxu0  ;;  %3339 = vmatmul.mubr.f32.gmra.mrb[212].mxu0 %v362_v21  ;;  %v4357_v30 = vpop.f32.mrb[107].mxu1  ;;  %4619 = vmatmul.mubr.f32.gmra.mrb[212].mxu1 %v874_v22 }
 0x1ea   : > { %8104 = vmatprep.mubr.msk.f32.mxu0 %vm1203_vm0, %v365_v23  ;;  %8360 = vmatprep.mubr.msk.f32.mxu1 %vm1203_vm0, %v877_v24  ;;  %v379_v29 = vld [vmem:[%s9679_s27 + $0x728] sm:$0xff] }
 0x1eb   : > { %7471 = vst.msk [vmem:[%s10104_s26 + $0xd4] sm:$0xf] %vm7417_vm2, %v9077_v27  ;;  %7727 = vst.msk [vmem:[%s10104_s26 + $0x4d4] sm:$0xf] %vm7417_vm2, %v9333_v28  ;;  %v376_v27 = vld [vmem:[%s9679_s27 + $0x710] sm:$0xff]  ;;  %v891_v30 = vld [vmem:[%s9679_s27 + $0x1728] sm:$0xff] }
 0x1ec   : > { %v3080_v35 = vpop.f32.mrb[108].mxu0  ;;  %v4360_v36 = vpop.f32.mrb[108].mxu1  ;;  %v888_v28 = vld [vmem:[%s9679_s27 + $0x1710] sm:$0xff] }
 0x1ed   : > { %v9078_v37 = vpack.c.bf16 %v3080_v35, %v3080_v35  ;;  %v9334_v38 = vpack.c.bf16 %v4360_v36, %v4360_v36  ;;  %v3082_v39 = vpop.f32.mrb[109].mxu0  ;;  %3344 = vmatmul.mubr.f32.gmra.mrb[214].mxu0 %v364_v31  ;;  %v4362_v40 = vpop.f32.mrb[109].mxu1  ;;  %4624 = vmatmul.mubr.f32.gmra.mrb[214].mxu1 %v876_v32 }
 0x1ee   : > { %8105 = vmatprep.mubr.msk.f32.mxu0 %vm1203_vm0, %v367_v33  ;;  %8361 = vmatprep.mubr.msk.f32.mxu1 %vm1203_vm0, %v879_v34  ;;  %v381_v39 = vld [vmem:[%s9679_s27 + $0x738] sm:$0xff] }
 0x1ef   : > { %7472 = vst.msk [vmem:[%s10104_s26 + $0xd8] sm:$0xf] %vm7417_vm2, %v9078_v37  ;;  %7728 = vst.msk [vmem:[%s10104_s26 + $0x4d8] sm:$0xf] %vm7417_vm2, %v9334_v38  ;;  %v378_v37 = vld [vmem:[%s9679_s27 + $0x720] sm:$0xff]  ;;  %v893_v40 = vld [vmem:[%s9679_s27 + $0x1738] sm:$0xff] }
 0x1f0   : > { %v3085_v45 = vpop.f32.mrb[110].mxu0  ;;  %v4365_v46 = vpop.f32.mrb[110].mxu1  ;;  %v890_v38 = vld [vmem:[%s9679_s27 + $0x1720] sm:$0xff] }
 0x1f1   : > { %v9079_v47 = vpack.c.bf16 %v3085_v45, %v3085_v45  ;;  %v9335_v48 = vpack.c.bf16 %v4365_v46, %v4365_v46  ;;  %v3087_v49 = vpop.f32.mrb[111].mxu0  ;;  %3349 = vmatmul.mubr.f32.gmra.mrb[216].mxu0 %v366_v41  ;;  %v4367_v50 = vpop.f32.mrb[111].mxu1  ;;  %4629 = vmatmul.mubr.f32.gmra.mrb[216].mxu1 %v878_v42 }
 0x1f2   : > { %8106 = vmatprep.mubr.msk.f32.mxu0 %vm1203_vm0, %v369_v43  ;;  %8362 = vmatprep.mubr.msk.f32.mxu1 %vm1203_vm0, %v881_v44  ;;  %v383_v49 = vld [vmem:[%s9679_s27 + $0x748] sm:$0xff] }
 0x1f3   : > { %7473 = vst.msk [vmem:[%s10104_s26 + $0xdc] sm:$0xf] %vm7417_vm2, %v9079_v47  ;;  %7729 = vst.msk [vmem:[%s10104_s26 + $0x4dc] sm:$0xf] %vm7417_vm2, %v9335_v48  ;;  %v380_v47 = vld [vmem:[%s9679_s27 + $0x730] sm:$0xff]  ;;  %v895_v50 = vld [vmem:[%s9679_s27 + $0x1748] sm:$0xff] }
 0x1f4   : > { %v3090_v55 = vpop.f32.mrb[112].mxu0  ;;  %v4370_v56 = vpop.f32.mrb[112].mxu1  ;;  %v892_v48 = vld [vmem:[%s9679_s27 + $0x1730] sm:$0xff] }
 0x1f5   : > { %v9080_v57 = vpack.c.bf16 %v3090_v55, %v3090_v55  ;;  %v9336_v58 = vpack.c.bf16 %v4370_v56, %v4370_v56  ;;  %v3092_v59 = vpop.f32.mrb[113].mxu0  ;;  %3354 = vmatmul.mubr.f32.gmra.mrb[218].mxu0 %v368_v51  ;;  %v4372_v60 = vpop.f32.mrb[113].mxu1  ;;  %4634 = vmatmul.mubr.f32.gmra.mrb[218].mxu1 %v880_v52 }
 0x1f6   : > { %8107 = vmatprep.mubr.msk.f32.mxu0 %vm1203_vm0, %v371_v53  ;;  %8363 = vmatprep.mubr.msk.f32.mxu1 %vm1203_vm0, %v883_v54  ;;  %v385_v59 = vld [vmem:[%s9679_s27 + $0x758] sm:$0xff] }
 0x1f7   : > { %7474 = vst.msk [vmem:[%s10104_s26 + $0xe0] sm:$0xf] %vm7417_vm2, %v9080_v57  ;;  %7730 = vst.msk [vmem:[%s10104_s26 + $0x4e0] sm:$0xf] %vm7417_vm2, %v9336_v58  ;;  %v382_v57 = vld [vmem:[%s9679_s27 + $0x740] sm:$0xff]  ;;  %v897_v60 = vld [vmem:[%s9679_s27 + $0x1758] sm:$0xff] }
 0x1f8   : > { %v3095_v1 = vpop.f32.mrb[114].mxu0  ;;  %v4375_v2 = vpop.f32.mrb[114].mxu1  ;;  %v894_v58 = vld [vmem:[%s9679_s27 + $0x1740] sm:$0xff] }
 0x1f9   : > { %v9081_v3 = vpack.c.bf16 %v3095_v1, %v3095_v1  ;;  %v9337_v4 = vpack.c.bf16 %v4375_v2, %v4375_v2  ;;  %v3097_v5 = vpop.f32.mrb[115].mxu0  ;;  %3359 = vmatmul.mubr.f32.gmra.mrb[220].mxu0 %v370_v61  ;;  %v4377_v6 = vpop.f32.mrb[115].mxu1  ;;  %4639 = vmatmul.mubr.f32.gmra.mrb[220].mxu1 %v882_v62 }
 0x1fa   : > { %8108 = vmatprep.mubr.msk.f32.mxu0 %vm1203_vm0, %v373_v63  ;;  %8364 = vmatprep.mubr.msk.f32.mxu1 %vm1203_vm0, %v885_v0  ;;  %v387_v5 = vld [vmem:[%s9679_s27 + $0x768] sm:$0xff] }
 0x1fb   : > { %7475 = vst.msk [vmem:[%s10104_s26 + $0xe4] sm:$0xf] %vm7417_vm2, %v9081_v3  ;;  %7731 = vst.msk [vmem:[%s10104_s26 + $0x4e4] sm:$0xf] %vm7417_vm2, %v9337_v4  ;;  %v384_v3 = vld [vmem:[%s9679_s27 + $0x750] sm:$0xff]  ;;  %v899_v6 = vld [vmem:[%s9679_s27 + $0x1768] sm:$0xff] }
 0x1fc   : > { %v3100_v11 = vpop.f32.mrb[116].mxu0  ;;  %v4380_v12 = vpop.f32.mrb[116].mxu1  ;;  %v896_v4 = vld [vmem:[%s9679_s27 + $0x1750] sm:$0xff] }
 0x1fd   : > { %v9082_v13 = vpack.c.bf16 %v3100_v11, %v3100_v11  ;;  %v9338_v14 = vpack.c.bf16 %v4380_v12, %v4380_v12  ;;  %v3102_v15 = vpop.f32.mrb[117].mxu0  ;;  %3364 = vmatmul.mubr.f32.gmra.mrb[222].mxu0 %v372_v7  ;;  %v4382_v16 = vpop.f32.mrb[117].mxu1  ;;  %4644 = vmatmul.mubr.f32.gmra.mrb[222].mxu1 %v884_v8 }
 0x1fe   : > { %8109 = vmatprep.mubr.msk.f32.mxu0 %vm1203_vm0, %v375_v9  ;;  %8365 = vmatprep.mubr.msk.f32.mxu1 %vm1203_vm0, %v887_v10  ;;  %v389_v15 = vld [vmem:[%s9679_s27 + $0x778] sm:$0xff] }
 0x1ff   : > { %7476 = vst.msk [vmem:[%s10104_s26 + $0xe8] sm:$0xf] %vm7417_vm2, %v9082_v13  ;;  %7732 = vst.msk [vmem:[%s10104_s26 + $0x4e8] sm:$0xf] %vm7417_vm2, %v9338_v14  ;;  %v386_v13 = vld [vmem:[%s9679_s27 + $0x760] sm:$0xff]  ;;  %v901_v16 = vld [vmem:[%s9679_s27 + $0x1778] sm:$0xff] }
 0x200   : > { %v3105_v21 = vpop.f32.mrb[118].mxu0  ;;  %v4385_v22 = vpop.f32.mrb[118].mxu1  ;;  %v898_v14 = vld [vmem:[%s9679_s27 + $0x1760] sm:$0xff] }
 0x201   : > { %v9083_v23 = vpack.c.bf16 %v3105_v21, %v3105_v21  ;;  %v9339_v24 = vpack.c.bf16 %v4385_v22, %v4385_v22  ;;  %v3107_v25 = vpop.f32.mrb[119].mxu0  ;;  %3369 = vmatmul.mubr.f32.gmra.mrb[224].mxu0 %v374_v17  ;;  %v4387_v26 = vpop.f32.mrb[119].mxu1  ;;  %4649 = vmatmul.mubr.f32.gmra.mrb[224].mxu1 %v886_v18 }
 0x202   : > { %8110 = vmatprep.mubr.msk.f32.mxu0 %vm1203_vm0, %v377_v19  ;;  %8366 = vmatprep.mubr.msk.f32.mxu1 %vm1203_vm0, %v889_v20  ;;  %v391_v25 = vld [vmem:[%s9679_s27 + $0x788] sm:$0xff] }
 0x203   : > { %7477 = vst.msk [vmem:[%s10104_s26 + $0xec] sm:$0xf] %vm7417_vm2, %v9083_v23  ;;  %7733 = vst.msk [vmem:[%s10104_s26 + $0x4ec] sm:$0xf] %vm7417_vm2, %v9339_v24  ;;  %v388_v23 = vld [vmem:[%s9679_s27 + $0x770] sm:$0xff]  ;;  %v903_v26 = vld [vmem:[%s9679_s27 + $0x1788] sm:$0xff] }
 0x204   : > { %v3110_v31 = vpop.f32.mrb[120].mxu0  ;;  %v4390_v32 = vpop.f32.mrb[120].mxu1  ;;  %v900_v24 = vld [vmem:[%s9679_s27 + $0x1770] sm:$0xff] }
 0x205   : > { %v9084_v33 = vpack.c.bf16 %v3110_v31, %v3110_v31  ;;  %v9340_v34 = vpack.c.bf16 %v4390_v32, %v4390_v32  ;;  %v3112_v35 = vpop.f32.mrb[121].mxu0  ;;  %3374 = vmatmul.mubr.f32.gmra.mrb[226].mxu0 %v376_v27  ;;  %v4392_v36 = vpop.f32.mrb[121].mxu1  ;;  %4654 = vmatmul.mubr.f32.gmra.mrb[226].mxu1 %v888_v28 }
 0x206   : > { %8111 = vmatprep.mubr.msk.f32.mxu0 %vm1203_vm0, %v379_v29  ;;  %8367 = vmatprep.mubr.msk.f32.mxu1 %vm1203_vm0, %v891_v30  ;;  %v393_v35 = vld [vmem:[%s9679_s27 + $0x798] sm:$0xff] }
 0x207   : > { %7478 = vst.msk [vmem:[%s10104_s26 + $0xf0] sm:$0xf] %vm7417_vm2, %v9084_v33  ;;  %7734 = vst.msk [vmem:[%s10104_s26 + $0x4f0] sm:$0xf] %vm7417_vm2, %v9340_v34  ;;  %v390_v33 = vld [vmem:[%s9679_s27 + $0x780] sm:$0xff]  ;;  %v905_v36 = vld [vmem:[%s9679_s27 + $0x1798] sm:$0xff] }
 0x208   : > { %v3115_v41 = vpop.f32.mrb[122].mxu0  ;;  %v4395_v42 = vpop.f32.mrb[122].mxu1  ;;  %v902_v34 = vld [vmem:[%s9679_s27 + $0x1780] sm:$0xff] }
 0x209   : > { %v9085_v43 = vpack.c.bf16 %v3115_v41, %v3115_v41  ;;  %v9341_v44 = vpack.c.bf16 %v4395_v42, %v4395_v42  ;;  %v3117_v45 = vpop.f32.mrb[123].mxu0  ;;  %3379 = vmatmul.mubr.f32.gmra.mrb[228].mxu0 %v378_v37  ;;  %v4397_v46 = vpop.f32.mrb[123].mxu1  ;;  %4659 = vmatmul.mubr.f32.gmra.mrb[228].mxu1 %v890_v38 }
 0x20a   : > { %8112 = vmatprep.mubr.msk.f32.mxu0 %vm1203_vm0, %v381_v39  ;;  %8368 = vmatprep.mubr.msk.f32.mxu1 %vm1203_vm0, %v893_v40  ;;  %v395_v45 = vld [vmem:[%s9679_s27 + $0x7a8] sm:$0xff] }
 0x20b   : > { %7479 = vst.msk [vmem:[%s10104_s26 + $0xf4] sm:$0xf] %vm7417_vm2, %v9085_v43  ;;  %7735 = vst.msk [vmem:[%s10104_s26 + $0x4f4] sm:$0xf] %vm7417_vm2, %v9341_v44  ;;  %v392_v43 = vld [vmem:[%s9679_s27 + $0x790] sm:$0xff]  ;;  %v907_v46 = vld [vmem:[%s9679_s27 + $0x17a8] sm:$0xff] }
 0x20c   : > { %v3120_v51 = vpop.f32.mrb[124].mxu0  ;;  %v4400_v52 = vpop.f32.mrb[124].mxu1  ;;  %v904_v44 = vld [vmem:[%s9679_s27 + $0x1790] sm:$0xff] }
 0x20d   : > { %v9086_v53 = vpack.c.bf16 %v3120_v51, %v3120_v51  ;;  %v9342_v54 = vpack.c.bf16 %v4400_v52, %v4400_v52  ;;  %v3122_v55 = vpop.f32.mrb[125].mxu0  ;;  %3384 = vmatmul.mubr.f32.gmra.mrb[230].mxu0 %v380_v47  ;;  %v4402_v56 = vpop.f32.mrb[125].mxu1  ;;  %4664 = vmatmul.mubr.f32.gmra.mrb[230].mxu1 %v892_v48 }
 0x20e   : > { %8113 = vmatprep.mubr.msk.f32.mxu0 %vm1203_vm0, %v383_v49  ;;  %8369 = vmatprep.mubr.msk.f32.mxu1 %vm1203_vm0, %v895_v50  ;;  %v397_v55 = vld [vmem:[%s9679_s27 + $0x7b8] sm:$0xff] }
 0x20f   : > { %7480 = vst.msk [vmem:[%s10104_s26 + $0xf8] sm:$0xf] %vm7417_vm2, %v9086_v53  ;;  %7736 = vst.msk [vmem:[%s10104_s26 + $0x4f8] sm:$0xf] %vm7417_vm2, %v9342_v54  ;;  %v394_v53 = vld [vmem:[%s9679_s27 + $0x7a0] sm:$0xff]  ;;  %v909_v56 = vld [vmem:[%s9679_s27 + $0x17b8] sm:$0xff] }
 0x210   : > { %v3125_v61 = vpop.f32.mrb[126].mxu0  ;;  %v4405_v62 = vpop.f32.mrb[126].mxu1  ;;  %v906_v54 = vld [vmem:[%s9679_s27 + $0x17a0] sm:$0xff] }
 0x211   : > { %v9087_v63 = vpack.c.bf16 %v3125_v61, %v3125_v61  ;;  %v9343_v0 = vpack.c.bf16 %v4405_v62, %v4405_v62  ;;  %v3127_v1 = vpop.f32.mrb[127].mxu0  ;;  %3389 = vmatmul.mubr.f32.gmra.mrb[232].mxu0 %v382_v57  ;;  %v4407_v2 = vpop.f32.mrb[127].mxu1  ;;  %4669 = vmatmul.mubr.f32.gmra.mrb[232].mxu1 %v894_v58 }
 0x212   : > { %8114 = vmatprep.mubr.msk.f32.mxu0 %vm1203_vm0, %v385_v59  ;;  %8370 = vmatprep.mubr.msk.f32.mxu1 %vm1203_vm0, %v897_v60  ;;  %v399_v1 = vld [vmem:[%s9679_s27 + $0x7c8] sm:$0xff] }
 0x213   : > { %7481 = vst.msk [vmem:[%s10104_s26 + $0xfc] sm:$0xf] %vm7417_vm2, %v9087_v63  ;;  %7737 = vst.msk [vmem:[%s10104_s26 + $0x4fc] sm:$0xf] %vm7417_vm2, %v9343_v0  ;;  %v396_v63 = vld [vmem:[%s9679_s27 + $0x7b0] sm:$0xff]  ;;  %v911_v2 = vld [vmem:[%s9679_s27 + $0x17c8] sm:$0xff] }
 0x214   : > { %v3130_v7 = vpop.f32.mrb[128].mxu0  ;;  %v4410_v8 = vpop.f32.mrb[128].mxu1  ;;  %v908_v0 = vld [vmem:[%s9679_s27 + $0x17b0] sm:$0xff] }
 0x215   : > { %v9088_v9 = vpack.c.bf16 %v3130_v7, %v3130_v7  ;;  %v9344_v10 = vpack.c.bf16 %v4410_v8, %v4410_v8  ;;  %v3132_v11 = vpop.f32.mrb[129].mxu0  ;;  %3394 = vmatmul.mubr.f32.gmra.mrb[234].mxu0 %v384_v3  ;;  %v4412_v12 = vpop.f32.mrb[129].mxu1  ;;  %4674 = vmatmul.mubr.f32.gmra.mrb[234].mxu1 %v896_v4 }
 0x216   : > { %8115 = vmatprep.mubr.msk.f32.mxu0 %vm1203_vm0, %v387_v5  ;;  %8371 = vmatprep.mubr.msk.f32.mxu1 %vm1203_vm0, %v899_v6  ;;  %v401_v11 = vld [vmem:[%s9679_s27 + $0x7d8] sm:$0xff] }
 0x217   : > { %7482 = vst.msk [vmem:[%s10104_s26 + $0x100] sm:$0xf] %vm7417_vm2, %v9088_v9  ;;  %7738 = vst.msk [vmem:[%s10104_s26 + $0x500] sm:$0xf] %vm7417_vm2, %v9344_v10  ;;  %v398_v9 = vld [vmem:[%s9679_s27 + $0x7c0] sm:$0xff]  ;;  %v913_v12 = vld [vmem:[%s9679_s27 + $0x17d8] sm:$0xff] }
 0x218   : > { %v3135_v17 = vpop.f32.mrb[130].mxu0  ;;  %v4415_v18 = vpop.f32.mrb[130].mxu1  ;;  %v910_v10 = vld [vmem:[%s9679_s27 + $0x17c0] sm:$0xff] }
 0x219   : > { %v9089_v19 = vpack.c.bf16 %v3135_v17, %v3135_v17  ;;  %v9345_v20 = vpack.c.bf16 %v4415_v18, %v4415_v18  ;;  %v3137_v21 = vpop.f32.mrb[131].mxu0  ;;  %3399 = vmatmul.mubr.f32.gmra.mrb[236].mxu0 %v386_v13  ;;  %v4417_v22 = vpop.f32.mrb[131].mxu1  ;;  %4679 = vmatmul.mubr.f32.gmra.mrb[236].mxu1 %v898_v14 }
 0x21a   : > { %8116 = vmatprep.mubr.msk.f32.mxu0 %vm1203_vm0, %v389_v15  ;;  %8372 = vmatprep.mubr.msk.f32.mxu1 %vm1203_vm0, %v901_v16  ;;  %v403_v21 = vld [vmem:[%s9679_s27 + $0x7e8] sm:$0xff] }
 0x21b   : > { %7483 = vst.msk [vmem:[%s10104_s26 + $0x104] sm:$0xf] %vm7417_vm2, %v9089_v19  ;;  %7739 = vst.msk [vmem:[%s10104_s26 + $0x504] sm:$0xf] %vm7417_vm2, %v9345_v20  ;;  %v400_v19 = vld [vmem:[%s9679_s27 + $0x7d0] sm:$0xff]  ;;  %v915_v22 = vld [vmem:[%s9679_s27 + $0x17e8] sm:$0xff] }
 0x21c   : > { %v3140_v27 = vpop.f32.mrb[132].mxu0  ;;  %v4420_v28 = vpop.f32.mrb[132].mxu1  ;;  %v912_v20 = vld [vmem:[%s9679_s27 + $0x17d0] sm:$0xff] }
 0x21d   : > { %v9090_v29 = vpack.c.bf16 %v3140_v27, %v3140_v27  ;;  %v9346_v30 = vpack.c.bf16 %v4420_v28, %v4420_v28  ;;  %v3142_v31 = vpop.f32.mrb[133].mxu0  ;;  %3404 = vmatmul.mubr.f32.gmra.mrb[238].mxu0 %v388_v23  ;;  %v4422_v32 = vpop.f32.mrb[133].mxu1  ;;  %4684 = vmatmul.mubr.f32.gmra.mrb[238].mxu1 %v900_v24 }
 0x21e   : > { %8117 = vmatprep.mubr.msk.f32.mxu0 %vm1203_vm0, %v391_v25  ;;  %8373 = vmatprep.mubr.msk.f32.mxu1 %vm1203_vm0, %v903_v26  ;;  %v405_v31 = vld [vmem:[%s9679_s27 + $0x7f8] sm:$0xff] }
 0x21f   : > { %7484 = vst.msk [vmem:[%s10104_s26 + $0x108] sm:$0xf] %vm7417_vm2, %v9090_v29  ;;  %7740 = vst.msk [vmem:[%s10104_s26 + $0x508] sm:$0xf] %vm7417_vm2, %v9346_v30  ;;  %v402_v29 = vld [vmem:[%s9679_s27 + $0x7e0] sm:$0xff]  ;;  %v917_v32 = vld [vmem:[%s9679_s27 + $0x17f8] sm:$0xff] }
 0x220   : > { %v3145_v37 = vpop.f32.mrb[134].mxu0  ;;  %v4425_v38 = vpop.f32.mrb[134].mxu1  ;;  %v914_v30 = vld [vmem:[%s9679_s27 + $0x17e0] sm:$0xff] }
 0x221   : > { %v9091_v39 = vpack.c.bf16 %v3145_v37, %v3145_v37  ;;  %v9347_v40 = vpack.c.bf16 %v4425_v38, %v4425_v38  ;;  %v3147_v41 = vpop.f32.mrb[135].mxu0  ;;  %3409 = vmatmul.mubr.f32.gmra.mrb[240].mxu0 %v390_v33  ;;  %v4427_v42 = vpop.f32.mrb[135].mxu1  ;;  %4689 = vmatmul.mubr.f32.gmra.mrb[240].mxu1 %v902_v34 }
 0x222   : > { %8118 = vmatprep.mubr.msk.f32.mxu0 %vm1203_vm0, %v393_v35  ;;  %8374 = vmatprep.mubr.msk.f32.mxu1 %vm1203_vm0, %v905_v36  ;;  %v407_v41 = vld [vmem:[%s9679_s27 + $0x808] sm:$0xff] }
 0x223   : > { %7485 = vst.msk [vmem:[%s10104_s26 + $0x10c] sm:$0xf] %vm7417_vm2, %v9091_v39  ;;  %7741 = vst.msk [vmem:[%s10104_s26 + $0x50c] sm:$0xf] %vm7417_vm2, %v9347_v40  ;;  %v404_v39 = vld [vmem:[%s9679_s27 + $0x7f0] sm:$0xff]  ;;  %v919_v42 = vld [vmem:[%s9679_s27 + $0x1808] sm:$0xff] }
 0x224   : > { %v3150_v47 = vpop.f32.mrb[136].mxu0  ;;  %v4430_v48 = vpop.f32.mrb[136].mxu1  ;;  %v916_v40 = vld [vmem:[%s9679_s27 + $0x17f0] sm:$0xff] }
 0x225   : > { %v9092_v49 = vpack.c.bf16 %v3150_v47, %v3150_v47  ;;  %v9348_v50 = vpack.c.bf16 %v4430_v48, %v4430_v48  ;;  %v3152_v51 = vpop.f32.mrb[137].mxu0  ;;  %3414 = vmatmul.mubr.f32.gmra.mrb[242].mxu0 %v392_v43  ;;  %v4432_v52 = vpop.f32.mrb[137].mxu1  ;;  %4694 = vmatmul.mubr.f32.gmra.mrb[242].mxu1 %v904_v44 }
 0x226   : > { %8119 = vmatprep.mubr.msk.f32.mxu0 %vm1203_vm0, %v395_v45  ;;  %8375 = vmatprep.mubr.msk.f32.mxu1 %vm1203_vm0, %v907_v46  ;;  %v409_v51 = vld [vmem:[%s9679_s27 + $0x818] sm:$0xff] }
 0x227   : > { %7486 = vst.msk [vmem:[%s10104_s26 + $0x110] sm:$0xf] %vm7417_vm2, %v9092_v49  ;;  %7742 = vst.msk [vmem:[%s10104_s26 + $0x510] sm:$0xf] %vm7417_vm2, %v9348_v50  ;;  %v406_v49 = vld [vmem:[%s9679_s27 + $0x800] sm:$0xff]  ;;  %v921_v52 = vld [vmem:[%s9679_s27 + $0x1818] sm:$0xff] }
 0x228   : > { %v3155_v57 = vpop.f32.mrb[138].mxu0  ;;  %v4435_v58 = vpop.f32.mrb[138].mxu1  ;;  %v918_v50 = vld [vmem:[%s9679_s27 + $0x1800] sm:$0xff] }
 0x229   : > { %v9093_v59 = vpack.c.bf16 %v3155_v57, %v3155_v57  ;;  %v9349_v60 = vpack.c.bf16 %v4435_v58, %v4435_v58  ;;  %v3157_v61 = vpop.f32.mrb[139].mxu0  ;;  %3419 = vmatmul.mubr.f32.gmra.mrb[244].mxu0 %v394_v53  ;;  %v4437_v62 = vpop.f32.mrb[139].mxu1  ;;  %4699 = vmatmul.mubr.f32.gmra.mrb[244].mxu1 %v906_v54 }
 0x22a   : > { %8120 = vmatprep.mubr.msk.f32.mxu0 %vm1203_vm0, %v397_v55  ;;  %8376 = vmatprep.mubr.msk.f32.mxu1 %vm1203_vm0, %v909_v56  ;;  %v411_v61 = vld [vmem:[%s9679_s27 + $0x828] sm:$0xff] }
 0x22b   : > { %7487 = vst.msk [vmem:[%s10104_s26 + $0x114] sm:$0xf] %vm7417_vm2, %v9093_v59  ;;  %7743 = vst.msk [vmem:[%s10104_s26 + $0x514] sm:$0xf] %vm7417_vm2, %v9349_v60  ;;  %v408_v59 = vld [vmem:[%s9679_s27 + $0x810] sm:$0xff]  ;;  %v923_v62 = vld [vmem:[%s9679_s27 + $0x1828] sm:$0xff] }
 0x22c   : > { %v3160_v3 = vpop.f32.mrb[140].mxu0  ;;  %v4440_v4 = vpop.f32.mrb[140].mxu1  ;;  %v920_v60 = vld [vmem:[%s9679_s27 + $0x1810] sm:$0xff] }
 0x22d   : > { %v9094_v5 = vpack.c.bf16 %v3160_v3, %v3160_v3  ;;  %v9350_v6 = vpack.c.bf16 %v4440_v4, %v4440_v4  ;;  %v3162_v7 = vpop.f32.mrb[141].mxu0  ;;  %3424 = vmatmul.mubr.f32.gmra.mrb[246].mxu0 %v396_v63  ;;  %v4442_v8 = vpop.f32.mrb[141].mxu1  ;;  %4704 = vmatmul.mubr.f32.gmra.mrb[246].mxu1 %v908_v0 }
 0x22e   : > { %8121 = vmatprep.mubr.msk.f32.mxu0 %vm1203_vm0, %v399_v1  ;;  %8377 = vmatprep.mubr.msk.f32.mxu1 %vm1203_vm0, %v911_v2  ;;  %v413_v7 = vld [vmem:[%s9679_s27 + $0x838] sm:$0xff] }
 0x22f   : > { %7488 = vst.msk [vmem:[%s10104_s26 + $0x118] sm:$0xf] %vm7417_vm2, %v9094_v5  ;;  %7744 = vst.msk [vmem:[%s10104_s26 + $0x518] sm:$0xf] %vm7417_vm2, %v9350_v6  ;;  %v410_v5 = vld [vmem:[%s9679_s27 + $0x820] sm:$0xff]  ;;  %v925_v8 = vld [vmem:[%s9679_s27 + $0x1838] sm:$0xff] }
 0x230   : > { %v3165_v13 = vpop.f32.mrb[142].mxu0  ;;  %v4445_v14 = vpop.f32.mrb[142].mxu1  ;;  %v922_v6 = vld [vmem:[%s9679_s27 + $0x1820] sm:$0xff] }
 0x231   : > { %v9095_v15 = vpack.c.bf16 %v3165_v13, %v3165_v13  ;;  %v9351_v16 = vpack.c.bf16 %v4445_v14, %v4445_v14  ;;  %v3167_v17 = vpop.f32.mrb[143].mxu0  ;;  %3429 = vmatmul.mubr.f32.gmra.mrb[248].mxu0 %v398_v9  ;;  %v4447_v18 = vpop.f32.mrb[143].mxu1  ;;  %4709 = vmatmul.mubr.f32.gmra.mrb[248].mxu1 %v910_v10 }
 0x232   : > { %8122 = vmatprep.mubr.msk.f32.mxu0 %vm1203_vm0, %v401_v11  ;;  %8378 = vmatprep.mubr.msk.f32.mxu1 %vm1203_vm0, %v913_v12  ;;  %v415_v17 = vld [vmem:[%s9679_s27 + $0x848] sm:$0xff] }
 0x233   : > { %7489 = vst.msk [vmem:[%s10104_s26 + $0x11c] sm:$0xf] %vm7417_vm2, %v9095_v15  ;;  %7745 = vst.msk [vmem:[%s10104_s26 + $0x51c] sm:$0xf] %vm7417_vm2, %v9351_v16  ;;  %v412_v15 = vld [vmem:[%s9679_s27 + $0x830] sm:$0xff]  ;;  %v927_v18 = vld [vmem:[%s9679_s27 + $0x1848] sm:$0xff] }
 0x234   : > { %v3170_v23 = vpop.f32.mrb[144].mxu0  ;;  %v4450_v24 = vpop.f32.mrb[144].mxu1  ;;  %v924_v16 = vld [vmem:[%s9679_s27 + $0x1830] sm:$0xff] }
 0x235   : > { %v9096_v25 = vpack.c.bf16 %v3170_v23, %v3170_v23  ;;  %v9352_v26 = vpack.c.bf16 %v4450_v24, %v4450_v24  ;;  %v3172_v27 = vpop.f32.mrb[145].mxu0  ;;  %3434 = vmatmul.mubr.f32.gmra.mrb[250].mxu0 %v400_v19  ;;  %v4452_v28 = vpop.f32.mrb[145].mxu1  ;;  %4714 = vmatmul.mubr.f32.gmra.mrb[250].mxu1 %v912_v20 }
 0x236   : > { %8123 = vmatprep.mubr.msk.f32.mxu0 %vm1203_vm0, %v403_v21  ;;  %8379 = vmatprep.mubr.msk.f32.mxu1 %vm1203_vm0, %v915_v22  ;;  %v417_v27 = vld [vmem:[%s9679_s27 + $0x858] sm:$0xff] }
 0x237   : > { %7490 = vst.msk [vmem:[%s10104_s26 + $0x120] sm:$0xf] %vm7417_vm2, %v9096_v25  ;;  %7746 = vst.msk [vmem:[%s10104_s26 + $0x520] sm:$0xf] %vm7417_vm2, %v9352_v26  ;;  %v414_v25 = vld [vmem:[%s9679_s27 + $0x840] sm:$0xff]  ;;  %v929_v28 = vld [vmem:[%s9679_s27 + $0x1858] sm:$0xff] }
 0x238   : > { %v3175_v33 = vpop.f32.mrb[146].mxu0  ;;  %v4455_v34 = vpop.f32.mrb[146].mxu1  ;;  %v926_v26 = vld [vmem:[%s9679_s27 + $0x1840] sm:$0xff] }
 0x239   : > { %v9097_v35 = vpack.c.bf16 %v3175_v33, %v3175_v33  ;;  %v9353_v36 = vpack.c.bf16 %v4455_v34, %v4455_v34  ;;  %v3177_v37 = vpop.f32.mrb[147].mxu0  ;;  %3439 = vmatmul.mubr.f32.gmra.mrb[252].mxu0 %v402_v29  ;;  %v4457_v38 = vpop.f32.mrb[147].mxu1  ;;  %4719 = vmatmul.mubr.f32.gmra.mrb[252].mxu1 %v914_v30 }
 0x23a   : > { %8124 = vmatprep.mubr.msk.f32.mxu0 %vm1203_vm0, %v405_v31  ;;  %8380 = vmatprep.mubr.msk.f32.mxu1 %vm1203_vm0, %v917_v32  ;;  %v419_v37 = vld [vmem:[%s9679_s27 + $0x868] sm:$0xff] }
 0x23b   : > { %7491 = vst.msk [vmem:[%s10104_s26 + $0x124] sm:$0xf] %vm7417_vm2, %v9097_v35  ;;  %7747 = vst.msk [vmem:[%s10104_s26 + $0x524] sm:$0xf] %vm7417_vm2, %v9353_v36  ;;  %v416_v35 = vld [vmem:[%s9679_s27 + $0x850] sm:$0xff]  ;;  %v931_v38 = vld [vmem:[%s9679_s27 + $0x1868] sm:$0xff] }
 0x23c   : > { %v3180_v43 = vpop.f32.mrb[148].mxu0  ;;  %v4460_v44 = vpop.f32.mrb[148].mxu1  ;;  %v928_v36 = vld [vmem:[%s9679_s27 + $0x1850] sm:$0xff] }
 0x23d   : > { %v9098_v45 = vpack.c.bf16 %v3180_v43, %v3180_v43  ;;  %v9354_v46 = vpack.c.bf16 %v4460_v44, %v4460_v44  ;;  %v3182_v47 = vpop.f32.mrb[149].mxu0  ;;  %3444 = vmatmul.mubr.f32.gmra.mrb[254].mxu0 %v404_v39  ;;  %v4462_v48 = vpop.f32.mrb[149].mxu1  ;;  %4724 = vmatmul.mubr.f32.gmra.mrb[254].mxu1 %v916_v40 }
 0x23e   : > { %8125 = vmatprep.mubr.msk.f32.mxu0 %vm1203_vm0, %v407_v41  ;;  %8381 = vmatprep.mubr.msk.f32.mxu1 %vm1203_vm0, %v919_v42  ;;  %v421_v47 = vld [vmem:[%s9679_s27 + $0x878] sm:$0xff] }
 0x23f   : > { %7492 = vst.msk [vmem:[%s10104_s26 + $0x128] sm:$0xf] %vm7417_vm2, %v9098_v45  ;;  %7748 = vst.msk [vmem:[%s10104_s26 + $0x528] sm:$0xf] %vm7417_vm2, %v9354_v46  ;;  %v418_v45 = vld [vmem:[%s9679_s27 + $0x860] sm:$0xff]  ;;  %v933_v48 = vld [vmem:[%s9679_s27 + $0x1878] sm:$0xff] }
 0x240   : > { %v3185_v53 = vpop.f32.mrb[150].mxu0  ;;  %v4465_v54 = vpop.f32.mrb[150].mxu1  ;;  %v930_v46 = vld [vmem:[%s9679_s27 + $0x1860] sm:$0xff] }
 0x241   : > { %v9099_v55 = vpack.c.bf16 %v3185_v53, %v3185_v53  ;;  %v9355_v56 = vpack.c.bf16 %v4465_v54, %v4465_v54  ;;  %v3187_v57 = vpop.f32.mrb[151].mxu0  ;;  %3449 = vmatmul.mubr.f32.gmra.mrb[0].mxu0 %v406_v49  ;;  %v4467_v58 = vpop.f32.mrb[151].mxu1  ;;  %4729 = vmatmul.mubr.f32.gmra.mrb[0].mxu1 %v918_v50 }
 0x242   : > { %8126 = vmatprep.mubr.msk.f32.mxu0 %vm1203_vm0, %v409_v51  ;;  %8382 = vmatprep.mubr.msk.f32.mxu1 %vm1203_vm0, %v921_v52  ;;  %v423_v57 = vld [vmem:[%s9679_s27 + $0x888] sm:$0xff] }
 0x243   : > { %7493 = vst.msk [vmem:[%s10104_s26 + $0x12c] sm:$0xf] %vm7417_vm2, %v9099_v55  ;;  %7749 = vst.msk [vmem:[%s10104_s26 + $0x52c] sm:$0xf] %vm7417_vm2, %v9355_v56  ;;  %v420_v55 = vld [vmem:[%s9679_s27 + $0x870] sm:$0xff]  ;;  %v935_v58 = vld [vmem:[%s9679_s27 + $0x1888] sm:$0xff] }
 0x244   : > { %v3190_v63 = vpop.f32.mrb[152].mxu0  ;;  %v4470_v0 = vpop.f32.mrb[152].mxu1  ;;  %v932_v56 = vld [vmem:[%s9679_s27 + $0x1870] sm:$0xff] }
 0x245   : > { %v9100_v1 = vpack.c.bf16 %v3190_v63, %v3190_v63  ;;  %v9356_v2 = vpack.c.bf16 %v4470_v0, %v4470_v0  ;;  %v3192_v3 = vpop.f32.mrb[153].mxu0  ;;  %3454 = vmatmul.mubr.f32.gmra.mrb[2].mxu0 %v408_v59  ;;  %v4472_v4 = vpop.f32.mrb[153].mxu1  ;;  %4734 = vmatmul.mubr.f32.gmra.mrb[2].mxu1 %v920_v60 }
 0x246   : > { %8127 = vmatprep.mubr.msk.f32.mxu0 %vm1203_vm0, %v411_v61  ;;  %8383 = vmatprep.mubr.msk.f32.mxu1 %vm1203_vm0, %v923_v62  ;;  %v425_v3 = vld [vmem:[%s9679_s27 + $0x898] sm:$0xff] }
 0x247   : > { %7494 = vst.msk [vmem:[%s10104_s26 + $0x130] sm:$0xf] %vm7417_vm2, %v9100_v1  ;;  %7750 = vst.msk [vmem:[%s10104_s26 + $0x530] sm:$0xf] %vm7417_vm2, %v9356_v2  ;;  %v422_v1 = vld [vmem:[%s9679_s27 + $0x880] sm:$0xff]  ;;  %v937_v4 = vld [vmem:[%s9679_s27 + $0x1898] sm:$0xff] }
 0x248   : > { %v3195_v9 = vpop.f32.mrb[154].mxu0  ;;  %v4475_v10 = vpop.f32.mrb[154].mxu1  ;;  %v934_v2 = vld [vmem:[%s9679_s27 + $0x1880] sm:$0xff] }
 0x249   : > { %v9101_v11 = vpack.c.bf16 %v3195_v9, %v3195_v9  ;;  %v9357_v12 = vpack.c.bf16 %v4475_v10, %v4475_v10  ;;  %v3197_v13 = vpop.f32.mrb[155].mxu0  ;;  %3459 = vmatmul.mubr.f32.gmra.mrb[4].mxu0 %v410_v5  ;;  %v4477_v14 = vpop.f32.mrb[155].mxu1  ;;  %4739 = vmatmul.mubr.f32.gmra.mrb[4].mxu1 %v922_v6 }
 0x24a   : > { %8128 = vmatprep.mubr.msk.f32.mxu0 %vm1203_vm0, %v413_v7  ;;  %8384 = vmatprep.mubr.msk.f32.mxu1 %vm1203_vm0, %v925_v8  ;;  %v427_v13 = vld [vmem:[%s9679_s27 + $0x8a8] sm:$0xff] }
 0x24b   : > { %7495 = vst.msk [vmem:[%s10104_s26 + $0x134] sm:$0xf] %vm7417_vm2, %v9101_v11  ;;  %7751 = vst.msk [vmem:[%s10104_s26 + $0x534] sm:$0xf] %vm7417_vm2, %v9357_v12  ;;  %v424_v11 = vld [vmem:[%s9679_s27 + $0x890] sm:$0xff]  ;;  %v939_v14 = vld [vmem:[%s9679_s27 + $0x18a8] sm:$0xff] }
 0x24c   : > { %v3200_v19 = vpop.f32.mrb[156].mxu0  ;;  %v4480_v20 = vpop.f32.mrb[156].mxu1  ;;  %v936_v12 = vld [vmem:[%s9679_s27 + $0x1890] sm:$0xff] }
 0x24d   : > { %v9102_v21 = vpack.c.bf16 %v3200_v19, %v3200_v19  ;;  %v9358_v22 = vpack.c.bf16 %v4480_v20, %v4480_v20  ;;  %v3202_v23 = vpop.f32.mrb[157].mxu0  ;;  %3464 = vmatmul.mubr.f32.gmra.mrb[6].mxu0 %v412_v15  ;;  %v4482_v24 = vpop.f32.mrb[157].mxu1  ;;  %4744 = vmatmul.mubr.f32.gmra.mrb[6].mxu1 %v924_v16 }
 0x24e   : > { %8129 = vmatprep.mubr.msk.f32.mxu0 %vm1203_vm0, %v415_v17  ;;  %8385 = vmatprep.mubr.msk.f32.mxu1 %vm1203_vm0, %v927_v18  ;;  %v429_v23 = vld [vmem:[%s9679_s27 + $0x8b8] sm:$0xff] }
 0x24f   : > { %7496 = vst.msk [vmem:[%s10104_s26 + $0x138] sm:$0xf] %vm7417_vm2, %v9102_v21  ;;  %7752 = vst.msk [vmem:[%s10104_s26 + $0x538] sm:$0xf] %vm7417_vm2, %v9358_v22  ;;  %v426_v21 = vld [vmem:[%s9679_s27 + $0x8a0] sm:$0xff]  ;;  %v941_v24 = vld [vmem:[%s9679_s27 + $0x18b8] sm:$0xff] }
 0x250   : > { %v3205_v29 = vpop.f32.mrb[158].mxu0  ;;  %v4485_v30 = vpop.f32.mrb[158].mxu1  ;;  %v938_v22 = vld [vmem:[%s9679_s27 + $0x18a0] sm:$0xff] }
 0x251   : > { %v9103_v31 = vpack.c.bf16 %v3205_v29, %v3205_v29  ;;  %v9359_v32 = vpack.c.bf16 %v4485_v30, %v4485_v30  ;;  %v3207_v33 = vpop.f32.mrb[159].mxu0  ;;  %3469 = vmatmul.mubr.f32.gmra.mrb[8].mxu0 %v414_v25  ;;  %v4487_v34 = vpop.f32.mrb[159].mxu1  ;;  %4749 = vmatmul.mubr.f32.gmra.mrb[8].mxu1 %v926_v26 }
 0x252   : > { %8130 = vmatprep.mubr.msk.f32.mxu0 %vm1203_vm0, %v417_v27  ;;  %8386 = vmatprep.mubr.msk.f32.mxu1 %vm1203_vm0, %v929_v28  ;;  %v431_v33 = vld [vmem:[%s9679_s27 + $0x8c8] sm:$0xff] }
 0x253   : > { %7497 = vst.msk [vmem:[%s10104_s26 + $0x13c] sm:$0xf] %vm7417_vm2, %v9103_v31  ;;  %7753 = vst.msk [vmem:[%s10104_s26 + $0x53c] sm:$0xf] %vm7417_vm2, %v9359_v32  ;;  %v428_v31 = vld [vmem:[%s9679_s27 + $0x8b0] sm:$0xff]  ;;  %v943_v34 = vld [vmem:[%s9679_s27 + $0x18c8] sm:$0xff] }
 0x254   : > { %v3210_v39 = vpop.f32.mrb[160].mxu0  ;;  %v4490_v40 = vpop.f32.mrb[160].mxu1  ;;  %v940_v32 = vld [vmem:[%s9679_s27 + $0x18b0] sm:$0xff] }
 0x255   : > { %v9104_v41 = vpack.c.bf16 %v3210_v39, %v3210_v39  ;;  %v9360_v42 = vpack.c.bf16 %v4490_v40, %v4490_v40  ;;  %v3212_v43 = vpop.f32.mrb[161].mxu0  ;;  %3474 = vmatmul.mubr.f32.gmra.mrb[10].mxu0 %v416_v35  ;;  %v4492_v44 = vpop.f32.mrb[161].mxu1  ;;  %4754 = vmatmul.mubr.f32.gmra.mrb[10].mxu1 %v928_v36 }
 0x256   : > { %8131 = vmatprep.mubr.msk.f32.mxu0 %vm1203_vm0, %v419_v37  ;;  %8387 = vmatprep.mubr.msk.f32.mxu1 %vm1203_vm0, %v931_v38  ;;  %v433_v43 = vld [vmem:[%s9679_s27 + $0x8d8] sm:$0xff] }
 0x257   : > { %7498 = vst.msk [vmem:[%s10104_s26 + $0x140] sm:$0xf] %vm7417_vm2, %v9104_v41  ;;  %7754 = vst.msk [vmem:[%s10104_s26 + $0x540] sm:$0xf] %vm7417_vm2, %v9360_v42  ;;  %v430_v41 = vld [vmem:[%s9679_s27 + $0x8c0] sm:$0xff]  ;;  %v945_v44 = vld [vmem:[%s9679_s27 + $0x18d8] sm:$0xff] }
 0x258   : > { %v3215_v49 = vpop.f32.mrb[162].mxu0  ;;  %v4495_v50 = vpop.f32.mrb[162].mxu1  ;;  %v942_v42 = vld [vmem:[%s9679_s27 + $0x18c0] sm:$0xff] }
 0x259   : > { %v9105_v51 = vpack.c.bf16 %v3215_v49, %v3215_v49  ;;  %v9361_v52 = vpack.c.bf16 %v4495_v50, %v4495_v50  ;;  %v3217_v53 = vpop.f32.mrb[163].mxu0  ;;  %3479 = vmatmul.mubr.f32.gmra.mrb[12].mxu0 %v418_v45  ;;  %v4497_v54 = vpop.f32.mrb[163].mxu1  ;;  %4759 = vmatmul.mubr.f32.gmra.mrb[12].mxu1 %v930_v46 }
 0x25a   : > { %8132 = vmatprep.mubr.msk.f32.mxu0 %vm1203_vm0, %v421_v47  ;;  %8388 = vmatprep.mubr.msk.f32.mxu1 %vm1203_vm0, %v933_v48  ;;  %v435_v53 = vld [vmem:[%s9679_s27 + $0x8e8] sm:$0xff] }
 0x25b   : > { %7499 = vst.msk [vmem:[%s10104_s26 + $0x144] sm:$0xf] %vm7417_vm2, %v9105_v51  ;;  %7755 = vst.msk [vmem:[%s10104_s26 + $0x544] sm:$0xf] %vm7417_vm2, %v9361_v52  ;;  %v432_v51 = vld [vmem:[%s9679_s27 + $0x8d0] sm:$0xff]  ;;  %v947_v54 = vld [vmem:[%s9679_s27 + $0x18e8] sm:$0xff] }
 0x25c   : > { %v3220_v59 = vpop.f32.mrb[164].mxu0  ;;  %v4500_v60 = vpop.f32.mrb[164].mxu1  ;;  %v944_v52 = vld [vmem:[%s9679_s27 + $0x18d0] sm:$0xff] }
 0x25d   : > { %v9106_v61 = vpack.c.bf16 %v3220_v59, %v3220_v59  ;;  %v9362_v62 = vpack.c.bf16 %v4500_v60, %v4500_v60  ;;  %v3222_v63 = vpop.f32.mrb[165].mxu0  ;;  %3484 = vmatmul.mubr.f32.gmra.mrb[14].mxu0 %v420_v55  ;;  %v4502_v0 = vpop.f32.mrb[165].mxu1  ;;  %4764 = vmatmul.mubr.f32.gmra.mrb[14].mxu1 %v932_v56 }
 0x25e   : > { %8133 = vmatprep.mubr.msk.f32.mxu0 %vm1203_vm0, %v423_v57  ;;  %8389 = vmatprep.mubr.msk.f32.mxu1 %vm1203_vm0, %v935_v58  ;;  %v437_v63 = vld [vmem:[%s9679_s27 + $0x8f8] sm:$0xff] }
 0x25f   : > { %7500 = vst.msk [vmem:[%s10104_s26 + $0x148] sm:$0xf] %vm7417_vm2, %v9106_v61  ;;  %7756 = vst.msk [vmem:[%s10104_s26 + $0x548] sm:$0xf] %vm7417_vm2, %v9362_v62  ;;  %v434_v61 = vld [vmem:[%s9679_s27 + $0x8e0] sm:$0xff]  ;;  %v949_v0 = vld [vmem:[%s9679_s27 + $0x18f8] sm:$0xff] }
 0x260   : > { %v3225_v5 = vpop.f32.mrb[166].mxu0  ;;  %v4505_v6 = vpop.f32.mrb[166].mxu1  ;;  %v946_v62 = vld [vmem:[%s9679_s27 + $0x18e0] sm:$0xff] }
 0x261   : > { %v9107_v7 = vpack.c.bf16 %v3225_v5, %v3225_v5  ;;  %v9363_v8 = vpack.c.bf16 %v4505_v6, %v4505_v6  ;;  %v3227_v9 = vpop.f32.mrb[167].mxu0  ;;  %3489 = vmatmul.mubr.f32.gmra.mrb[16].mxu0 %v422_v1  ;;  %v4507_v10 = vpop.f32.mrb[167].mxu1  ;;  %4769 = vmatmul.mubr.f32.gmra.mrb[16].mxu1 %v934_v2 }
 0x262   : > { %8134 = vmatprep.mubr.msk.f32.mxu0 %vm1203_vm0, %v425_v3  ;;  %8390 = vmatprep.mubr.msk.f32.mxu1 %vm1203_vm0, %v937_v4  ;;  %v439_v9 = vld [vmem:[%s9679_s27 + $0x908] sm:$0xff] }
 0x263   : > { %7501 = vst.msk [vmem:[%s10104_s26 + $0x14c] sm:$0xf] %vm7417_vm2, %v9107_v7  ;;  %7757 = vst.msk [vmem:[%s10104_s26 + $0x54c] sm:$0xf] %vm7417_vm2, %v9363_v8  ;;  %v436_v7 = vld [vmem:[%s9679_s27 + $0x8f0] sm:$0xff]  ;;  %v951_v10 = vld [vmem:[%s9679_s27 + $0x1908] sm:$0xff] }
 0x264   : > { %v3230_v15 = vpop.f32.mrb[168].mxu0  ;;  %v4510_v16 = vpop.f32.mrb[168].mxu1  ;;  %v948_v8 = vld [vmem:[%s9679_s27 + $0x18f0] sm:$0xff] }
 0x265   : > { %v9108_v17 = vpack.c.bf16 %v3230_v15, %v3230_v15  ;;  %v9364_v18 = vpack.c.bf16 %v4510_v16, %v4510_v16  ;;  %v3232_v19 = vpop.f32.mrb[169].mxu0  ;;  %3494 = vmatmul.mubr.f32.gmra.mrb[18].mxu0 %v424_v11  ;;  %v4512_v20 = vpop.f32.mrb[169].mxu1  ;;  %4774 = vmatmul.mubr.f32.gmra.mrb[18].mxu1 %v936_v12 }
 0x266   : > { %8135 = vmatprep.mubr.msk.f32.mxu0 %vm1203_vm0, %v427_v13  ;;  %8391 = vmatprep.mubr.msk.f32.mxu1 %vm1203_vm0, %v939_v14  ;;  %v441_v19 = vld [vmem:[%s9679_s27 + $0x918] sm:$0xff] }
 0x267   : > { %7502 = vst.msk [vmem:[%s10104_s26 + $0x150] sm:$0xf] %vm7417_vm2, %v9108_v17  ;;  %7758 = vst.msk [vmem:[%s10104_s26 + $0x550] sm:$0xf] %vm7417_vm2, %v9364_v18  ;;  %v438_v17 = vld [vmem:[%s9679_s27 + $0x900] sm:$0xff]  ;;  %v953_v20 = vld [vmem:[%s9679_s27 + $0x1918] sm:$0xff] }
 0x268   : > { %v3235_v25 = vpop.f32.mrb[170].mxu0  ;;  %v4515_v26 = vpop.f32.mrb[170].mxu1  ;;  %v950_v18 = vld [vmem:[%s9679_s27 + $0x1900] sm:$0xff] }
 0x269   : > { %v9109_v27 = vpack.c.bf16 %v3235_v25, %v3235_v25  ;;  %v9365_v28 = vpack.c.bf16 %v4515_v26, %v4515_v26  ;;  %v3237_v29 = vpop.f32.mrb[171].mxu0  ;;  %3499 = vmatmul.mubr.f32.gmra.mrb[20].mxu0 %v426_v21  ;;  %v4517_v30 = vpop.f32.mrb[171].mxu1  ;;  %4779 = vmatmul.mubr.f32.gmra.mrb[20].mxu1 %v938_v22 }
 0x26a   : > { %8136 = vmatprep.mubr.msk.f32.mxu0 %vm1203_vm0, %v429_v23  ;;  %8392 = vmatprep.mubr.msk.f32.mxu1 %vm1203_vm0, %v941_v24  ;;  %v443_v29 = vld [vmem:[%s9679_s27 + $0x928] sm:$0xff] }
 0x26b   : > { %7503 = vst.msk [vmem:[%s10104_s26 + $0x154] sm:$0xf] %vm7417_vm2, %v9109_v27  ;;  %7759 = vst.msk [vmem:[%s10104_s26 + $0x554] sm:$0xf] %vm7417_vm2, %v9365_v28  ;;  %v440_v27 = vld [vmem:[%s9679_s27 + $0x910] sm:$0xff]  ;;  %v955_v30 = vld [vmem:[%s9679_s27 + $0x1928] sm:$0xff] }
 0x26c   : > { %v3240_v35 = vpop.f32.mrb[172].mxu0  ;;  %v4520_v36 = vpop.f32.mrb[172].mxu1  ;;  %v952_v28 = vld [vmem:[%s9679_s27 + $0x1910] sm:$0xff] }
 0x26d   : > { %v9110_v37 = vpack.c.bf16 %v3240_v35, %v3240_v35  ;;  %v9366_v38 = vpack.c.bf16 %v4520_v36, %v4520_v36  ;;  %v3242_v39 = vpop.f32.mrb[173].mxu0  ;;  %3504 = vmatmul.mubr.f32.gmra.mrb[22].mxu0 %v428_v31  ;;  %v4522_v40 = vpop.f32.mrb[173].mxu1  ;;  %4784 = vmatmul.mubr.f32.gmra.mrb[22].mxu1 %v940_v32 }
 0x26e   : > { %8137 = vmatprep.mubr.msk.f32.mxu0 %vm1203_vm0, %v431_v33  ;;  %8393 = vmatprep.mubr.msk.f32.mxu1 %vm1203_vm0, %v943_v34  ;;  %v445_v39 = vld [vmem:[%s9679_s27 + $0x938] sm:$0xff] }
 0x26f   : > { %7504 = vst.msk [vmem:[%s10104_s26 + $0x158] sm:$0xf] %vm7417_vm2, %v9110_v37  ;;  %7760 = vst.msk [vmem:[%s10104_s26 + $0x558] sm:$0xf] %vm7417_vm2, %v9366_v38  ;;  %v442_v37 = vld [vmem:[%s9679_s27 + $0x920] sm:$0xff]  ;;  %v957_v40 = vld [vmem:[%s9679_s27 + $0x1938] sm:$0xff] }
 0x270   : > { %v3245_v45 = vpop.f32.mrb[174].mxu0  ;;  %v4525_v46 = vpop.f32.mrb[174].mxu1  ;;  %v954_v38 = vld [vmem:[%s9679_s27 + $0x1920] sm:$0xff] }
 0x271   : > { %v9111_v47 = vpack.c.bf16 %v3245_v45, %v3245_v45  ;;  %v9367_v48 = vpack.c.bf16 %v4525_v46, %v4525_v46  ;;  %v3247_v49 = vpop.f32.mrb[175].mxu0  ;;  %3509 = vmatmul.mubr.f32.gmra.mrb[24].mxu0 %v430_v41  ;;  %v4527_v50 = vpop.f32.mrb[175].mxu1  ;;  %4789 = vmatmul.mubr.f32.gmra.mrb[24].mxu1 %v942_v42 }
 0x272   : > { %8138 = vmatprep.mubr.msk.f32.mxu0 %vm1203_vm0, %v433_v43  ;;  %8394 = vmatprep.mubr.msk.f32.mxu1 %vm1203_vm0, %v945_v44  ;;  %v447_v49 = vld [vmem:[%s9679_s27 + $0x948] sm:$0xff] }
 0x273   : > { %7505 = vst.msk [vmem:[%s10104_s26 + $0x15c] sm:$0xf] %vm7417_vm2, %v9111_v47  ;;  %7761 = vst.msk [vmem:[%s10104_s26 + $0x55c] sm:$0xf] %vm7417_vm2, %v9367_v48  ;;  %v444_v47 = vld [vmem:[%s9679_s27 + $0x930] sm:$0xff]  ;;  %v959_v50 = vld [vmem:[%s9679_s27 + $0x1948] sm:$0xff] }
 0x274   : > { %v3250_v55 = vpop.f32.mrb[176].mxu0  ;;  %v4530_v56 = vpop.f32.mrb[176].mxu1  ;;  %v956_v48 = vld [vmem:[%s9679_s27 + $0x1930] sm:$0xff] }
 0x275   : > { %v9112_v57 = vpack.c.bf16 %v3250_v55, %v3250_v55  ;;  %v9368_v58 = vpack.c.bf16 %v4530_v56, %v4530_v56  ;;  %v3252_v59 = vpop.f32.mrb[177].mxu0  ;;  %3514 = vmatmul.mubr.f32.gmra.mrb[26].mxu0 %v432_v51  ;;  %v4532_v60 = vpop.f32.mrb[177].mxu1  ;;  %4794 = vmatmul.mubr.f32.gmra.mrb[26].mxu1 %v944_v52 }
 0x276   : > { %8139 = vmatprep.mubr.msk.f32.mxu0 %vm1203_vm0, %v435_v53  ;;  %8395 = vmatprep.mubr.msk.f32.mxu1 %vm1203_vm0, %v947_v54  ;;  %v449_v59 = vld [vmem:[%s9679_s27 + $0x958] sm:$0xff] }
 0x277   : > { %7506 = vst.msk [vmem:[%s10104_s26 + $0x160] sm:$0xf] %vm7417_vm2, %v9112_v57  ;;  %7762 = vst.msk [vmem:[%s10104_s26 + $0x560] sm:$0xf] %vm7417_vm2, %v9368_v58  ;;  %v446_v57 = vld [vmem:[%s9679_s27 + $0x940] sm:$0xff]  ;;  %v961_v60 = vld [vmem:[%s9679_s27 + $0x1958] sm:$0xff] }
 0x278   : > { %v3255_v1 = vpop.f32.mrb[178].mxu0  ;;  %v4535_v2 = vpop.f32.mrb[178].mxu1  ;;  %v958_v58 = vld [vmem:[%s9679_s27 + $0x1940] sm:$0xff] }
 0x279   : > { %v9113_v3 = vpack.c.bf16 %v3255_v1, %v3255_v1  ;;  %v9369_v4 = vpack.c.bf16 %v4535_v2, %v4535_v2  ;;  %v3257_v5 = vpop.f32.mrb[179].mxu0  ;;  %3519 = vmatmul.mubr.f32.gmra.mrb[28].mxu0 %v434_v61  ;;  %v4537_v6 = vpop.f32.mrb[179].mxu1  ;;  %4799 = vmatmul.mubr.f32.gmra.mrb[28].mxu1 %v946_v62 }
 0x27a   : > { %8140 = vmatprep.mubr.msk.f32.mxu0 %vm1203_vm0, %v437_v63  ;;  %8396 = vmatprep.mubr.msk.f32.mxu1 %vm1203_vm0, %v949_v0  ;;  %v451_v5 = vld [vmem:[%s9679_s27 + $0x968] sm:$0xff] }
 0x27b   : > { %7507 = vst.msk [vmem:[%s10104_s26 + $0x164] sm:$0xf] %vm7417_vm2, %v9113_v3  ;;  %7763 = vst.msk [vmem:[%s10104_s26 + $0x564] sm:$0xf] %vm7417_vm2, %v9369_v4  ;;  %v448_v3 = vld [vmem:[%s9679_s27 + $0x950] sm:$0xff]  ;;  %v963_v6 = vld [vmem:[%s9679_s27 + $0x1968] sm:$0xff] }
 0x27c   : > { %v3260_v11 = vpop.f32.mrb[180].mxu0  ;;  %v4540_v12 = vpop.f32.mrb[180].mxu1  ;;  %v960_v4 = vld [vmem:[%s9679_s27 + $0x1950] sm:$0xff] }
 0x27d   : > { %v9114_v13 = vpack.c.bf16 %v3260_v11, %v3260_v11  ;;  %v9370_v14 = vpack.c.bf16 %v4540_v12, %v4540_v12  ;;  %v3262_v15 = vpop.f32.mrb[181].mxu0  ;;  %3524 = vmatmul.mubr.f32.gmra.mrb[30].mxu0 %v436_v7  ;;  %v4542_v16 = vpop.f32.mrb[181].mxu1  ;;  %4804 = vmatmul.mubr.f32.gmra.mrb[30].mxu1 %v948_v8 }
 0x27e   : > { %8141 = vmatprep.mubr.msk.f32.mxu0 %vm1203_vm0, %v439_v9  ;;  %8397 = vmatprep.mubr.msk.f32.mxu1 %vm1203_vm0, %v951_v10  ;;  %v453_v15 = vld [vmem:[%s9679_s27 + $0x978] sm:$0xff] }
 0x27f   : > { %7508 = vst.msk [vmem:[%s10104_s26 + $0x168] sm:$0xf] %vm7417_vm2, %v9114_v13  ;;  %7764 = vst.msk [vmem:[%s10104_s26 + $0x568] sm:$0xf] %vm7417_vm2, %v9370_v14  ;;  %v450_v13 = vld [vmem:[%s9679_s27 + $0x960] sm:$0xff]  ;;  %v965_v16 = vld [vmem:[%s9679_s27 + $0x1978] sm:$0xff] }
 0x280   : > { %v3265_v21 = vpop.f32.mrb[182].mxu0  ;;  %v4545_v22 = vpop.f32.mrb[182].mxu1  ;;  %v962_v14 = vld [vmem:[%s9679_s27 + $0x1960] sm:$0xff] }
 0x281   : > { %v9115_v23 = vpack.c.bf16 %v3265_v21, %v3265_v21  ;;  %v9371_v24 = vpack.c.bf16 %v4545_v22, %v4545_v22  ;;  %v3267_v25 = vpop.f32.mrb[183].mxu0  ;;  %3529 = vmatmul.mubr.f32.gmra.mrb[32].mxu0 %v438_v17  ;;  %v4547_v26 = vpop.f32.mrb[183].mxu1  ;;  %4809 = vmatmul.mubr.f32.gmra.mrb[32].mxu1 %v950_v18 }
 0x282   : > { %8142 = vmatprep.mubr.msk.f32.mxu0 %vm1203_vm0, %v441_v19  ;;  %8398 = vmatprep.mubr.msk.f32.mxu1 %vm1203_vm0, %v953_v20  ;;  %v455_v25 = vld [vmem:[%s9679_s27 + $0x988] sm:$0xff] }
 0x283   : > { %7509 = vst.msk [vmem:[%s10104_s26 + $0x16c] sm:$0xf] %vm7417_vm2, %v9115_v23  ;;  %7765 = vst.msk [vmem:[%s10104_s26 + $0x56c] sm:$0xf] %vm7417_vm2, %v9371_v24  ;;  %v452_v23 = vld [vmem:[%s9679_s27 + $0x970] sm:$0xff]  ;;  %v967_v26 = vld [vmem:[%s9679_s27 + $0x1988] sm:$0xff] }
 0x284   : > { %v3270_v31 = vpop.f32.mrb[184].mxu0  ;;  %v4550_v32 = vpop.f32.mrb[184].mxu1  ;;  %v964_v24 = vld [vmem:[%s9679_s27 + $0x1970] sm:$0xff] }
 0x285   : > { %v9116_v33 = vpack.c.bf16 %v3270_v31, %v3270_v31  ;;  %v9372_v34 = vpack.c.bf16 %v4550_v32, %v4550_v32  ;;  %v3272_v35 = vpop.f32.mrb[185].mxu0  ;;  %3534 = vmatmul.mubr.f32.gmra.mrb[34].mxu0 %v440_v27  ;;  %v4552_v36 = vpop.f32.mrb[185].mxu1  ;;  %4814 = vmatmul.mubr.f32.gmra.mrb[34].mxu1 %v952_v28 }
 0x286   : > { %8143 = vmatprep.mubr.msk.f32.mxu0 %vm1203_vm0, %v443_v29  ;;  %8399 = vmatprep.mubr.msk.f32.mxu1 %vm1203_vm0, %v955_v30  ;;  %v457_v35 = vld [vmem:[%s9679_s27 + $0x998] sm:$0xff] }
 0x287   : > { %7510 = vst.msk [vmem:[%s10104_s26 + $0x170] sm:$0xf] %vm7417_vm2, %v9116_v33  ;;  %7766 = vst.msk [vmem:[%s10104_s26 + $0x570] sm:$0xf] %vm7417_vm2, %v9372_v34  ;;  %v454_v33 = vld [vmem:[%s9679_s27 + $0x980] sm:$0xff]  ;;  %v969_v36 = vld [vmem:[%s9679_s27 + $0x1998] sm:$0xff] }
 0x288   : > { %v3275_v41 = vpop.f32.mrb[186].mxu0  ;;  %v4555_v42 = vpop.f32.mrb[186].mxu1  ;;  %v966_v34 = vld [vmem:[%s9679_s27 + $0x1980] sm:$0xff] }
 0x289   : > { %v9117_v43 = vpack.c.bf16 %v3275_v41, %v3275_v41  ;;  %v9373_v44 = vpack.c.bf16 %v4555_v42, %v4555_v42  ;;  %v3277_v45 = vpop.f32.mrb[187].mxu0  ;;  %3539 = vmatmul.mubr.f32.gmra.mrb[36].mxu0 %v442_v37  ;;  %v4557_v46 = vpop.f32.mrb[187].mxu1  ;;  %4819 = vmatmul.mubr.f32.gmra.mrb[36].mxu1 %v954_v38 }
 0x28a   : > { %8144 = vmatprep.mubr.msk.f32.mxu0 %vm1203_vm0, %v445_v39  ;;  %8400 = vmatprep.mubr.msk.f32.mxu1 %vm1203_vm0, %v957_v40  ;;  %v459_v45 = vld [vmem:[%s9679_s27 + $0x9a8] sm:$0xff] }
 0x28b   : > { %7511 = vst.msk [vmem:[%s10104_s26 + $0x174] sm:$0xf] %vm7417_vm2, %v9117_v43  ;;  %7767 = vst.msk [vmem:[%s10104_s26 + $0x574] sm:$0xf] %vm7417_vm2, %v9373_v44  ;;  %v456_v43 = vld [vmem:[%s9679_s27 + $0x990] sm:$0xff]  ;;  %v971_v46 = vld [vmem:[%s9679_s27 + $0x19a8] sm:$0xff] }
 0x28c   : > { %v3280_v51 = vpop.f32.mrb[188].mxu0  ;;  %v4560_v52 = vpop.f32.mrb[188].mxu1  ;;  %v968_v44 = vld [vmem:[%s9679_s27 + $0x1990] sm:$0xff] }
 0x28d   : > { %v9118_v53 = vpack.c.bf16 %v3280_v51, %v3280_v51  ;;  %v9374_v54 = vpack.c.bf16 %v4560_v52, %v4560_v52  ;;  %v3282_v55 = vpop.f32.mrb[189].mxu0  ;;  %3544 = vmatmul.mubr.f32.gmra.mrb[38].mxu0 %v444_v47  ;;  %v4562_v56 = vpop.f32.mrb[189].mxu1  ;;  %4824 = vmatmul.mubr.f32.gmra.mrb[38].mxu1 %v956_v48 }
 0x28e   : > { %8145 = vmatprep.mubr.msk.f32.mxu0 %vm1203_vm0, %v447_v49  ;;  %8401 = vmatprep.mubr.msk.f32.mxu1 %vm1203_vm0, %v959_v50  ;;  %v461_v55 = vld [vmem:[%s9679_s27 + $0x9b8] sm:$0xff] }
 0x28f   : > { %7512 = vst.msk [vmem:[%s10104_s26 + $0x178] sm:$0xf] %vm7417_vm2, %v9118_v53  ;;  %7768 = vst.msk [vmem:[%s10104_s26 + $0x578] sm:$0xf] %vm7417_vm2, %v9374_v54  ;;  %v458_v53 = vld [vmem:[%s9679_s27 + $0x9a0] sm:$0xff]  ;;  %v973_v56 = vld [vmem:[%s9679_s27 + $0x19b8] sm:$0xff] }
 0x290   : > { %v3285_v61 = vpop.f32.mrb[190].mxu0  ;;  %v4565_v62 = vpop.f32.mrb[190].mxu1  ;;  %v970_v54 = vld [vmem:[%s9679_s27 + $0x19a0] sm:$0xff] }
 0x291   : > { %v9119_v63 = vpack.c.bf16 %v3285_v61, %v3285_v61  ;;  %v9375_v0 = vpack.c.bf16 %v4565_v62, %v4565_v62  ;;  %v3287_v1 = vpop.f32.mrb[191].mxu0  ;;  %3549 = vmatmul.mubr.f32.gmra.mrb[40].mxu0 %v446_v57  ;;  %v4567_v2 = vpop.f32.mrb[191].mxu1  ;;  %4829 = vmatmul.mubr.f32.gmra.mrb[40].mxu1 %v958_v58 }
 0x292   : > { %8146 = vmatprep.mubr.msk.f32.mxu0 %vm1203_vm0, %v449_v59  ;;  %8402 = vmatprep.mubr.msk.f32.mxu1 %vm1203_vm0, %v961_v60  ;;  %v463_v1 = vld [vmem:[%s9679_s27 + $0x9c8] sm:$0xff] }
 0x293   : > { %7513 = vst.msk [vmem:[%s10104_s26 + $0x17c] sm:$0xf] %vm7417_vm2, %v9119_v63  ;;  %7769 = vst.msk [vmem:[%s10104_s26 + $0x57c] sm:$0xf] %vm7417_vm2, %v9375_v0  ;;  %v460_v63 = vld [vmem:[%s9679_s27 + $0x9b0] sm:$0xff]  ;;  %v975_v2 = vld [vmem:[%s9679_s27 + $0x19c8] sm:$0xff] }
 0x294   : > { %v3290_v7 = vpop.f32.mrb[192].mxu0  ;;  %v4570_v8 = vpop.f32.mrb[192].mxu1  ;;  %v972_v0 = vld [vmem:[%s9679_s27 + $0x19b0] sm:$0xff] }
 0x295   : > { %v9120_v9 = vpack.c.bf16 %v3290_v7, %v3290_v7  ;;  %v9376_v10 = vpack.c.bf16 %v4570_v8, %v4570_v8  ;;  %v3292_v11 = vpop.f32.mrb[193].mxu0  ;;  %3554 = vmatmul.mubr.f32.gmra.mrb[42].mxu0 %v448_v3  ;;  %v4572_v12 = vpop.f32.mrb[193].mxu1  ;;  %4834 = vmatmul.mubr.f32.gmra.mrb[42].mxu1 %v960_v4 }
 0x296   : > { %8147 = vmatprep.mubr.msk.f32.mxu0 %vm1203_vm0, %v451_v5  ;;  %8403 = vmatprep.mubr.msk.f32.mxu1 %vm1203_vm0, %v963_v6  ;;  %v465_v11 = vld [vmem:[%s9679_s27 + $0x9d8] sm:$0xff] }
 0x297   : > { %7514 = vst.msk [vmem:[%s10104_s26 + $0x180] sm:$0xf] %vm7417_vm2, %v9120_v9  ;;  %7770 = vst.msk [vmem:[%s10104_s26 + $0x580] sm:$0xf] %vm7417_vm2, %v9376_v10  ;;  %v462_v9 = vld [vmem:[%s9679_s27 + $0x9c0] sm:$0xff]  ;;  %v977_v12 = vld [vmem:[%s9679_s27 + $0x19d8] sm:$0xff] }
 0x298   : > { %v3295_v17 = vpop.f32.mrb[194].mxu0  ;;  %v4575_v18 = vpop.f32.mrb[194].mxu1  ;;  %v974_v10 = vld [vmem:[%s9679_s27 + $0x19c0] sm:$0xff] }
 0x299   : > { %v9121_v19 = vpack.c.bf16 %v3295_v17, %v3295_v17  ;;  %v9377_v20 = vpack.c.bf16 %v4575_v18, %v4575_v18  ;;  %v3297_v21 = vpop.f32.mrb[195].mxu0  ;;  %3559 = vmatmul.mubr.f32.gmra.mrb[44].mxu0 %v450_v13  ;;  %v4577_v22 = vpop.f32.mrb[195].mxu1  ;;  %4839 = vmatmul.mubr.f32.gmra.mrb[44].mxu1 %v962_v14 }
 0x29a   : > { %8148 = vmatprep.mubr.msk.f32.mxu0 %vm1203_vm0, %v453_v15  ;;  %8404 = vmatprep.mubr.msk.f32.mxu1 %vm1203_vm0, %v965_v16  ;;  %v467_v21 = vld [vmem:[%s9679_s27 + $0x9e8] sm:$0xff] }
 0x29b   : > { %7515 = vst.msk [vmem:[%s10104_s26 + $0x184] sm:$0xf] %vm7417_vm2, %v9121_v19  ;;  %7771 = vst.msk [vmem:[%s10104_s26 + $0x584] sm:$0xf] %vm7417_vm2, %v9377_v20  ;;  %v464_v19 = vld [vmem:[%s9679_s27 + $0x9d0] sm:$0xff]  ;;  %v979_v22 = vld [vmem:[%s9679_s27 + $0x19e8] sm:$0xff] }
 0x29c   : > { %v3300_v27 = vpop.f32.mrb[196].mxu0  ;;  %v4580_v28 = vpop.f32.mrb[196].mxu1  ;;  %v976_v20 = vld [vmem:[%s9679_s27 + $0x19d0] sm:$0xff] }
 0x29d   : > { %v9122_v29 = vpack.c.bf16 %v3300_v27, %v3300_v27  ;;  %v9378_v30 = vpack.c.bf16 %v4580_v28, %v4580_v28  ;;  %v3302_v31 = vpop.f32.mrb[197].mxu0  ;;  %3564 = vmatmul.mubr.f32.gmra.mrb[46].mxu0 %v452_v23  ;;  %v4582_v32 = vpop.f32.mrb[197].mxu1  ;;  %4844 = vmatmul.mubr.f32.gmra.mrb[46].mxu1 %v964_v24 }
 0x29e   : > { %8149 = vmatprep.mubr.msk.f32.mxu0 %vm1203_vm0, %v455_v25  ;;  %8405 = vmatprep.mubr.msk.f32.mxu1 %vm1203_vm0, %v967_v26  ;;  %v469_v31 = vld [vmem:[%s9679_s27 + $0x9f8] sm:$0xff] }
 0x29f   : > { %7516 = vst.msk [vmem:[%s10104_s26 + $0x188] sm:$0xf] %vm7417_vm2, %v9122_v29  ;;  %7772 = vst.msk [vmem:[%s10104_s26 + $0x588] sm:$0xf] %vm7417_vm2, %v9378_v30  ;;  %v466_v29 = vld [vmem:[%s9679_s27 + $0x9e0] sm:$0xff]  ;;  %v981_v32 = vld [vmem:[%s9679_s27 + $0x19f8] sm:$0xff] }
 0x2a0   : > { %v3305_v37 = vpop.f32.mrb[198].mxu0  ;;  %v4585_v38 = vpop.f32.mrb[198].mxu1  ;;  %v978_v30 = vld [vmem:[%s9679_s27 + $0x19e0] sm:$0xff] }
 0x2a1   : > { %v9123_v39 = vpack.c.bf16 %v3305_v37, %v3305_v37  ;;  %v9379_v40 = vpack.c.bf16 %v4585_v38, %v4585_v38  ;;  %v3307_v41 = vpop.f32.mrb[199].mxu0  ;;  %3569 = vmatmul.mubr.f32.gmra.mrb[48].mxu0 %v454_v33  ;;  %v4587_v42 = vpop.f32.mrb[199].mxu1  ;;  %4849 = vmatmul.mubr.f32.gmra.mrb[48].mxu1 %v966_v34 }
 0x2a2   : > { %8150 = vmatprep.mubr.msk.f32.mxu0 %vm1203_vm0, %v457_v35  ;;  %8406 = vmatprep.mubr.msk.f32.mxu1 %vm1203_vm0, %v969_v36  ;;  %v471_v41 = vld [vmem:[%s9679_s27 + $0xa08] sm:$0xff] }
 0x2a3   : > { %7517 = vst.msk [vmem:[%s10104_s26 + $0x18c] sm:$0xf] %vm7417_vm2, %v9123_v39  ;;  %7773 = vst.msk [vmem:[%s10104_s26 + $0x58c] sm:$0xf] %vm7417_vm2, %v9379_v40  ;;  %v468_v39 = vld [vmem:[%s9679_s27 + $0x9f0] sm:$0xff]  ;;  %v983_v42 = vld [vmem:[%s9679_s27 + $0x1a08] sm:$0xff] }
 0x2a4   : > { %v3310_v47 = vpop.f32.mrb[200].mxu0  ;;  %v4590_v48 = vpop.f32.mrb[200].mxu1  ;;  %v980_v40 = vld [vmem:[%s9679_s27 + $0x19f0] sm:$0xff] }
 0x2a5   : > { %v9124_v49 = vpack.c.bf16 %v3310_v47, %v3310_v47  ;;  %v9380_v50 = vpack.c.bf16 %v4590_v48, %v4590_v48  ;;  %v3312_v51 = vpop.f32.mrb[201].mxu0  ;;  %3574 = vmatmul.mubr.f32.gmra.mrb[50].mxu0 %v456_v43  ;;  %v4592_v52 = vpop.f32.mrb[201].mxu1  ;;  %4854 = vmatmul.mubr.f32.gmra.mrb[50].mxu1 %v968_v44 }
 0x2a6   : > { %8151 = vmatprep.mubr.msk.f32.mxu0 %vm1203_vm0, %v459_v45  ;;  %8407 = vmatprep.mubr.msk.f32.mxu1 %vm1203_vm0, %v971_v46  ;;  %v473_v51 = vld [vmem:[%s9679_s27 + $0xa18] sm:$0xff] }
 0x2a7   : > { %7518 = vst.msk [vmem:[%s10104_s26 + $0x190] sm:$0xf] %vm7417_vm2, %v9124_v49  ;;  %7774 = vst.msk [vmem:[%s10104_s26 + $0x590] sm:$0xf] %vm7417_vm2, %v9380_v50  ;;  %v470_v49 = vld [vmem:[%s9679_s27 + $0xa00] sm:$0xff]  ;;  %v985_v52 = vld [vmem:[%s9679_s27 + $0x1a18] sm:$0xff] }
 0x2a8   : > { %v3315_v57 = vpop.f32.mrb[202].mxu0  ;;  %v4595_v58 = vpop.f32.mrb[202].mxu1  ;;  %v982_v50 = vld [vmem:[%s9679_s27 + $0x1a00] sm:$0xff] }
 0x2a9   : > { %v9125_v59 = vpack.c.bf16 %v3315_v57, %v3315_v57  ;;  %v9381_v60 = vpack.c.bf16 %v4595_v58, %v4595_v58  ;;  %v3317_v61 = vpop.f32.mrb[203].mxu0  ;;  %3579 = vmatmul.mubr.f32.gmra.mrb[52].mxu0 %v458_v53  ;;  %v4597_v62 = vpop.f32.mrb[203].mxu1  ;;  %4859 = vmatmul.mubr.f32.gmra.mrb[52].mxu1 %v970_v54 }
 0x2aa   : > { %8152 = vmatprep.mubr.msk.f32.mxu0 %vm1203_vm0, %v461_v55  ;;  %8408 = vmatprep.mubr.msk.f32.mxu1 %vm1203_vm0, %v973_v56  ;;  %v475_v61 = vld [vmem:[%s9679_s27 + $0xa28] sm:$0xff] }
 0x2ab   : > { %7519 = vst.msk [vmem:[%s10104_s26 + $0x194] sm:$0xf] %vm7417_vm2, %v9125_v59  ;;  %7775 = vst.msk [vmem:[%s10104_s26 + $0x594] sm:$0xf] %vm7417_vm2, %v9381_v60  ;;  %v472_v59 = vld [vmem:[%s9679_s27 + $0xa10] sm:$0xff]  ;;  %v987_v62 = vld [vmem:[%s9679_s27 + $0x1a28] sm:$0xff] }
 0x2ac   : > { %v3320_v3 = vpop.f32.mrb[204].mxu0  ;;  %v4600_v4 = vpop.f32.mrb[204].mxu1  ;;  %v984_v60 = vld [vmem:[%s9679_s27 + $0x1a10] sm:$0xff] }
 0x2ad   : > { %v9126_v5 = vpack.c.bf16 %v3320_v3, %v3320_v3  ;;  %v9382_v6 = vpack.c.bf16 %v4600_v4, %v4600_v4  ;;  %v3322_v7 = vpop.f32.mrb[205].mxu0  ;;  %3584 = vmatmul.mubr.f32.gmra.mrb[54].mxu0 %v460_v63  ;;  %v4602_v8 = vpop.f32.mrb[205].mxu1  ;;  %4864 = vmatmul.mubr.f32.gmra.mrb[54].mxu1 %v972_v0 }
 0x2ae   : > { %8153 = vmatprep.mubr.msk.f32.mxu0 %vm1203_vm0, %v463_v1  ;;  %8409 = vmatprep.mubr.msk.f32.mxu1 %vm1203_vm0, %v975_v2  ;;  %v477_v7 = vld [vmem:[%s9679_s27 + $0xa38] sm:$0xff] }
 0x2af   : > { %7520 = vst.msk [vmem:[%s10104_s26 + $0x198] sm:$0xf] %vm7417_vm2, %v9126_v5  ;;  %7776 = vst.msk [vmem:[%s10104_s26 + $0x598] sm:$0xf] %vm7417_vm2, %v9382_v6  ;;  %v474_v5 = vld [vmem:[%s9679_s27 + $0xa20] sm:$0xff]  ;;  %v989_v8 = vld [vmem:[%s9679_s27 + $0x1a38] sm:$0xff] }
 0x2b0   : > { %v3325_v13 = vpop.f32.mrb[206].mxu0  ;;  %v4605_v14 = vpop.f32.mrb[206].mxu1  ;;  %v986_v6 = vld [vmem:[%s9679_s27 + $0x1a20] sm:$0xff] }
 0x2b1   : > { %v9127_v15 = vpack.c.bf16 %v3325_v13, %v3325_v13  ;;  %v9383_v16 = vpack.c.bf16 %v4605_v14, %v4605_v14  ;;  %v3327_v17 = vpop.f32.mrb[207].mxu0  ;;  %3589 = vmatmul.mubr.f32.gmra.mrb[56].mxu0 %v462_v9  ;;  %v4607_v18 = vpop.f32.mrb[207].mxu1  ;;  %4869 = vmatmul.mubr.f32.gmra.mrb[56].mxu1 %v974_v10 }
 0x2b2   : > { %8154 = vmatprep.mubr.msk.f32.mxu0 %vm1203_vm0, %v465_v11  ;;  %8410 = vmatprep.mubr.msk.f32.mxu1 %vm1203_vm0, %v977_v12  ;;  %v479_v17 = vld [vmem:[%s9679_s27 + $0xa48] sm:$0xff] }
 0x2b3   : > { %7521 = vst.msk [vmem:[%s10104_s26 + $0x19c] sm:$0xf] %vm7417_vm2, %v9127_v15  ;;  %7777 = vst.msk [vmem:[%s10104_s26 + $0x59c] sm:$0xf] %vm7417_vm2, %v9383_v16  ;;  %v476_v15 = vld [vmem:[%s9679_s27 + $0xa30] sm:$0xff]  ;;  %v991_v18 = vld [vmem:[%s9679_s27 + $0x1a48] sm:$0xff] }
 0x2b4   : > { %v3330_v23 = vpop.f32.mrb[208].mxu0  ;;  %v4610_v24 = vpop.f32.mrb[208].mxu1  ;;  %v988_v16 = vld [vmem:[%s9679_s27 + $0x1a30] sm:$0xff] }
 0x2b5   : > { %v9128_v25 = vpack.c.bf16 %v3330_v23, %v3330_v23  ;;  %v9384_v26 = vpack.c.bf16 %v4610_v24, %v4610_v24  ;;  %v3332_v27 = vpop.f32.mrb[209].mxu0  ;;  %3594 = vmatmul.mubr.f32.gmra.mrb[58].mxu0 %v464_v19  ;;  %v4612_v28 = vpop.f32.mrb[209].mxu1  ;;  %4874 = vmatmul.mubr.f32.gmra.mrb[58].mxu1 %v976_v20 }
 0x2b6   : > { %8155 = vmatprep.mubr.msk.f32.mxu0 %vm1203_vm0, %v467_v21  ;;  %8411 = vmatprep.mubr.msk.f32.mxu1 %vm1203_vm0, %v979_v22  ;;  %v481_v27 = vld [vmem:[%s9679_s27 + $0xa58] sm:$0xff] }
 0x2b7   : > { %7522 = vst.msk [vmem:[%s10104_s26 + $0x1a0] sm:$0xf] %vm7417_vm2, %v9128_v25  ;;  %7778 = vst.msk [vmem:[%s10104_s26 + $0x5a0] sm:$0xf] %vm7417_vm2, %v9384_v26  ;;  %v478_v25 = vld [vmem:[%s9679_s27 + $0xa40] sm:$0xff]  ;;  %v993_v28 = vld [vmem:[%s9679_s27 + $0x1a58] sm:$0xff] }
 0x2b8   : > { %v3335_v33 = vpop.f32.mrb[210].mxu0  ;;  %v4615_v34 = vpop.f32.mrb[210].mxu1  ;;  %v990_v26 = vld [vmem:[%s9679_s27 + $0x1a40] sm:$0xff] }
 0x2b9   : > { %v9129_v35 = vpack.c.bf16 %v3335_v33, %v3335_v33  ;;  %v9385_v36 = vpack.c.bf16 %v4615_v34, %v4615_v34  ;;  %v3337_v37 = vpop.f32.mrb[211].mxu0  ;;  %3599 = vmatmul.mubr.f32.gmra.mrb[60].mxu0 %v466_v29  ;;  %v4617_v38 = vpop.f32.mrb[211].mxu1  ;;  %4879 = vmatmul.mubr.f32.gmra.mrb[60].mxu1 %v978_v30 }
 0x2ba   : > { %8156 = vmatprep.mubr.msk.f32.mxu0 %vm1203_vm0, %v469_v31  ;;  %8412 = vmatprep.mubr.msk.f32.mxu1 %vm1203_vm0, %v981_v32  ;;  %v483_v37 = vld [vmem:[%s9679_s27 + $0xa68] sm:$0xff] }
 0x2bb   : > { %7523 = vst.msk [vmem:[%s10104_s26 + $0x1a4] sm:$0xf] %vm7417_vm2, %v9129_v35  ;;  %7779 = vst.msk [vmem:[%s10104_s26 + $0x5a4] sm:$0xf] %vm7417_vm2, %v9385_v36  ;;  %v480_v35 = vld [vmem:[%s9679_s27 + $0xa50] sm:$0xff]  ;;  %v995_v38 = vld [vmem:[%s9679_s27 + $0x1a68] sm:$0xff] }
 0x2bc   : > { %v3340_v43 = vpop.f32.mrb[212].mxu0  ;;  %v4620_v44 = vpop.f32.mrb[212].mxu1  ;;  %v992_v36 = vld [vmem:[%s9679_s27 + $0x1a50] sm:$0xff] }
 0x2bd   : > { %v9130_v45 = vpack.c.bf16 %v3340_v43, %v3340_v43  ;;  %v9386_v46 = vpack.c.bf16 %v4620_v44, %v4620_v44  ;;  %v3342_v47 = vpop.f32.mrb[213].mxu0  ;;  %3604 = vmatmul.mubr.f32.gmra.mrb[62].mxu0 %v468_v39  ;;  %v4622_v48 = vpop.f32.mrb[213].mxu1  ;;  %4884 = vmatmul.mubr.f32.gmra.mrb[62].mxu1 %v980_v40 }
 0x2be   : > { %8157 = vmatprep.mubr.msk.f32.mxu0 %vm1203_vm0, %v471_v41  ;;  %8413 = vmatprep.mubr.msk.f32.mxu1 %vm1203_vm0, %v983_v42  ;;  %v485_v47 = vld [vmem:[%s9679_s27 + $0xa78] sm:$0xff] }
 0x2bf   : > { %7524 = vst.msk [vmem:[%s10104_s26 + $0x1a8] sm:$0xf] %vm7417_vm2, %v9130_v45  ;;  %7780 = vst.msk [vmem:[%s10104_s26 + $0x5a8] sm:$0xf] %vm7417_vm2, %v9386_v46  ;;  %v482_v45 = vld [vmem:[%s9679_s27 + $0xa60] sm:$0xff]  ;;  %v997_v48 = vld [vmem:[%s9679_s27 + $0x1a78] sm:$0xff] }
 0x2c0   : > { %v3345_v53 = vpop.f32.mrb[214].mxu0  ;;  %v4625_v54 = vpop.f32.mrb[214].mxu1  ;;  %v994_v46 = vld [vmem:[%s9679_s27 + $0x1a60] sm:$0xff] }
 0x2c1   : > { %v9131_v55 = vpack.c.bf16 %v3345_v53, %v3345_v53  ;;  %v9387_v56 = vpack.c.bf16 %v4625_v54, %v4625_v54  ;;  %v3347_v57 = vpop.f32.mrb[215].mxu0  ;;  %3609 = vmatmul.mubr.f32.gmra.mrb[64].mxu0 %v470_v49  ;;  %v4627_v58 = vpop.f32.mrb[215].mxu1  ;;  %4889 = vmatmul.mubr.f32.gmra.mrb[64].mxu1 %v982_v50 }
 0x2c2   : > { %8158 = vmatprep.mubr.msk.f32.mxu0 %vm1203_vm0, %v473_v51  ;;  %8414 = vmatprep.mubr.msk.f32.mxu1 %vm1203_vm0, %v985_v52  ;;  %v487_v57 = vld [vmem:[%s9679_s27 + $0xa88] sm:$0xff] }
 0x2c3   : > { %7525 = vst.msk [vmem:[%s10104_s26 + $0x1ac] sm:$0xf] %vm7417_vm2, %v9131_v55  ;;  %7781 = vst.msk [vmem:[%s10104_s26 + $0x5ac] sm:$0xf] %vm7417_vm2, %v9387_v56  ;;  %v484_v55 = vld [vmem:[%s9679_s27 + $0xa70] sm:$0xff]  ;;  %v999_v58 = vld [vmem:[%s9679_s27 + $0x1a88] sm:$0xff] }
 0x2c4   : > { %v3350_v63 = vpop.f32.mrb[216].mxu0  ;;  %v4630_v0 = vpop.f32.mrb[216].mxu1  ;;  %v996_v56 = vld [vmem:[%s9679_s27 + $0x1a70] sm:$0xff] }
 0x2c5   : > { %v9132_v1 = vpack.c.bf16 %v3350_v63, %v3350_v63  ;;  %v9388_v2 = vpack.c.bf16 %v4630_v0, %v4630_v0  ;;  %v3352_v3 = vpop.f32.mrb[217].mxu0  ;;  %3614 = vmatmul.mubr.f32.gmra.mrb[66].mxu0 %v472_v59  ;;  %v4632_v4 = vpop.f32.mrb[217].mxu1  ;;  %4894 = vmatmul.mubr.f32.gmra.mrb[66].mxu1 %v984_v60 }
 0x2c6   : > { %8159 = vmatprep.mubr.msk.f32.mxu0 %vm1203_vm0, %v475_v61  ;;  %8415 = vmatprep.mubr.msk.f32.mxu1 %vm1203_vm0, %v987_v62  ;;  %v489_v3 = vld [vmem:[%s9679_s27 + $0xa98] sm:$0xff] }
 0x2c7   : > { %7526 = vst.msk [vmem:[%s10104_s26 + $0x1b0] sm:$0xf] %vm7417_vm2, %v9132_v1  ;;  %7782 = vst.msk [vmem:[%s10104_s26 + $0x5b0] sm:$0xf] %vm7417_vm2, %v9388_v2  ;;  %v486_v1 = vld [vmem:[%s9679_s27 + $0xa80] sm:$0xff]  ;;  %v1001_v4 = vld [vmem:[%s9679_s27 + $0x1a98] sm:$0xff] }
 0x2c8   : > { %v3355_v9 = vpop.f32.mrb[218].mxu0  ;;  %v4635_v10 = vpop.f32.mrb[218].mxu1  ;;  %v998_v2 = vld [vmem:[%s9679_s27 + $0x1a80] sm:$0xff] }
 0x2c9   : > { %v9133_v11 = vpack.c.bf16 %v3355_v9, %v3355_v9  ;;  %v9389_v12 = vpack.c.bf16 %v4635_v10, %v4635_v10  ;;  %v3357_v13 = vpop.f32.mrb[219].mxu0  ;;  %3619 = vmatmul.mubr.f32.gmra.mrb[68].mxu0 %v474_v5  ;;  %v4637_v14 = vpop.f32.mrb[219].mxu1  ;;  %4899 = vmatmul.mubr.f32.gmra.mrb[68].mxu1 %v986_v6 }
 0x2ca   : > { %8160 = vmatprep.mubr.msk.f32.mxu0 %vm1203_vm0, %v477_v7  ;;  %8416 = vmatprep.mubr.msk.f32.mxu1 %vm1203_vm0, %v989_v8  ;;  %v491_v13 = vld [vmem:[%s9679_s27 + $0xaa8] sm:$0xff] }
 0x2cb   : > { %7527 = vst.msk [vmem:[%s10104_s26 + $0x1b4] sm:$0xf] %vm7417_vm2, %v9133_v11  ;;  %7783 = vst.msk [vmem:[%s10104_s26 + $0x5b4] sm:$0xf] %vm7417_vm2, %v9389_v12  ;;  %v488_v11 = vld [vmem:[%s9679_s27 + $0xa90] sm:$0xff]  ;;  %v1003_v14 = vld [vmem:[%s9679_s27 + $0x1aa8] sm:$0xff] }
 0x2cc   : > { %v3360_v19 = vpop.f32.mrb[220].mxu0  ;;  %v4640_v20 = vpop.f32.mrb[220].mxu1  ;;  %v1000_v12 = vld [vmem:[%s9679_s27 + $0x1a90] sm:$0xff] }
 0x2cd   : > { %v9134_v21 = vpack.c.bf16 %v3360_v19, %v3360_v19  ;;  %v9390_v22 = vpack.c.bf16 %v4640_v20, %v4640_v20  ;;  %v3362_v23 = vpop.f32.mrb[221].mxu0  ;;  %3624 = vmatmul.mubr.f32.gmra.mrb[70].mxu0 %v476_v15  ;;  %v4642_v24 = vpop.f32.mrb[221].mxu1  ;;  %4904 = vmatmul.mubr.f32.gmra.mrb[70].mxu1 %v988_v16 }
 0x2ce   : > { %8161 = vmatprep.mubr.msk.f32.mxu0 %vm1203_vm0, %v479_v17  ;;  %8417 = vmatprep.mubr.msk.f32.mxu1 %vm1203_vm0, %v991_v18  ;;  %v493_v23 = vld [vmem:[%s9679_s27 + $0xab8] sm:$0xff] }
 0x2cf   : > { %7528 = vst.msk [vmem:[%s10104_s26 + $0x1b8] sm:$0xf] %vm7417_vm2, %v9134_v21  ;;  %7784 = vst.msk [vmem:[%s10104_s26 + $0x5b8] sm:$0xf] %vm7417_vm2, %v9390_v22  ;;  %v490_v21 = vld [vmem:[%s9679_s27 + $0xaa0] sm:$0xff]  ;;  %v1005_v24 = vld [vmem:[%s9679_s27 + $0x1ab8] sm:$0xff] }
 0x2d0   : > { %v3365_v29 = vpop.f32.mrb[222].mxu0  ;;  %v4645_v30 = vpop.f32.mrb[222].mxu1  ;;  %v1002_v22 = vld [vmem:[%s9679_s27 + $0x1aa0] sm:$0xff] }
 0x2d1   : > { %v9135_v31 = vpack.c.bf16 %v3365_v29, %v3365_v29  ;;  %v9391_v32 = vpack.c.bf16 %v4645_v30, %v4645_v30  ;;  %v3367_v33 = vpop.f32.mrb[223].mxu0  ;;  %3629 = vmatmul.mubr.f32.gmra.mrb[72].mxu0 %v478_v25  ;;  %v4647_v34 = vpop.f32.mrb[223].mxu1  ;;  %4909 = vmatmul.mubr.f32.gmra.mrb[72].mxu1 %v990_v26 }
 0x2d2   : > { %8162 = vmatprep.mubr.msk.f32.mxu0 %vm1203_vm0, %v481_v27  ;;  %8418 = vmatprep.mubr.msk.f32.mxu1 %vm1203_vm0, %v993_v28  ;;  %v495_v33 = vld [vmem:[%s9679_s27 + $0xac8] sm:$0xff] }
 0x2d3   : > { %7529 = vst.msk [vmem:[%s10104_s26 + $0x1bc] sm:$0xf] %vm7417_vm2, %v9135_v31  ;;  %7785 = vst.msk [vmem:[%s10104_s26 + $0x5bc] sm:$0xf] %vm7417_vm2, %v9391_v32  ;;  %v492_v31 = vld [vmem:[%s9679_s27 + $0xab0] sm:$0xff]  ;;  %v1007_v34 = vld [vmem:[%s9679_s27 + $0x1ac8] sm:$0xff] }
 0x2d4   : > { %v3370_v39 = vpop.f32.mrb[224].mxu0  ;;  %v4650_v40 = vpop.f32.mrb[224].mxu1  ;;  %v1004_v32 = vld [vmem:[%s9679_s27 + $0x1ab0] sm:$0xff] }
 0x2d5   : > { %v9136_v41 = vpack.c.bf16 %v3370_v39, %v3370_v39  ;;  %v9392_v42 = vpack.c.bf16 %v4650_v40, %v4650_v40  ;;  %v3372_v43 = vpop.f32.mrb[225].mxu0  ;;  %3634 = vmatmul.mubr.f32.gmra.mrb[74].mxu0 %v480_v35  ;;  %v4652_v44 = vpop.f32.mrb[225].mxu1  ;;  %4914 = vmatmul.mubr.f32.gmra.mrb[74].mxu1 %v992_v36 }
 0x2d6   : > { %8163 = vmatprep.mubr.msk.f32.mxu0 %vm1203_vm0, %v483_v37  ;;  %8419 = vmatprep.mubr.msk.f32.mxu1 %vm1203_vm0, %v995_v38  ;;  %v497_v43 = vld [vmem:[%s9679_s27 + $0xad8] sm:$0xff] }
 0x2d7   : > { %7530 = vst.msk [vmem:[%s10104_s26 + $0x1c0] sm:$0xf] %vm7417_vm2, %v9136_v41  ;;  %7786 = vst.msk [vmem:[%s10104_s26 + $0x5c0] sm:$0xf] %vm7417_vm2, %v9392_v42  ;;  %v494_v41 = vld [vmem:[%s9679_s27 + $0xac0] sm:$0xff]  ;;  %v1009_v44 = vld [vmem:[%s9679_s27 + $0x1ad8] sm:$0xff] }
 0x2d8   : > { %v3375_v49 = vpop.f32.mrb[226].mxu0  ;;  %v4655_v50 = vpop.f32.mrb[226].mxu1  ;;  %v1006_v42 = vld [vmem:[%s9679_s27 + $0x1ac0] sm:$0xff] }
 0x2d9   : > { %v9137_v51 = vpack.c.bf16 %v3375_v49, %v3375_v49  ;;  %v9393_v52 = vpack.c.bf16 %v4655_v50, %v4655_v50  ;;  %v3377_v53 = vpop.f32.mrb[227].mxu0  ;;  %3639 = vmatmul.mubr.f32.gmra.mrb[76].mxu0 %v482_v45  ;;  %v4657_v54 = vpop.f32.mrb[227].mxu1  ;;  %4919 = vmatmul.mubr.f32.gmra.mrb[76].mxu1 %v994_v46 }
 0x2da   : > { %8164 = vmatprep.mubr.msk.f32.mxu0 %vm1203_vm0, %v485_v47  ;;  %8420 = vmatprep.mubr.msk.f32.mxu1 %vm1203_vm0, %v997_v48  ;;  %v499_v53 = vld [vmem:[%s9679_s27 + $0xae8] sm:$0xff] }
 0x2db   : > { %7531 = vst.msk [vmem:[%s10104_s26 + $0x1c4] sm:$0xf] %vm7417_vm2, %v9137_v51  ;;  %7787 = vst.msk [vmem:[%s10104_s26 + $0x5c4] sm:$0xf] %vm7417_vm2, %v9393_v52  ;;  %v496_v51 = vld [vmem:[%s9679_s27 + $0xad0] sm:$0xff]  ;;  %v1011_v54 = vld [vmem:[%s9679_s27 + $0x1ae8] sm:$0xff] }
 0x2dc   : > { %v3380_v59 = vpop.f32.mrb[228].mxu0  ;;  %v4660_v60 = vpop.f32.mrb[228].mxu1  ;;  %v1008_v52 = vld [vmem:[%s9679_s27 + $0x1ad0] sm:$0xff] }
 0x2dd   : > { %v9138_v61 = vpack.c.bf16 %v3380_v59, %v3380_v59  ;;  %v9394_v62 = vpack.c.bf16 %v4660_v60, %v4660_v60  ;;  %v3382_v63 = vpop.f32.mrb[229].mxu0  ;;  %3644 = vmatmul.mubr.f32.gmra.mrb[78].mxu0 %v484_v55  ;;  %v4662_v0 = vpop.f32.mrb[229].mxu1  ;;  %4924 = vmatmul.mubr.f32.gmra.mrb[78].mxu1 %v996_v56 }
 0x2de   : > { %8165 = vmatprep.mubr.msk.f32.mxu0 %vm1203_vm0, %v487_v57  ;;  %8421 = vmatprep.mubr.msk.f32.mxu1 %vm1203_vm0, %v999_v58  ;;  %v501_v63 = vld [vmem:[%s9679_s27 + $0xaf8] sm:$0xff] }
 0x2df   : > { %7532 = vst.msk [vmem:[%s10104_s26 + $0x1c8] sm:$0xf] %vm7417_vm2, %v9138_v61  ;;  %7788 = vst.msk [vmem:[%s10104_s26 + $0x5c8] sm:$0xf] %vm7417_vm2, %v9394_v62  ;;  %v498_v61 = vld [vmem:[%s9679_s27 + $0xae0] sm:$0xff]  ;;  %v1013_v0 = vld [vmem:[%s9679_s27 + $0x1af8] sm:$0xff] }
 0x2e0   : > { %v3385_v5 = vpop.f32.mrb[230].mxu0  ;;  %v4665_v6 = vpop.f32.mrb[230].mxu1  ;;  %v1010_v62 = vld [vmem:[%s9679_s27 + $0x1ae0] sm:$0xff] }
 0x2e1   : > { %v9139_v7 = vpack.c.bf16 %v3385_v5, %v3385_v5  ;;  %v9395_v8 = vpack.c.bf16 %v4665_v6, %v4665_v6  ;;  %v3387_v9 = vpop.f32.mrb[231].mxu0  ;;  %3649 = vmatmul.mubr.f32.gmra.mrb[80].mxu0 %v486_v1  ;;  %v4667_v10 = vpop.f32.mrb[231].mxu1  ;;  %4929 = vmatmul.mubr.f32.gmra.mrb[80].mxu1 %v998_v2 }
 0x2e2   : > { %8166 = vmatprep.mubr.msk.f32.mxu0 %vm1203_vm0, %v489_v3  ;;  %8422 = vmatprep.mubr.msk.f32.mxu1 %vm1203_vm0, %v1001_v4  ;;  %v503_v9 = vld [vmem:[%s9679_s27 + $0xb08] sm:$0xff] }
 0x2e3   : > { %7533 = vst.msk [vmem:[%s10104_s26 + $0x1cc] sm:$0xf] %vm7417_vm2, %v9139_v7  ;;  %7789 = vst.msk [vmem:[%s10104_s26 + $0x5cc] sm:$0xf] %vm7417_vm2, %v9395_v8  ;;  %v500_v7 = vld [vmem:[%s9679_s27 + $0xaf0] sm:$0xff]  ;;  %v1015_v10 = vld [vmem:[%s9679_s27 + $0x1b08] sm:$0xff] }
 0x2e4   : > { %v3390_v15 = vpop.f32.mrb[232].mxu0  ;;  %v4670_v16 = vpop.f32.mrb[232].mxu1  ;;  %v1012_v8 = vld [vmem:[%s9679_s27 + $0x1af0] sm:$0xff] }
 0x2e5   : > { %v9140_v17 = vpack.c.bf16 %v3390_v15, %v3390_v15  ;;  %v9396_v18 = vpack.c.bf16 %v4670_v16, %v4670_v16  ;;  %v3392_v19 = vpop.f32.mrb[233].mxu0  ;;  %3654 = vmatmul.mubr.f32.gmra.mrb[82].mxu0 %v488_v11  ;;  %v4672_v20 = vpop.f32.mrb[233].mxu1  ;;  %4934 = vmatmul.mubr.f32.gmra.mrb[82].mxu1 %v1000_v12 }
 0x2e6   : > { %8167 = vmatprep.mubr.msk.f32.mxu0 %vm1203_vm0, %v491_v13  ;;  %8423 = vmatprep.mubr.msk.f32.mxu1 %vm1203_vm0, %v1003_v14  ;;  %v505_v19 = vld [vmem:[%s9679_s27 + $0xb18] sm:$0xff] }
 0x2e7   : > { %7534 = vst.msk [vmem:[%s10104_s26 + $0x1d0] sm:$0xf] %vm7417_vm2, %v9140_v17  ;;  %7790 = vst.msk [vmem:[%s10104_s26 + $0x5d0] sm:$0xf] %vm7417_vm2, %v9396_v18  ;;  %v502_v17 = vld [vmem:[%s9679_s27 + $0xb00] sm:$0xff]  ;;  %v1017_v20 = vld [vmem:[%s9679_s27 + $0x1b18] sm:$0xff] }
 0x2e8   : > { %v3395_v25 = vpop.f32.mrb[234].mxu0  ;;  %v4675_v26 = vpop.f32.mrb[234].mxu1  ;;  %v1014_v18 = vld [vmem:[%s9679_s27 + $0x1b00] sm:$0xff] }
 0x2e9   : > { %v9141_v27 = vpack.c.bf16 %v3395_v25, %v3395_v25  ;;  %v9397_v28 = vpack.c.bf16 %v4675_v26, %v4675_v26  ;;  %v3397_v29 = vpop.f32.mrb[235].mxu0  ;;  %3659 = vmatmul.mubr.f32.gmra.mrb[84].mxu0 %v490_v21  ;;  %v4677_v30 = vpop.f32.mrb[235].mxu1  ;;  %4939 = vmatmul.mubr.f32.gmra.mrb[84].mxu1 %v1002_v22 }
 0x2ea   : > { %8168 = vmatprep.mubr.msk.f32.mxu0 %vm1203_vm0, %v493_v23  ;;  %8424 = vmatprep.mubr.msk.f32.mxu1 %vm1203_vm0, %v1005_v24  ;;  %v507_v29 = vld [vmem:[%s9679_s27 + $0xb28] sm:$0xff] }
 0x2eb   : > { %7535 = vst.msk [vmem:[%s10104_s26 + $0x1d4] sm:$0xf] %vm7417_vm2, %v9141_v27  ;;  %7791 = vst.msk [vmem:[%s10104_s26 + $0x5d4] sm:$0xf] %vm7417_vm2, %v9397_v28  ;;  %v504_v27 = vld [vmem:[%s9679_s27 + $0xb10] sm:$0xff]  ;;  %v1019_v30 = vld [vmem:[%s9679_s27 + $0x1b28] sm:$0xff] }
 0x2ec   : > { %v3400_v35 = vpop.f32.mrb[236].mxu0  ;;  %v4680_v36 = vpop.f32.mrb[236].mxu1  ;;  %v1016_v28 = vld [vmem:[%s9679_s27 + $0x1b10] sm:$0xff] }
 0x2ed   : > { %v9142_v37 = vpack.c.bf16 %v3400_v35, %v3400_v35  ;;  %v9398_v38 = vpack.c.bf16 %v4680_v36, %v4680_v36  ;;  %v3402_v39 = vpop.f32.mrb[237].mxu0  ;;  %3664 = vmatmul.mubr.f32.gmra.mrb[86].mxu0 %v492_v31  ;;  %v4682_v40 = vpop.f32.mrb[237].mxu1  ;;  %4944 = vmatmul.mubr.f32.gmra.mrb[86].mxu1 %v1004_v32 }
 0x2ee   : > { %8169 = vmatprep.mubr.msk.f32.mxu0 %vm1203_vm0, %v495_v33  ;;  %8425 = vmatprep.mubr.msk.f32.mxu1 %vm1203_vm0, %v1007_v34  ;;  %v509_v39 = vld [vmem:[%s9679_s27 + $0xb38] sm:$0xff] }
 0x2ef   : > { %7536 = vst.msk [vmem:[%s10104_s26 + $0x1d8] sm:$0xf] %vm7417_vm2, %v9142_v37  ;;  %7792 = vst.msk [vmem:[%s10104_s26 + $0x5d8] sm:$0xf] %vm7417_vm2, %v9398_v38  ;;  %v506_v37 = vld [vmem:[%s9679_s27 + $0xb20] sm:$0xff]  ;;  %v1021_v40 = vld [vmem:[%s9679_s27 + $0x1b38] sm:$0xff] }
 0x2f0   : > { %v3405_v45 = vpop.f32.mrb[238].mxu0  ;;  %v4685_v46 = vpop.f32.mrb[238].mxu1  ;;  %v1018_v38 = vld [vmem:[%s9679_s27 + $0x1b20] sm:$0xff] }
 0x2f1   : > { %v9143_v47 = vpack.c.bf16 %v3405_v45, %v3405_v45  ;;  %v9399_v48 = vpack.c.bf16 %v4685_v46, %v4685_v46  ;;  %v3407_v49 = vpop.f32.mrb[239].mxu0  ;;  %3669 = vmatmul.mubr.f32.gmra.mrb[88].mxu0 %v494_v41  ;;  %v4687_v50 = vpop.f32.mrb[239].mxu1  ;;  %4949 = vmatmul.mubr.f32.gmra.mrb[88].mxu1 %v1006_v42 }
 0x2f2   : > { %8170 = vmatprep.mubr.msk.f32.mxu0 %vm1203_vm0, %v497_v43  ;;  %8426 = vmatprep.mubr.msk.f32.mxu1 %vm1203_vm0, %v1009_v44  ;;  %v511_v49 = vld [vmem:[%s9679_s27 + $0xb48] sm:$0xff] }
 0x2f3   : > { %7537 = vst.msk [vmem:[%s10104_s26 + $0x1dc] sm:$0xf] %vm7417_vm2, %v9143_v47  ;;  %7793 = vst.msk [vmem:[%s10104_s26 + $0x5dc] sm:$0xf] %vm7417_vm2, %v9399_v48  ;;  %v508_v47 = vld [vmem:[%s9679_s27 + $0xb30] sm:$0xff]  ;;  %v1023_v50 = vld [vmem:[%s9679_s27 + $0x1b48] sm:$0xff] }
 0x2f4   : > { %v3410_v55 = vpop.f32.mrb[240].mxu0  ;;  %v4690_v56 = vpop.f32.mrb[240].mxu1  ;;  %v1020_v48 = vld [vmem:[%s9679_s27 + $0x1b30] sm:$0xff] }
 0x2f5   : > { %v9144_v57 = vpack.c.bf16 %v3410_v55, %v3410_v55  ;;  %v9400_v58 = vpack.c.bf16 %v4690_v56, %v4690_v56  ;;  %v3412_v59 = vpop.f32.mrb[241].mxu0  ;;  %3674 = vmatmul.mubr.f32.gmra.mrb[90].mxu0 %v496_v51  ;;  %v4692_v60 = vpop.f32.mrb[241].mxu1  ;;  %4954 = vmatmul.mubr.f32.gmra.mrb[90].mxu1 %v1008_v52 }
 0x2f6   : > { %8171 = vmatprep.mubr.msk.f32.mxu0 %vm1203_vm0, %v499_v53  ;;  %8427 = vmatprep.mubr.msk.f32.mxu1 %vm1203_vm0, %v1011_v54  ;;  %v513_v59 = vld [vmem:[%s9679_s27 + $0xb58] sm:$0xff] }
 0x2f7   : > { %7538 = vst.msk [vmem:[%s10104_s26 + $0x1e0] sm:$0xf] %vm7417_vm2, %v9144_v57  ;;  %7794 = vst.msk [vmem:[%s10104_s26 + $0x5e0] sm:$0xf] %vm7417_vm2, %v9400_v58  ;;  %v510_v57 = vld [vmem:[%s9679_s27 + $0xb40] sm:$0xff]  ;;  %v1025_v60 = vld [vmem:[%s9679_s27 + $0x1b58] sm:$0xff] }
 0x2f8   : > { %v3415_v1 = vpop.f32.mrb[242].mxu0  ;;  %v4695_v2 = vpop.f32.mrb[242].mxu1  ;;  %v1022_v58 = vld [vmem:[%s9679_s27 + $0x1b40] sm:$0xff] }
 0x2f9   : > { %v9145_v3 = vpack.c.bf16 %v3415_v1, %v3415_v1  ;;  %v9401_v4 = vpack.c.bf16 %v4695_v2, %v4695_v2  ;;  %v3417_v5 = vpop.f32.mrb[243].mxu0  ;;  %3679 = vmatmul.mubr.f32.gmra.mrb[92].mxu0 %v498_v61  ;;  %v4697_v6 = vpop.f32.mrb[243].mxu1  ;;  %4959 = vmatmul.mubr.f32.gmra.mrb[92].mxu1 %v1010_v62 }
 0x2fa   : > { %8172 = vmatprep.mubr.msk.f32.mxu0 %vm1203_vm0, %v501_v63  ;;  %8428 = vmatprep.mubr.msk.f32.mxu1 %vm1203_vm0, %v1013_v0  ;;  %v515_v5 = vld [vmem:[%s9679_s27 + $0xb68] sm:$0xff] }
 0x2fb   : > { %7539 = vst.msk [vmem:[%s10104_s26 + $0x1e4] sm:$0xf] %vm7417_vm2, %v9145_v3  ;;  %7795 = vst.msk [vmem:[%s10104_s26 + $0x5e4] sm:$0xf] %vm7417_vm2, %v9401_v4  ;;  %v512_v3 = vld [vmem:[%s9679_s27 + $0xb50] sm:$0xff]  ;;  %v1027_v6 = vld [vmem:[%s9679_s27 + $0x1b68] sm:$0xff] }
 0x2fc   : > { %v3420_v11 = vpop.f32.mrb[244].mxu0  ;;  %v4700_v12 = vpop.f32.mrb[244].mxu1  ;;  %v1024_v4 = vld [vmem:[%s9679_s27 + $0x1b50] sm:$0xff] }
 0x2fd   : > { %v9146_v13 = vpack.c.bf16 %v3420_v11, %v3420_v11  ;;  %v9402_v14 = vpack.c.bf16 %v4700_v12, %v4700_v12  ;;  %v3422_v15 = vpop.f32.mrb[245].mxu0  ;;  %3684 = vmatmul.mubr.f32.gmra.mrb[94].mxu0 %v500_v7  ;;  %v4702_v16 = vpop.f32.mrb[245].mxu1  ;;  %4964 = vmatmul.mubr.f32.gmra.mrb[94].mxu1 %v1012_v8 }
 0x2fe   : > { %8173 = vmatprep.mubr.msk.f32.mxu0 %vm1203_vm0, %v503_v9  ;;  %8429 = vmatprep.mubr.msk.f32.mxu1 %vm1203_vm0, %v1015_v10  ;;  %v517_v15 = vld [vmem:[%s9679_s27 + $0xb78] sm:$0xff] }
 0x2ff   : > { %7540 = vst.msk [vmem:[%s10104_s26 + $0x1e8] sm:$0xf] %vm7417_vm2, %v9146_v13  ;;  %7796 = vst.msk [vmem:[%s10104_s26 + $0x5e8] sm:$0xf] %vm7417_vm2, %v9402_v14  ;;  %v514_v13 = vld [vmem:[%s9679_s27 + $0xb60] sm:$0xff]  ;;  %v1029_v16 = vld [vmem:[%s9679_s27 + $0x1b78] sm:$0xff] }
 0x300   : > { %v3425_v21 = vpop.f32.mrb[246].mxu0  ;;  %v4705_v22 = vpop.f32.mrb[246].mxu1  ;;  %v1026_v14 = vld [vmem:[%s9679_s27 + $0x1b60] sm:$0xff] }
 0x301   : > { %v9147_v23 = vpack.c.bf16 %v3425_v21, %v3425_v21  ;;  %v9403_v24 = vpack.c.bf16 %v4705_v22, %v4705_v22  ;;  %v3427_v25 = vpop.f32.mrb[247].mxu0  ;;  %3689 = vmatmul.mubr.f32.gmra.mrb[96].mxu0 %v502_v17  ;;  %v4707_v26 = vpop.f32.mrb[247].mxu1  ;;  %4969 = vmatmul.mubr.f32.gmra.mrb[96].mxu1 %v1014_v18 }
 0x302   : > { %8174 = vmatprep.mubr.msk.f32.mxu0 %vm1203_vm0, %v505_v19  ;;  %8430 = vmatprep.mubr.msk.f32.mxu1 %vm1203_vm0, %v1017_v20  ;;  %v519_v25 = vld [vmem:[%s9679_s27 + $0xb88] sm:$0xff] }
 0x303   : > { %7541 = vst.msk [vmem:[%s10104_s26 + $0x1ec] sm:$0xf] %vm7417_vm2, %v9147_v23  ;;  %7797 = vst.msk [vmem:[%s10104_s26 + $0x5ec] sm:$0xf] %vm7417_vm2, %v9403_v24  ;;  %v516_v23 = vld [vmem:[%s9679_s27 + $0xb70] sm:$0xff]  ;;  %v1031_v26 = vld [vmem:[%s9679_s27 + $0x1b88] sm:$0xff] }
 0x304   : > { %v3430_v31 = vpop.f32.mrb[248].mxu0  ;;  %v4710_v32 = vpop.f32.mrb[248].mxu1  ;;  %v1028_v24 = vld [vmem:[%s9679_s27 + $0x1b70] sm:$0xff] }
 0x305   : > { %v9148_v33 = vpack.c.bf16 %v3430_v31, %v3430_v31  ;;  %v9404_v34 = vpack.c.bf16 %v4710_v32, %v4710_v32  ;;  %v3432_v35 = vpop.f32.mrb[249].mxu0  ;;  %3694 = vmatmul.mubr.f32.gmra.mrb[98].mxu0 %v504_v27  ;;  %v4712_v36 = vpop.f32.mrb[249].mxu1  ;;  %4974 = vmatmul.mubr.f32.gmra.mrb[98].mxu1 %v1016_v28 }
 0x306   : > { %8175 = vmatprep.mubr.msk.f32.mxu0 %vm1203_vm0, %v507_v29  ;;  %8431 = vmatprep.mubr.msk.f32.mxu1 %vm1203_vm0, %v1019_v30  ;;  %v521_v35 = vld [vmem:[%s9679_s27 + $0xb98] sm:$0xff] }
 0x307   : > { %7542 = vst.msk [vmem:[%s10104_s26 + $0x1f0] sm:$0xf] %vm7417_vm2, %v9148_v33  ;;  %7798 = vst.msk [vmem:[%s10104_s26 + $0x5f0] sm:$0xf] %vm7417_vm2, %v9404_v34  ;;  %v518_v33 = vld [vmem:[%s9679_s27 + $0xb80] sm:$0xff]  ;;  %v1033_v36 = vld [vmem:[%s9679_s27 + $0x1b98] sm:$0xff] }
 0x308   : > { %v3435_v41 = vpop.f32.mrb[250].mxu0  ;;  %v4715_v42 = vpop.f32.mrb[250].mxu1  ;;  %v1030_v34 = vld [vmem:[%s9679_s27 + $0x1b80] sm:$0xff] }
 0x309   : > { %v9149_v43 = vpack.c.bf16 %v3435_v41, %v3435_v41  ;;  %v9405_v44 = vpack.c.bf16 %v4715_v42, %v4715_v42  ;;  %v3437_v45 = vpop.f32.mrb[251].mxu0  ;;  %3699 = vmatmul.mubr.f32.gmra.mrb[100].mxu0 %v506_v37  ;;  %v4717_v46 = vpop.f32.mrb[251].mxu1  ;;  %4979 = vmatmul.mubr.f32.gmra.mrb[100].mxu1 %v1018_v38 }
 0x30a   : > { %8176 = vmatprep.mubr.msk.f32.mxu0 %vm1203_vm0, %v509_v39  ;;  %8432 = vmatprep.mubr.msk.f32.mxu1 %vm1203_vm0, %v1021_v40  ;;  %v523_v45 = vld [vmem:[%s9679_s27 + $0xba8] sm:$0xff] }
 0x30b   : > { %7543 = vst.msk [vmem:[%s10104_s26 + $0x1f4] sm:$0xf] %vm7417_vm2, %v9149_v43  ;;  %7799 = vst.msk [vmem:[%s10104_s26 + $0x5f4] sm:$0xf] %vm7417_vm2, %v9405_v44  ;;  %v520_v43 = vld [vmem:[%s9679_s27 + $0xb90] sm:$0xff]  ;;  %v1035_v46 = vld [vmem:[%s9679_s27 + $0x1ba8] sm:$0xff] }
 0x30c   : > { %v3440_v51 = vpop.f32.mrb[252].mxu0  ;;  %v4720_v52 = vpop.f32.mrb[252].mxu1  ;;  %v1032_v44 = vld [vmem:[%s9679_s27 + $0x1b90] sm:$0xff] }
 0x30d   : > { %v9150_v53 = vpack.c.bf16 %v3440_v51, %v3440_v51  ;;  %v9406_v54 = vpack.c.bf16 %v4720_v52, %v4720_v52  ;;  %v3442_v55 = vpop.f32.mrb[253].mxu0  ;;  %3704 = vmatmul.mubr.f32.gmra.mrb[102].mxu0 %v508_v47  ;;  %v4722_v56 = vpop.f32.mrb[253].mxu1  ;;  %4984 = vmatmul.mubr.f32.gmra.mrb[102].mxu1 %v1020_v48 }
 0x30e   : > { %8177 = vmatprep.mubr.msk.f32.mxu0 %vm1203_vm0, %v511_v49  ;;  %8433 = vmatprep.mubr.msk.f32.mxu1 %vm1203_vm0, %v1023_v50  ;;  %v525_v55 = vld [vmem:[%s9679_s27 + $0xbb8] sm:$0xff] }
 0x30f   : > { %7544 = vst.msk [vmem:[%s10104_s26 + $0x1f8] sm:$0xf] %vm7417_vm2, %v9150_v53  ;;  %7800 = vst.msk [vmem:[%s10104_s26 + $0x5f8] sm:$0xf] %vm7417_vm2, %v9406_v54  ;;  %v522_v53 = vld [vmem:[%s9679_s27 + $0xba0] sm:$0xff]  ;;  %v1037_v56 = vld [vmem:[%s9679_s27 + $0x1bb8] sm:$0xff] }
 0x310   : > { %v3445_v61 = vpop.f32.mrb[254].mxu0  ;;  %v4725_v62 = vpop.f32.mrb[254].mxu1  ;;  %v1034_v54 = vld [vmem:[%s9679_s27 + $0x1ba0] sm:$0xff] }
 0x311   : > { %v9151_v63 = vpack.c.bf16 %v3445_v61, %v3445_v61  ;;  %v9407_v0 = vpack.c.bf16 %v4725_v62, %v4725_v62  ;;  %v3447_v1 = vpop.f32.mrb[255].mxu0  ;;  %3709 = vmatmul.mubr.f32.gmra.mrb[104].mxu0 %v510_v57  ;;  %v4727_v2 = vpop.f32.mrb[255].mxu1  ;;  %4989 = vmatmul.mubr.f32.gmra.mrb[104].mxu1 %v1022_v58 }
 0x312   : > { %8178 = vmatprep.mubr.msk.f32.mxu0 %vm1203_vm0, %v513_v59  ;;  %8434 = vmatprep.mubr.msk.f32.mxu1 %vm1203_vm0, %v1025_v60  ;;  %v527_v1 = vld [vmem:[%s9679_s27 + $0xbc8] sm:$0xff] }
 0x313   : > { %7545 = vst.msk [vmem:[%s10104_s26 + $0x1fc] sm:$0xf] %vm7417_vm2, %v9151_v63  ;;  %7801 = vst.msk [vmem:[%s10104_s26 + $0x5fc] sm:$0xf] %vm7417_vm2, %v9407_v0  ;;  %v524_v63 = vld [vmem:[%s9679_s27 + $0xbb0] sm:$0xff]  ;;  %v1039_v2 = vld [vmem:[%s9679_s27 + $0x1bc8] sm:$0xff] }
 0x314   : > { %v3450_v7 = vpop.f32.mrb[0].mxu0  ;;  %v4730_v8 = vpop.f32.mrb[0].mxu1  ;;  %v1036_v0 = vld [vmem:[%s9679_s27 + $0x1bb0] sm:$0xff] }
 0x315   : > { %v9152_v9 = vpack.c.bf16 %v3450_v7, %v3450_v7  ;;  %v9408_v10 = vpack.c.bf16 %v4730_v8, %v4730_v8  ;;  %v3452_v11 = vpop.f32.mrb[1].mxu0  ;;  %3714 = vmatmul.mubr.f32.gmra.mrb[106].mxu0 %v512_v3  ;;  %v4732_v12 = vpop.f32.mrb[1].mxu1  ;;  %4994 = vmatmul.mubr.f32.gmra.mrb[106].mxu1 %v1024_v4 }
 0x316   : > { %8179 = vmatprep.mubr.msk.f32.mxu0 %vm1203_vm0, %v515_v5  ;;  %8435 = vmatprep.mubr.msk.f32.mxu1 %vm1203_vm0, %v1027_v6  ;;  %v529_v11 = vld [vmem:[%s9679_s27 + $0xbd8] sm:$0xff] }
 0x317   : > { %7546 = vst.msk [vmem:[%s10104_s26 + $0x200] sm:$0xf] %vm7417_vm2, %v9152_v9  ;;  %7802 = vst.msk [vmem:[%s10104_s26 + $0x600] sm:$0xf] %vm7417_vm2, %v9408_v10  ;;  %v526_v9 = vld [vmem:[%s9679_s27 + $0xbc0] sm:$0xff]  ;;  %v1041_v12 = vld [vmem:[%s9679_s27 + $0x1bd8] sm:$0xff] }
 0x318   : > { %v3455_v17 = vpop.f32.mrb[2].mxu0  ;;  %v4735_v18 = vpop.f32.mrb[2].mxu1  ;;  %v1038_v10 = vld [vmem:[%s9679_s27 + $0x1bc0] sm:$0xff] }
 0x319   : > { %v9153_v19 = vpack.c.bf16 %v3455_v17, %v3455_v17  ;;  %v9409_v20 = vpack.c.bf16 %v4735_v18, %v4735_v18  ;;  %v3457_v21 = vpop.f32.mrb[3].mxu0  ;;  %3719 = vmatmul.mubr.f32.gmra.mrb[108].mxu0 %v514_v13  ;;  %v4737_v22 = vpop.f32.mrb[3].mxu1  ;;  %4999 = vmatmul.mubr.f32.gmra.mrb[108].mxu1 %v1026_v14 }
 0x31a   : > { %8180 = vmatprep.mubr.msk.f32.mxu0 %vm1203_vm0, %v517_v15  ;;  %8436 = vmatprep.mubr.msk.f32.mxu1 %vm1203_vm0, %v1029_v16  ;;  %v531_v21 = vld [vmem:[%s9679_s27 + $0xbe8] sm:$0xff] }
 0x31b   : > { %7547 = vst.msk [vmem:[%s10104_s26 + $0x204] sm:$0xf] %vm7417_vm2, %v9153_v19  ;;  %7803 = vst.msk [vmem:[%s10104_s26 + $0x604] sm:$0xf] %vm7417_vm2, %v9409_v20  ;;  %v528_v19 = vld [vmem:[%s9679_s27 + $0xbd0] sm:$0xff]  ;;  %v1043_v22 = vld [vmem:[%s9679_s27 + $0x1be8] sm:$0xff] }
 0x31c   : > { %v3460_v27 = vpop.f32.mrb[4].mxu0  ;;  %v4740_v28 = vpop.f32.mrb[4].mxu1  ;;  %v1040_v20 = vld [vmem:[%s9679_s27 + $0x1bd0] sm:$0xff] }
 0x31d   : > { %v9154_v29 = vpack.c.bf16 %v3460_v27, %v3460_v27  ;;  %v9410_v30 = vpack.c.bf16 %v4740_v28, %v4740_v28  ;;  %v3462_v31 = vpop.f32.mrb[5].mxu0  ;;  %3724 = vmatmul.mubr.f32.gmra.mrb[110].mxu0 %v516_v23  ;;  %v4742_v32 = vpop.f32.mrb[5].mxu1  ;;  %5004 = vmatmul.mubr.f32.gmra.mrb[110].mxu1 %v1028_v24 }
 0x31e   : > { %8181 = vmatprep.mubr.msk.f32.mxu0 %vm1203_vm0, %v519_v25  ;;  %8437 = vmatprep.mubr.msk.f32.mxu1 %vm1203_vm0, %v1031_v26  ;;  %v533_v31 = vld [vmem:[%s9679_s27 + $0xbf8] sm:$0xff] }
 0x31f   : > { %7548 = vst.msk [vmem:[%s10104_s26 + $0x208] sm:$0xf] %vm7417_vm2, %v9154_v29  ;;  %7804 = vst.msk [vmem:[%s10104_s26 + $0x608] sm:$0xf] %vm7417_vm2, %v9410_v30  ;;  %v530_v29 = vld [vmem:[%s9679_s27 + $0xbe0] sm:$0xff]  ;;  %v1045_v32 = vld [vmem:[%s9679_s27 + $0x1bf8] sm:$0xff] }
 0x320   : > { %v3465_v37 = vpop.f32.mrb[6].mxu0  ;;  %v4745_v38 = vpop.f32.mrb[6].mxu1  ;;  %v1042_v30 = vld [vmem:[%s9679_s27 + $0x1be0] sm:$0xff] }
 0x321   : > { %v9155_v39 = vpack.c.bf16 %v3465_v37, %v3465_v37  ;;  %v9411_v40 = vpack.c.bf16 %v4745_v38, %v4745_v38  ;;  %v3467_v41 = vpop.f32.mrb[7].mxu0  ;;  %3729 = vmatmul.mubr.f32.gmra.mrb[112].mxu0 %v518_v33  ;;  %v4747_v42 = vpop.f32.mrb[7].mxu1  ;;  %5009 = vmatmul.mubr.f32.gmra.mrb[112].mxu1 %v1030_v34 }
 0x322   : > { %8182 = vmatprep.mubr.msk.f32.mxu0 %vm1203_vm0, %v521_v35  ;;  %8438 = vmatprep.mubr.msk.f32.mxu1 %vm1203_vm0, %v1033_v36  ;;  %v535_v41 = vld [vmem:[%s9679_s27 + $0xc08] sm:$0xff] }
 0x323   : > { %7549 = vst.msk [vmem:[%s10104_s26 + $0x20c] sm:$0xf] %vm7417_vm2, %v9155_v39  ;;  %7805 = vst.msk [vmem:[%s10104_s26 + $0x60c] sm:$0xf] %vm7417_vm2, %v9411_v40  ;;  %v532_v39 = vld [vmem:[%s9679_s27 + $0xbf0] sm:$0xff]  ;;  %v1047_v42 = vld [vmem:[%s9679_s27 + $0x1c08] sm:$0xff] }
 0x324   : > { %v3470_v47 = vpop.f32.mrb[8].mxu0  ;;  %v4750_v48 = vpop.f32.mrb[8].mxu1  ;;  %v1044_v40 = vld [vmem:[%s9679_s27 + $0x1bf0] sm:$0xff] }
 0x325   : > { %v9156_v49 = vpack.c.bf16 %v3470_v47, %v3470_v47  ;;  %v9412_v50 = vpack.c.bf16 %v4750_v48, %v4750_v48  ;;  %v3472_v51 = vpop.f32.mrb[9].mxu0  ;;  %3734 = vmatmul.mubr.f32.gmra.mrb[114].mxu0 %v520_v43  ;;  %v4752_v52 = vpop.f32.mrb[9].mxu1  ;;  %5014 = vmatmul.mubr.f32.gmra.mrb[114].mxu1 %v1032_v44 }
 0x326   : > { %8183 = vmatprep.mubr.msk.f32.mxu0 %vm1203_vm0, %v523_v45  ;;  %8439 = vmatprep.mubr.msk.f32.mxu1 %vm1203_vm0, %v1035_v46  ;;  %v537_v51 = vld [vmem:[%s9679_s27 + $0xc18] sm:$0xff] }
 0x327   : > { %7550 = vst.msk [vmem:[%s10104_s26 + $0x210] sm:$0xf] %vm7417_vm2, %v9156_v49  ;;  %7806 = vst.msk [vmem:[%s10104_s26 + $0x610] sm:$0xf] %vm7417_vm2, %v9412_v50  ;;  %v534_v49 = vld [vmem:[%s9679_s27 + $0xc00] sm:$0xff]  ;;  %v1049_v52 = vld [vmem:[%s9679_s27 + $0x1c18] sm:$0xff] }
 0x328   : > { %v3475_v57 = vpop.f32.mrb[10].mxu0  ;;  %v4755_v58 = vpop.f32.mrb[10].mxu1  ;;  %v1046_v50 = vld [vmem:[%s9679_s27 + $0x1c00] sm:$0xff] }
 0x329   : > { %v9157_v59 = vpack.c.bf16 %v3475_v57, %v3475_v57  ;;  %v9413_v60 = vpack.c.bf16 %v4755_v58, %v4755_v58  ;;  %v3477_v61 = vpop.f32.mrb[11].mxu0  ;;  %3739 = vmatmul.mubr.f32.gmra.mrb[116].mxu0 %v522_v53  ;;  %v4757_v62 = vpop.f32.mrb[11].mxu1  ;;  %5019 = vmatmul.mubr.f32.gmra.mrb[116].mxu1 %v1034_v54 }
 0x32a   : > { %8184 = vmatprep.mubr.msk.f32.mxu0 %vm1203_vm0, %v525_v55  ;;  %8440 = vmatprep.mubr.msk.f32.mxu1 %vm1203_vm0, %v1037_v56  ;;  %v539_v61 = vld [vmem:[%s9679_s27 + $0xc28] sm:$0xff] }
 0x32b   : > { %7551 = vst.msk [vmem:[%s10104_s26 + $0x214] sm:$0xf] %vm7417_vm2, %v9157_v59  ;;  %7807 = vst.msk [vmem:[%s10104_s26 + $0x614] sm:$0xf] %vm7417_vm2, %v9413_v60  ;;  %v536_v59 = vld [vmem:[%s9679_s27 + $0xc10] sm:$0xff]  ;;  %v1051_v62 = vld [vmem:[%s9679_s27 + $0x1c28] sm:$0xff] }
 0x32c   : > { %v3480_v3 = vpop.f32.mrb[12].mxu0  ;;  %v4760_v4 = vpop.f32.mrb[12].mxu1  ;;  %v1048_v60 = vld [vmem:[%s9679_s27 + $0x1c10] sm:$0xff] }
 0x32d   : > { %v9158_v5 = vpack.c.bf16 %v3480_v3, %v3480_v3  ;;  %v9414_v6 = vpack.c.bf16 %v4760_v4, %v4760_v4  ;;  %v3482_v7 = vpop.f32.mrb[13].mxu0  ;;  %3744 = vmatmul.mubr.f32.gmra.mrb[118].mxu0 %v524_v63  ;;  %v4762_v8 = vpop.f32.mrb[13].mxu1  ;;  %5024 = vmatmul.mubr.f32.gmra.mrb[118].mxu1 %v1036_v0 }
 0x32e   : > { %8185 = vmatprep.mubr.msk.f32.mxu0 %vm1203_vm0, %v527_v1  ;;  %8441 = vmatprep.mubr.msk.f32.mxu1 %vm1203_vm0, %v1039_v2  ;;  %v541_v7 = vld [vmem:[%s9679_s27 + $0xc38] sm:$0xff] }
 0x32f   : > { %7552 = vst.msk [vmem:[%s10104_s26 + $0x218] sm:$0xf] %vm7417_vm2, %v9158_v5  ;;  %7808 = vst.msk [vmem:[%s10104_s26 + $0x618] sm:$0xf] %vm7417_vm2, %v9414_v6  ;;  %v538_v5 = vld [vmem:[%s9679_s27 + $0xc20] sm:$0xff]  ;;  %v1053_v8 = vld [vmem:[%s9679_s27 + $0x1c38] sm:$0xff] }
 0x330   : > { %v3485_v13 = vpop.f32.mrb[14].mxu0  ;;  %v4765_v14 = vpop.f32.mrb[14].mxu1  ;;  %v1050_v6 = vld [vmem:[%s9679_s27 + $0x1c20] sm:$0xff] }
 0x331   : > { %v9159_v15 = vpack.c.bf16 %v3485_v13, %v3485_v13  ;;  %v9415_v16 = vpack.c.bf16 %v4765_v14, %v4765_v14  ;;  %v3487_v17 = vpop.f32.mrb[15].mxu0  ;;  %3749 = vmatmul.mubr.f32.gmra.mrb[120].mxu0 %v526_v9  ;;  %v4767_v18 = vpop.f32.mrb[15].mxu1  ;;  %5029 = vmatmul.mubr.f32.gmra.mrb[120].mxu1 %v1038_v10 }
 0x332   : > { %8186 = vmatprep.mubr.msk.f32.mxu0 %vm1203_vm0, %v529_v11  ;;  %8442 = vmatprep.mubr.msk.f32.mxu1 %vm1203_vm0, %v1041_v12  ;;  %v543_v17 = vld [vmem:[%s9679_s27 + $0xc48] sm:$0xff] }
 0x333   : > { %7553 = vst.msk [vmem:[%s10104_s26 + $0x21c] sm:$0xf] %vm7417_vm2, %v9159_v15  ;;  %7809 = vst.msk [vmem:[%s10104_s26 + $0x61c] sm:$0xf] %vm7417_vm2, %v9415_v16  ;;  %v540_v15 = vld [vmem:[%s9679_s27 + $0xc30] sm:$0xff]  ;;  %v1055_v18 = vld [vmem:[%s9679_s27 + $0x1c48] sm:$0xff] }
 0x334   : > { %v3490_v23 = vpop.f32.mrb[16].mxu0  ;;  %v4770_v24 = vpop.f32.mrb[16].mxu1  ;;  %v1052_v16 = vld [vmem:[%s9679_s27 + $0x1c30] sm:$0xff] }
 0x335   : > { %v9160_v25 = vpack.c.bf16 %v3490_v23, %v3490_v23  ;;  %v9416_v26 = vpack.c.bf16 %v4770_v24, %v4770_v24  ;;  %v3492_v27 = vpop.f32.mrb[17].mxu0  ;;  %3754 = vmatmul.mubr.f32.gmra.mrb[122].mxu0 %v528_v19  ;;  %v4772_v28 = vpop.f32.mrb[17].mxu1  ;;  %5034 = vmatmul.mubr.f32.gmra.mrb[122].mxu1 %v1040_v20 }
 0x336   : > { %8187 = vmatprep.mubr.msk.f32.mxu0 %vm1203_vm0, %v531_v21  ;;  %8443 = vmatprep.mubr.msk.f32.mxu1 %vm1203_vm0, %v1043_v22  ;;  %v545_v27 = vld [vmem:[%s9679_s27 + $0xc58] sm:$0xff] }
 0x337   : > { %7554 = vst.msk [vmem:[%s10104_s26 + $0x220] sm:$0xf] %vm7417_vm2, %v9160_v25  ;;  %7810 = vst.msk [vmem:[%s10104_s26 + $0x620] sm:$0xf] %vm7417_vm2, %v9416_v26  ;;  %v542_v25 = vld [vmem:[%s9679_s27 + $0xc40] sm:$0xff]  ;;  %v1057_v28 = vld [vmem:[%s9679_s27 + $0x1c58] sm:$0xff] }
 0x338   : > { %v3495_v33 = vpop.f32.mrb[18].mxu0  ;;  %v4775_v34 = vpop.f32.mrb[18].mxu1  ;;  %v1054_v26 = vld [vmem:[%s9679_s27 + $0x1c40] sm:$0xff] }
 0x339   : > { %v9161_v35 = vpack.c.bf16 %v3495_v33, %v3495_v33  ;;  %v9417_v36 = vpack.c.bf16 %v4775_v34, %v4775_v34  ;;  %v3497_v37 = vpop.f32.mrb[19].mxu0  ;;  %3759 = vmatmul.mubr.f32.gmra.mrb[124].mxu0 %v530_v29  ;;  %v4777_v38 = vpop.f32.mrb[19].mxu1  ;;  %5039 = vmatmul.mubr.f32.gmra.mrb[124].mxu1 %v1042_v30 }
 0x33a   : > { %8188 = vmatprep.mubr.msk.f32.mxu0 %vm1203_vm0, %v533_v31  ;;  %8444 = vmatprep.mubr.msk.f32.mxu1 %vm1203_vm0, %v1045_v32  ;;  %v547_v37 = vld [vmem:[%s9679_s27 + $0xc68] sm:$0xff] }
 0x33b   : > { %7555 = vst.msk [vmem:[%s10104_s26 + $0x224] sm:$0xf] %vm7417_vm2, %v9161_v35  ;;  %7811 = vst.msk [vmem:[%s10104_s26 + $0x624] sm:$0xf] %vm7417_vm2, %v9417_v36  ;;  %v544_v35 = vld [vmem:[%s9679_s27 + $0xc50] sm:$0xff]  ;;  %v1059_v38 = vld [vmem:[%s9679_s27 + $0x1c68] sm:$0xff] }
 0x33c   : > { %v3500_v43 = vpop.f32.mrb[20].mxu0  ;;  %v4780_v44 = vpop.f32.mrb[20].mxu1  ;;  %v1056_v36 = vld [vmem:[%s9679_s27 + $0x1c50] sm:$0xff] }
 0x33d   : > { %v9162_v45 = vpack.c.bf16 %v3500_v43, %v3500_v43  ;;  %v9418_v46 = vpack.c.bf16 %v4780_v44, %v4780_v44  ;;  %v3502_v47 = vpop.f32.mrb[21].mxu0  ;;  %3764 = vmatmul.mubr.f32.gmra.mrb[126].mxu0 %v532_v39  ;;  %v4782_v48 = vpop.f32.mrb[21].mxu1  ;;  %5044 = vmatmul.mubr.f32.gmra.mrb[126].mxu1 %v1044_v40 }
 0x33e   : > { %8189 = vmatprep.mubr.msk.f32.mxu0 %vm1203_vm0, %v535_v41  ;;  %8445 = vmatprep.mubr.msk.f32.mxu1 %vm1203_vm0, %v1047_v42  ;;  %v549_v47 = vld [vmem:[%s9679_s27 + $0xc78] sm:$0xff] }
 0x33f   : > { %7556 = vst.msk [vmem:[%s10104_s26 + $0x228] sm:$0xf] %vm7417_vm2, %v9162_v45  ;;  %7812 = vst.msk [vmem:[%s10104_s26 + $0x628] sm:$0xf] %vm7417_vm2, %v9418_v46  ;;  %v546_v45 = vld [vmem:[%s9679_s27 + $0xc60] sm:$0xff]  ;;  %v1061_v48 = vld [vmem:[%s9679_s27 + $0x1c78] sm:$0xff] }
 0x340   : > { %v3505_v53 = vpop.f32.mrb[22].mxu0  ;;  %v4785_v54 = vpop.f32.mrb[22].mxu1  ;;  %v1058_v46 = vld [vmem:[%s9679_s27 + $0x1c60] sm:$0xff] }
 0x341   : > { %v9163_v55 = vpack.c.bf16 %v3505_v53, %v3505_v53  ;;  %v9419_v56 = vpack.c.bf16 %v4785_v54, %v4785_v54  ;;  %v3507_v57 = vpop.f32.mrb[23].mxu0  ;;  %3769 = vmatmul.mubr.f32.gmra.mrb[128].mxu0 %v534_v49  ;;  %v4787_v58 = vpop.f32.mrb[23].mxu1  ;;  %5049 = vmatmul.mubr.f32.gmra.mrb[128].mxu1 %v1046_v50 }
 0x342   : > { %8190 = vmatprep.mubr.msk.f32.mxu0 %vm1203_vm0, %v537_v51  ;;  %8446 = vmatprep.mubr.msk.f32.mxu1 %vm1203_vm0, %v1049_v52  ;;  %v551_v57 = vld [vmem:[%s9679_s27 + $0xc88] sm:$0xff] }
 0x343   : > { %7557 = vst.msk [vmem:[%s10104_s26 + $0x22c] sm:$0xf] %vm7417_vm2, %v9163_v55  ;;  %7813 = vst.msk [vmem:[%s10104_s26 + $0x62c] sm:$0xf] %vm7417_vm2, %v9419_v56  ;;  %v548_v55 = vld [vmem:[%s9679_s27 + $0xc70] sm:$0xff]  ;;  %v1063_v58 = vld [vmem:[%s9679_s27 + $0x1c88] sm:$0xff] }
 0x344   : > { %v3510_v63 = vpop.f32.mrb[24].mxu0  ;;  %v4790_v0 = vpop.f32.mrb[24].mxu1  ;;  %v1060_v56 = vld [vmem:[%s9679_s27 + $0x1c70] sm:$0xff] }
 0x345   : > { %v9164_v1 = vpack.c.bf16 %v3510_v63, %v3510_v63  ;;  %v9420_v2 = vpack.c.bf16 %v4790_v0, %v4790_v0  ;;  %v3512_v3 = vpop.f32.mrb[25].mxu0  ;;  %3774 = vmatmul.mubr.f32.gmra.mrb[130].mxu0 %v536_v59  ;;  %v4792_v4 = vpop.f32.mrb[25].mxu1  ;;  %5054 = vmatmul.mubr.f32.gmra.mrb[130].mxu1 %v1048_v60 }
 0x346   : > { %8191 = vmatprep.mubr.msk.f32.mxu0 %vm1203_vm0, %v539_v61  ;;  %8447 = vmatprep.mubr.msk.f32.mxu1 %vm1203_vm0, %v1051_v62  ;;  %v553_v3 = vld [vmem:[%s9679_s27 + $0xc98] sm:$0xff] }
 0x347   : > { %7558 = vst.msk [vmem:[%s10104_s26 + $0x230] sm:$0xf] %vm7417_vm2, %v9164_v1  ;;  %7814 = vst.msk [vmem:[%s10104_s26 + $0x630] sm:$0xf] %vm7417_vm2, %v9420_v2  ;;  %v550_v1 = vld [vmem:[%s9679_s27 + $0xc80] sm:$0xff]  ;;  %v1065_v4 = vld [vmem:[%s9679_s27 + $0x1c98] sm:$0xff] }
 0x348   : > { %v3515_v9 = vpop.f32.mrb[26].mxu0  ;;  %v4795_v10 = vpop.f32.mrb[26].mxu1  ;;  %v1062_v2 = vld [vmem:[%s9679_s27 + $0x1c80] sm:$0xff] }
 0x349   : > { %v9165_v11 = vpack.c.bf16 %v3515_v9, %v3515_v9  ;;  %v9421_v12 = vpack.c.bf16 %v4795_v10, %v4795_v10  ;;  %v3517_v13 = vpop.f32.mrb[27].mxu0  ;;  %3779 = vmatmul.mubr.f32.gmra.mrb[132].mxu0 %v538_v5  ;;  %v4797_v14 = vpop.f32.mrb[27].mxu1  ;;  %5059 = vmatmul.mubr.f32.gmra.mrb[132].mxu1 %v1050_v6 }
 0x34a   : > { %8192 = vmatprep.mubr.msk.f32.mxu0 %vm1203_vm0, %v541_v7  ;;  %8448 = vmatprep.mubr.msk.f32.mxu1 %vm1203_vm0, %v1053_v8  ;;  %v555_v13 = vld [vmem:[%s9679_s27 + $0xca8] sm:$0xff] }
 0x34b   : > { %7559 = vst.msk [vmem:[%s10104_s26 + $0x234] sm:$0xf] %vm7417_vm2, %v9165_v11  ;;  %7815 = vst.msk [vmem:[%s10104_s26 + $0x634] sm:$0xf] %vm7417_vm2, %v9421_v12  ;;  %v552_v11 = vld [vmem:[%s9679_s27 + $0xc90] sm:$0xff]  ;;  %v1067_v14 = vld [vmem:[%s9679_s27 + $0x1ca8] sm:$0xff] }
 0x34c   : > { %v3520_v19 = vpop.f32.mrb[28].mxu0  ;;  %v4800_v20 = vpop.f32.mrb[28].mxu1  ;;  %v1064_v12 = vld [vmem:[%s9679_s27 + $0x1c90] sm:$0xff] }
 0x34d   : > { %v9166_v21 = vpack.c.bf16 %v3520_v19, %v3520_v19  ;;  %v9422_v22 = vpack.c.bf16 %v4800_v20, %v4800_v20  ;;  %v3522_v23 = vpop.f32.mrb[29].mxu0  ;;  %3784 = vmatmul.mubr.f32.gmra.mrb[134].mxu0 %v540_v15  ;;  %v4802_v24 = vpop.f32.mrb[29].mxu1  ;;  %5064 = vmatmul.mubr.f32.gmra.mrb[134].mxu1 %v1052_v16 }
 0x34e   : > { %8193 = vmatprep.mubr.msk.f32.mxu0 %vm1203_vm0, %v543_v17  ;;  %8449 = vmatprep.mubr.msk.f32.mxu1 %vm1203_vm0, %v1055_v18  ;;  %v557_v23 = vld [vmem:[%s9679_s27 + $0xcb8] sm:$0xff] }
 0x34f   : > { %7560 = vst.msk [vmem:[%s10104_s26 + $0x238] sm:$0xf] %vm7417_vm2, %v9166_v21  ;;  %7816 = vst.msk [vmem:[%s10104_s26 + $0x638] sm:$0xf] %vm7417_vm2, %v9422_v22  ;;  %v554_v21 = vld [vmem:[%s9679_s27 + $0xca0] sm:$0xff]  ;;  %v1069_v24 = vld [vmem:[%s9679_s27 + $0x1cb8] sm:$0xff] }
 0x350   : > { %v3525_v29 = vpop.f32.mrb[30].mxu0  ;;  %v4805_v30 = vpop.f32.mrb[30].mxu1  ;;  %v1066_v22 = vld [vmem:[%s9679_s27 + $0x1ca0] sm:$0xff] }
 0x351   : > { %v9167_v31 = vpack.c.bf16 %v3525_v29, %v3525_v29  ;;  %v9423_v32 = vpack.c.bf16 %v4805_v30, %v4805_v30  ;;  %v3527_v33 = vpop.f32.mrb[31].mxu0  ;;  %3789 = vmatmul.mubr.f32.gmra.mrb[136].mxu0 %v542_v25  ;;  %v4807_v34 = vpop.f32.mrb[31].mxu1  ;;  %5069 = vmatmul.mubr.f32.gmra.mrb[136].mxu1 %v1054_v26 }
 0x352   : > { %8194 = vmatprep.mubr.msk.f32.mxu0 %vm1203_vm0, %v545_v27  ;;  %8450 = vmatprep.mubr.msk.f32.mxu1 %vm1203_vm0, %v1057_v28  ;;  %v559_v33 = vld [vmem:[%s9679_s27 + $0xcc8] sm:$0xff] }
 0x353   : > { %7561 = vst.msk [vmem:[%s10104_s26 + $0x23c] sm:$0xf] %vm7417_vm2, %v9167_v31  ;;  %7817 = vst.msk [vmem:[%s10104_s26 + $0x63c] sm:$0xf] %vm7417_vm2, %v9423_v32  ;;  %v556_v31 = vld [vmem:[%s9679_s27 + $0xcb0] sm:$0xff]  ;;  %v1071_v34 = vld [vmem:[%s9679_s27 + $0x1cc8] sm:$0xff] }
 0x354   : > { %v3530_v39 = vpop.f32.mrb[32].mxu0  ;;  %v4810_v40 = vpop.f32.mrb[32].mxu1  ;;  %v1068_v32 = vld [vmem:[%s9679_s27 + $0x1cb0] sm:$0xff] }
 0x355   : > { %v9168_v41 = vpack.c.bf16 %v3530_v39, %v3530_v39  ;;  %v9424_v42 = vpack.c.bf16 %v4810_v40, %v4810_v40  ;;  %v3532_v43 = vpop.f32.mrb[33].mxu0  ;;  %3794 = vmatmul.mubr.f32.gmra.mrb[138].mxu0 %v544_v35  ;;  %v4812_v44 = vpop.f32.mrb[33].mxu1  ;;  %5074 = vmatmul.mubr.f32.gmra.mrb[138].mxu1 %v1056_v36 }
 0x356   : > { %8195 = vmatprep.mubr.msk.f32.mxu0 %vm1203_vm0, %v547_v37  ;;  %8451 = vmatprep.mubr.msk.f32.mxu1 %vm1203_vm0, %v1059_v38  ;;  %v561_v43 = vld [vmem:[%s9679_s27 + $0xcd8] sm:$0xff] }
 0x357   : > { %7562 = vst.msk [vmem:[%s10104_s26 + $0x240] sm:$0xf] %vm7417_vm2, %v9168_v41  ;;  %7818 = vst.msk [vmem:[%s10104_s26 + $0x640] sm:$0xf] %vm7417_vm2, %v9424_v42  ;;  %v558_v41 = vld [vmem:[%s9679_s27 + $0xcc0] sm:$0xff]  ;;  %v1073_v44 = vld [vmem:[%s9679_s27 + $0x1cd8] sm:$0xff] }
 0x358   : > { %v3535_v49 = vpop.f32.mrb[34].mxu0  ;;  %v4815_v50 = vpop.f32.mrb[34].mxu1  ;;  %v1070_v42 = vld [vmem:[%s9679_s27 + $0x1cc0] sm:$0xff] }
 0x359   : > { %v9169_v51 = vpack.c.bf16 %v3535_v49, %v3535_v49  ;;  %v9425_v52 = vpack.c.bf16 %v4815_v50, %v4815_v50  ;;  %v3537_v53 = vpop.f32.mrb[35].mxu0  ;;  %3799 = vmatmul.mubr.f32.gmra.mrb[140].mxu0 %v546_v45  ;;  %v4817_v54 = vpop.f32.mrb[35].mxu1  ;;  %5079 = vmatmul.mubr.f32.gmra.mrb[140].mxu1 %v1058_v46 }
 0x35a   : > { %8196 = vmatprep.mubr.msk.f32.mxu0 %vm1203_vm0, %v549_v47  ;;  %8452 = vmatprep.mubr.msk.f32.mxu1 %vm1203_vm0, %v1061_v48  ;;  %v563_v53 = vld [vmem:[%s9679_s27 + $0xce8] sm:$0xff] }
 0x35b   : > { %7563 = vst.msk [vmem:[%s10104_s26 + $0x244] sm:$0xf] %vm7417_vm2, %v9169_v51  ;;  %7819 = vst.msk [vmem:[%s10104_s26 + $0x644] sm:$0xf] %vm7417_vm2, %v9425_v52  ;;  %v560_v51 = vld [vmem:[%s9679_s27 + $0xcd0] sm:$0xff]  ;;  %v1075_v54 = vld [vmem:[%s9679_s27 + $0x1ce8] sm:$0xff] }
 0x35c   : > { %v3540_v59 = vpop.f32.mrb[36].mxu0  ;;  %v4820_v60 = vpop.f32.mrb[36].mxu1  ;;  %v1072_v52 = vld [vmem:[%s9679_s27 + $0x1cd0] sm:$0xff] }
 0x35d   : > { %v9170_v61 = vpack.c.bf16 %v3540_v59, %v3540_v59  ;;  %v9426_v62 = vpack.c.bf16 %v4820_v60, %v4820_v60  ;;  %v3542_v63 = vpop.f32.mrb[37].mxu0  ;;  %3804 = vmatmul.mubr.f32.gmra.mrb[142].mxu0 %v548_v55  ;;  %v4822_v0 = vpop.f32.mrb[37].mxu1  ;;  %5084 = vmatmul.mubr.f32.gmra.mrb[142].mxu1 %v1060_v56 }
 0x35e   : > { %8197 = vmatprep.mubr.msk.f32.mxu0 %vm1203_vm0, %v551_v57  ;;  %8453 = vmatprep.mubr.msk.f32.mxu1 %vm1203_vm0, %v1063_v58  ;;  %v565_v63 = vld [vmem:[%s9679_s27 + $0xcf8] sm:$0xff] }
 0x35f   : > { %7564 = vst.msk [vmem:[%s10104_s26 + $0x248] sm:$0xf] %vm7417_vm2, %v9170_v61  ;;  %7820 = vst.msk [vmem:[%s10104_s26 + $0x648] sm:$0xf] %vm7417_vm2, %v9426_v62  ;;  %v562_v61 = vld [vmem:[%s9679_s27 + $0xce0] sm:$0xff]  ;;  %v1077_v0 = vld [vmem:[%s9679_s27 + $0x1cf8] sm:$0xff] }
 0x360   : > { %v3545_v5 = vpop.f32.mrb[38].mxu0  ;;  %v4825_v6 = vpop.f32.mrb[38].mxu1  ;;  %v1074_v62 = vld [vmem:[%s9679_s27 + $0x1ce0] sm:$0xff] }
 0x361   : > { %v9171_v7 = vpack.c.bf16 %v3545_v5, %v3545_v5  ;;  %v9427_v8 = vpack.c.bf16 %v4825_v6, %v4825_v6  ;;  %v3547_v9 = vpop.f32.mrb[39].mxu0  ;;  %3809 = vmatmul.mubr.f32.gmra.mrb[144].mxu0 %v550_v1  ;;  %v4827_v10 = vpop.f32.mrb[39].mxu1  ;;  %5089 = vmatmul.mubr.f32.gmra.mrb[144].mxu1 %v1062_v2 }
 0x362   : > { %8198 = vmatprep.mubr.msk.f32.mxu0 %vm1203_vm0, %v553_v3  ;;  %8454 = vmatprep.mubr.msk.f32.mxu1 %vm1203_vm0, %v1065_v4  ;;  %v567_v9 = vld [vmem:[%s9679_s27 + $0xd08] sm:$0xff] }
 0x363   : > { %7565 = vst.msk [vmem:[%s10104_s26 + $0x24c] sm:$0xf] %vm7417_vm2, %v9171_v7  ;;  %7821 = vst.msk [vmem:[%s10104_s26 + $0x64c] sm:$0xf] %vm7417_vm2, %v9427_v8  ;;  %v564_v7 = vld [vmem:[%s9679_s27 + $0xcf0] sm:$0xff]  ;;  %v1079_v10 = vld [vmem:[%s9679_s27 + $0x1d08] sm:$0xff] }
 0x364   : > { %v3550_v15 = vpop.f32.mrb[40].mxu0  ;;  %v4830_v16 = vpop.f32.mrb[40].mxu1  ;;  %v1076_v8 = vld [vmem:[%s9679_s27 + $0x1cf0] sm:$0xff] }
 0x365   : > { %v9172_v17 = vpack.c.bf16 %v3550_v15, %v3550_v15  ;;  %v9428_v18 = vpack.c.bf16 %v4830_v16, %v4830_v16  ;;  %v3552_v19 = vpop.f32.mrb[41].mxu0  ;;  %3814 = vmatmul.mubr.f32.gmra.mrb[146].mxu0 %v552_v11  ;;  %v4832_v20 = vpop.f32.mrb[41].mxu1  ;;  %5094 = vmatmul.mubr.f32.gmra.mrb[146].mxu1 %v1064_v12 }
 0x366   : > { %8199 = vmatprep.mubr.msk.f32.mxu0 %vm1203_vm0, %v555_v13  ;;  %8455 = vmatprep.mubr.msk.f32.mxu1 %vm1203_vm0, %v1067_v14  ;;  %v569_v19 = vld [vmem:[%s9679_s27 + $0xd18] sm:$0xff] }
 0x367   : > { %7566 = vst.msk [vmem:[%s10104_s26 + $0x250] sm:$0xf] %vm7417_vm2, %v9172_v17  ;;  %7822 = vst.msk [vmem:[%s10104_s26 + $0x650] sm:$0xf] %vm7417_vm2, %v9428_v18  ;;  %v566_v17 = vld [vmem:[%s9679_s27 + $0xd00] sm:$0xff]  ;;  %v1081_v20 = vld [vmem:[%s9679_s27 + $0x1d18] sm:$0xff] }
 0x368   : > { %v3555_v25 = vpop.f32.mrb[42].mxu0  ;;  %v4835_v26 = vpop.f32.mrb[42].mxu1  ;;  %v1078_v18 = vld [vmem:[%s9679_s27 + $0x1d00] sm:$0xff] }
 0x369   : > { %v9173_v27 = vpack.c.bf16 %v3555_v25, %v3555_v25  ;;  %v9429_v28 = vpack.c.bf16 %v4835_v26, %v4835_v26  ;;  %v3557_v29 = vpop.f32.mrb[43].mxu0  ;;  %3819 = vmatmul.mubr.f32.gmra.mrb[148].mxu0 %v554_v21  ;;  %v4837_v30 = vpop.f32.mrb[43].mxu1  ;;  %5099 = vmatmul.mubr.f32.gmra.mrb[148].mxu1 %v1066_v22 }
 0x36a   : > { %8200 = vmatprep.mubr.msk.f32.mxu0 %vm1203_vm0, %v557_v23  ;;  %8456 = vmatprep.mubr.msk.f32.mxu1 %vm1203_vm0, %v1069_v24  ;;  %v571_v29 = vld [vmem:[%s9679_s27 + $0xd28] sm:$0xff] }
 0x36b   : > { %7567 = vst.msk [vmem:[%s10104_s26 + $0x254] sm:$0xf] %vm7417_vm2, %v9173_v27  ;;  %7823 = vst.msk [vmem:[%s10104_s26 + $0x654] sm:$0xf] %vm7417_vm2, %v9429_v28  ;;  %v568_v27 = vld [vmem:[%s9679_s27 + $0xd10] sm:$0xff]  ;;  %v1083_v30 = vld [vmem:[%s9679_s27 + $0x1d28] sm:$0xff] }
 0x36c   : > { %v3560_v35 = vpop.f32.mrb[44].mxu0  ;;  %v4840_v36 = vpop.f32.mrb[44].mxu1  ;;  %v1080_v28 = vld [vmem:[%s9679_s27 + $0x1d10] sm:$0xff] }
 0x36d   : > { %v9174_v37 = vpack.c.bf16 %v3560_v35, %v3560_v35  ;;  %v9430_v38 = vpack.c.bf16 %v4840_v36, %v4840_v36  ;;  %v3562_v39 = vpop.f32.mrb[45].mxu0  ;;  %3824 = vmatmul.mubr.f32.gmra.mrb[150].mxu0 %v556_v31  ;;  %v4842_v40 = vpop.f32.mrb[45].mxu1  ;;  %5104 = vmatmul.mubr.f32.gmra.mrb[150].mxu1 %v1068_v32 }
 0x36e   : > { %8201 = vmatprep.mubr.msk.f32.mxu0 %vm1203_vm0, %v559_v33  ;;  %8457 = vmatprep.mubr.msk.f32.mxu1 %vm1203_vm0, %v1071_v34  ;;  %v573_v39 = vld [vmem:[%s9679_s27 + $0xd38] sm:$0xff] }
 0x36f   : > { %7568 = vst.msk [vmem:[%s10104_s26 + $0x258] sm:$0xf] %vm7417_vm2, %v9174_v37  ;;  %7824 = vst.msk [vmem:[%s10104_s26 + $0x658] sm:$0xf] %vm7417_vm2, %v9430_v38  ;;  %v570_v37 = vld [vmem:[%s9679_s27 + $0xd20] sm:$0xff]  ;;  %v1085_v40 = vld [vmem:[%s9679_s27 + $0x1d38] sm:$0xff] }
 0x370   : > { %v3565_v45 = vpop.f32.mrb[46].mxu0  ;;  %v4845_v46 = vpop.f32.mrb[46].mxu1  ;;  %v1082_v38 = vld [vmem:[%s9679_s27 + $0x1d20] sm:$0xff] }
 0x371   : > { %v9175_v47 = vpack.c.bf16 %v3565_v45, %v3565_v45  ;;  %v9431_v48 = vpack.c.bf16 %v4845_v46, %v4845_v46  ;;  %v3567_v49 = vpop.f32.mrb[47].mxu0  ;;  %3829 = vmatmul.mubr.f32.gmra.mrb[152].mxu0 %v558_v41  ;;  %v4847_v50 = vpop.f32.mrb[47].mxu1  ;;  %5109 = vmatmul.mubr.f32.gmra.mrb[152].mxu1 %v1070_v42 }
 0x372   : > { %8202 = vmatprep.mubr.msk.f32.mxu0 %vm1203_vm0, %v561_v43  ;;  %8458 = vmatprep.mubr.msk.f32.mxu1 %vm1203_vm0, %v1073_v44  ;;  %v575_v49 = vld [vmem:[%s9679_s27 + $0xd48] sm:$0xff] }
 0x373   : > { %7569 = vst.msk [vmem:[%s10104_s26 + $0x25c] sm:$0xf] %vm7417_vm2, %v9175_v47  ;;  %7825 = vst.msk [vmem:[%s10104_s26 + $0x65c] sm:$0xf] %vm7417_vm2, %v9431_v48  ;;  %v572_v47 = vld [vmem:[%s9679_s27 + $0xd30] sm:$0xff]  ;;  %v1087_v50 = vld [vmem:[%s9679_s27 + $0x1d48] sm:$0xff] }
 0x374   : > { %v3570_v55 = vpop.f32.mrb[48].mxu0  ;;  %v4850_v56 = vpop.f32.mrb[48].mxu1  ;;  %v1084_v48 = vld [vmem:[%s9679_s27 + $0x1d30] sm:$0xff] }
 0x375   : > { %v9176_v57 = vpack.c.bf16 %v3570_v55, %v3570_v55  ;;  %v9432_v58 = vpack.c.bf16 %v4850_v56, %v4850_v56  ;;  %v3572_v59 = vpop.f32.mrb[49].mxu0  ;;  %3834 = vmatmul.mubr.f32.gmra.mrb[154].mxu0 %v560_v51  ;;  %v4852_v60 = vpop.f32.mrb[49].mxu1  ;;  %5114 = vmatmul.mubr.f32.gmra.mrb[154].mxu1 %v1072_v52 }
 0x376   : > { %8203 = vmatprep.mubr.msk.f32.mxu0 %vm1203_vm0, %v563_v53  ;;  %8459 = vmatprep.mubr.msk.f32.mxu1 %vm1203_vm0, %v1075_v54  ;;  %v577_v59 = vld [vmem:[%s9679_s27 + $0xd58] sm:$0xff] }
 0x377   : > { %7570 = vst.msk [vmem:[%s10104_s26 + $0x260] sm:$0xf] %vm7417_vm2, %v9176_v57  ;;  %7826 = vst.msk [vmem:[%s10104_s26 + $0x660] sm:$0xf] %vm7417_vm2, %v9432_v58  ;;  %v574_v57 = vld [vmem:[%s9679_s27 + $0xd40] sm:$0xff]  ;;  %v1089_v60 = vld [vmem:[%s9679_s27 + $0x1d58] sm:$0xff] }
 0x378   : > { %v3575_v1 = vpop.f32.mrb[50].mxu0  ;;  %v4855_v2 = vpop.f32.mrb[50].mxu1  ;;  %v1086_v58 = vld [vmem:[%s9679_s27 + $0x1d40] sm:$0xff] }
 0x379   : > { %v9177_v3 = vpack.c.bf16 %v3575_v1, %v3575_v1  ;;  %v9433_v4 = vpack.c.bf16 %v4855_v2, %v4855_v2  ;;  %v3577_v5 = vpop.f32.mrb[51].mxu0  ;;  %3839 = vmatmul.mubr.f32.gmra.mrb[156].mxu0 %v562_v61  ;;  %v4857_v6 = vpop.f32.mrb[51].mxu1  ;;  %5119 = vmatmul.mubr.f32.gmra.mrb[156].mxu1 %v1074_v62 }
 0x37a   : > { %8204 = vmatprep.mubr.msk.f32.mxu0 %vm1203_vm0, %v565_v63  ;;  %8460 = vmatprep.mubr.msk.f32.mxu1 %vm1203_vm0, %v1077_v0  ;;  %v579_v5 = vld [vmem:[%s9679_s27 + $0xd68] sm:$0xff] }
 0x37b   : > { %7571 = vst.msk [vmem:[%s10104_s26 + $0x264] sm:$0xf] %vm7417_vm2, %v9177_v3  ;;  %7827 = vst.msk [vmem:[%s10104_s26 + $0x664] sm:$0xf] %vm7417_vm2, %v9433_v4  ;;  %v576_v3 = vld [vmem:[%s9679_s27 + $0xd50] sm:$0xff]  ;;  %v1091_v6 = vld [vmem:[%s9679_s27 + $0x1d68] sm:$0xff] }
 0x37c   : > { %v3580_v11 = vpop.f32.mrb[52].mxu0  ;;  %v4860_v12 = vpop.f32.mrb[52].mxu1  ;;  %v1088_v4 = vld [vmem:[%s9679_s27 + $0x1d50] sm:$0xff] }
 0x37d   : > { %v9178_v13 = vpack.c.bf16 %v3580_v11, %v3580_v11  ;;  %v9434_v14 = vpack.c.bf16 %v4860_v12, %v4860_v12  ;;  %v3582_v15 = vpop.f32.mrb[53].mxu0  ;;  %3844 = vmatmul.mubr.f32.gmra.mrb[158].mxu0 %v564_v7  ;;  %v4862_v16 = vpop.f32.mrb[53].mxu1  ;;  %5124 = vmatmul.mubr.f32.gmra.mrb[158].mxu1 %v1076_v8 }
 0x37e   : > { %8205 = vmatprep.mubr.msk.f32.mxu0 %vm1203_vm0, %v567_v9  ;;  %8461 = vmatprep.mubr.msk.f32.mxu1 %vm1203_vm0, %v1079_v10  ;;  %v581_v15 = vld [vmem:[%s9679_s27 + $0xd78] sm:$0xff] }
 0x37f   : > { %7572 = vst.msk [vmem:[%s10104_s26 + $0x268] sm:$0xf] %vm7417_vm2, %v9178_v13  ;;  %7828 = vst.msk [vmem:[%s10104_s26 + $0x668] sm:$0xf] %vm7417_vm2, %v9434_v14  ;;  %v578_v13 = vld [vmem:[%s9679_s27 + $0xd60] sm:$0xff]  ;;  %v1093_v16 = vld [vmem:[%s9679_s27 + $0x1d78] sm:$0xff] }
 0x380   : > { %v3585_v21 = vpop.f32.mrb[54].mxu0  ;;  %v4865_v22 = vpop.f32.mrb[54].mxu1  ;;  %v1090_v14 = vld [vmem:[%s9679_s27 + $0x1d60] sm:$0xff] }
 0x381   : > { %v9179_v23 = vpack.c.bf16 %v3585_v21, %v3585_v21  ;;  %v9435_v24 = vpack.c.bf16 %v4865_v22, %v4865_v22  ;;  %v3587_v25 = vpop.f32.mrb[55].mxu0  ;;  %3849 = vmatmul.mubr.f32.gmra.mrb[160].mxu0 %v566_v17  ;;  %v4867_v26 = vpop.f32.mrb[55].mxu1  ;;  %5129 = vmatmul.mubr.f32.gmra.mrb[160].mxu1 %v1078_v18 }
 0x382   : > { %8206 = vmatprep.mubr.msk.f32.mxu0 %vm1203_vm0, %v569_v19  ;;  %8462 = vmatprep.mubr.msk.f32.mxu1 %vm1203_vm0, %v1081_v20  ;;  %v583_v25 = vld [vmem:[%s9679_s27 + $0xd88] sm:$0xff] }
 0x383   : > { %7573 = vst.msk [vmem:[%s10104_s26 + $0x26c] sm:$0xf] %vm7417_vm2, %v9179_v23  ;;  %7829 = vst.msk [vmem:[%s10104_s26 + $0x66c] sm:$0xf] %vm7417_vm2, %v9435_v24  ;;  %v580_v23 = vld [vmem:[%s9679_s27 + $0xd70] sm:$0xff]  ;;  %v1095_v26 = vld [vmem:[%s9679_s27 + $0x1d88] sm:$0xff] }
 0x384   : > { %v3590_v31 = vpop.f32.mrb[56].mxu0  ;;  %v4870_v32 = vpop.f32.mrb[56].mxu1  ;;  %v1092_v24 = vld [vmem:[%s9679_s27 + $0x1d70] sm:$0xff] }
 0x385   : > { %v9180_v33 = vpack.c.bf16 %v3590_v31, %v3590_v31  ;;  %v9436_v34 = vpack.c.bf16 %v4870_v32, %v4870_v32  ;;  %v3592_v35 = vpop.f32.mrb[57].mxu0  ;;  %3854 = vmatmul.mubr.f32.gmra.mrb[162].mxu0 %v568_v27  ;;  %v4872_v36 = vpop.f32.mrb[57].mxu1  ;;  %5134 = vmatmul.mubr.f32.gmra.mrb[162].mxu1 %v1080_v28 }
 0x386   : > { %8207 = vmatprep.mubr.msk.f32.mxu0 %vm1203_vm0, %v571_v29  ;;  %8463 = vmatprep.mubr.msk.f32.mxu1 %vm1203_vm0, %v1083_v30  ;;  %v585_v35 = vld [vmem:[%s9679_s27 + $0xd98] sm:$0xff] }
 0x387   : > { %7574 = vst.msk [vmem:[%s10104_s26 + $0x270] sm:$0xf] %vm7417_vm2, %v9180_v33  ;;  %7830 = vst.msk [vmem:[%s10104_s26 + $0x670] sm:$0xf] %vm7417_vm2, %v9436_v34  ;;  %v582_v33 = vld [vmem:[%s9679_s27 + $0xd80] sm:$0xff]  ;;  %v1097_v36 = vld [vmem:[%s9679_s27 + $0x1d98] sm:$0xff] }
 0x388   : > { %v3595_v41 = vpop.f32.mrb[58].mxu0  ;;  %v4875_v42 = vpop.f32.mrb[58].mxu1  ;;  %v1094_v34 = vld [vmem:[%s9679_s27 + $0x1d80] sm:$0xff] }
 0x389   : > { %v9181_v43 = vpack.c.bf16 %v3595_v41, %v3595_v41  ;;  %v9437_v44 = vpack.c.bf16 %v4875_v42, %v4875_v42  ;;  %v3597_v45 = vpop.f32.mrb[59].mxu0  ;;  %3859 = vmatmul.mubr.f32.gmra.mrb[164].mxu0 %v570_v37  ;;  %v4877_v46 = vpop.f32.mrb[59].mxu1  ;;  %5139 = vmatmul.mubr.f32.gmra.mrb[164].mxu1 %v1082_v38 }
 0x38a   : > { %8208 = vmatprep.mubr.msk.f32.mxu0 %vm1203_vm0, %v573_v39  ;;  %8464 = vmatprep.mubr.msk.f32.mxu1 %vm1203_vm0, %v1085_v40  ;;  %v587_v45 = vld [vmem:[%s9679_s27 + $0xda8] sm:$0xff] }
 0x38b   : > { %7575 = vst.msk [vmem:[%s10104_s26 + $0x274] sm:$0xf] %vm7417_vm2, %v9181_v43  ;;  %7831 = vst.msk [vmem:[%s10104_s26 + $0x674] sm:$0xf] %vm7417_vm2, %v9437_v44  ;;  %v584_v43 = vld [vmem:[%s9679_s27 + $0xd90] sm:$0xff]  ;;  %v1099_v46 = vld [vmem:[%s9679_s27 + $0x1da8] sm:$0xff] }
 0x38c   : > { %v3600_v51 = vpop.f32.mrb[60].mxu0  ;;  %v4880_v52 = vpop.f32.mrb[60].mxu1  ;;  %v1096_v44 = vld [vmem:[%s9679_s27 + $0x1d90] sm:$0xff] }
 0x38d   : > { %v9182_v53 = vpack.c.bf16 %v3600_v51, %v3600_v51  ;;  %v9438_v54 = vpack.c.bf16 %v4880_v52, %v4880_v52  ;;  %v3602_v55 = vpop.f32.mrb[61].mxu0  ;;  %3864 = vmatmul.mubr.f32.gmra.mrb[166].mxu0 %v572_v47  ;;  %v4882_v56 = vpop.f32.mrb[61].mxu1  ;;  %5144 = vmatmul.mubr.f32.gmra.mrb[166].mxu1 %v1084_v48 }
 0x38e   : > { %8209 = vmatprep.mubr.msk.f32.mxu0 %vm1203_vm0, %v575_v49  ;;  %8465 = vmatprep.mubr.msk.f32.mxu1 %vm1203_vm0, %v1087_v50  ;;  %v589_v55 = vld [vmem:[%s9679_s27 + $0xdb8] sm:$0xff] }
 0x38f   : > { %7576 = vst.msk [vmem:[%s10104_s26 + $0x278] sm:$0xf] %vm7417_vm2, %v9182_v53  ;;  %7832 = vst.msk [vmem:[%s10104_s26 + $0x678] sm:$0xf] %vm7417_vm2, %v9438_v54  ;;  %v586_v53 = vld [vmem:[%s9679_s27 + $0xda0] sm:$0xff]  ;;  %v1101_v56 = vld [vmem:[%s9679_s27 + $0x1db8] sm:$0xff] }
 0x390   : > { %v3605_v61 = vpop.f32.mrb[62].mxu0  ;;  %v4885_v62 = vpop.f32.mrb[62].mxu1  ;;  %v1098_v54 = vld [vmem:[%s9679_s27 + $0x1da0] sm:$0xff] }
 0x391   : > { %v9183_v63 = vpack.c.bf16 %v3605_v61, %v3605_v61  ;;  %v9439_v0 = vpack.c.bf16 %v4885_v62, %v4885_v62  ;;  %v3607_v1 = vpop.f32.mrb[63].mxu0  ;;  %3869 = vmatmul.mubr.f32.gmra.mrb[168].mxu0 %v574_v57  ;;  %v4887_v2 = vpop.f32.mrb[63].mxu1  ;;  %5149 = vmatmul.mubr.f32.gmra.mrb[168].mxu1 %v1086_v58 }
 0x392   : > { %8210 = vmatprep.mubr.msk.f32.mxu0 %vm1203_vm0, %v577_v59  ;;  %8466 = vmatprep.mubr.msk.f32.mxu1 %vm1203_vm0, %v1089_v60  ;;  %v591_v1 = vld [vmem:[%s9679_s27 + $0xdc8] sm:$0xff] }
 0x393   : > { %7577 = vst.msk [vmem:[%s10104_s26 + $0x27c] sm:$0xf] %vm7417_vm2, %v9183_v63  ;;  %7833 = vst.msk [vmem:[%s10104_s26 + $0x67c] sm:$0xf] %vm7417_vm2, %v9439_v0  ;;  %v588_v63 = vld [vmem:[%s9679_s27 + $0xdb0] sm:$0xff]  ;;  %v1103_v2 = vld [vmem:[%s9679_s27 + $0x1dc8] sm:$0xff] }
 0x394   : > { %v3610_v7 = vpop.f32.mrb[64].mxu0  ;;  %v4890_v8 = vpop.f32.mrb[64].mxu1  ;;  %v1100_v0 = vld [vmem:[%s9679_s27 + $0x1db0] sm:$0xff] }
 0x395   : > { %v9184_v9 = vpack.c.bf16 %v3610_v7, %v3610_v7  ;;  %v9440_v10 = vpack.c.bf16 %v4890_v8, %v4890_v8  ;;  %v3612_v11 = vpop.f32.mrb[65].mxu0  ;;  %3874 = vmatmul.mubr.f32.gmra.mrb[170].mxu0 %v576_v3  ;;  %v4892_v12 = vpop.f32.mrb[65].mxu1  ;;  %5154 = vmatmul.mubr.f32.gmra.mrb[170].mxu1 %v1088_v4 }
 0x396   : > { %8211 = vmatprep.mubr.msk.f32.mxu0 %vm1203_vm0, %v579_v5  ;;  %8467 = vmatprep.mubr.msk.f32.mxu1 %vm1203_vm0, %v1091_v6  ;;  %v593_v11 = vld [vmem:[%s9679_s27 + $0xdd8] sm:$0xff] }
 0x397   : > { %7578 = vst.msk [vmem:[%s10104_s26 + $0x280] sm:$0xf] %vm7417_vm2, %v9184_v9  ;;  %7834 = vst.msk [vmem:[%s10104_s26 + $0x680] sm:$0xf] %vm7417_vm2, %v9440_v10  ;;  %v590_v9 = vld [vmem:[%s9679_s27 + $0xdc0] sm:$0xff]  ;;  %v1105_v12 = vld [vmem:[%s9679_s27 + $0x1dd8] sm:$0xff] }
 0x398   : > { %v3615_v17 = vpop.f32.mrb[66].mxu0  ;;  %v4895_v18 = vpop.f32.mrb[66].mxu1  ;;  %v1102_v10 = vld [vmem:[%s9679_s27 + $0x1dc0] sm:$0xff] }
 0x399   : > { %v9185_v19 = vpack.c.bf16 %v3615_v17, %v3615_v17  ;;  %v9441_v20 = vpack.c.bf16 %v4895_v18, %v4895_v18  ;;  %v3617_v21 = vpop.f32.mrb[67].mxu0  ;;  %3879 = vmatmul.mubr.f32.gmra.mrb[172].mxu0 %v578_v13  ;;  %v4897_v22 = vpop.f32.mrb[67].mxu1  ;;  %5159 = vmatmul.mubr.f32.gmra.mrb[172].mxu1 %v1090_v14 }
 0x39a   : > { %8212 = vmatprep.mubr.msk.f32.mxu0 %vm1203_vm0, %v581_v15  ;;  %8468 = vmatprep.mubr.msk.f32.mxu1 %vm1203_vm0, %v1093_v16  ;;  %v595_v21 = vld [vmem:[%s9679_s27 + $0xde8] sm:$0xff] }
 0x39b   : > { %7579 = vst.msk [vmem:[%s10104_s26 + $0x284] sm:$0xf] %vm7417_vm2, %v9185_v19  ;;  %7835 = vst.msk [vmem:[%s10104_s26 + $0x684] sm:$0xf] %vm7417_vm2, %v9441_v20  ;;  %v592_v19 = vld [vmem:[%s9679_s27 + $0xdd0] sm:$0xff]  ;;  %v1107_v22 = vld [vmem:[%s9679_s27 + $0x1de8] sm:$0xff] }
 0x39c   : > { %v3620_v27 = vpop.f32.mrb[68].mxu0  ;;  %v4900_v28 = vpop.f32.mrb[68].mxu1  ;;  %v1104_v20 = vld [vmem:[%s9679_s27 + $0x1dd0] sm:$0xff] }
 0x39d   : > { %v9186_v29 = vpack.c.bf16 %v3620_v27, %v3620_v27  ;;  %v9442_v30 = vpack.c.bf16 %v4900_v28, %v4900_v28  ;;  %v3622_v31 = vpop.f32.mrb[69].mxu0  ;;  %3884 = vmatmul.mubr.f32.gmra.mrb[174].mxu0 %v580_v23  ;;  %v4902_v32 = vpop.f32.mrb[69].mxu1  ;;  %5164 = vmatmul.mubr.f32.gmra.mrb[174].mxu1 %v1092_v24 }
 0x39e   : > { %8213 = vmatprep.mubr.msk.f32.mxu0 %vm1203_vm0, %v583_v25  ;;  %8469 = vmatprep.mubr.msk.f32.mxu1 %vm1203_vm0, %v1095_v26  ;;  %v597_v31 = vld [vmem:[%s9679_s27 + $0xdf8] sm:$0xff] }
 0x39f   : > { %7580 = vst.msk [vmem:[%s10104_s26 + $0x288] sm:$0xf] %vm7417_vm2, %v9186_v29  ;;  %7836 = vst.msk [vmem:[%s10104_s26 + $0x688] sm:$0xf] %vm7417_vm2, %v9442_v30  ;;  %v594_v29 = vld [vmem:[%s9679_s27 + $0xde0] sm:$0xff]  ;;  %v1109_v32 = vld [vmem:[%s9679_s27 + $0x1df8] sm:$0xff] }
 0x3a0   : > { %v3625_v37 = vpop.f32.mrb[70].mxu0  ;;  %v4905_v38 = vpop.f32.mrb[70].mxu1  ;;  %v1106_v30 = vld [vmem:[%s9679_s27 + $0x1de0] sm:$0xff] }
 0x3a1   : > { %v9187_v39 = vpack.c.bf16 %v3625_v37, %v3625_v37  ;;  %v9443_v40 = vpack.c.bf16 %v4905_v38, %v4905_v38  ;;  %v3627_v41 = vpop.f32.mrb[71].mxu0  ;;  %3889 = vmatmul.mubr.f32.gmra.mrb[176].mxu0 %v582_v33  ;;  %v4907_v42 = vpop.f32.mrb[71].mxu1  ;;  %5169 = vmatmul.mubr.f32.gmra.mrb[176].mxu1 %v1094_v34 }
 0x3a2   : > { %8214 = vmatprep.mubr.msk.f32.mxu0 %vm1203_vm0, %v585_v35  ;;  %8470 = vmatprep.mubr.msk.f32.mxu1 %vm1203_vm0, %v1097_v36  ;;  %v599_v41 = vld [vmem:[%s9679_s27 + $0xe08] sm:$0xff] }
 0x3a3   : > { %7581 = vst.msk [vmem:[%s10104_s26 + $0x28c] sm:$0xf] %vm7417_vm2, %v9187_v39  ;;  %7837 = vst.msk [vmem:[%s10104_s26 + $0x68c] sm:$0xf] %vm7417_vm2, %v9443_v40  ;;  %v596_v39 = vld [vmem:[%s9679_s27 + $0xdf0] sm:$0xff]  ;;  %v1111_v42 = vld [vmem:[%s9679_s27 + $0x1e08] sm:$0xff] }
 0x3a4   : > { %v3630_v47 = vpop.f32.mrb[72].mxu0  ;;  %v4910_v48 = vpop.f32.mrb[72].mxu1  ;;  %v1108_v40 = vld [vmem:[%s9679_s27 + $0x1df0] sm:$0xff] }
 0x3a5   : > { %v9188_v49 = vpack.c.bf16 %v3630_v47, %v3630_v47  ;;  %v9444_v50 = vpack.c.bf16 %v4910_v48, %v4910_v48  ;;  %v3632_v51 = vpop.f32.mrb[73].mxu0  ;;  %3894 = vmatmul.mubr.f32.gmra.mrb[178].mxu0 %v584_v43  ;;  %v4912_v52 = vpop.f32.mrb[73].mxu1  ;;  %5174 = vmatmul.mubr.f32.gmra.mrb[178].mxu1 %v1096_v44 }
 0x3a6   : > { %8215 = vmatprep.mubr.msk.f32.mxu0 %vm1203_vm0, %v587_v45  ;;  %8471 = vmatprep.mubr.msk.f32.mxu1 %vm1203_vm0, %v1099_v46  ;;  %v601_v51 = vld [vmem:[%s9679_s27 + $0xe18] sm:$0xff] }
 0x3a7   : > { %7582 = vst.msk [vmem:[%s10104_s26 + $0x290] sm:$0xf] %vm7417_vm2, %v9188_v49  ;;  %7838 = vst.msk [vmem:[%s10104_s26 + $0x690] sm:$0xf] %vm7417_vm2, %v9444_v50  ;;  %v598_v49 = vld [vmem:[%s9679_s27 + $0xe00] sm:$0xff]  ;;  %v1113_v52 = vld [vmem:[%s9679_s27 + $0x1e18] sm:$0xff] }
 0x3a8   : > { %v3635_v57 = vpop.f32.mrb[74].mxu0  ;;  %v4915_v58 = vpop.f32.mrb[74].mxu1  ;;  %v1110_v50 = vld [vmem:[%s9679_s27 + $0x1e00] sm:$0xff] }
 0x3a9   : > { %v9189_v59 = vpack.c.bf16 %v3635_v57, %v3635_v57  ;;  %v9445_v60 = vpack.c.bf16 %v4915_v58, %v4915_v58  ;;  %v3637_v61 = vpop.f32.mrb[75].mxu0  ;;  %3899 = vmatmul.mubr.f32.gmra.mrb[180].mxu0 %v586_v53  ;;  %v4917_v62 = vpop.f32.mrb[75].mxu1  ;;  %5179 = vmatmul.mubr.f32.gmra.mrb[180].mxu1 %v1098_v54 }
 0x3aa   : > { %8216 = vmatprep.mubr.msk.f32.mxu0 %vm1203_vm0, %v589_v55  ;;  %8472 = vmatprep.mubr.msk.f32.mxu1 %vm1203_vm0, %v1101_v56  ;;  %v603_v61 = vld [vmem:[%s9679_s27 + $0xe28] sm:$0xff] }
 0x3ab   : > { %7583 = vst.msk [vmem:[%s10104_s26 + $0x294] sm:$0xf] %vm7417_vm2, %v9189_v59  ;;  %7839 = vst.msk [vmem:[%s10104_s26 + $0x694] sm:$0xf] %vm7417_vm2, %v9445_v60  ;;  %v600_v59 = vld [vmem:[%s9679_s27 + $0xe10] sm:$0xff]  ;;  %v1115_v62 = vld [vmem:[%s9679_s27 + $0x1e28] sm:$0xff] }
 0x3ac   : > { %v3640_v3 = vpop.f32.mrb[76].mxu0  ;;  %v4920_v4 = vpop.f32.mrb[76].mxu1  ;;  %v1112_v60 = vld [vmem:[%s9679_s27 + $0x1e10] sm:$0xff] }
 0x3ad   : > { %v9190_v5 = vpack.c.bf16 %v3640_v3, %v3640_v3  ;;  %v9446_v6 = vpack.c.bf16 %v4920_v4, %v4920_v4  ;;  %v3642_v7 = vpop.f32.mrb[77].mxu0  ;;  %3904 = vmatmul.mubr.f32.gmra.mrb[182].mxu0 %v588_v63  ;;  %v4922_v8 = vpop.f32.mrb[77].mxu1  ;;  %5184 = vmatmul.mubr.f32.gmra.mrb[182].mxu1 %v1100_v0 }
 0x3ae   : > { %8217 = vmatprep.mubr.msk.f32.mxu0 %vm1203_vm0, %v591_v1  ;;  %8473 = vmatprep.mubr.msk.f32.mxu1 %vm1203_vm0, %v1103_v2  ;;  %v605_v7 = vld [vmem:[%s9679_s27 + $0xe38] sm:$0xff] }
 0x3af   : > { %7584 = vst.msk [vmem:[%s10104_s26 + $0x298] sm:$0xf] %vm7417_vm2, %v9190_v5  ;;  %7840 = vst.msk [vmem:[%s10104_s26 + $0x698] sm:$0xf] %vm7417_vm2, %v9446_v6  ;;  %v602_v5 = vld [vmem:[%s9679_s27 + $0xe20] sm:$0xff]  ;;  %v1117_v8 = vld [vmem:[%s9679_s27 + $0x1e38] sm:$0xff] }
 0x3b0   : > { %v3645_v13 = vpop.f32.mrb[78].mxu0  ;;  %v4925_v14 = vpop.f32.mrb[78].mxu1  ;;  %v1114_v6 = vld [vmem:[%s9679_s27 + $0x1e20] sm:$0xff] }
 0x3b1   : > { %v9191_v15 = vpack.c.bf16 %v3645_v13, %v3645_v13  ;;  %v9447_v16 = vpack.c.bf16 %v4925_v14, %v4925_v14  ;;  %v3647_v17 = vpop.f32.mrb[79].mxu0  ;;  %3909 = vmatmul.mubr.f32.gmra.mrb[184].mxu0 %v590_v9  ;;  %v4927_v18 = vpop.f32.mrb[79].mxu1  ;;  %5189 = vmatmul.mubr.f32.gmra.mrb[184].mxu1 %v1102_v10 }
 0x3b2   : > { %8218 = vmatprep.mubr.msk.f32.mxu0 %vm1203_vm0, %v593_v11  ;;  %8474 = vmatprep.mubr.msk.f32.mxu1 %vm1203_vm0, %v1105_v12  ;;  %v607_v17 = vld [vmem:[%s9679_s27 + $0xe48] sm:$0xff] }
 0x3b3   : > { %7585 = vst.msk [vmem:[%s10104_s26 + $0x29c] sm:$0xf] %vm7417_vm2, %v9191_v15  ;;  %7841 = vst.msk [vmem:[%s10104_s26 + $0x69c] sm:$0xf] %vm7417_vm2, %v9447_v16  ;;  %v604_v15 = vld [vmem:[%s9679_s27 + $0xe30] sm:$0xff]  ;;  %v1119_v18 = vld [vmem:[%s9679_s27 + $0x1e48] sm:$0xff] }
 0x3b4   : > { %v3650_v23 = vpop.f32.mrb[80].mxu0  ;;  %v4930_v24 = vpop.f32.mrb[80].mxu1  ;;  %v1116_v16 = vld [vmem:[%s9679_s27 + $0x1e30] sm:$0xff] }
 0x3b5   : > { %v9192_v25 = vpack.c.bf16 %v3650_v23, %v3650_v23  ;;  %v9448_v26 = vpack.c.bf16 %v4930_v24, %v4930_v24  ;;  %v3652_v27 = vpop.f32.mrb[81].mxu0  ;;  %3914 = vmatmul.mubr.f32.gmra.mrb[186].mxu0 %v592_v19  ;;  %v4932_v28 = vpop.f32.mrb[81].mxu1  ;;  %5194 = vmatmul.mubr.f32.gmra.mrb[186].mxu1 %v1104_v20 }
 0x3b6   : > { %8219 = vmatprep.mubr.msk.f32.mxu0 %vm1203_vm0, %v595_v21  ;;  %8475 = vmatprep.mubr.msk.f32.mxu1 %vm1203_vm0, %v1107_v22  ;;  %v609_v27 = vld [vmem:[%s9679_s27 + $0xe58] sm:$0xff] }
 0x3b7   : > { %7586 = vst.msk [vmem:[%s10104_s26 + $0x2a0] sm:$0xf] %vm7417_vm2, %v9192_v25  ;;  %7842 = vst.msk [vmem:[%s10104_s26 + $0x6a0] sm:$0xf] %vm7417_vm2, %v9448_v26  ;;  %v606_v25 = vld [vmem:[%s9679_s27 + $0xe40] sm:$0xff]  ;;  %v1121_v28 = vld [vmem:[%s9679_s27 + $0x1e58] sm:$0xff] }
 0x3b8   : > { %v3655_v33 = vpop.f32.mrb[82].mxu0  ;;  %v4935_v34 = vpop.f32.mrb[82].mxu1  ;;  %v1118_v26 = vld [vmem:[%s9679_s27 + $0x1e40] sm:$0xff] }
 0x3b9   : > { %v9193_v35 = vpack.c.bf16 %v3655_v33, %v3655_v33  ;;  %v9449_v36 = vpack.c.bf16 %v4935_v34, %v4935_v34  ;;  %v3657_v37 = vpop.f32.mrb[83].mxu0  ;;  %3919 = vmatmul.mubr.f32.gmra.mrb[188].mxu0 %v594_v29  ;;  %v4937_v38 = vpop.f32.mrb[83].mxu1  ;;  %5199 = vmatmul.mubr.f32.gmra.mrb[188].mxu1 %v1106_v30 }
 0x3ba   : > { %8220 = vmatprep.mubr.msk.f32.mxu0 %vm1203_vm0, %v597_v31  ;;  %8476 = vmatprep.mubr.msk.f32.mxu1 %vm1203_vm0, %v1109_v32  ;;  %v611_v37 = vld [vmem:[%s9679_s27 + $0xe68] sm:$0xff] }
 0x3bb   : > { %7587 = vst.msk [vmem:[%s10104_s26 + $0x2a4] sm:$0xf] %vm7417_vm2, %v9193_v35  ;;  %7843 = vst.msk [vmem:[%s10104_s26 + $0x6a4] sm:$0xf] %vm7417_vm2, %v9449_v36  ;;  %v608_v35 = vld [vmem:[%s9679_s27 + $0xe50] sm:$0xff]  ;;  %v1123_v38 = vld [vmem:[%s9679_s27 + $0x1e68] sm:$0xff] }
 0x3bc   : > { %v3660_v43 = vpop.f32.mrb[84].mxu0  ;;  %v4940_v44 = vpop.f32.mrb[84].mxu1  ;;  %v1120_v36 = vld [vmem:[%s9679_s27 + $0x1e50] sm:$0xff] }
 0x3bd   : > { %v9194_v45 = vpack.c.bf16 %v3660_v43, %v3660_v43  ;;  %v9450_v46 = vpack.c.bf16 %v4940_v44, %v4940_v44  ;;  %v3662_v47 = vpop.f32.mrb[85].mxu0  ;;  %3924 = vmatmul.mubr.f32.gmra.mrb[190].mxu0 %v596_v39  ;;  %v4942_v48 = vpop.f32.mrb[85].mxu1  ;;  %5204 = vmatmul.mubr.f32.gmra.mrb[190].mxu1 %v1108_v40 }
 0x3be   : > { %8221 = vmatprep.mubr.msk.f32.mxu0 %vm1203_vm0, %v599_v41  ;;  %8477 = vmatprep.mubr.msk.f32.mxu1 %vm1203_vm0, %v1111_v42  ;;  %v613_v47 = vld [vmem:[%s9679_s27 + $0xe78] sm:$0xff] }
 0x3bf   : > { %7588 = vst.msk [vmem:[%s10104_s26 + $0x2a8] sm:$0xf] %vm7417_vm2, %v9194_v45  ;;  %7844 = vst.msk [vmem:[%s10104_s26 + $0x6a8] sm:$0xf] %vm7417_vm2, %v9450_v46  ;;  %v610_v45 = vld [vmem:[%s9679_s27 + $0xe60] sm:$0xff]  ;;  %v1125_v48 = vld [vmem:[%s9679_s27 + $0x1e78] sm:$0xff] }
 0x3c0   : > { %v3665_v53 = vpop.f32.mrb[86].mxu0  ;;  %v4945_v54 = vpop.f32.mrb[86].mxu1  ;;  %v1122_v46 = vld [vmem:[%s9679_s27 + $0x1e60] sm:$0xff] }
 0x3c1   : > { %v9195_v55 = vpack.c.bf16 %v3665_v53, %v3665_v53  ;;  %v9451_v56 = vpack.c.bf16 %v4945_v54, %v4945_v54  ;;  %v3667_v57 = vpop.f32.mrb[87].mxu0  ;;  %3929 = vmatmul.mubr.f32.gmra.mrb[192].mxu0 %v598_v49  ;;  %v4947_v58 = vpop.f32.mrb[87].mxu1  ;;  %5209 = vmatmul.mubr.f32.gmra.mrb[192].mxu1 %v1110_v50 }
 0x3c2   : > { %8222 = vmatprep.mubr.msk.f32.mxu0 %vm1203_vm0, %v601_v51  ;;  %8478 = vmatprep.mubr.msk.f32.mxu1 %vm1203_vm0, %v1113_v52  ;;  %v615_v57 = vld [vmem:[%s9679_s27 + $0xe88] sm:$0xff] }
 0x3c3   : > { %7589 = vst.msk [vmem:[%s10104_s26 + $0x2ac] sm:$0xf] %vm7417_vm2, %v9195_v55  ;;  %7845 = vst.msk [vmem:[%s10104_s26 + $0x6ac] sm:$0xf] %vm7417_vm2, %v9451_v56  ;;  %v612_v55 = vld [vmem:[%s9679_s27 + $0xe70] sm:$0xff]  ;;  %v1127_v58 = vld [vmem:[%s9679_s27 + $0x1e88] sm:$0xff] }
 0x3c4   : > { %v3670_v63 = vpop.f32.mrb[88].mxu0  ;;  %v4950_v0 = vpop.f32.mrb[88].mxu1  ;;  %v1124_v56 = vld [vmem:[%s9679_s27 + $0x1e70] sm:$0xff] }
 0x3c5   : > { %v9196_v1 = vpack.c.bf16 %v3670_v63, %v3670_v63  ;;  %v9452_v2 = vpack.c.bf16 %v4950_v0, %v4950_v0  ;;  %v3672_v3 = vpop.f32.mrb[89].mxu0  ;;  %3934 = vmatmul.mubr.f32.gmra.mrb[194].mxu0 %v600_v59  ;;  %v4952_v4 = vpop.f32.mrb[89].mxu1  ;;  %5214 = vmatmul.mubr.f32.gmra.mrb[194].mxu1 %v1112_v60 }
 0x3c6   : > { %8223 = vmatprep.mubr.msk.f32.mxu0 %vm1203_vm0, %v603_v61  ;;  %8479 = vmatprep.mubr.msk.f32.mxu1 %vm1203_vm0, %v1115_v62  ;;  %v617_v3 = vld [vmem:[%s9679_s27 + $0xe98] sm:$0xff] }
 0x3c7   : > { %7590 = vst.msk [vmem:[%s10104_s26 + $0x2b0] sm:$0xf] %vm7417_vm2, %v9196_v1  ;;  %7846 = vst.msk [vmem:[%s10104_s26 + $0x6b0] sm:$0xf] %vm7417_vm2, %v9452_v2  ;;  %v614_v1 = vld [vmem:[%s9679_s27 + $0xe80] sm:$0xff]  ;;  %v1129_v4 = vld [vmem:[%s9679_s27 + $0x1e98] sm:$0xff] }
 0x3c8   : > { %v3675_v9 = vpop.f32.mrb[90].mxu0  ;;  %v4955_v10 = vpop.f32.mrb[90].mxu1  ;;  %v1126_v2 = vld [vmem:[%s9679_s27 + $0x1e80] sm:$0xff] }
 0x3c9   : > { %v9197_v11 = vpack.c.bf16 %v3675_v9, %v3675_v9  ;;  %v9453_v12 = vpack.c.bf16 %v4955_v10, %v4955_v10  ;;  %v3677_v13 = vpop.f32.mrb[91].mxu0  ;;  %3939 = vmatmul.mubr.f32.gmra.mrb[196].mxu0 %v602_v5  ;;  %v4957_v14 = vpop.f32.mrb[91].mxu1  ;;  %5219 = vmatmul.mubr.f32.gmra.mrb[196].mxu1 %v1114_v6 }
 0x3ca   : > { %8224 = vmatprep.mubr.msk.f32.mxu0 %vm1203_vm0, %v605_v7  ;;  %8480 = vmatprep.mubr.msk.f32.mxu1 %vm1203_vm0, %v1117_v8  ;;  %v619_v13 = vld [vmem:[%s9679_s27 + $0xea8] sm:$0xff] }
 0x3cb   : > { %7591 = vst.msk [vmem:[%s10104_s26 + $0x2b4] sm:$0xf] %vm7417_vm2, %v9197_v11  ;;  %7847 = vst.msk [vmem:[%s10104_s26 + $0x6b4] sm:$0xf] %vm7417_vm2, %v9453_v12  ;;  %v616_v11 = vld [vmem:[%s9679_s27 + $0xe90] sm:$0xff]  ;;  %v1131_v14 = vld [vmem:[%s9679_s27 + $0x1ea8] sm:$0xff] }
 0x3cc   : > { %v3680_v19 = vpop.f32.mrb[92].mxu0  ;;  %v4960_v20 = vpop.f32.mrb[92].mxu1  ;;  %v1128_v12 = vld [vmem:[%s9679_s27 + $0x1e90] sm:$0xff] }
 0x3cd   : > { %v9198_v21 = vpack.c.bf16 %v3680_v19, %v3680_v19  ;;  %v9454_v22 = vpack.c.bf16 %v4960_v20, %v4960_v20  ;;  %v3682_v23 = vpop.f32.mrb[93].mxu0  ;;  %3944 = vmatmul.mubr.f32.gmra.mrb[198].mxu0 %v604_v15  ;;  %v4962_v24 = vpop.f32.mrb[93].mxu1  ;;  %5224 = vmatmul.mubr.f32.gmra.mrb[198].mxu1 %v1116_v16 }
 0x3ce   : > { %8225 = vmatprep.mubr.msk.f32.mxu0 %vm1203_vm0, %v607_v17  ;;  %8481 = vmatprep.mubr.msk.f32.mxu1 %vm1203_vm0, %v1119_v18  ;;  %v621_v23 = vld [vmem:[%s9679_s27 + $0xeb8] sm:$0xff] }
 0x3cf   : > { %7592 = vst.msk [vmem:[%s10104_s26 + $0x2b8] sm:$0xf] %vm7417_vm2, %v9198_v21  ;;  %7848 = vst.msk [vmem:[%s10104_s26 + $0x6b8] sm:$0xf] %vm7417_vm2, %v9454_v22  ;;  %v618_v21 = vld [vmem:[%s9679_s27 + $0xea0] sm:$0xff]  ;;  %v1133_v24 = vld [vmem:[%s9679_s27 + $0x1eb8] sm:$0xff] }
 0x3d0   : > { %v3685_v29 = vpop.f32.mrb[94].mxu0  ;;  %v4965_v30 = vpop.f32.mrb[94].mxu1  ;;  %v1130_v22 = vld [vmem:[%s9679_s27 + $0x1ea0] sm:$0xff] }
 0x3d1   : > { %v9199_v31 = vpack.c.bf16 %v3685_v29, %v3685_v29  ;;  %v9455_v32 = vpack.c.bf16 %v4965_v30, %v4965_v30  ;;  %v3687_v33 = vpop.f32.mrb[95].mxu0  ;;  %3949 = vmatmul.mubr.f32.gmra.mrb[200].mxu0 %v606_v25  ;;  %v4967_v34 = vpop.f32.mrb[95].mxu1  ;;  %5229 = vmatmul.mubr.f32.gmra.mrb[200].mxu1 %v1118_v26 }
 0x3d2   : > { %8226 = vmatprep.mubr.msk.f32.mxu0 %vm1203_vm0, %v609_v27  ;;  %8482 = vmatprep.mubr.msk.f32.mxu1 %vm1203_vm0, %v1121_v28  ;;  %v623_v33 = vld [vmem:[%s9679_s27 + $0xec8] sm:$0xff] }
 0x3d3   : > { %7593 = vst.msk [vmem:[%s10104_s26 + $0x2bc] sm:$0xf] %vm7417_vm2, %v9199_v31  ;;  %7849 = vst.msk [vmem:[%s10104_s26 + $0x6bc] sm:$0xf] %vm7417_vm2, %v9455_v32  ;;  %v620_v31 = vld [vmem:[%s9679_s27 + $0xeb0] sm:$0xff]  ;;  %v1135_v34 = vld [vmem:[%s9679_s27 + $0x1ec8] sm:$0xff] }
 0x3d4   : > { %v3690_v39 = vpop.f32.mrb[96].mxu0  ;;  %v4970_v40 = vpop.f32.mrb[96].mxu1  ;;  %v1132_v32 = vld [vmem:[%s9679_s27 + $0x1eb0] sm:$0xff] }
 0x3d5   : > { %v9200_v41 = vpack.c.bf16 %v3690_v39, %v3690_v39  ;;  %v9456_v42 = vpack.c.bf16 %v4970_v40, %v4970_v40  ;;  %v3692_v43 = vpop.f32.mrb[97].mxu0  ;;  %3954 = vmatmul.mubr.f32.gmra.mrb[202].mxu0 %v608_v35  ;;  %v4972_v44 = vpop.f32.mrb[97].mxu1  ;;  %5234 = vmatmul.mubr.f32.gmra.mrb[202].mxu1 %v1120_v36 }
 0x3d6   : > { %8227 = vmatprep.mubr.msk.f32.mxu0 %vm1203_vm0, %v611_v37  ;;  %8483 = vmatprep.mubr.msk.f32.mxu1 %vm1203_vm0, %v1123_v38  ;;  %v625_v43 = vld [vmem:[%s9679_s27 + $0xed8] sm:$0xff] }
 0x3d7   : > { %7594 = vst.msk [vmem:[%s10104_s26 + $0x2c0] sm:$0xf] %vm7417_vm2, %v9200_v41  ;;  %7850 = vst.msk [vmem:[%s10104_s26 + $0x6c0] sm:$0xf] %vm7417_vm2, %v9456_v42  ;;  %v622_v41 = vld [vmem:[%s9679_s27 + $0xec0] sm:$0xff]  ;;  %v1137_v44 = vld [vmem:[%s9679_s27 + $0x1ed8] sm:$0xff] }
 0x3d8   : > { %v3695_v49 = vpop.f32.mrb[98].mxu0  ;;  %v4975_v50 = vpop.f32.mrb[98].mxu1  ;;  %v1134_v42 = vld [vmem:[%s9679_s27 + $0x1ec0] sm:$0xff] }
 0x3d9   : > { %v9201_v51 = vpack.c.bf16 %v3695_v49, %v3695_v49  ;;  %v9457_v52 = vpack.c.bf16 %v4975_v50, %v4975_v50  ;;  %v3697_v53 = vpop.f32.mrb[99].mxu0  ;;  %3959 = vmatmul.mubr.f32.gmra.mrb[204].mxu0 %v610_v45  ;;  %v4977_v54 = vpop.f32.mrb[99].mxu1  ;;  %5239 = vmatmul.mubr.f32.gmra.mrb[204].mxu1 %v1122_v46 }
 0x3da   : > { %8228 = vmatprep.mubr.msk.f32.mxu0 %vm1203_vm0, %v613_v47  ;;  %8484 = vmatprep.mubr.msk.f32.mxu1 %vm1203_vm0, %v1125_v48  ;;  %v627_v53 = vld [vmem:[%s9679_s27 + $0xee8] sm:$0xff] }
 0x3db   : > { %7595 = vst.msk [vmem:[%s10104_s26 + $0x2c4] sm:$0xf] %vm7417_vm2, %v9201_v51  ;;  %7851 = vst.msk [vmem:[%s10104_s26 + $0x6c4] sm:$0xf] %vm7417_vm2, %v9457_v52  ;;  %v624_v51 = vld [vmem:[%s9679_s27 + $0xed0] sm:$0xff]  ;;  %v1139_v54 = vld [vmem:[%s9679_s27 + $0x1ee8] sm:$0xff] }
 0x3dc   : > { %v3700_v59 = vpop.f32.mrb[100].mxu0  ;;  %v4980_v60 = vpop.f32.mrb[100].mxu1  ;;  %v1136_v52 = vld [vmem:[%s9679_s27 + $0x1ed0] sm:$0xff] }
 0x3dd   : > { %v9202_v61 = vpack.c.bf16 %v3700_v59, %v3700_v59  ;;  %v9458_v62 = vpack.c.bf16 %v4980_v60, %v4980_v60  ;;  %v3702_v63 = vpop.f32.mrb[101].mxu0  ;;  %3964 = vmatmul.mubr.f32.gmra.mrb[206].mxu0 %v612_v55  ;;  %v4982_v0 = vpop.f32.mrb[101].mxu1  ;;  %5244 = vmatmul.mubr.f32.gmra.mrb[206].mxu1 %v1124_v56 }
 0x3de   : > { %8229 = vmatprep.mubr.msk.f32.mxu0 %vm1203_vm0, %v615_v57  ;;  %8485 = vmatprep.mubr.msk.f32.mxu1 %vm1203_vm0, %v1127_v58  ;;  %v629_v63 = vld [vmem:[%s9679_s27 + $0xef8] sm:$0xff] }
 0x3df   : > { %7596 = vst.msk [vmem:[%s10104_s26 + $0x2c8] sm:$0xf] %vm7417_vm2, %v9202_v61  ;;  %7852 = vst.msk [vmem:[%s10104_s26 + $0x6c8] sm:$0xf] %vm7417_vm2, %v9458_v62  ;;  %v626_v61 = vld [vmem:[%s9679_s27 + $0xee0] sm:$0xff]  ;;  %v1141_v0 = vld [vmem:[%s9679_s27 + $0x1ef8] sm:$0xff] }
 0x3e0   : > { %v3705_v5 = vpop.f32.mrb[102].mxu0  ;;  %v4985_v6 = vpop.f32.mrb[102].mxu1  ;;  %v1138_v62 = vld [vmem:[%s9679_s27 + $0x1ee0] sm:$0xff] }
 0x3e1   : > { %v9203_v7 = vpack.c.bf16 %v3705_v5, %v3705_v5  ;;  %v9459_v8 = vpack.c.bf16 %v4985_v6, %v4985_v6  ;;  %v3707_v9 = vpop.f32.mrb[103].mxu0  ;;  %3969 = vmatmul.mubr.f32.gmra.mrb[208].mxu0 %v614_v1  ;;  %v4987_v10 = vpop.f32.mrb[103].mxu1  ;;  %5249 = vmatmul.mubr.f32.gmra.mrb[208].mxu1 %v1126_v2 }
 0x3e2   : > { %8230 = vmatprep.mubr.msk.f32.mxu0 %vm1203_vm0, %v617_v3  ;;  %8486 = vmatprep.mubr.msk.f32.mxu1 %vm1203_vm0, %v1129_v4  ;;  %v631_v9 = vld [vmem:[%s9679_s27 + $0xf08] sm:$0xff] }
 0x3e3   : > { %7597 = vst.msk [vmem:[%s10104_s26 + $0x2cc] sm:$0xf] %vm7417_vm2, %v9203_v7  ;;  %7853 = vst.msk [vmem:[%s10104_s26 + $0x6cc] sm:$0xf] %vm7417_vm2, %v9459_v8  ;;  %v628_v7 = vld [vmem:[%s9679_s27 + $0xef0] sm:$0xff]  ;;  %v1143_v10 = vld [vmem:[%s9679_s27 + $0x1f08] sm:$0xff] }
 0x3e4   : > { %v3710_v15 = vpop.f32.mrb[104].mxu0  ;;  %v4990_v16 = vpop.f32.mrb[104].mxu1  ;;  %v1140_v8 = vld [vmem:[%s9679_s27 + $0x1ef0] sm:$0xff] }
 0x3e5   : > { %v9204_v17 = vpack.c.bf16 %v3710_v15, %v3710_v15  ;;  %v9460_v18 = vpack.c.bf16 %v4990_v16, %v4990_v16  ;;  %v3712_v19 = vpop.f32.mrb[105].mxu0  ;;  %3974 = vmatmul.mubr.f32.gmra.mrb[210].mxu0 %v616_v11  ;;  %v4992_v20 = vpop.f32.mrb[105].mxu1  ;;  %5254 = vmatmul.mubr.f32.gmra.mrb[210].mxu1 %v1128_v12 }
 0x3e6   : > { %8231 = vmatprep.mubr.msk.f32.mxu0 %vm1203_vm0, %v619_v13  ;;  %8487 = vmatprep.mubr.msk.f32.mxu1 %vm1203_vm0, %v1131_v14  ;;  %v633_v19 = vld [vmem:[%s9679_s27 + $0xf18] sm:$0xff] }
 0x3e7   : > { %7598 = vst.msk [vmem:[%s10104_s26 + $0x2d0] sm:$0xf] %vm7417_vm2, %v9204_v17  ;;  %7854 = vst.msk [vmem:[%s10104_s26 + $0x6d0] sm:$0xf] %vm7417_vm2, %v9460_v18  ;;  %v630_v17 = vld [vmem:[%s9679_s27 + $0xf00] sm:$0xff]  ;;  %v1145_v20 = vld [vmem:[%s9679_s27 + $0x1f18] sm:$0xff] }
 0x3e8   : > { %v3715_v25 = vpop.f32.mrb[106].mxu0  ;;  %v4995_v26 = vpop.f32.mrb[106].mxu1  ;;  %v1142_v18 = vld [vmem:[%s9679_s27 + $0x1f00] sm:$0xff] }
 0x3e9   : > { %v9205_v27 = vpack.c.bf16 %v3715_v25, %v3715_v25  ;;  %v9461_v28 = vpack.c.bf16 %v4995_v26, %v4995_v26  ;;  %v3717_v29 = vpop.f32.mrb[107].mxu0  ;;  %3979 = vmatmul.mubr.f32.gmra.mrb[212].mxu0 %v618_v21  ;;  %v4997_v30 = vpop.f32.mrb[107].mxu1  ;;  %5259 = vmatmul.mubr.f32.gmra.mrb[212].mxu1 %v1130_v22 }
 0x3ea   : > { %8232 = vmatprep.mubr.msk.f32.mxu0 %vm1203_vm0, %v621_v23  ;;  %8488 = vmatprep.mubr.msk.f32.mxu1 %vm1203_vm0, %v1133_v24  ;;  %v635_v29 = vld [vmem:[%s9679_s27 + $0xf28] sm:$0xff] }
 0x3eb   : > { %7599 = vst.msk [vmem:[%s10104_s26 + $0x2d4] sm:$0xf] %vm7417_vm2, %v9205_v27  ;;  %7855 = vst.msk [vmem:[%s10104_s26 + $0x6d4] sm:$0xf] %vm7417_vm2, %v9461_v28  ;;  %v632_v27 = vld [vmem:[%s9679_s27 + $0xf10] sm:$0xff]  ;;  %v1147_v30 = vld [vmem:[%s9679_s27 + $0x1f28] sm:$0xff] }
 0x3ec   : > { %v3720_v35 = vpop.f32.mrb[108].mxu0  ;;  %v5000_v36 = vpop.f32.mrb[108].mxu1  ;;  %v1144_v28 = vld [vmem:[%s9679_s27 + $0x1f10] sm:$0xff] }
 0x3ed   : > { %v9206_v37 = vpack.c.bf16 %v3720_v35, %v3720_v35  ;;  %v9462_v38 = vpack.c.bf16 %v5000_v36, %v5000_v36  ;;  %v3722_v39 = vpop.f32.mrb[109].mxu0  ;;  %3984 = vmatmul.mubr.f32.gmra.mrb[214].mxu0 %v620_v31  ;;  %v5002_v40 = vpop.f32.mrb[109].mxu1  ;;  %5264 = vmatmul.mubr.f32.gmra.mrb[214].mxu1 %v1132_v32 }
 0x3ee   : > { %8233 = vmatprep.mubr.msk.f32.mxu0 %vm1203_vm0, %v623_v33  ;;  %8489 = vmatprep.mubr.msk.f32.mxu1 %vm1203_vm0, %v1135_v34  ;;  %v637_v39 = vld [vmem:[%s9679_s27 + $0xf38] sm:$0xff] }
 0x3ef   : > { %7600 = vst.msk [vmem:[%s10104_s26 + $0x2d8] sm:$0xf] %vm7417_vm2, %v9206_v37  ;;  %7856 = vst.msk [vmem:[%s10104_s26 + $0x6d8] sm:$0xf] %vm7417_vm2, %v9462_v38  ;;  %v634_v37 = vld [vmem:[%s9679_s27 + $0xf20] sm:$0xff]  ;;  %v1149_v40 = vld [vmem:[%s9679_s27 + $0x1f38] sm:$0xff] }
 0x3f0   : > { %v3725_v45 = vpop.f32.mrb[110].mxu0  ;;  %v5005_v46 = vpop.f32.mrb[110].mxu1  ;;  %v1146_v38 = vld [vmem:[%s9679_s27 + $0x1f20] sm:$0xff] }
 0x3f1   : > { %v9207_v47 = vpack.c.bf16 %v3725_v45, %v3725_v45  ;;  %v9463_v48 = vpack.c.bf16 %v5005_v46, %v5005_v46  ;;  %v3727_v49 = vpop.f32.mrb[111].mxu0  ;;  %3989 = vmatmul.mubr.f32.gmra.mrb[216].mxu0 %v622_v41  ;;  %v5007_v50 = vpop.f32.mrb[111].mxu1  ;;  %5269 = vmatmul.mubr.f32.gmra.mrb[216].mxu1 %v1134_v42 }
 0x3f2   : > { %8234 = vmatprep.mubr.msk.f32.mxu0 %vm1203_vm0, %v625_v43  ;;  %8490 = vmatprep.mubr.msk.f32.mxu1 %vm1203_vm0, %v1137_v44  ;;  %v639_v49 = vld [vmem:[%s9679_s27 + $0xf48] sm:$0xff] }
 0x3f3   : > { %7601 = vst.msk [vmem:[%s10104_s26 + $0x2dc] sm:$0xf] %vm7417_vm2, %v9207_v47  ;;  %7857 = vst.msk [vmem:[%s10104_s26 + $0x6dc] sm:$0xf] %vm7417_vm2, %v9463_v48  ;;  %v636_v47 = vld [vmem:[%s9679_s27 + $0xf30] sm:$0xff]  ;;  %v1151_v50 = vld [vmem:[%s9679_s27 + $0x1f48] sm:$0xff] }
 0x3f4   : > { %v3730_v55 = vpop.f32.mrb[112].mxu0  ;;  %v5010_v56 = vpop.f32.mrb[112].mxu1  ;;  %v1148_v48 = vld [vmem:[%s9679_s27 + $0x1f30] sm:$0xff] }
 0x3f5   : > { %v9208_v57 = vpack.c.bf16 %v3730_v55, %v3730_v55  ;;  %v9464_v58 = vpack.c.bf16 %v5010_v56, %v5010_v56  ;;  %v3732_v59 = vpop.f32.mrb[113].mxu0  ;;  %3994 = vmatmul.mubr.f32.gmra.mrb[218].mxu0 %v624_v51  ;;  %v5012_v60 = vpop.f32.mrb[113].mxu1  ;;  %5274 = vmatmul.mubr.f32.gmra.mrb[218].mxu1 %v1136_v52 }
 0x3f6   : > { %8235 = vmatprep.mubr.msk.f32.mxu0 %vm1203_vm0, %v627_v53  ;;  %8491 = vmatprep.mubr.msk.f32.mxu1 %vm1203_vm0, %v1139_v54  ;;  %v641_v59 = vld [vmem:[%s9679_s27 + $0xf58] sm:$0xff] }
 0x3f7   : > { %7602 = vst.msk [vmem:[%s10104_s26 + $0x2e0] sm:$0xf] %vm7417_vm2, %v9208_v57  ;;  %7858 = vst.msk [vmem:[%s10104_s26 + $0x6e0] sm:$0xf] %vm7417_vm2, %v9464_v58  ;;  %v638_v57 = vld [vmem:[%s9679_s27 + $0xf40] sm:$0xff]  ;;  %v1153_v60 = vld [vmem:[%s9679_s27 + $0x1f58] sm:$0xff] }
 0x3f8   : > { %v3735_v1 = vpop.f32.mrb[114].mxu0  ;;  %v5015_v2 = vpop.f32.mrb[114].mxu1  ;;  %v1150_v58 = vld [vmem:[%s9679_s27 + $0x1f40] sm:$0xff] }
 0x3f9   : > { %v9209_v3 = vpack.c.bf16 %v3735_v1, %v3735_v1  ;;  %v9465_v4 = vpack.c.bf16 %v5015_v2, %v5015_v2  ;;  %v3737_v5 = vpop.f32.mrb[115].mxu0  ;;  %3999 = vmatmul.mubr.f32.gmra.mrb[220].mxu0 %v626_v61  ;;  %v5017_v6 = vpop.f32.mrb[115].mxu1  ;;  %5279 = vmatmul.mubr.f32.gmra.mrb[220].mxu1 %v1138_v62 }
 0x3fa   : > { %8236 = vmatprep.mubr.msk.f32.mxu0 %vm1203_vm0, %v629_v63  ;;  %8492 = vmatprep.mubr.msk.f32.mxu1 %vm1203_vm0, %v1141_v0  ;;  %v643_v5 = vld [vmem:[%s9679_s27 + $0xf68] sm:$0xff] }
 0x3fb   : > { %7603 = vst.msk [vmem:[%s10104_s26 + $0x2e4] sm:$0xf] %vm7417_vm2, %v9209_v3  ;;  %7859 = vst.msk [vmem:[%s10104_s26 + $0x6e4] sm:$0xf] %vm7417_vm2, %v9465_v4  ;;  %v640_v3 = vld [vmem:[%s9679_s27 + $0xf50] sm:$0xff]  ;;  %v1155_v6 = vld [vmem:[%s9679_s27 + $0x1f68] sm:$0xff] }
 0x3fc   : > { %v3740_v11 = vpop.f32.mrb[116].mxu0  ;;  %v5020_v12 = vpop.f32.mrb[116].mxu1  ;;  %v1152_v4 = vld [vmem:[%s9679_s27 + $0x1f50] sm:$0xff] }
 0x3fd   : > { %v9210_v13 = vpack.c.bf16 %v3740_v11, %v3740_v11  ;;  %v9466_v14 = vpack.c.bf16 %v5020_v12, %v5020_v12  ;;  %v3742_v15 = vpop.f32.mrb[117].mxu0  ;;  %4004 = vmatmul.mubr.f32.gmra.mrb[222].mxu0 %v628_v7  ;;  %v5022_v16 = vpop.f32.mrb[117].mxu1  ;;  %5284 = vmatmul.mubr.f32.gmra.mrb[222].mxu1 %v1140_v8 }
 0x3fe   : > { %8237 = vmatprep.mubr.msk.f32.mxu0 %vm1203_vm0, %v631_v9  ;;  %8493 = vmatprep.mubr.msk.f32.mxu1 %vm1203_vm0, %v1143_v10  ;;  %v645_v15 = vld [vmem:[%s9679_s27 + $0xf78] sm:$0xff] }
 0x3ff   : > { %7604 = vst.msk [vmem:[%s10104_s26 + $0x2e8] sm:$0xf] %vm7417_vm2, %v9210_v13  ;;  %7860 = vst.msk [vmem:[%s10104_s26 + $0x6e8] sm:$0xf] %vm7417_vm2, %v9466_v14  ;;  %v642_v13 = vld [vmem:[%s9679_s27 + $0xf60] sm:$0xff]  ;;  %v1157_v16 = vld [vmem:[%s9679_s27 + $0x1f78] sm:$0xff] }
 0x400   : > { %v3745_v21 = vpop.f32.mrb[118].mxu0  ;;  %v5025_v22 = vpop.f32.mrb[118].mxu1  ;;  %v1154_v14 = vld [vmem:[%s9679_s27 + $0x1f60] sm:$0xff] }
 0x401   : > { %v9211_v23 = vpack.c.bf16 %v3745_v21, %v3745_v21  ;;  %v9467_v24 = vpack.c.bf16 %v5025_v22, %v5025_v22  ;;  %v3747_v25 = vpop.f32.mrb[119].mxu0  ;;  %4009 = vmatmul.mubr.f32.gmra.mrb[224].mxu0 %v630_v17  ;;  %v5027_v26 = vpop.f32.mrb[119].mxu1  ;;  %5289 = vmatmul.mubr.f32.gmra.mrb[224].mxu1 %v1142_v18 }
 0x402   : > { %8238 = vmatprep.mubr.msk.f32.mxu0 %vm1203_vm0, %v633_v19  ;;  %8494 = vmatprep.mubr.msk.f32.mxu1 %vm1203_vm0, %v1145_v20  ;;  %v647_v25 = vld [vmem:[%s9679_s27 + $0xf88] sm:$0xff] }
 0x403   : > { %7605 = vst.msk [vmem:[%s10104_s26 + $0x2ec] sm:$0xf] %vm7417_vm2, %v9211_v23  ;;  %7861 = vst.msk [vmem:[%s10104_s26 + $0x6ec] sm:$0xf] %vm7417_vm2, %v9467_v24  ;;  %v644_v23 = vld [vmem:[%s9679_s27 + $0xf70] sm:$0xff]  ;;  %v1159_v26 = vld [vmem:[%s9679_s27 + $0x1f88] sm:$0xff] }
 0x404   : > { %v3750_v31 = vpop.f32.mrb[120].mxu0  ;;  %v5030_v32 = vpop.f32.mrb[120].mxu1  ;;  %v1156_v24 = vld [vmem:[%s9679_s27 + $0x1f70] sm:$0xff] }
 0x405   : > { %v9212_v33 = vpack.c.bf16 %v3750_v31, %v3750_v31  ;;  %v9468_v34 = vpack.c.bf16 %v5030_v32, %v5030_v32  ;;  %v3752_v35 = vpop.f32.mrb[121].mxu0  ;;  %4014 = vmatmul.mubr.f32.gmra.mrb[226].mxu0 %v632_v27  ;;  %v5032_v36 = vpop.f32.mrb[121].mxu1  ;;  %5294 = vmatmul.mubr.f32.gmra.mrb[226].mxu1 %v1144_v28 }
 0x406   : > { %8239 = vmatprep.mubr.msk.f32.mxu0 %vm1203_vm0, %v635_v29  ;;  %8495 = vmatprep.mubr.msk.f32.mxu1 %vm1203_vm0, %v1147_v30  ;;  %v649_v35 = vld [vmem:[%s9679_s27 + $0xf98] sm:$0xff] }
 0x407   : > { %7606 = vst.msk [vmem:[%s10104_s26 + $0x2f0] sm:$0xf] %vm7417_vm2, %v9212_v33  ;;  %7862 = vst.msk [vmem:[%s10104_s26 + $0x6f0] sm:$0xf] %vm7417_vm2, %v9468_v34  ;;  %v646_v33 = vld [vmem:[%s9679_s27 + $0xf80] sm:$0xff]  ;;  %v1161_v36 = vld [vmem:[%s9679_s27 + $0x1f98] sm:$0xff] }
 0x408   : > { %v3755_v41 = vpop.f32.mrb[122].mxu0  ;;  %v5035_v42 = vpop.f32.mrb[122].mxu1  ;;  %v1158_v34 = vld [vmem:[%s9679_s27 + $0x1f80] sm:$0xff] }
 0x409   : > { %v9213_v43 = vpack.c.bf16 %v3755_v41, %v3755_v41  ;;  %v9469_v44 = vpack.c.bf16 %v5035_v42, %v5035_v42  ;;  %v3757_v45 = vpop.f32.mrb[123].mxu0  ;;  %4019 = vmatmul.mubr.f32.gmra.mrb[228].mxu0 %v634_v37  ;;  %v5037_v46 = vpop.f32.mrb[123].mxu1  ;;  %5299 = vmatmul.mubr.f32.gmra.mrb[228].mxu1 %v1146_v38 }
 0x40a   : > { %8240 = vmatprep.mubr.msk.f32.mxu0 %vm1203_vm0, %v637_v39  ;;  %8496 = vmatprep.mubr.msk.f32.mxu1 %vm1203_vm0, %v1149_v40  ;;  %v651_v45 = vld [vmem:[%s9679_s27 + $0xfa8] sm:$0xff] }
 0x40b   : > { %7607 = vst.msk [vmem:[%s10104_s26 + $0x2f4] sm:$0xf] %vm7417_vm2, %v9213_v43  ;;  %7863 = vst.msk [vmem:[%s10104_s26 + $0x6f4] sm:$0xf] %vm7417_vm2, %v9469_v44  ;;  %v648_v43 = vld [vmem:[%s9679_s27 + $0xf90] sm:$0xff]  ;;  %v1163_v46 = vld [vmem:[%s9679_s27 + $0x1fa8] sm:$0xff] }
 0x40c   : > { %v3760_v51 = vpop.f32.mrb[124].mxu0  ;;  %v5040_v52 = vpop.f32.mrb[124].mxu1  ;;  %v1160_v44 = vld [vmem:[%s9679_s27 + $0x1f90] sm:$0xff] }
 0x40d   : > { %v9214_v53 = vpack.c.bf16 %v3760_v51, %v3760_v51  ;;  %v9470_v54 = vpack.c.bf16 %v5040_v52, %v5040_v52  ;;  %v3762_v55 = vpop.f32.mrb[125].mxu0  ;;  %4024 = vmatmul.mubr.f32.gmra.mrb[230].mxu0 %v636_v47  ;;  %v5042_v56 = vpop.f32.mrb[125].mxu1  ;;  %5304 = vmatmul.mubr.f32.gmra.mrb[230].mxu1 %v1148_v48 }
 0x40e   : > { %8241 = vmatprep.mubr.msk.f32.mxu0 %vm1203_vm0, %v639_v49  ;;  %8497 = vmatprep.mubr.msk.f32.mxu1 %vm1203_vm0, %v1151_v50  ;;  %v653_v55 = vld [vmem:[%s9679_s27 + $0xfb8] sm:$0xff] }
 0x40f   : > { %7608 = vst.msk [vmem:[%s10104_s26 + $0x2f8] sm:$0xf] %vm7417_vm2, %v9214_v53  ;;  %7864 = vst.msk [vmem:[%s10104_s26 + $0x6f8] sm:$0xf] %vm7417_vm2, %v9470_v54  ;;  %v650_v53 = vld [vmem:[%s9679_s27 + $0xfa0] sm:$0xff]  ;;  %v1165_v56 = vld [vmem:[%s9679_s27 + $0x1fb8] sm:$0xff] }
 0x410   : > { %v3765_v61 = vpop.f32.mrb[126].mxu0  ;;  %v5045_v62 = vpop.f32.mrb[126].mxu1  ;;  %v1162_v54 = vld [vmem:[%s9679_s27 + $0x1fa0] sm:$0xff] }
 0x411   : > { %v9215_v63 = vpack.c.bf16 %v3765_v61, %v3765_v61  ;;  %v9471_v0 = vpack.c.bf16 %v5045_v62, %v5045_v62  ;;  %v3767_v1 = vpop.f32.mrb[127].mxu0  ;;  %4029 = vmatmul.mubr.f32.gmra.mrb[232].mxu0 %v638_v57  ;;  %v5047_v2 = vpop.f32.mrb[127].mxu1  ;;  %5309 = vmatmul.mubr.f32.gmra.mrb[232].mxu1 %v1150_v58 }
 0x412   : > { %8242 = vmatprep.mubr.msk.f32.mxu0 %vm1203_vm0, %v641_v59  ;;  %8498 = vmatprep.mubr.msk.f32.mxu1 %vm1203_vm0, %v1153_v60  ;;  %v655_v1 = vld [vmem:[%s9679_s27 + $0xfc8] sm:$0xff] }
 0x413   : > { %7609 = vst.msk [vmem:[%s10104_s26 + $0x2fc] sm:$0xf] %vm7417_vm2, %v9215_v63  ;;  %7865 = vst.msk [vmem:[%s10104_s26 + $0x6fc] sm:$0xf] %vm7417_vm2, %v9471_v0  ;;  %v652_v63 = vld [vmem:[%s9679_s27 + $0xfb0] sm:$0xff]  ;;  %v1167_v2 = vld [vmem:[%s9679_s27 + $0x1fc8] sm:$0xff] }
 0x414   : > { %v3770_v7 = vpop.f32.mrb[128].mxu0  ;;  %v5050_v8 = vpop.f32.mrb[128].mxu1  ;;  %v1164_v0 = vld [vmem:[%s9679_s27 + $0x1fb0] sm:$0xff] }
 0x415   : > { %v9216_v9 = vpack.c.bf16 %v3770_v7, %v3770_v7  ;;  %v9472_v10 = vpack.c.bf16 %v5050_v8, %v5050_v8  ;;  %v3772_v11 = vpop.f32.mrb[129].mxu0  ;;  %4034 = vmatmul.mubr.f32.gmra.mrb[234].mxu0 %v640_v3  ;;  %v5052_v12 = vpop.f32.mrb[129].mxu1  ;;  %5314 = vmatmul.mubr.f32.gmra.mrb[234].mxu1 %v1152_v4 }
 0x416   : > { %8243 = vmatprep.mubr.msk.f32.mxu0 %vm1203_vm0, %v643_v5  ;;  %8499 = vmatprep.mubr.msk.f32.mxu1 %vm1203_vm0, %v1155_v6  ;;  %v657_v11 = vld [vmem:[%s9679_s27 + $0xfd8] sm:$0xff] }
 0x417   : > { %7610 = vst.msk [vmem:[%s10104_s26 + $0x300] sm:$0xf] %vm7417_vm2, %v9216_v9  ;;  %7866 = vst.msk [vmem:[%s10104_s26 + $0x700] sm:$0xf] %vm7417_vm2, %v9472_v10  ;;  %v654_v9 = vld [vmem:[%s9679_s27 + $0xfc0] sm:$0xff]  ;;  %v1169_v12 = vld [vmem:[%s9679_s27 + $0x1fd8] sm:$0xff] }
 0x418   : > { %v3775_v17 = vpop.f32.mrb[130].mxu0  ;;  %v5055_v18 = vpop.f32.mrb[130].mxu1  ;;  %v1166_v10 = vld [vmem:[%s9679_s27 + $0x1fc0] sm:$0xff] }
 0x419   : > { %v9217_v19 = vpack.c.bf16 %v3775_v17, %v3775_v17  ;;  %v9473_v20 = vpack.c.bf16 %v5055_v18, %v5055_v18  ;;  %v3777_v21 = vpop.f32.mrb[131].mxu0  ;;  %4039 = vmatmul.mubr.f32.gmra.mrb[236].mxu0 %v642_v13  ;;  %v5057_v22 = vpop.f32.mrb[131].mxu1  ;;  %5319 = vmatmul.mubr.f32.gmra.mrb[236].mxu1 %v1154_v14 }
 0x41a   : > { %8244 = vmatprep.mubr.msk.f32.mxu0 %vm1203_vm0, %v645_v15  ;;  %8500 = vmatprep.mubr.msk.f32.mxu1 %vm1203_vm0, %v1157_v16  ;;  %v659_v21 = vld [vmem:[%s9679_s27 + $0xfe8] sm:$0xff] }
 0x41b   : > { %7611 = vst.msk [vmem:[%s10104_s26 + $0x304] sm:$0xf] %vm7417_vm2, %v9217_v19  ;;  %7867 = vst.msk [vmem:[%s10104_s26 + $0x704] sm:$0xf] %vm7417_vm2, %v9473_v20  ;;  %v656_v19 = vld [vmem:[%s9679_s27 + $0xfd0] sm:$0xff]  ;;  %v1171_v22 = vld [vmem:[%s9679_s27 + $0x1fe8] sm:$0xff] }
 0x41c   : > { %v3780_v27 = vpop.f32.mrb[132].mxu0  ;;  %v5060_v28 = vpop.f32.mrb[132].mxu1  ;;  %v1168_v20 = vld [vmem:[%s9679_s27 + $0x1fd0] sm:$0xff] }
 0x41d   : > { %v9218_v29 = vpack.c.bf16 %v3780_v27, %v3780_v27  ;;  %v9474_v30 = vpack.c.bf16 %v5060_v28, %v5060_v28  ;;  %v3782_v31 = vpop.f32.mrb[133].mxu0  ;;  %4044 = vmatmul.mubr.f32.gmra.mrb[238].mxu0 %v644_v23  ;;  %v5062_v32 = vpop.f32.mrb[133].mxu1  ;;  %5324 = vmatmul.mubr.f32.gmra.mrb[238].mxu1 %v1156_v24 }
 0x41e   : > { %8245 = vmatprep.mubr.msk.f32.mxu0 %vm1203_vm0, %v647_v25  ;;  %8501 = vmatprep.mubr.msk.f32.mxu1 %vm1203_vm0, %v1159_v26  ;;  %v661_v31 = vld [vmem:[%s9679_s27 + $0xff8] sm:$0xff] }
 0x41f   : > { %7612 = vst.msk [vmem:[%s10104_s26 + $0x308] sm:$0xf] %vm7417_vm2, %v9218_v29  ;;  %7868 = vst.msk [vmem:[%s10104_s26 + $0x708] sm:$0xf] %vm7417_vm2, %v9474_v30  ;;  %v658_v29 = vld [vmem:[%s9679_s27 + $0xfe0] sm:$0xff]  ;;  %v1173_v32 = vld [vmem:[%s9679_s27 + $0x1ff8] sm:$0xff] }
 0x420   : > { %v3785_v37 = vpop.f32.mrb[134].mxu0  ;;  %v5065_v38 = vpop.f32.mrb[134].mxu1  ;;  %v1170_v30 = vld [vmem:[%s9679_s27 + $0x1fe0] sm:$0xff] }
 0x421   : > { %v9219_v39 = vpack.c.bf16 %v3785_v37, %v3785_v37  ;;  %v9475_v40 = vpack.c.bf16 %v5065_v38, %v5065_v38  ;;  %v3787_v41 = vpop.f32.mrb[135].mxu0  ;;  %4049 = vmatmul.mubr.f32.gmra.mrb[240].mxu0 %v646_v33  ;;  %v5067_v42 = vpop.f32.mrb[135].mxu1  ;;  %5329 = vmatmul.mubr.f32.gmra.mrb[240].mxu1 %v1158_v34 }
 0x422   : > { %8246 = vmatprep.mubr.msk.f32.mxu0 %vm1203_vm0, %v649_v35  ;;  %8502 = vmatprep.mubr.msk.f32.mxu1 %vm1203_vm0, %v1161_v36 }
 0x423   : > { %7613 = vst.msk [vmem:[%s10104_s26 + $0x30c] sm:$0xf] %vm7417_vm2, %v9219_v39  ;;  %7869 = vst.msk [vmem:[%s10104_s26 + $0x70c] sm:$0xf] %vm7417_vm2, %v9475_v40  ;;  %v660_v39 = vld [vmem:[%s9679_s27 + $0xff0] sm:$0xff] }
 0x424   : > { %v3790_v47 = vpop.f32.mrb[136].mxu0  ;;  %v5070_v48 = vpop.f32.mrb[136].mxu1  ;;  %v1172_v40 = vld [vmem:[%s9679_s27 + $0x1ff0] sm:$0xff] }
 0x425   : > { %v9220_v49 = vpack.c.bf16 %v3790_v47, %v3790_v47  ;;  %v9476_v50 = vpack.c.bf16 %v5070_v48, %v5070_v48  ;;  %v3792_v51 = vpop.f32.mrb[137].mxu0  ;;  %4054 = vmatmul.mubr.f32.gmra.mrb[242].mxu0 %v648_v43  ;;  %v5072_v52 = vpop.f32.mrb[137].mxu1  ;;  %5334 = vmatmul.mubr.f32.gmra.mrb[242].mxu1 %v1160_v44 }
 0x426   : > { %8247 = vmatprep.mubr.msk.f32.mxu0 %vm1203_vm0, %v651_v45  ;;  %8503 = vmatprep.mubr.msk.f32.mxu1 %vm1203_vm0, %v1163_v46 }
 0x427   : > { %7614 = vst.msk [vmem:[%s10104_s26 + $0x310] sm:$0xf] %vm7417_vm2, %v9220_v49  ;;  %7870 = vst.msk [vmem:[%s10104_s26 + $0x710] sm:$0xf] %vm7417_vm2, %v9476_v50 }
 0x428   : > { %v3795_v57 = vpop.f32.mrb[138].mxu0  ;;  %v5075_v58 = vpop.f32.mrb[138].mxu1 }
 0x429   : > { %v9221_v59 = vpack.c.bf16 %v3795_v57, %v3795_v57  ;;  %v9477_v60 = vpack.c.bf16 %v5075_v58, %v5075_v58  ;;  %v3797_v61 = vpop.f32.mrb[139].mxu0  ;;  %4059 = vmatmul.mubr.f32.gmra.mrb[244].mxu0 %v650_v53  ;;  %v5077_v62 = vpop.f32.mrb[139].mxu1  ;;  %5339 = vmatmul.mubr.f32.gmra.mrb[244].mxu1 %v1162_v54 }
 0x42a   : > { %8248 = vmatprep.mubr.msk.f32.mxu0 %vm1203_vm0, %v653_v55  ;;  %8504 = vmatprep.mubr.msk.f32.mxu1 %vm1203_vm0, %v1165_v56 }
 0x42b   : > { %7615 = vst.msk [vmem:[%s10104_s26 + $0x314] sm:$0xf] %vm7417_vm2, %v9221_v59  ;;  %7871 = vst.msk [vmem:[%s10104_s26 + $0x714] sm:$0xf] %vm7417_vm2, %v9477_v60 }
 0x42c   : > { %v3800_v3 = vpop.f32.mrb[140].mxu0  ;;  %v5080_v4 = vpop.f32.mrb[140].mxu1 }
 0x42d   : > { %v9222_v5 = vpack.c.bf16 %v3800_v3, %v3800_v3  ;;  %v9478_v6 = vpack.c.bf16 %v5080_v4, %v5080_v4  ;;  %v3802_v7 = vpop.f32.mrb[141].mxu0  ;;  %4064 = vmatmul.mubr.f32.gmra.mrb[246].mxu0 %v652_v63  ;;  %v5082_v8 = vpop.f32.mrb[141].mxu1  ;;  %5344 = vmatmul.mubr.f32.gmra.mrb[246].mxu1 %v1164_v0 }
 0x42e   : > { %8249 = vmatprep.mubr.msk.f32.mxu0 %vm1203_vm0, %v655_v1  ;;  %8505 = vmatprep.mubr.msk.f32.mxu1 %vm1203_vm0, %v1167_v2 }
 0x42f   : > { %7616 = vst.msk [vmem:[%s10104_s26 + $0x318] sm:$0xf] %vm7417_vm2, %v9222_v5  ;;  %7872 = vst.msk [vmem:[%s10104_s26 + $0x718] sm:$0xf] %vm7417_vm2, %v9478_v6 }
 0x430   : > { %v3805_v13 = vpop.f32.mrb[142].mxu0  ;;  %v5085_v14 = vpop.f32.mrb[142].mxu1 }
 0x431   : > { %v9223_v15 = vpack.c.bf16 %v3805_v13, %v3805_v13  ;;  %v9479_v16 = vpack.c.bf16 %v5085_v14, %v5085_v14  ;;  %v3807_v17 = vpop.f32.mrb[143].mxu0  ;;  %4069 = vmatmul.mubr.f32.gmra.mrb[248].mxu0 %v654_v9  ;;  %v5087_v18 = vpop.f32.mrb[143].mxu1  ;;  %5349 = vmatmul.mubr.f32.gmra.mrb[248].mxu1 %v1166_v10 }
 0x432   : > { %8250 = vmatprep.mubr.msk.f32.mxu0 %vm1203_vm0, %v657_v11  ;;  %8506 = vmatprep.mubr.msk.f32.mxu1 %vm1203_vm0, %v1169_v12 }
 0x433   : > { %7617 = vst.msk [vmem:[%s10104_s26 + $0x31c] sm:$0xf] %vm7417_vm2, %v9223_v15  ;;  %7873 = vst.msk [vmem:[%s10104_s26 + $0x71c] sm:$0xf] %vm7417_vm2, %v9479_v16 }
 0x434   : > { %v3810_v23 = vpop.f32.mrb[144].mxu0  ;;  %v5090_v24 = vpop.f32.mrb[144].mxu1 }
 0x435   : > { %v9224_v25 = vpack.c.bf16 %v3810_v23, %v3810_v23  ;;  %v9480_v26 = vpack.c.bf16 %v5090_v24, %v5090_v24  ;;  %v3812_v27 = vpop.f32.mrb[145].mxu0  ;;  %4074 = vmatmul.mubr.f32.gmra.mrb[250].mxu0 %v656_v19  ;;  %v5092_v28 = vpop.f32.mrb[145].mxu1  ;;  %5354 = vmatmul.mubr.f32.gmra.mrb[250].mxu1 %v1168_v20 }
 0x436   : > { %8251 = vmatprep.mubr.msk.f32.mxu0 %vm1203_vm0, %v659_v21  ;;  %8507 = vmatprep.mubr.msk.f32.mxu1 %vm1203_vm0, %v1171_v22 }
 0x437   : > { %7618 = vst.msk [vmem:[%s10104_s26 + $0x320] sm:$0xf] %vm7417_vm2, %v9224_v25  ;;  %7874 = vst.msk [vmem:[%s10104_s26 + $0x720] sm:$0xf] %vm7417_vm2, %v9480_v26 }
 0x438   : > { %v3815_v33 = vpop.f32.mrb[146].mxu0  ;;  %v5095_v34 = vpop.f32.mrb[146].mxu1 }
 0x439   : > { %v9225_v35 = vpack.c.bf16 %v3815_v33, %v3815_v33  ;;  %v9481_v36 = vpack.c.bf16 %v5095_v34, %v5095_v34  ;;  %v3817_v37 = vpop.f32.mrb[147].mxu0  ;;  %4079 = vmatmul.mubr.f32.gmra.mrb[252].mxu0 %v658_v29  ;;  %v5097_v38 = vpop.f32.mrb[147].mxu1  ;;  %5359 = vmatmul.mubr.f32.gmra.mrb[252].mxu1 %v1170_v30 }
 0x43a   : > { %8252 = vmatprep.mubr.msk.f32.mxu0 %vm1203_vm0, %v661_v31  ;;  %8508 = vmatprep.mubr.msk.f32.mxu1 %vm1203_vm0, %v1173_v32 }
 0x43b   : > { %7619 = vst.msk [vmem:[%s10104_s26 + $0x324] sm:$0xf] %vm7417_vm2, %v9225_v35  ;;  %7875 = vst.msk [vmem:[%s10104_s26 + $0x724] sm:$0xf] %vm7417_vm2, %v9481_v36 }
 0x43c   : > { %v3820_v41 = vpop.f32.mrb[148].mxu0  ;;  %v5100_v42 = vpop.f32.mrb[148].mxu1 }
 0x43d   : > { %v9226_v43 = vpack.c.bf16 %v3820_v41, %v3820_v41  ;;  %v9482_v44 = vpack.c.bf16 %v5100_v42, %v5100_v42  ;;  %v3822_v45 = vpop.f32.mrb[149].mxu0  ;;  %4084 = vmatmul.mubr.f32.gmra.mrb[254].mxu0 %v660_v39  ;;  %v5102_v46 = vpop.f32.mrb[149].mxu1  ;;  %5364 = vmatmul.mubr.f32.gmra.mrb[254].mxu1 %v1172_v40 }
 0x43f   : > { %7620 = vst.msk [vmem:[%s10104_s26 + $0x328] sm:$0xf] %vm7417_vm2, %v9226_v43  ;;  %7876 = vst.msk [vmem:[%s10104_s26 + $0x728] sm:$0xf] %vm7417_vm2, %v9482_v44 }
 0x440   : > { %v3825_v47 = vpop.f32.mrb[150].mxu0  ;;  %v5105_v48 = vpop.f32.mrb[150].mxu1 }
 0x441   : > { %v9227_v49 = vpack.c.bf16 %v3825_v47, %v3825_v47  ;;  %v9483_v50 = vpack.c.bf16 %v5105_v48, %v5105_v48  ;;  %v3827_v51 = vpop.f32.mrb[151].mxu0  ;;  %v5107_v52 = vpop.f32.mrb[151].mxu1 }
 0x443   : > { %7621 = vst.msk [vmem:[%s10104_s26 + $0x32c] sm:$0xf] %vm7417_vm2, %v9227_v49  ;;  %7877 = vst.msk [vmem:[%s10104_s26 + $0x72c] sm:$0xf] %vm7417_vm2, %v9483_v50 }
 0x444   : > { %v3830_v53 = vpop.f32.mrb[152].mxu0  ;;  %v5110_v54 = vpop.f32.mrb[152].mxu1 }
 0x445   : > { %v9228_v55 = vpack.c.bf16 %v3830_v53, %v3830_v53  ;;  %v9484_v56 = vpack.c.bf16 %v5110_v54, %v5110_v54  ;;  %v3832_v57 = vpop.f32.mrb[153].mxu0  ;;  %v5112_v58 = vpop.f32.mrb[153].mxu1 }
 0x447   : > { %7622 = vst.msk [vmem:[%s10104_s26 + $0x330] sm:$0xf] %vm7417_vm2, %v9228_v55  ;;  %7878 = vst.msk [vmem:[%s10104_s26 + $0x730] sm:$0xf] %vm7417_vm2, %v9484_v56 }
 0x448   : > { %v3835_v59 = vpop.f32.mrb[154].mxu0  ;;  %v5115_v60 = vpop.f32.mrb[154].mxu1 }
 0x449   : > { %v9229_v61 = vpack.c.bf16 %v3835_v59, %v3835_v59  ;;  %v9485_v62 = vpack.c.bf16 %v5115_v60, %v5115_v60  ;;  %v3837_v63 = vpop.f32.mrb[155].mxu0  ;;  %v5117_v0 = vpop.f32.mrb[155].mxu1 }
 0x44b   : > { %7623 = vst.msk [vmem:[%s10104_s26 + $0x334] sm:$0xf] %vm7417_vm2, %v9229_v61  ;;  %7879 = vst.msk [vmem:[%s10104_s26 + $0x734] sm:$0xf] %vm7417_vm2, %v9485_v62 }
 0x44c   : > { %v3840_v1 = vpop.f32.mrb[156].mxu0  ;;  %v5120_v2 = vpop.f32.mrb[156].mxu1 }
 0x44d   : > { %v9230_v3 = vpack.c.bf16 %v3840_v1, %v3840_v1  ;;  %v9486_v4 = vpack.c.bf16 %v5120_v2, %v5120_v2  ;;  %v3842_v5 = vpop.f32.mrb[157].mxu0  ;;  %v5122_v6 = vpop.f32.mrb[157].mxu1 }
 0x44f   : > { %7624 = vst.msk [vmem:[%s10104_s26 + $0x338] sm:$0xf] %vm7417_vm2, %v9230_v3  ;;  %7880 = vst.msk [vmem:[%s10104_s26 + $0x738] sm:$0xf] %vm7417_vm2, %v9486_v4 }
 0x450   : > { %v3845_v7 = vpop.f32.mrb[158].mxu0  ;;  %v5125_v8 = vpop.f32.mrb[158].mxu1 }
 0x451   : > { %v9231_v9 = vpack.c.bf16 %v3845_v7, %v3845_v7  ;;  %v9487_v10 = vpack.c.bf16 %v5125_v8, %v5125_v8  ;;  %v3847_v11 = vpop.f32.mrb[159].mxu0  ;;  %v5127_v12 = vpop.f32.mrb[159].mxu1 }
 0x453   : > { %7625 = vst.msk [vmem:[%s10104_s26 + $0x33c] sm:$0xf] %vm7417_vm2, %v9231_v9  ;;  %7881 = vst.msk [vmem:[%s10104_s26 + $0x73c] sm:$0xf] %vm7417_vm2, %v9487_v10 }
 0x454   : > { %v3850_v13 = vpop.f32.mrb[160].mxu0  ;;  %v5130_v14 = vpop.f32.mrb[160].mxu1 }
 0x455   : > { %v9232_v15 = vpack.c.bf16 %v3850_v13, %v3850_v13  ;;  %v9488_v16 = vpack.c.bf16 %v5130_v14, %v5130_v14  ;;  %v3852_v17 = vpop.f32.mrb[161].mxu0  ;;  %v5132_v18 = vpop.f32.mrb[161].mxu1 }
 0x457   : > { %7626 = vst.msk [vmem:[%s10104_s26 + $0x340] sm:$0xf] %vm7417_vm2, %v9232_v15  ;;  %7882 = vst.msk [vmem:[%s10104_s26 + $0x740] sm:$0xf] %vm7417_vm2, %v9488_v16 }
 0x458   : > { %v3855_v19 = vpop.f32.mrb[162].mxu0  ;;  %v5135_v20 = vpop.f32.mrb[162].mxu1 }
 0x459   : > { %v9233_v21 = vpack.c.bf16 %v3855_v19, %v3855_v19  ;;  %v9489_v22 = vpack.c.bf16 %v5135_v20, %v5135_v20  ;;  %v3857_v23 = vpop.f32.mrb[163].mxu0  ;;  %v5137_v24 = vpop.f32.mrb[163].mxu1 }
 0x45b   : > { %7627 = vst.msk [vmem:[%s10104_s26 + $0x344] sm:$0xf] %vm7417_vm2, %v9233_v21  ;;  %7883 = vst.msk [vmem:[%s10104_s26 + $0x744] sm:$0xf] %vm7417_vm2, %v9489_v22 }
 0x45c   : > { %v3860_v25 = vpop.f32.mrb[164].mxu0  ;;  %v5140_v26 = vpop.f32.mrb[164].mxu1 }
 0x45d   : > { %v9234_v27 = vpack.c.bf16 %v3860_v25, %v3860_v25  ;;  %v9490_v28 = vpack.c.bf16 %v5140_v26, %v5140_v26  ;;  %v3862_v29 = vpop.f32.mrb[165].mxu0  ;;  %v5142_v30 = vpop.f32.mrb[165].mxu1 }
 0x45f   : > { %7628 = vst.msk [vmem:[%s10104_s26 + $0x348] sm:$0xf] %vm7417_vm2, %v9234_v27  ;;  %7884 = vst.msk [vmem:[%s10104_s26 + $0x748] sm:$0xf] %vm7417_vm2, %v9490_v28 }
 0x460   : > { %v3865_v31 = vpop.f32.mrb[166].mxu0  ;;  %v5145_v32 = vpop.f32.mrb[166].mxu1 }
 0x461   : > { %v9235_v33 = vpack.c.bf16 %v3865_v31, %v3865_v31  ;;  %v9491_v34 = vpack.c.bf16 %v5145_v32, %v5145_v32  ;;  %v3867_v35 = vpop.f32.mrb[167].mxu0  ;;  %v5147_v36 = vpop.f32.mrb[167].mxu1 }
 0x463   : > { %7629 = vst.msk [vmem:[%s10104_s26 + $0x34c] sm:$0xf] %vm7417_vm2, %v9235_v33  ;;  %7885 = vst.msk [vmem:[%s10104_s26 + $0x74c] sm:$0xf] %vm7417_vm2, %v9491_v34 }
 0x464   : > { %v3870_v37 = vpop.f32.mrb[168].mxu0  ;;  %v5150_v38 = vpop.f32.mrb[168].mxu1 }
 0x465   : > { %v9236_v39 = vpack.c.bf16 %v3870_v37, %v3870_v37  ;;  %v9492_v40 = vpack.c.bf16 %v5150_v38, %v5150_v38  ;;  %v3872_v41 = vpop.f32.mrb[169].mxu0  ;;  %v5152_v42 = vpop.f32.mrb[169].mxu1 }
 0x467   : > { %7630 = vst.msk [vmem:[%s10104_s26 + $0x350] sm:$0xf] %vm7417_vm2, %v9236_v39  ;;  %7886 = vst.msk [vmem:[%s10104_s26 + $0x750] sm:$0xf] %vm7417_vm2, %v9492_v40 }
 0x468   : > { %v3875_v43 = vpop.f32.mrb[170].mxu0  ;;  %v5155_v44 = vpop.f32.mrb[170].mxu1 }
 0x469   : > { %v9237_v45 = vpack.c.bf16 %v3875_v43, %v3875_v43  ;;  %v9493_v46 = vpack.c.bf16 %v5155_v44, %v5155_v44  ;;  %v3877_v47 = vpop.f32.mrb[171].mxu0  ;;  %v5157_v48 = vpop.f32.mrb[171].mxu1 }
 0x46b   : > { %7631 = vst.msk [vmem:[%s10104_s26 + $0x354] sm:$0xf] %vm7417_vm2, %v9237_v45  ;;  %7887 = vst.msk [vmem:[%s10104_s26 + $0x754] sm:$0xf] %vm7417_vm2, %v9493_v46 }
 0x46c   : > { %v3880_v49 = vpop.f32.mrb[172].mxu0  ;;  %v5160_v50 = vpop.f32.mrb[172].mxu1 }
 0x46d   : > { %v9238_v51 = vpack.c.bf16 %v3880_v49, %v3880_v49  ;;  %v9494_v52 = vpack.c.bf16 %v5160_v50, %v5160_v50  ;;  %v3882_v53 = vpop.f32.mrb[173].mxu0  ;;  %v5162_v54 = vpop.f32.mrb[173].mxu1 }
 0x46f   : > { %7632 = vst.msk [vmem:[%s10104_s26 + $0x358] sm:$0xf] %vm7417_vm2, %v9238_v51  ;;  %7888 = vst.msk [vmem:[%s10104_s26 + $0x758] sm:$0xf] %vm7417_vm2, %v9494_v52 }
 0x470   : > { %v3885_v55 = vpop.f32.mrb[174].mxu0  ;;  %v5165_v56 = vpop.f32.mrb[174].mxu1 }
 0x471   : > { %v9239_v57 = vpack.c.bf16 %v3885_v55, %v3885_v55  ;;  %v9495_v58 = vpack.c.bf16 %v5165_v56, %v5165_v56  ;;  %v3887_v59 = vpop.f32.mrb[175].mxu0  ;;  %v5167_v60 = vpop.f32.mrb[175].mxu1 }
 0x473   : > { %7633 = vst.msk [vmem:[%s10104_s26 + $0x35c] sm:$0xf] %vm7417_vm2, %v9239_v57  ;;  %7889 = vst.msk [vmem:[%s10104_s26 + $0x75c] sm:$0xf] %vm7417_vm2, %v9495_v58 }
 0x474   : > { %v3890_v61 = vpop.f32.mrb[176].mxu0  ;;  %v5170_v62 = vpop.f32.mrb[176].mxu1 }
 0x475   : > { %v9240_v63 = vpack.c.bf16 %v3890_v61, %v3890_v61  ;;  %v9496_v0 = vpack.c.bf16 %v5170_v62, %v5170_v62  ;;  %v3892_v1 = vpop.f32.mrb[177].mxu0  ;;  %v5172_v2 = vpop.f32.mrb[177].mxu1 }
 0x477   : > { %7634 = vst.msk [vmem:[%s10104_s26 + $0x360] sm:$0xf] %vm7417_vm2, %v9240_v63  ;;  %7890 = vst.msk [vmem:[%s10104_s26 + $0x760] sm:$0xf] %vm7417_vm2, %v9496_v0 }
 0x478   : > { %v3895_v3 = vpop.f32.mrb[178].mxu0  ;;  %v5175_v4 = vpop.f32.mrb[178].mxu1 }
 0x479   : > { %v9241_v5 = vpack.c.bf16 %v3895_v3, %v3895_v3  ;;  %v9497_v6 = vpack.c.bf16 %v5175_v4, %v5175_v4  ;;  %v3897_v7 = vpop.f32.mrb[179].mxu0  ;;  %v5177_v8 = vpop.f32.mrb[179].mxu1 }
 0x47b   : > { %7635 = vst.msk [vmem:[%s10104_s26 + $0x364] sm:$0xf] %vm7417_vm2, %v9241_v5  ;;  %7891 = vst.msk [vmem:[%s10104_s26 + $0x764] sm:$0xf] %vm7417_vm2, %v9497_v6 }
 0x47c   : > { %v3900_v9 = vpop.f32.mrb[180].mxu0  ;;  %v5180_v10 = vpop.f32.mrb[180].mxu1 }
 0x47d   : > { %v9242_v11 = vpack.c.bf16 %v3900_v9, %v3900_v9  ;;  %v9498_v12 = vpack.c.bf16 %v5180_v10, %v5180_v10  ;;  %v3902_v13 = vpop.f32.mrb[181].mxu0  ;;  %v5182_v14 = vpop.f32.mrb[181].mxu1 }
 0x47f   : > { %7636 = vst.msk [vmem:[%s10104_s26 + $0x368] sm:$0xf] %vm7417_vm2, %v9242_v11  ;;  %7892 = vst.msk [vmem:[%s10104_s26 + $0x768] sm:$0xf] %vm7417_vm2, %v9498_v12 }
 0x480   : > { %v3905_v15 = vpop.f32.mrb[182].mxu0  ;;  %v5185_v16 = vpop.f32.mrb[182].mxu1 }
 0x481   : > { %v9243_v17 = vpack.c.bf16 %v3905_v15, %v3905_v15  ;;  %v9499_v18 = vpack.c.bf16 %v5185_v16, %v5185_v16  ;;  %v3907_v19 = vpop.f32.mrb[183].mxu0  ;;  %v5187_v20 = vpop.f32.mrb[183].mxu1 }
 0x483   : > { %7637 = vst.msk [vmem:[%s10104_s26 + $0x36c] sm:$0xf] %vm7417_vm2, %v9243_v17  ;;  %7893 = vst.msk [vmem:[%s10104_s26 + $0x76c] sm:$0xf] %vm7417_vm2, %v9499_v18 }
 0x484   : > { %v3910_v21 = vpop.f32.mrb[184].mxu0  ;;  %v5190_v22 = vpop.f32.mrb[184].mxu1 }
 0x485   : > { %v9244_v23 = vpack.c.bf16 %v3910_v21, %v3910_v21  ;;  %v9500_v24 = vpack.c.bf16 %v5190_v22, %v5190_v22  ;;  %v3912_v25 = vpop.f32.mrb[185].mxu0  ;;  %v5192_v26 = vpop.f32.mrb[185].mxu1 }
 0x487   : > { %7638 = vst.msk [vmem:[%s10104_s26 + $0x370] sm:$0xf] %vm7417_vm2, %v9244_v23  ;;  %7894 = vst.msk [vmem:[%s10104_s26 + $0x770] sm:$0xf] %vm7417_vm2, %v9500_v24 }
 0x488   : > { %v3915_v27 = vpop.f32.mrb[186].mxu0  ;;  %v5195_v28 = vpop.f32.mrb[186].mxu1 }
 0x489   : > { %v9245_v29 = vpack.c.bf16 %v3915_v27, %v3915_v27  ;;  %v9501_v30 = vpack.c.bf16 %v5195_v28, %v5195_v28  ;;  %v3917_v31 = vpop.f32.mrb[187].mxu0  ;;  %v5197_v32 = vpop.f32.mrb[187].mxu1 }
 0x48b   : > { %7639 = vst.msk [vmem:[%s10104_s26 + $0x374] sm:$0xf] %vm7417_vm2, %v9245_v29  ;;  %7895 = vst.msk [vmem:[%s10104_s26 + $0x774] sm:$0xf] %vm7417_vm2, %v9501_v30 }
 0x48c   : > { %v3920_v33 = vpop.f32.mrb[188].mxu0  ;;  %v5200_v34 = vpop.f32.mrb[188].mxu1 }
 0x48d   : > { %v9246_v35 = vpack.c.bf16 %v3920_v33, %v3920_v33  ;;  %v9502_v36 = vpack.c.bf16 %v5200_v34, %v5200_v34  ;;  %v3922_v37 = vpop.f32.mrb[189].mxu0  ;;  %v5202_v38 = vpop.f32.mrb[189].mxu1 }
 0x48f   : > { %7640 = vst.msk [vmem:[%s10104_s26 + $0x378] sm:$0xf] %vm7417_vm2, %v9246_v35  ;;  %7896 = vst.msk [vmem:[%s10104_s26 + $0x778] sm:$0xf] %vm7417_vm2, %v9502_v36 }
 0x490   : > { %v3925_v39 = vpop.f32.mrb[190].mxu0  ;;  %v5205_v40 = vpop.f32.mrb[190].mxu1 }
 0x491   : > { %v9247_v41 = vpack.c.bf16 %v3925_v39, %v3925_v39  ;;  %v9503_v42 = vpack.c.bf16 %v5205_v40, %v5205_v40  ;;  %v3927_v43 = vpop.f32.mrb[191].mxu0  ;;  %v5207_v44 = vpop.f32.mrb[191].mxu1 }
 0x493   : > { %7641 = vst.msk [vmem:[%s10104_s26 + $0x37c] sm:$0xf] %vm7417_vm2, %v9247_v41  ;;  %7897 = vst.msk [vmem:[%s10104_s26 + $0x77c] sm:$0xf] %vm7417_vm2, %v9503_v42 }
 0x494   : > { %v3930_v45 = vpop.f32.mrb[192].mxu0  ;;  %v5210_v46 = vpop.f32.mrb[192].mxu1 }
 0x495   : > { %v9248_v47 = vpack.c.bf16 %v3930_v45, %v3930_v45  ;;  %v9504_v48 = vpack.c.bf16 %v5210_v46, %v5210_v46  ;;  %v3932_v49 = vpop.f32.mrb[193].mxu0  ;;  %v5212_v50 = vpop.f32.mrb[193].mxu1 }
 0x497   : > { %7642 = vst.msk [vmem:[%s10104_s26 + $0x380] sm:$0xf] %vm7417_vm2, %v9248_v47  ;;  %7898 = vst.msk [vmem:[%s10104_s26 + $0x780] sm:$0xf] %vm7417_vm2, %v9504_v48 }
 0x498   : > { %v3935_v51 = vpop.f32.mrb[194].mxu0  ;;  %v5215_v52 = vpop.f32.mrb[194].mxu1 }
 0x499   : > { %v9249_v53 = vpack.c.bf16 %v3935_v51, %v3935_v51  ;;  %v9505_v54 = vpack.c.bf16 %v5215_v52, %v5215_v52  ;;  %v3937_v55 = vpop.f32.mrb[195].mxu0  ;;  %v5217_v56 = vpop.f32.mrb[195].mxu1 }
 0x49b   : > { %7643 = vst.msk [vmem:[%s10104_s26 + $0x384] sm:$0xf] %vm7417_vm2, %v9249_v53  ;;  %7899 = vst.msk [vmem:[%s10104_s26 + $0x784] sm:$0xf] %vm7417_vm2, %v9505_v54 }
 0x49c   : > { %v3940_v57 = vpop.f32.mrb[196].mxu0  ;;  %v5220_v58 = vpop.f32.mrb[196].mxu1 }
 0x49d   : > { %v9250_v59 = vpack.c.bf16 %v3940_v57, %v3940_v57  ;;  %v9506_v60 = vpack.c.bf16 %v5220_v58, %v5220_v58  ;;  %v3942_v61 = vpop.f32.mrb[197].mxu0  ;;  %v5222_v62 = vpop.f32.mrb[197].mxu1 }
 0x49f   : > { %7644 = vst.msk [vmem:[%s10104_s26 + $0x388] sm:$0xf] %vm7417_vm2, %v9250_v59  ;;  %7900 = vst.msk [vmem:[%s10104_s26 + $0x788] sm:$0xf] %vm7417_vm2, %v9506_v60 }
 0x4a0   : > { %v3945_v63 = vpop.f32.mrb[198].mxu0  ;;  %v5225_v0 = vpop.f32.mrb[198].mxu1 }
 0x4a1   : > { %v9251_v1 = vpack.c.bf16 %v3945_v63, %v3945_v63  ;;  %v9507_v2 = vpack.c.bf16 %v5225_v0, %v5225_v0  ;;  %v3947_v3 = vpop.f32.mrb[199].mxu0  ;;  %v5227_v4 = vpop.f32.mrb[199].mxu1 }
 0x4a3   : > { %7645 = vst.msk [vmem:[%s10104_s26 + $0x38c] sm:$0xf] %vm7417_vm2, %v9251_v1  ;;  %7901 = vst.msk [vmem:[%s10104_s26 + $0x78c] sm:$0xf] %vm7417_vm2, %v9507_v2 }
 0x4a4   : > { %v3950_v5 = vpop.f32.mrb[200].mxu0  ;;  %v5230_v6 = vpop.f32.mrb[200].mxu1 }
 0x4a5   : > { %v9252_v7 = vpack.c.bf16 %v3950_v5, %v3950_v5  ;;  %v9508_v8 = vpack.c.bf16 %v5230_v6, %v5230_v6  ;;  %v3952_v9 = vpop.f32.mrb[201].mxu0  ;;  %v5232_v10 = vpop.f32.mrb[201].mxu1 }
 0x4a7   : > { %7646 = vst.msk [vmem:[%s10104_s26 + $0x390] sm:$0xf] %vm7417_vm2, %v9252_v7  ;;  %7902 = vst.msk [vmem:[%s10104_s26 + $0x790] sm:$0xf] %vm7417_vm2, %v9508_v8 }
 0x4a8   : > { %v3955_v11 = vpop.f32.mrb[202].mxu0  ;;  %v5235_v12 = vpop.f32.mrb[202].mxu1 }
 0x4a9   : > { %v9253_v13 = vpack.c.bf16 %v3955_v11, %v3955_v11  ;;  %v9509_v14 = vpack.c.bf16 %v5235_v12, %v5235_v12  ;;  %v3957_v15 = vpop.f32.mrb[203].mxu0  ;;  %v5237_v16 = vpop.f32.mrb[203].mxu1 }
 0x4ab   : > { %7647 = vst.msk [vmem:[%s10104_s26 + $0x394] sm:$0xf] %vm7417_vm2, %v9253_v13  ;;  %7903 = vst.msk [vmem:[%s10104_s26 + $0x794] sm:$0xf] %vm7417_vm2, %v9509_v14 }
 0x4ac   : > { %v3960_v17 = vpop.f32.mrb[204].mxu0  ;;  %v5240_v18 = vpop.f32.mrb[204].mxu1 }
 0x4ad   : > { %v9254_v19 = vpack.c.bf16 %v3960_v17, %v3960_v17  ;;  %v9510_v20 = vpack.c.bf16 %v5240_v18, %v5240_v18  ;;  %v3962_v21 = vpop.f32.mrb[205].mxu0  ;;  %v5242_v22 = vpop.f32.mrb[205].mxu1 }
 0x4af   : > { %7648 = vst.msk [vmem:[%s10104_s26 + $0x398] sm:$0xf] %vm7417_vm2, %v9254_v19  ;;  %7904 = vst.msk [vmem:[%s10104_s26 + $0x798] sm:$0xf] %vm7417_vm2, %v9510_v20 }
 0x4b0   : > { %v3965_v23 = vpop.f32.mrb[206].mxu0  ;;  %v5245_v24 = vpop.f32.mrb[206].mxu1 }
 0x4b1   : > { %v9255_v25 = vpack.c.bf16 %v3965_v23, %v3965_v23  ;;  %v9511_v26 = vpack.c.bf16 %v5245_v24, %v5245_v24  ;;  %v3967_v27 = vpop.f32.mrb[207].mxu0  ;;  %v5247_v28 = vpop.f32.mrb[207].mxu1 }
 0x4b3   : > { %7649 = vst.msk [vmem:[%s10104_s26 + $0x39c] sm:$0xf] %vm7417_vm2, %v9255_v25  ;;  %7905 = vst.msk [vmem:[%s10104_s26 + $0x79c] sm:$0xf] %vm7417_vm2, %v9511_v26 }
 0x4b4   : > { %v3970_v29 = vpop.f32.mrb[208].mxu0  ;;  %v5250_v30 = vpop.f32.mrb[208].mxu1 }
 0x4b5   : > { %v9256_v31 = vpack.c.bf16 %v3970_v29, %v3970_v29  ;;  %v9512_v32 = vpack.c.bf16 %v5250_v30, %v5250_v30  ;;  %v3972_v33 = vpop.f32.mrb[209].mxu0  ;;  %v5252_v34 = vpop.f32.mrb[209].mxu1 }
 0x4b7   : > { %7650 = vst.msk [vmem:[%s10104_s26 + $0x3a0] sm:$0xf] %vm7417_vm2, %v9256_v31  ;;  %7906 = vst.msk [vmem:[%s10104_s26 + $0x7a0] sm:$0xf] %vm7417_vm2, %v9512_v32 }
 0x4b8   : > { %v3975_v35 = vpop.f32.mrb[210].mxu0  ;;  %v5255_v36 = vpop.f32.mrb[210].mxu1 }
 0x4b9   : > { %v9257_v37 = vpack.c.bf16 %v3975_v35, %v3975_v35  ;;  %v9513_v38 = vpack.c.bf16 %v5255_v36, %v5255_v36  ;;  %v3977_v39 = vpop.f32.mrb[211].mxu0  ;;  %v5257_v40 = vpop.f32.mrb[211].mxu1 }
 0x4bb   : > { %7651 = vst.msk [vmem:[%s10104_s26 + $0x3a4] sm:$0xf] %vm7417_vm2, %v9257_v37  ;;  %7907 = vst.msk [vmem:[%s10104_s26 + $0x7a4] sm:$0xf] %vm7417_vm2, %v9513_v38 }
 0x4bc   : > { %v3980_v41 = vpop.f32.mrb[212].mxu0  ;;  %v5260_v42 = vpop.f32.mrb[212].mxu1 }
 0x4bd   : > { %v9258_v43 = vpack.c.bf16 %v3980_v41, %v3980_v41  ;;  %v9514_v44 = vpack.c.bf16 %v5260_v42, %v5260_v42  ;;  %v3982_v45 = vpop.f32.mrb[213].mxu0  ;;  %v5262_v46 = vpop.f32.mrb[213].mxu1 }
 0x4bf   : > { %7652 = vst.msk [vmem:[%s10104_s26 + $0x3a8] sm:$0xf] %vm7417_vm2, %v9258_v43  ;;  %7908 = vst.msk [vmem:[%s10104_s26 + $0x7a8] sm:$0xf] %vm7417_vm2, %v9514_v44 }
 0x4c0   : > { %v3985_v47 = vpop.f32.mrb[214].mxu0  ;;  %v5265_v48 = vpop.f32.mrb[214].mxu1 }
 0x4c1   : > { %v9259_v49 = vpack.c.bf16 %v3985_v47, %v3985_v47  ;;  %v9515_v50 = vpack.c.bf16 %v5265_v48, %v5265_v48  ;;  %v3987_v51 = vpop.f32.mrb[215].mxu0  ;;  %v5267_v52 = vpop.f32.mrb[215].mxu1 }
 0x4c3   : > { %7653 = vst.msk [vmem:[%s10104_s26 + $0x3ac] sm:$0xf] %vm7417_vm2, %v9259_v49  ;;  %7909 = vst.msk [vmem:[%s10104_s26 + $0x7ac] sm:$0xf] %vm7417_vm2, %v9515_v50 }
 0x4c4   : > { %v3990_v53 = vpop.f32.mrb[216].mxu0  ;;  %v5270_v54 = vpop.f32.mrb[216].mxu1 }
 0x4c5   : > { %v9260_v55 = vpack.c.bf16 %v3990_v53, %v3990_v53  ;;  %v9516_v56 = vpack.c.bf16 %v5270_v54, %v5270_v54  ;;  %v3992_v57 = vpop.f32.mrb[217].mxu0  ;;  %v5272_v58 = vpop.f32.mrb[217].mxu1 }
 0x4c7   : > { %7654 = vst.msk [vmem:[%s10104_s26 + $0x3b0] sm:$0xf] %vm7417_vm2, %v9260_v55  ;;  %7910 = vst.msk [vmem:[%s10104_s26 + $0x7b0] sm:$0xf] %vm7417_vm2, %v9516_v56 }
 0x4c8   : > { %v3995_v59 = vpop.f32.mrb[218].mxu0  ;;  %v5275_v60 = vpop.f32.mrb[218].mxu1 }
 0x4c9   : > { %v9261_v61 = vpack.c.bf16 %v3995_v59, %v3995_v59  ;;  %v9517_v62 = vpack.c.bf16 %v5275_v60, %v5275_v60  ;;  %v3997_v63 = vpop.f32.mrb[219].mxu0  ;;  %v5277_v0 = vpop.f32.mrb[219].mxu1 }
 0x4cb   : > { %7655 = vst.msk [vmem:[%s10104_s26 + $0x3b4] sm:$0xf] %vm7417_vm2, %v9261_v61  ;;  %7911 = vst.msk [vmem:[%s10104_s26 + $0x7b4] sm:$0xf] %vm7417_vm2, %v9517_v62 }
 0x4cc   : > { %v4000_v1 = vpop.f32.mrb[220].mxu0  ;;  %v5280_v2 = vpop.f32.mrb[220].mxu1 }
 0x4cd   : > { %v9262_v3 = vpack.c.bf16 %v4000_v1, %v4000_v1  ;;  %v9518_v4 = vpack.c.bf16 %v5280_v2, %v5280_v2  ;;  %v4002_v5 = vpop.f32.mrb[221].mxu0  ;;  %v5282_v6 = vpop.f32.mrb[221].mxu1 }
 0x4cf   : > { %7656 = vst.msk [vmem:[%s10104_s26 + $0x3b8] sm:$0xf] %vm7417_vm2, %v9262_v3  ;;  %7912 = vst.msk [vmem:[%s10104_s26 + $0x7b8] sm:$0xf] %vm7417_vm2, %v9518_v4 }
 0x4d0   : > { %v4005_v7 = vpop.f32.mrb[222].mxu0  ;;  %v5285_v8 = vpop.f32.mrb[222].mxu1 }
 0x4d1   : > { %v9263_v9 = vpack.c.bf16 %v4005_v7, %v4005_v7  ;;  %v9519_v10 = vpack.c.bf16 %v5285_v8, %v5285_v8  ;;  %v4007_v11 = vpop.f32.mrb[223].mxu0  ;;  %v5287_v12 = vpop.f32.mrb[223].mxu1 }
 0x4d3   : > { %7657 = vst.msk [vmem:[%s10104_s26 + $0x3bc] sm:$0xf] %vm7417_vm2, %v9263_v9  ;;  %7913 = vst.msk [vmem:[%s10104_s26 + $0x7bc] sm:$0xf] %vm7417_vm2, %v9519_v10 }
 0x4d4   : > { %v4010_v13 = vpop.f32.mrb[224].mxu0  ;;  %v5290_v14 = vpop.f32.mrb[224].mxu1 }
 0x4d5   : > { %v9264_v15 = vpack.c.bf16 %v4010_v13, %v4010_v13  ;;  %v9520_v16 = vpack.c.bf16 %v5290_v14, %v5290_v14  ;;  %v4012_v17 = vpop.f32.mrb[225].mxu0  ;;  %v5292_v18 = vpop.f32.mrb[225].mxu1 }
 0x4d7   : > { %7658 = vst.msk [vmem:[%s10104_s26 + $0x3c0] sm:$0xf] %vm7417_vm2, %v9264_v15  ;;  %7914 = vst.msk [vmem:[%s10104_s26 + $0x7c0] sm:$0xf] %vm7417_vm2, %v9520_v16 }
 0x4d8   : > { %v4015_v19 = vpop.f32.mrb[226].mxu0  ;;  %v5295_v20 = vpop.f32.mrb[226].mxu1 }
 0x4d9   : > { %v9265_v21 = vpack.c.bf16 %v4015_v19, %v4015_v19  ;;  %v9521_v22 = vpack.c.bf16 %v5295_v20, %v5295_v20  ;;  %v4017_v23 = vpop.f32.mrb[227].mxu0  ;;  %v5297_v24 = vpop.f32.mrb[227].mxu1 }
 0x4db   : > { %7659 = vst.msk [vmem:[%s10104_s26 + $0x3c4] sm:$0xf] %vm7417_vm2, %v9265_v21  ;;  %7915 = vst.msk [vmem:[%s10104_s26 + $0x7c4] sm:$0xf] %vm7417_vm2, %v9521_v22 }
 0x4dc   : > { %v4020_v25 = vpop.f32.mrb[228].mxu0  ;;  %v5300_v26 = vpop.f32.mrb[228].mxu1 }
 0x4dd   : > { %v9266_v27 = vpack.c.bf16 %v4020_v25, %v4020_v25  ;;  %v9522_v28 = vpack.c.bf16 %v5300_v26, %v5300_v26  ;;  %v4022_v29 = vpop.f32.mrb[229].mxu0  ;;  %v5302_v30 = vpop.f32.mrb[229].mxu1 }
 0x4df   : > { %7660 = vst.msk [vmem:[%s10104_s26 + $0x3c8] sm:$0xf] %vm7417_vm2, %v9266_v27  ;;  %7916 = vst.msk [vmem:[%s10104_s26 + $0x7c8] sm:$0xf] %vm7417_vm2, %v9522_v28 }
 0x4e0   : > { %v4025_v31 = vpop.f32.mrb[230].mxu0  ;;  %v5305_v32 = vpop.f32.mrb[230].mxu1 }
 0x4e1   : > { %v9267_v33 = vpack.c.bf16 %v4025_v31, %v4025_v31  ;;  %v9523_v34 = vpack.c.bf16 %v5305_v32, %v5305_v32  ;;  %v4027_v35 = vpop.f32.mrb[231].mxu0  ;;  %v5307_v36 = vpop.f32.mrb[231].mxu1 }
 0x4e3   : > { %7661 = vst.msk [vmem:[%s10104_s26 + $0x3cc] sm:$0xf] %vm7417_vm2, %v9267_v33  ;;  %7917 = vst.msk [vmem:[%s10104_s26 + $0x7cc] sm:$0xf] %vm7417_vm2, %v9523_v34 }
 0x4e4   : > { %v4030_v37 = vpop.f32.mrb[232].mxu0  ;;  %v5310_v38 = vpop.f32.mrb[232].mxu1 }
 0x4e5   : > { %v9268_v39 = vpack.c.bf16 %v4030_v37, %v4030_v37  ;;  %v9524_v40 = vpack.c.bf16 %v5310_v38, %v5310_v38  ;;  %v4032_v41 = vpop.f32.mrb[233].mxu0  ;;  %v5312_v42 = vpop.f32.mrb[233].mxu1 }
 0x4e7   : > { %7662 = vst.msk [vmem:[%s10104_s26 + $0x3d0] sm:$0xf] %vm7417_vm2, %v9268_v39  ;;  %7918 = vst.msk [vmem:[%s10104_s26 + $0x7d0] sm:$0xf] %vm7417_vm2, %v9524_v40 }
 0x4e8   : > { %v4035_v43 = vpop.f32.mrb[234].mxu0  ;;  %v5315_v44 = vpop.f32.mrb[234].mxu1 }
 0x4e9   : > { %v9269_v45 = vpack.c.bf16 %v4035_v43, %v4035_v43  ;;  %v9525_v46 = vpack.c.bf16 %v5315_v44, %v5315_v44  ;;  %v4037_v47 = vpop.f32.mrb[235].mxu0  ;;  %v5317_v48 = vpop.f32.mrb[235].mxu1 }
 0x4eb   : > { %7663 = vst.msk [vmem:[%s10104_s26 + $0x3d4] sm:$0xf] %vm7417_vm2, %v9269_v45  ;;  %7919 = vst.msk [vmem:[%s10104_s26 + $0x7d4] sm:$0xf] %vm7417_vm2, %v9525_v46 }
 0x4ec   : > { %v4040_v49 = vpop.f32.mrb[236].mxu0  ;;  %v5320_v50 = vpop.f32.mrb[236].mxu1 }
 0x4ed   : > { %v9270_v51 = vpack.c.bf16 %v4040_v49, %v4040_v49  ;;  %v9526_v52 = vpack.c.bf16 %v5320_v50, %v5320_v50  ;;  %v4042_v53 = vpop.f32.mrb[237].mxu0  ;;  %v5322_v54 = vpop.f32.mrb[237].mxu1 }
 0x4ef   : > { %7664 = vst.msk [vmem:[%s10104_s26 + $0x3d8] sm:$0xf] %vm7417_vm2, %v9270_v51  ;;  %7920 = vst.msk [vmem:[%s10104_s26 + $0x7d8] sm:$0xf] %vm7417_vm2, %v9526_v52 }
 0x4f0   : > { %v4045_v55 = vpop.f32.mrb[238].mxu0  ;;  %v5325_v56 = vpop.f32.mrb[238].mxu1 }
 0x4f1   : > { %v9271_v57 = vpack.c.bf16 %v4045_v55, %v4045_v55  ;;  %v9527_v58 = vpack.c.bf16 %v5325_v56, %v5325_v56  ;;  %v4047_v59 = vpop.f32.mrb[239].mxu0  ;;  %v5327_v60 = vpop.f32.mrb[239].mxu1 }
 0x4f3   : > { %7665 = vst.msk [vmem:[%s10104_s26 + $0x3dc] sm:$0xf] %vm7417_vm2, %v9271_v57  ;;  %7921 = vst.msk [vmem:[%s10104_s26 + $0x7dc] sm:$0xf] %vm7417_vm2, %v9527_v58 }
 0x4f4   : > { %v4050_v61 = vpop.f32.mrb[240].mxu0  ;;  %v5330_v62 = vpop.f32.mrb[240].mxu1 }
 0x4f5   : > { %v9272_v63 = vpack.c.bf16 %v4050_v61, %v4050_v61  ;;  %v9528_v0 = vpack.c.bf16 %v5330_v62, %v5330_v62  ;;  %v4052_v1 = vpop.f32.mrb[241].mxu0  ;;  %v5332_v2 = vpop.f32.mrb[241].mxu1 }
 0x4f7   : > { %7666 = vst.msk [vmem:[%s10104_s26 + $0x3e0] sm:$0xf] %vm7417_vm2, %v9272_v63  ;;  %7922 = vst.msk [vmem:[%s10104_s26 + $0x7e0] sm:$0xf] %vm7417_vm2, %v9528_v0 }
 0x4f8   : > { %v4055_v3 = vpop.f32.mrb[242].mxu0  ;;  %v5335_v4 = vpop.f32.mrb[242].mxu1 }
 0x4f9   : > { %v9273_v5 = vpack.c.bf16 %v4055_v3, %v4055_v3  ;;  %v9529_v6 = vpack.c.bf16 %v5335_v4, %v5335_v4  ;;  %v4057_v7 = vpop.f32.mrb[243].mxu0  ;;  %v5337_v8 = vpop.f32.mrb[243].mxu1 }
 0x4fb   : > { %7667 = vst.msk [vmem:[%s10104_s26 + $0x3e4] sm:$0xf] %vm7417_vm2, %v9273_v5  ;;  %7923 = vst.msk [vmem:[%s10104_s26 + $0x7e4] sm:$0xf] %vm7417_vm2, %v9529_v6 }
 0x4fc   : > { %v4060_v9 = vpop.f32.mrb[244].mxu0  ;;  %v5340_v10 = vpop.f32.mrb[244].mxu1 }
 0x4fd   : > { %v9274_v11 = vpack.c.bf16 %v4060_v9, %v4060_v9  ;;  %v9530_v12 = vpack.c.bf16 %v5340_v10, %v5340_v10  ;;  %v4062_v13 = vpop.f32.mrb[245].mxu0  ;;  %v5342_v14 = vpop.f32.mrb[245].mxu1 }
 0x4ff   : > { %7668 = vst.msk [vmem:[%s10104_s26 + $0x3e8] sm:$0xf] %vm7417_vm2, %v9274_v11  ;;  %7924 = vst.msk [vmem:[%s10104_s26 + $0x7e8] sm:$0xf] %vm7417_vm2, %v9530_v12 }
 0x500   : > { %v4065_v15 = vpop.f32.mrb[246].mxu0  ;;  %v5345_v16 = vpop.f32.mrb[246].mxu1 }
 0x501   : > { %v9275_v17 = vpack.c.bf16 %v4065_v15, %v4065_v15  ;;  %v9531_v18 = vpack.c.bf16 %v5345_v16, %v5345_v16  ;;  %v4067_v19 = vpop.f32.mrb[247].mxu0  ;;  %v5347_v20 = vpop.f32.mrb[247].mxu1 }
 0x503   : > { %7669 = vst.msk [vmem:[%s10104_s26 + $0x3ec] sm:$0xf] %vm7417_vm2, %v9275_v17  ;;  %7925 = vst.msk [vmem:[%s10104_s26 + $0x7ec] sm:$0xf] %vm7417_vm2, %v9531_v18 }
 0x504   : > { %v4070_v21 = vpop.f32.mrb[248].mxu0  ;;  %v5350_v22 = vpop.f32.mrb[248].mxu1 }
 0x505   : > { %v9276_v23 = vpack.c.bf16 %v4070_v21, %v4070_v21  ;;  %v9532_v24 = vpack.c.bf16 %v5350_v22, %v5350_v22  ;;  %v4072_v25 = vpop.f32.mrb[249].mxu0  ;;  %v5352_v26 = vpop.f32.mrb[249].mxu1 }
 0x507   : > { %7670 = vst.msk [vmem:[%s10104_s26 + $0x3f0] sm:$0xf] %vm7417_vm2, %v9276_v23  ;;  %7926 = vst.msk [vmem:[%s10104_s26 + $0x7f0] sm:$0xf] %vm7417_vm2, %v9532_v24 }
 0x508   : > { %v4075_v27 = vpop.f32.mrb[250].mxu0  ;;  %v5355_v28 = vpop.f32.mrb[250].mxu1 }
 0x509   : > { %v9277_v29 = vpack.c.bf16 %v4075_v27, %v4075_v27  ;;  %v9533_v30 = vpack.c.bf16 %v5355_v28, %v5355_v28  ;;  %v4077_v31 = vpop.f32.mrb[251].mxu0  ;;  %v5357_v32 = vpop.f32.mrb[251].mxu1 }
 0x50b   : > { %7671 = vst.msk [vmem:[%s10104_s26 + $0x3f4] sm:$0xf] %vm7417_vm2, %v9277_v29  ;;  %7927 = vst.msk [vmem:[%s10104_s26 + $0x7f4] sm:$0xf] %vm7417_vm2, %v9533_v30 }
 0x50c   : > { %v4080_v33 = vpop.f32.mrb[252].mxu0  ;;  %v5360_v34 = vpop.f32.mrb[252].mxu1 }
 0x50d   : > { %v9278_v35 = vpack.c.bf16 %v4080_v33, %v4080_v33  ;;  %v9534_v36 = vpack.c.bf16 %v5360_v34, %v5360_v34  ;;  %v4082_v37 = vpop.f32.mrb[253].mxu0  ;;  %v5362_v38 = vpop.f32.mrb[253].mxu1 }
 0x50f   : > { %7672 = vst.msk [vmem:[%s10104_s26 + $0x3f8] sm:$0xf] %vm7417_vm2, %v9278_v35  ;;  %7928 = vst.msk [vmem:[%s10104_s26 + $0x7f8] sm:$0xf] %vm7417_vm2, %v9534_v36 }
 0x510   : > { %v4085_v39 = vpop.f32.mrb[254].mxu0  ;;  %v5365_v40 = vpop.f32.mrb[254].mxu1 }
 0x511   : > { %v9279_v41 = vpack.c.bf16 %v4085_v39, %v4085_v39  ;;  %v9535_v42 = vpack.c.bf16 %v5365_v40, %v5365_v40  ;;  %v4087_v43 = vpop.f32.mrb[255].mxu0  ;;  %v5367_v44 = vpop.f32.mrb[255].mxu1 }
 0x513   : > { %7673 = vst.msk [vmem:[%s10104_s26 + $0x3fc] sm:$0xf] %vm7417_vm2, %v9279_v41  ;;  %7929 = vst.msk [vmem:[%s10104_s26 + $0x7fc] sm:$0xf] %vm7417_vm2, %v9535_v42 }
 0x514 PF: > { %s12_s9 = sadd.s32 1, %s9624_s9  }
 0x515   : > { %p9_p4 = scmp.ge.s32.totalorder %s12_s9, 4  }
 0x517   :  { %11 = sbr.rel (!%p9_p4) target bundleno = 1 (0x1), region = 58 }

</bundles_post_ra>
